<compile_context>
chip_gen: v6e
topology: v6e:2x2x1
jax: 0.10.0
libtpu: 0.0.40
codegen_flags: <defaults>
</compile_context>

<pallas_src>
import functools

import jax
import jax.numpy as jnp
import numpy as np
from jax import lax
from jax.experimental import pallas as pl
from jax.experimental.pallas import tpu as pltpu

# ---- config (CFG.N_EMBD, CFG.MLP_HIDDEN_DIM) ----
D = 128            # N_EMBD
H = 256            # MLP_HIDDEN_DIM
T = 8              # tokens per sequence (number of RNN-cell forward calls)
EPS = 1e-5         # nn.LayerNorm default eps
N_SCAN = 3         # ceil(log2(T)) prefix-scan steps

# rows of the raw per-channel parameter array (N_CHAN, D)
LN1_G, LN1_B, LN2_G, LN2_B = 0, 1, 2, 3
KM, VM, RM = 4, 5, 6                      # attention key/value/receptance Mixer weights
LOG_GAIN, LOG_DECAY = 7, 8                # WKVMemory params
MM, MR2 = 9, 10                           # GatedMLP mlp_mixer / receptance_mixer weights
N_CHAN = 11

# slices of the packed (5, D, D) weight stack
WK, WV, WR, WO, WR2 = 0, 1, 2, 3, 4       # attn key/value/receptance/output, mlp receptance


# ------------------------------ Pallas kernel ------------------------------
def rwkv_kernel(x_ref, cp_ref, sp_ref, wkvr_ref, wo_ref, wmlp_ref, wmv_ref, o_ref):
    """Processes one (M_TILE, D) block of flattened (batch*time) rows."""
    x = x_ref[...]                                   # (M, D) f32 activations
    cp = cp_ref[...]                                 # (4, D)  LN gamma/beta rows
    sp = sp_ref[...]                                 # (N_SCAN+1, 2D) decay powers + gain
    M_, D_ = x.shape

    # time index of each row within its sequence (rows are (b, t) with t fastest)
    row_t = lax.broadcasted_iota(jnp.int32, (M_, 2 * D_), 0) % T

    def ln_row(i):                                   # (1, D) row, broadcasts over M
        return cp[i:i + 1, :]

    def layernorm(v, g, b):
        mu = jnp.mean(v, axis=-1, keepdims=True)
        var = jnp.mean((v - mu) ** 2, axis=-1, keepdims=True)
        return (v - mu) * lax.rsqrt(var + EPS) * g + b

    zpad = jnp.zeros((T, 2 * D_), jnp.float32)       # hoisted zero rows for all shifts

    def tshift(v, s):
        # row (b, t) <- row (b, t - s); rows with t < s become zero
        # (matches the fresh-module Mixer / WKVMemory zero buffers).
        w = v.shape[-1]
        shifted = jnp.concatenate([zpad[:s, :w], v[:M_ - s, :]], axis=0)
        return jnp.where(row_t[:, :w] >= s, shifted, 0.0)

    # ---------------- AttentionBlock (time mixing), batched over rows ----------------
    x1 = layernorm(x, ln_row(LN1_G), ln_row(LN1_B))                  # (M, D)
    x1_cat = jnp.concatenate([x1, tshift(x1, 1)], axis=-1)           # (M, 2D)
    # one fused bf16 matmul -> [keys | values | receptances]; mixing folded into weights
    kvr = jnp.dot(x1_cat.astype(jnp.bfloat16), wkvr_ref[...],
                  preferred_element_type=jnp.float32)                # (M, 3D)
    keys = kvr[:, :D_]
    vals = kvr[:, D_:2 * D_]
    rec = kvr[:, 2 * D_:]

    imp = jnp.exp(keys)                                              # importances
    cn = jnp.concatenate([imp * vals, imp], axis=-1)                 # [contents | normalizer] updates
    cn0 = cn
    # fused Hillis-Steele prefix scan: c_t = sum_{s<=t} decay^(t-s) * u_s (per channel)
    for k in range(N_SCAN):
        s = 1 << k
        cn = cn + sp[k:k + 1, :] * tshift(cn, s)

    num_den = cn + sp[N_SCAN:N_SCAN + 1, :] * cn0                    # + gain * latest update
    den = num_den[:, D_:]
    r = pl.reciprocal(den, approx=True)                              # EUP vrcp
    r = r * (2.0 - den * r)                                          # one Newton refinement
    wkv = num_den[:, :D_] * r

    rwkv = jax.nn.sigmoid(rec) * wkv
    x_att = x + jnp.dot(rwkv.astype(jnp.bfloat16), wo_ref[...],
                        preferred_element_type=jnp.float32)

    # ---------------- GatedMLP (channel mixing), batched over rows ----------------
    x2 = layernorm(x_att, ln_row(LN2_G), ln_row(LN2_B))
    x2_cat = jnp.concatenate([x2, tshift(x2, 1)], axis=-1)           # (M, 2D)
    hr = jnp.dot(x2_cat.astype(jnp.bfloat16), wmlp_ref[...],
                 preferred_element_type=jnp.float32)                 # (M, H+D)
    H_ = hr.shape[-1] - D_
    hid = jnp.maximum(hr[:, :H_], 0.0)
    hid = hid * hid                                                  # SquaredReLU
    rec2 = hr[:, H_:]
    mlp = jnp.dot(hid.astype(jnp.bfloat16), wmv_ref[...],
                  preferred_element_type=jnp.float32)

    o_ref[...] = x_att + jax.nn.sigmoid(rec2) * mlp


# ------------------------- once-per-weight-load prep -------------------------
def prepare_rwkv_params(chans, w5, wmk, wmv):
    """Run ONCE per weight load (NOT per forward): fold mixer weights into the
    projection matrices, cast weights to bf16, precompute decay powers / gain."""
    def fold_mix(m, w):
        # mix(x, x_prev, m) @ w  ==  [x | x_prev] @ concat([m*w, (1-m)*w], axis=0)
        return jnp.concatenate([m[:, None] * w, (1.0 - m)[:, None] * w], axis=0)

    w_kvr = jnp.concatenate([fold_mix(chans[KM], w5[WK]),
                             fold_mix(chans[VM], w5[WV]),
                             fold_mix(chans[RM], w5[WR])], axis=1).astype(jnp.bfloat16)
    w_mlp = jnp.concatenate([fold_mix(chans[MM], wmk),
                             fold_mix(chans[MR2], w5[WR2])], axis=1).astype(jnp.bfloat16)
    w_o = w5[WO].astype(jnp.bfloat16)
    w_mv = wmv.astype(jnp.bfloat16)

    chanp = jnp.stack([chans[LN1_G], chans[LN1_B], chans[LN2_G], chans[LN2_B]])

    decay = jnp.exp(-jnp.exp(chans[LOG_DECAY]))
    gain = jnp.exp(chans[LOG_GAIN]) - 1.0
    rows, d = [], decay
    for _ in range(N_SCAN):
        rows.append(jnp.concatenate([d, d]))          # decay^(2^k), tiled over [c | n] halves
        d = d * d
    rows.append(jnp.concatenate([gain, gain]))
    scanp = jnp.stack(rows).astype(jnp.float32)       # (N_SCAN + 1, 2D)
    return chanp, scanp, w_kvr, w_o, w_mlp, w_mv


# ------------------------------- per-call path -------------------------------
@functools.partial(jax.jit, static_argnames=("m_tile",))
def rwkv_block_pallas(x_bt, chanp, scanp, w_kvr, w_o, w_mlp, w_mv, *, m_tile=256):
    """x_bt: (B*T, D) flattened activations, sequences contiguous along rows."""
    M, D_ = x_bt.shape
    H_ = w_mv.shape[0]
    m_tile = min(m_tile, M)
    assert M % m_tile == 0 and m_tile % T == 0 and m_tile % 8 == 0

    flops = 2 * M * (2 * D_ * 3 * D_ + D_ * D_ + 2 * D_ * (H_ + D_) + H_ * D_)
    bytes_accessed = (2 * M * D_ * 4                                      # activations in + out
                      + 2 * (w_kvr.size + w_o.size + w_mlp.size + w_mv.size)   # bf16 weights
                      + 4 * (chanp.size + scanp.size))
    cost = pl.CostEstimate(flops=flops, transcendentals=5 * M * D_,
                           bytes_accessed=bytes_accessed)

    return pl.pallas_call(
        rwkv_kernel,
        out_shape=jax.ShapeDtypeStruct((M, D_), jnp.float32),
        grid_spec=pltpu.PrefetchScalarGridSpec(
            num_scalar_prefetch=0,
            grid=(M // m_tile,),                       # batched rows; weights stay VMEM-resident
            in_specs=[
                pl.BlockSpec((m_tile, D_), lambda i: (i, 0)),
                pl.BlockSpec(chanp.shape, lambda i: (0, 0)),
                pl.BlockSpec(scanp.shape, lambda i: (0, 0)),
                pl.BlockSpec(w_kvr.shape, lambda i: (0, 0)),
                pl.BlockSpec(w_o.shape, lambda i: (0, 0)),
                pl.BlockSpec(w_mlp.shape, lambda i: (0, 0)),
                pl.BlockSpec(w_mv.shape, lambda i: (0, 0)),
            ],
            out_specs=pl.BlockSpec((m_tile, D_), lambda i: (i, 0)),
        ),
        compiler_params=pltpu.CompilerParams(
            dimension_semantics=("parallel",)),        # v7x: shard batch across both TCs
        cost_estimate=cost,
    )(x_bt, chanp, scanp, w_kvr, w_o, w_mlp, w_mv)


# ---------------- pure-JAX reference (token-by-token, like the nn.Module) ----------------
def rwkv_block_ref(x_seq, chans, w5, wmk, wmv):
    """Sequential RNN-cell reference for ONE sequence (T, D)."""
    def layernorm(v, g, b):
        mu = jnp.mean(v)
        var = jnp.mean((v - mu) ** 2)
        return (v - mu) / jnp.sqrt(var + EPS) * g + b

    def mixf(cur, last, w):
        return cur * w + last * (1.0 - w)

    decay = jnp.exp(-jnp.exp(chans[LOG_DECAY]))
    gain = jnp.exp(chans[LOG_GAIN]) - 1.0

    def step(state, x):
        lk, lv, lr, c, n, lm, lr2 = state
        x1 = layernorm(x, chans[LN1_G], chans[LN1_B])
        keys = mixf(x1, lk, chans[KM]) @ w5[WK]
        vals = mixf(x1, lv, chans[VM]) @ w5[WV]
        rec = mixf(x1, lr, chans[RM]) @ w5[WR]
        imp = jnp.exp(keys)
        cu, nu = imp * vals, imp
        c = c * decay + cu
        n = n * decay + nu
        wkv = (c + gain * cu) / (n + gain * nu)
        x = x + (jax.nn.sigmoid(rec) * wkv) @ w5[WO]
        x2 = layernorm(x, chans[LN2_G], chans[LN2_B])
        h = jnp.maximum(mixf(x2, lm, chans[MM]) @ wmk, 0.0) ** 2
        rec2 = mixf(x2, lr2, chans[MR2]) @ w5[WR2]
        out = x + jax.nn.sigmoid(rec2) * (h @ wmv)
        return (x1, x1, x1, c, n, x2, x2), out

    init = tuple(jnp.zeros((x_seq.shape[1],), jnp.float32) for _ in range(7))
    _, ys = lax.scan(step, init, x_seq)
    return ys


if __name__ == "__main__":
    B = 64                      # independent sequences (32 per 256-row tile)
    key = jax.random.PRNGKey(0)
    k_x, k_ch, k_w5, k_mk, k_mv = jax.random.split(key, 5)

    x = jax.random.normal(k_x, (B, T, D), jnp.float32)

    # Per-channel parameters: small deterministic values so all paths are non-degenerate.
    chans = 0.3 * jax.random.normal(k_ch, (N_CHAN, D), jnp.float32)
    chans = chans.at[LN1_G].set(1.0 + 0.1 * chans[LN1_G])   # LayerNorm gamma ~ 1
    chans = chans.at[LN2_G].set(1.0 + 0.1 * chans[LN2_G])

    # Linear weights, stored pre-transposed as (in, out); small scale keeps exp(keys) tame.
    w5 = 0.05 * jax.random.normal(k_w5, (5, D, D), jnp.float32)
    wmk = 0.05 * jax.random.normal(k_mk, (D, H), jnp.float32)
    wmv = 0.05 * jax.random.normal(k_mv, (H, D), jnp.float32)

    # Weight folding / constant transcendentals: once per weight load, not per forward.
    params = prepare_rwkv_params(chans, w5, wmk, wmv)
    params = jax.tree_util.tree_map(jax.block_until_ready, params)

    out = rwkv_block_pallas(x.reshape(B * T, D), *params)
    out = jax.block_until_ready(out).reshape(B, T, D)

    ref = jax.block_until_ready(
        jax.vmap(lambda s: rwkv_block_ref(s, chans, w5, wmk, wmv))(x))

    # bf16 weights + approx-reciprocal(+Newton) -> slightly relaxed parity vs f32 reference.
    np.testing.assert_allclose(np.asarray(out), np.asarray(ref), rtol=2e-2, atol=2e-2)
    print("KERNEL_OK")
</pallas_src>

<mosaic_0001>
module attributes {stable_mosaic.version = 11 : i64} {
  func.func @rwkv_kernel(%arg0: i32, %arg1: memref<256x128xf32, #tpu.memory_space<vmem>>, %arg2: memref<4x128xf32, #tpu.memory_space<vmem>>, %arg3: memref<4x256xf32, #tpu.memory_space<vmem>>, %arg4: memref<256x384xbf16, #tpu.memory_space<vmem>>, %arg5: memref<128x128xbf16, #tpu.memory_space<vmem>>, %arg6: memref<256x384xbf16, #tpu.memory_space<vmem>>, %arg7: memref<256x128xbf16, #tpu.memory_space<vmem>>, %arg8: memref<256x128xf32, #tpu.memory_space<vmem>>) attributes {dimension_semantics = [#tpu.dimension_semantics<parallel>], iteration_bounds = array<i64: 2>, scalar_prefetch = 0 : i64, scratch_operands = 0 : i64, tpu.core_type = #tpu.core_type<tc>, window_params = [{transform_indices = @transform_0, window_bounds = array<i64: 256, 128>}, {pipeline_mode = #tpu.pipeline_mode<synchronous>, transform_indices = @transform_1, window_bounds = array<i64: 4, 128>}, {pipeline_mode = #tpu.pipeline_mode<synchronous>, transform_indices = @transform_2, window_bounds = array<i64: 4, 256>}, {pipeline_mode = #tpu.pipeline_mode<synchronous>, transform_indices = @transform_3, window_bounds = array<i64: 256, 384>}, {pipeline_mode = #tpu.pipeline_mode<synchronous>, transform_indices = @transform_4, window_bounds = array<i64: 128, 128>}, {pipeline_mode = #tpu.pipeline_mode<synchronous>, transform_indices = @transform_5, window_bounds = array<i64: 256, 384>}, {pipeline_mode = #tpu.pipeline_mode<synchronous>, transform_indices = @transform_6, window_bounds = array<i64: 256, 128>}, {transform_indices = @transform_7, window_bounds = array<i64: 256, 128>}]} {
    %c0 = arith.constant 0 : index
    %c0_0 = arith.constant 0 : index
    %0 = vector.load %arg1[%c0, %c0_0] : memref<256x128xf32, #tpu.memory_space<vmem>>, vector<256x128xf32>
    %c0_1 = arith.constant 0 : index
    %c0_2 = arith.constant 0 : index
    %1 = vector.load %arg2[%c0_1, %c0_2] : memref<4x128xf32, #tpu.memory_space<vmem>>, vector<4x128xf32>
    %c0_3 = arith.constant 0 : index
    %c0_4 = arith.constant 0 : index
    %2 = vector.load %arg3[%c0_3, %c0_4] : memref<4x256xf32, #tpu.memory_space<vmem>>, vector<4x256xf32>
    %3 = tpu.iota {dimensions = array<i32: 0>} : vector<256x256xi32>
    %c8_i32 = arith.constant 8 : i32
    %c0_i32 = arith.constant 0 : i32
    %4 = arith.cmpi eq, %c8_i32, %c0_i32 : i32
    %c1_i32 = arith.constant 1 : i32
    %5 = arith.select %4, %c1_i32, %c8_i32 : i32
    %6 = vector.broadcast %5 : i32 to vector<256x256xi32>
    %7 = arith.remsi %3, %6 : vector<256x256xi32>
    %c0_i32_5 = arith.constant 0 : i32
    %8 = vector.broadcast %c0_i32_5 : i32 to vector<256x256xi32>
    %9 = arith.cmpi ne, %7, %8 : vector<256x256xi32>
    %c0_i32_6 = arith.constant 0 : i32
    %10 = vector.broadcast %c0_i32_6 : i32 to vector<256x256xi32>
    %11 = arith.cmpi slt, %7, %10 : vector<256x256xi32>
    %c0_i32_7 = arith.constant 0 : i32
    %12 = arith.cmpi slt, %5, %c0_i32_7 : i32
    %13 = vector.broadcast %12 : i1 to vector<256x256xi1>
    %14 = vector.broadcast %13 : vector<256x256xi1> to vector<256x256xi1>
    %15 = arith.xori %11, %14 : vector<256x256xi1>
    %16 = arith.andi %15, %9 : vector<256x256xi1>
    %17 = vector.broadcast %5 : i32 to vector<256x256xi32>
    %18 = arith.addi %7, %17 : vector<256x256xi32>
    %19 = arith.select %16, %18, %7 : vector<256x256xi1>, vector<256x256xi32>
    %cst = arith.constant 0.000000e+00 : f32
    %20 = vector.broadcast %cst : f32 to vector<8x256xf32>
    %21 = vector.extract_strided_slice %1 {offsets = [0, 0], sizes = [1, 128], strides = [1, 1]} : vector<4x128xf32> to vector<1x128xf32>
    %22 = vector.extract_strided_slice %1 {offsets = [1, 0], sizes = [1, 128], strides = [1, 1]} : vector<4x128xf32> to vector<1x128xf32>
    %cst_8 = arith.constant dense<0.000000e+00> : vector<256xf32>
    %23 = vector.multi_reduction <add>, %0, %cst_8 [1] : vector<256x128xf32> to vector<256xf32>
    %24 = vector.shape_cast %23 : vector<256xf32> to vector<256x1xf32>
    %cst_9 = arith.constant 1.280000e+02 : f32
    %25 = vector.broadcast %cst_9 : f32 to vector<256x1xf32>
    %26 = arith.divf %24, %25 : vector<256x1xf32>
    %27 = vector.broadcast %26 : vector<256x1xf32> to vector<256x128xf32>
    %28 = arith.subf %0, %27 : vector<256x128xf32>
    %29 = arith.mulf %28, %28 : vector<256x128xf32>
    %cst_10 = arith.constant dense<0.000000e+00> : vector<256xf32>
    %30 = vector.multi_reduction <add>, %29, %cst_10 [1] : vector<256x128xf32> to vector<256xf32>
    %31 = vector.shape_cast %30 : vector<256xf32> to vector<256x1xf32>
    %cst_11 = arith.constant 1.280000e+02 : f32
    %32 = vector.broadcast %cst_11 : f32 to vector<256x1xf32>
    %33 = arith.divf %31, %32 : vector<256x1xf32>
    %34 = vector.broadcast %26 : vector<256x1xf32> to vector<256x128xf32>
    %35 = arith.subf %0, %34 : vector<256x128xf32>
    %cst_12 = arith.constant 9.99999974E-6 : f32
    %36 = vector.broadcast %cst_12 : f32 to vector<256x1xf32>
    %37 = arith.addf %33, %36 : vector<256x1xf32>
    %38 = math.rsqrt %37 : vector<256x1xf32>
    %39 = vector.broadcast %38 : vector<256x1xf32> to vector<256x128xf32>
    %40 = arith.mulf %35, %39 : vector<256x128xf32>
    %41 = vector.broadcast %21 : vector<1x128xf32> to vector<256x128xf32>
    %42 = arith.mulf %40, %41 : vector<256x128xf32>
    %43 = vector.broadcast %22 : vector<1x128xf32> to vector<256x128xf32>
    %44 = arith.addf %42, %43 : vector<256x128xf32>
    %45 = vector.extract_strided_slice %20 {offsets = [0, 0], sizes = [1, 128], strides = [1, 1]} : vector<8x256xf32> to vector<1x128xf32>
    %46 = vector.extract_strided_slice %44 {offsets = [0, 0], sizes = [255, 128], strides = [1, 1]} : vector<256x128xf32> to vector<255x128xf32>
    %47 = tpu.concatenate %45, %46 in 0 : vector<1x128xf32>, vector<255x128xf32> -> vector<256x128xf32>
    %48 = vector.extract_strided_slice %19 {offsets = [0, 0], sizes = [256, 128], strides = [1, 1]} : vector<256x256xi32> to vector<256x128xi32>
    %c1_i32_13 = arith.constant 1 : i32
    %49 = vector.broadcast %c1_i32_13 : i32 to vector<256x128xi32>
    %50 = arith.cmpi sge, %48, %49 : vector<256x128xi32>
    %cst_14 = arith.constant 0.000000e+00 : f32
    %51 = vector.broadcast %cst_14 : f32 to vector<256x128xf32>
    %52 = arith.select %50, %47, %51 : vector<256x128xi1>, vector<256x128xf32>
    %53 = tpu.concatenate %44, %52 in 1 : vector<256x128xf32>, vector<256x128xf32> -> vector<256x256xf32>
    %54 = arith.truncf %53 : vector<256x256xf32> to vector<256x256xbf16>
    %c0_15 = arith.constant 0 : index
    %c0_16 = arith.constant 0 : index
    %55 = vector.load %arg4[%c0_15, %c0_16] : memref<256x384xbf16, #tpu.memory_space<vmem>>, vector<256x384xbf16>
    %cst_17 = arith.constant dense<0.000000e+00> : vector<256x384xf32>
    %56 = tpu.matmul %54, %55, %cst_17 {dimension_numbers = #tpu.dot_dimension_numbers<[1], [0], [0], [1], [0, 0, 1, 1], [], []>} : vector<256x256xbf16>, vector<256x384xbf16>, vector<256x384xf32> -> vector<256x384xf32>
    %57 = vector.extract_strided_slice %56 {offsets = [0, 0], sizes = [256, 128], strides = [1, 1]} : vector<256x384xf32> to vector<256x128xf32>
    %58 = vector.extract_strided_slice %56 {offsets = [0, 128], sizes = [256, 128], strides = [1, 1]} : vector<256x384xf32> to vector<256x128xf32>
    %59 = vector.extract_strided_slice %56 {offsets = [0, 256], sizes = [256, 128], strides = [1, 1]} : vector<256x384xf32> to vector<256x128xf32>
    %60 = math.exp %57 : vector<256x128xf32>
    %61 = arith.mulf %60, %58 : vector<256x128xf32>
    %62 = tpu.concatenate %61, %60 in 1 : vector<256x128xf32>, vector<256x128xf32> -> vector<256x256xf32>
    %63 = vector.extract_strided_slice %2 {offsets = [0, 0], sizes = [1, 256], strides = [1, 1]} : vector<4x256xf32> to vector<1x256xf32>
    %64 = vector.extract_strided_slice %20 {offsets = [0, 0], sizes = [1, 256], strides = [1, 1]} : vector<8x256xf32> to vector<1x256xf32>
    %65 = vector.extract_strided_slice %62 {offsets = [0, 0], sizes = [255, 256], strides = [1, 1]} : vector<256x256xf32> to vector<255x256xf32>
    %66 = tpu.concatenate %64, %65 in 0 : vector<1x256xf32>, vector<255x256xf32> -> vector<256x256xf32>
    %c1_i32_18 = arith.constant 1 : i32
    %67 = vector.broadcast %c1_i32_18 : i32 to vector<256x256xi32>
    %68 = arith.cmpi sge, %19, %67 : vector<256x256xi32>
    %cst_19 = arith.constant 0.000000e+00 : f32
    %69 = vector.broadcast %cst_19 : f32 to vector<256x256xf32>
    %70 = arith.select %68, %66, %69 : vector<256x256xi1>, vector<256x256xf32>
    %71 = vector.broadcast %63 : vector<1x256xf32> to vector<256x256xf32>
    %72 = arith.mulf %71, %70 : vector<256x256xf32>
    %73 = arith.addf %62, %72 : vector<256x256xf32>
    %74 = vector.extract_strided_slice %2 {offsets = [1, 0], sizes = [1, 256], strides = [1, 1]} : vector<4x256xf32> to vector<1x256xf32>
    %75 = vector.extract_strided_slice %20 {offsets = [0, 0], sizes = [2, 256], strides = [1, 1]} : vector<8x256xf32> to vector<2x256xf32>
    %76 = vector.extract_strided_slice %73 {offsets = [0, 0], sizes = [254, 256], strides = [1, 1]} : vector<256x256xf32> to vector<254x256xf32>
    %77 = tpu.concatenate %75, %76 in 0 : vector<2x256xf32>, vector<254x256xf32> -> vector<256x256xf32>
    %c2_i32 = arith.constant 2 : i32
    %78 = vector.broadcast %c2_i32 : i32 to vector<256x256xi32>
    %79 = arith.cmpi sge, %19, %78 : vector<256x256xi32>
    %cst_20 = arith.constant 0.000000e+00 : f32
    %80 = vector.broadcast %cst_20 : f32 to vector<256x256xf32>
    %81 = arith.select %79, %77, %80 : vector<256x256xi1>, vector<256x256xf32>
    %82 = vector.broadcast %74 : vector<1x256xf32> to vector<256x256xf32>
    %83 = arith.mulf %82, %81 : vector<256x256xf32>
    %84 = arith.addf %73, %83 : vector<256x256xf32>
    %85 = vector.extract_strided_slice %2 {offsets = [2, 0], sizes = [1, 256], strides = [1, 1]} : vector<4x256xf32> to vector<1x256xf32>
    %86 = vector.extract_strided_slice %20 {offsets = [0, 0], sizes = [4, 256], strides = [1, 1]} : vector<8x256xf32> to vector<4x256xf32>
    %87 = vector.extract_strided_slice %84 {offsets = [0, 0], sizes = [252, 256], strides = [1, 1]} : vector<256x256xf32> to vector<252x256xf32>
    %88 = tpu.concatenate %86, %87 in 0 : vector<4x256xf32>, vector<252x256xf32> -> vector<256x256xf32>
    %c4_i32 = arith.constant 4 : i32
    %89 = vector.broadcast %c4_i32 : i32 to vector<256x256xi32>
    %90 = arith.cmpi sge, %19, %89 : vector<256x256xi32>
    %cst_21 = arith.constant 0.000000e+00 : f32
    %91 = vector.broadcast %cst_21 : f32 to vector<256x256xf32>
    %92 = arith.select %90, %88, %91 : vector<256x256xi1>, vector<256x256xf32>
    %93 = vector.broadcast %85 : vector<1x256xf32> to vector<256x256xf32>
    %94 = arith.mulf %93, %92 : vector<256x256xf32>
    %95 = arith.addf %84, %94 : vector<256x256xf32>
    %96 = vector.extract_strided_slice %2 {offsets = [3, 0], sizes = [1, 256], strides = [1, 1]} : vector<4x256xf32> to vector<1x256xf32>
    %97 = vector.broadcast %96 : vector<1x256xf32> to vector<256x256xf32>
    %98 = arith.mulf %97, %62 : vector<256x256xf32>
    %99 = arith.addf %95, %98 : vector<256x256xf32>
    %100 = vector.extract_strided_slice %99 {offsets = [0, 128], sizes = [256, 128], strides = [1, 1]} : vector<256x256xf32> to vector<256x128xf32>
    %101 = tpu.reciprocal %100 {approx = true} : vector<256x128xf32> -> vector<256x128xf32>
    %102 = arith.mulf %100, %101 : vector<256x128xf32>
    %cst_22 = arith.constant 2.000000e+00 : f32
    %103 = vector.broadcast %cst_22 : f32 to vector<256x128xf32>
    %104 = arith.subf %103, %102 : vector<256x128xf32>
    %105 = arith.mulf %101, %104 : vector<256x128xf32>
    %106 = vector.extract_strided_slice %99 {offsets = [0, 0], sizes = [256, 128], strides = [1, 1]} : vector<256x256xf32> to vector<256x128xf32>
    %107 = arith.mulf %106, %105 : vector<256x128xf32>
    %108 = arith.negf %59 : vector<256x128xf32>
    %109 = math.exp %108 : vector<256x128xf32>
    %cst_23 = arith.constant 1.000000e+00 : f32
    %110 = vector.broadcast %cst_23 : f32 to vector<256x128xf32>
    %111 = arith.addf %110, %109 : vector<256x128xf32>
    %112 = arith.divf %110, %111 : vector<256x128xf32>
    %113 = arith.mulf %112, %107 : vector<256x128xf32>
    %114 = arith.truncf %113 : vector<256x128xf32> to vector<256x128xbf16>
    %c0_24 = arith.constant 0 : index
    %c0_25 = arith.constant 0 : index
    %115 = vector.load %arg5[%c0_24, %c0_25] : memref<128x128xbf16, #tpu.memory_space<vmem>>, vector<128x128xbf16>
    %cst_26 = arith.constant dense<0.000000e+00> : vector<256x128xf32>
    %116 = tpu.matmul %114, %115, %cst_26 {dimension_numbers = #tpu.dot_dimension_numbers<[1], [0], [0], [1], [0, 0, 1, 1], [], []>} : vector<256x128xbf16>, vector<128x128xbf16>, vector<256x128xf32> -> vector<256x128xf32>
    %117 = arith.addf %0, %116 : vector<256x128xf32>
    %118 = vector.extract_strided_slice %1 {offsets = [2, 0], sizes = [1, 128], strides = [1, 1]} : vector<4x128xf32> to vector<1x128xf32>
    %119 = vector.extract_strided_slice %1 {offsets = [3, 0], sizes = [1, 128], strides = [1, 1]} : vector<4x128xf32> to vector<1x128xf32>
    %cst_27 = arith.constant dense<0.000000e+00> : vector<256xf32>
    %120 = vector.multi_reduction <add>, %117, %cst_27 [1] : vector<256x128xf32> to vector<256xf32>
    %121 = vector.shape_cast %120 : vector<256xf32> to vector<256x1xf32>
    %cst_28 = arith.constant 1.280000e+02 : f32
    %122 = vector.broadcast %cst_28 : f32 to vector<256x1xf32>
    %123 = arith.divf %121, %122 : vector<256x1xf32>
    %124 = vector.broadcast %123 : vector<256x1xf32> to vector<256x128xf32>
    %125 = arith.subf %117, %124 : vector<256x128xf32>
    %126 = arith.mulf %125, %125 : vector<256x128xf32>
    %cst_29 = arith.constant dense<0.000000e+00> : vector<256xf32>
    %127 = vector.multi_reduction <add>, %126, %cst_29 [1] : vector<256x128xf32> to vector<256xf32>
    %128 = vector.shape_cast %127 : vector<256xf32> to vector<256x1xf32>
    %cst_30 = arith.constant 1.280000e+02 : f32
    %129 = vector.broadcast %cst_30 : f32 to vector<256x1xf32>
    %130 = arith.divf %128, %129 : vector<256x1xf32>
    %131 = vector.broadcast %123 : vector<256x1xf32> to vector<256x128xf32>
    %132 = arith.subf %117, %131 : vector<256x128xf32>
    %cst_31 = arith.constant 9.99999974E-6 : f32
    %133 = vector.broadcast %cst_31 : f32 to vector<256x1xf32>
    %134 = arith.addf %130, %133 : vector<256x1xf32>
    %135 = math.rsqrt %134 : vector<256x1xf32>
    %136 = vector.broadcast %135 : vector<256x1xf32> to vector<256x128xf32>
    %137 = arith.mulf %132, %136 : vector<256x128xf32>
    %138 = vector.broadcast %118 : vector<1x128xf32> to vector<256x128xf32>
    %139 = arith.mulf %137, %138 : vector<256x128xf32>
    %140 = vector.broadcast %119 : vector<1x128xf32> to vector<256x128xf32>
    %141 = arith.addf %139, %140 : vector<256x128xf32>
    %142 = vector.extract_strided_slice %20 {offsets = [0, 0], sizes = [1, 128], strides = [1, 1]} : vector<8x256xf32> to vector<1x128xf32>
    %143 = vector.extract_strided_slice %141 {offsets = [0, 0], sizes = [255, 128], strides = [1, 1]} : vector<256x128xf32> to vector<255x128xf32>
    %144 = tpu.concatenate %142, %143 in 0 : vector<1x128xf32>, vector<255x128xf32> -> vector<256x128xf32>
    %145 = vector.extract_strided_slice %19 {offsets = [0, 0], sizes = [256, 128], strides = [1, 1]} : vector<256x256xi32> to vector<256x128xi32>
    %c1_i32_32 = arith.constant 1 : i32
    %146 = vector.broadcast %c1_i32_32 : i32 to vector<256x128xi32>
    %147 = arith.cmpi sge, %145, %146 : vector<256x128xi32>
    %cst_33 = arith.constant 0.000000e+00 : f32
    %148 = vector.broadcast %cst_33 : f32 to vector<256x128xf32>
    %149 = arith.select %147, %144, %148 : vector<256x128xi1>, vector<256x128xf32>
    %150 = tpu.concatenate %141, %149 in 1 : vector<256x128xf32>, vector<256x128xf32> -> vector<256x256xf32>
    %151 = arith.truncf %150 : vector<256x256xf32> to vector<256x256xbf16>
    %c0_34 = arith.constant 0 : index
    %c0_35 = arith.constant 0 : index
    %152 = vector.load %arg6[%c0_34, %c0_35] : memref<256x384xbf16, #tpu.memory_space<vmem>>, vector<256x384xbf16>
    %cst_36 = arith.constant dense<0.000000e+00> : vector<256x384xf32>
    %153 = tpu.matmul %151, %152, %cst_36 {dimension_numbers = #tpu.dot_dimension_numbers<[1], [0], [0], [1], [0, 0, 1, 1], [], []>} : vector<256x256xbf16>, vector<256x384xbf16>, vector<256x384xf32> -> vector<256x384xf32>
    %154 = vector.extract_strided_slice %153 {offsets = [0, 0], sizes = [256, 256], strides = [1, 1]} : vector<256x384xf32> to vector<256x256xf32>
    %cst_37 = arith.constant 0.000000e+00 : f32
    %155 = vector.broadcast %cst_37 : f32 to vector<256x256xf32>
    %156 = arith.maximumf %154, %155 : vector<256x256xf32>
    %157 = arith.mulf %156, %156 : vector<256x256xf32>
    %158 = vector.extract_strided_slice %153 {offsets = [0, 256], sizes = [256, 128], strides = [1, 1]} : vector<256x384xf32> to vector<256x128xf32>
    %159 = arith.truncf %157 : vector<256x256xf32> to vector<256x256xbf16>
    %c0_38 = arith.constant 0 : index
    %c0_39 = arith.constant 0 : index
    %160 = vector.load %arg7[%c0_38, %c0_39] : memref<256x128xbf16, #tpu.memory_space<vmem>>, vector<256x128xbf16>
    %cst_40 = arith.constant dense<0.000000e+00> : vector<256x128xf32>
    %161 = tpu.matmul %159, %160, %cst_40 {dimension_numbers = #tpu.dot_dimension_numbers<[1], [0], [0], [1], [0, 0, 1, 1], [], []>} : vector<256x256xbf16>, vector<256x128xbf16>, vector<256x128xf32> -> vector<256x128xf32>
    %162 = arith.negf %158 : vector<256x128xf32>
    %163 = math.exp %162 : vector<256x128xf32>
    %cst_41 = arith.constant 1.000000e+00 : f32
    %164 = vector.broadcast %cst_41 : f32 to vector<256x128xf32>
    %165 = arith.addf %164, %163 : vector<256x128xf32>
    %166 = arith.divf %164, %165 : vector<256x128xf32>
    %167 = arith.mulf %166, %161 : vector<256x128xf32>
    %168 = arith.addf %117, %167 : vector<256x128xf32>
    %c0_42 = arith.constant 0 : index
    %c0_43 = arith.constant 0 : index
    %169 = vector.load %arg8[%c0_42, %c0_43] : memref<256x128xf32, #tpu.memory_space<vmem>>, vector<256x128xf32>
    tpu.vector_store %arg8[%c0_42, %c0_43], %168 {strides = array<i32>} : memref<256x128xf32, #tpu.memory_space<vmem>>, vector<256x128xf32>,
    return
  }
  func.func @transform_0(%arg0: i32) -> (i32, i32) {
    %c0_i32 = arith.constant 0 : i32
    %c0_i32_0 = arith.constant 0 : i32
    return %arg0, %c0_i32 : i32, i32
  }
  func.func @transform_1(%arg0: i32) -> (i32, i32) {
    %c0_i32 = arith.constant 0 : i32
    %c0_i32_0 = arith.constant 0 : i32
    %c0_i32_1 = arith.constant 0 : i32
    return %c0_i32, %c0_i32_0 : i32, i32
  }
  func.func @transform_2(%arg0: i32) -> (i32, i32) {
    %c0_i32 = arith.constant 0 : i32
    %c0_i32_0 = arith.constant 0 : i32
    %c0_i32_1 = arith.constant 0 : i32
    return %c0_i32, %c0_i32_0 : i32, i32
  }
  func.func @transform_3(%arg0: i32) -> (i32, i32) {
    %c0_i32 = arith.constant 0 : i32
    %c0_i32_0 = arith.constant 0 : i32
    %c0_i32_1 = arith.constant 0 : i32
    return %c0_i32, %c0_i32_0 : i32, i32
  }
  func.func @transform_4(%arg0: i32) -> (i32, i32) {
    %c0_i32 = arith.constant 0 : i32
    %c0_i32_0 = arith.constant 0 : i32
    %c0_i32_1 = arith.constant 0 : i32
    return %c0_i32, %c0_i32_0 : i32, i32
  }
  func.func @transform_5(%arg0: i32) -> (i32, i32) {
    %c0_i32 = arith.constant 0 : i32
    %c0_i32_0 = arith.constant 0 : i32
    %c0_i32_1 = arith.constant 0 : i32
    return %c0_i32, %c0_i32_0 : i32, i32
  }
  func.func @transform_6(%arg0: i32) -> (i32, i32) {
    %c0_i32 = arith.constant 0 : i32
    %c0_i32_0 = arith.constant 0 : i32
    %c0_i32_1 = arith.constant 0 : i32
    return %c0_i32, %c0_i32_0 : i32, i32
  }
  func.func @transform_7(%arg0: i32) -> (i32, i32) {
    %c0_i32 = arith.constant 0 : i32
    %c0_i32_0 = arith.constant 0 : i32
    return %arg0, %c0_i32 : i32, i32
  }
}

</mosaic_0001>

<bundles_post_ra>
// kernel: rwkv_block_pallas.1
= control target key start
LH: loop header
LB: loop body
LE: loop exit
PB: predicated region body
PF: predicated region fallthrough
CT: control target
= control target key end

     0   :  { %s13270_s0 = inlined_call_operand.hbm [shape: f32[512,128], index: 0, kind: input, shape index: {}]   ;;  %s13271_s1 = inlined_call_operand.hbm [shape: f32[4,128], index: 1, kind: input, shape index: {}]   ;;  %s13272_s2 = inlined_call_operand.hbm [shape: f32[4,256], index: 2, kind: input, shape index: {}]   ;;  %s13273_s3 = inlined_call_operand.hbm [shape: bf16[256,384], index: 3, kind: input, shape index: {}]   ;;  %s13274_s4 = inlined_call_operand.hbm [shape: bf16[128,128], index: 4, kind: input, shape index: {}]   ;;  %s13275_s5 = inlined_call_operand.hbm [shape: bf16[256,384], index: 5, kind: input, shape index: {}]   ;;  %s13276_s6 = inlined_call_operand.hbm [shape: bf16[256,128], index: 6, kind: input, shape index: {}]   ;;  %s13277_s7 = inlined_call_operand.hbm [shape: f32[512,128], index: 7, kind: output, shape index: {}]  }
   0x1   :  { %13528 = sst [smem:[#allocation108_spill]] %s13271_s1 }
   0x2   :  { %12 = vsyncpa [#allocation3], 0 }
   0x3   :  { %14 = vsyncpa [#allocation3 + $0x1], 0 }
   0x4   :  { %15 = vsyncpa [#allocation6], 0 }
   0x5   :  { %16 = vsyncpa [#allocation9], 0 }
   0x6   :  { %17 = vsyncpa [#allocation12], 0 }
   0x7   :  { %18 = vsyncpa [#allocation4], 0 }
   0x8   :  { %20 = vsyncpa [#allocation4 + $0x1], 0  ;;  %s8667_s24 = smov 0   ;;  %s8669_s25 = smov 0  }
   0x9   :  { %s8671_s26 = smov 0   ;;  %s8673_s27 = smov 0  }
   0xa LB: > { %s8611_s28 = smov [#allocation5]   ;;  %s8688_s30 = sadd.s32 4294967295, %s8609_s27   ;;  %s8609_s27 = sphi %s8673_s27, %s14320_s27   ;;  %s8605_s26 = sphi %s8671_s26, %s14319_s26   ;;  %s8601_s25 = sphi %s8669_s25, %s14318_s25   ;;  %s8597_s24 = sphi %s8667_s24, %s14317_s24  }
   0xb   : > { %s222_s29 = sshll.u32 %s8611_s28, 4  ;;  %p6694_p0 = scmp.ge.s32.totalorder %s8609_s27, 1  ;;  %s223_s29 = int_to_ptr.vmem [resolvable:$true] %s222_s29 }
   0xc   : > { %p13278_p1 = scmp.eq.s32.totalorder %s8688_s30, 0  ;;  %p209_p2 = scmp.lt.s32.totalorder %s8609_s27, 3 }
   0xd   : > { %s8612_s9 = smov [#allocation8]   ;;  %s8613_s12 = smov [#allocation11]  }
   0xe   : > { %p8693_p3 = pnand %p6694_p0, %p209_p2  ;;  %s243_s10 = sshll.u32 %s8612_s9, 4  ;;  %s8700_s10 = int_to_ptr.vmem [resolvable:$true] %s243_s10 }
   0xf   : > { %s269_s13 = sshll.u32 %s8613_s12, 4  ;;  %s8360_s15 = scalar_lea.vmem %s223_s29, 64  ;;  %s8708_s13 = int_to_ptr.vmem [resolvable:$true] %s269_s13 }
  0x10   : > { %s13529_s8 = scalar_select %p8693_p3, 1, 0 }
  0x11   : > { %p7565_p5 = pneg %p8693_p3  ;;  %p8361_p8 = scmp.ne.s32.totalorder %s223_s29, %s8360_s15 }
  0x12   : > { %p8368_p11 = scmp.lt.s32.totalorder %s223_s29, %s223_s29  ;;  %p8369_p12 = scmp.lt.s32.totalorder %s8360_s15, %s8360_s15 }
  0x13   : > { %p8704_p6 = pnand %p7565_p5, %p13278_p1 }
  0x14   : > { %p8370_p13 = por %p8369_p12, %p8368_p11 }
  0x15   : > { %p8712_p7 = pneg %p8704_p6 }
  0x17   : > { %p8363_p9 = pnand %p8361_p8, %p8712_p7 }
  0x19   : > { %p8364_p10 = pneg %p8363_p9 }
  0x1b   : > { %p8371_p0 = pnand %p8370_p13, %p8364_p10 }
  0x1d   : > { %8374 = shalt.err (!%p8371_p0)
}
  0x1e   : > { %s13532_s1 = sld [smem:[#allocation108_spill]]  ;;  %s8386_s18 = scalar_lea.vmem %s8700_s10, 6144 }
  0x1f   : > { %p8387_p2 = scmp.ne.s32.totalorder %s8700_s10, %s8386_s18  ;;  %p8394_p9 = scmp.lt.s32.totalorder %s8700_s10, %s8700_s10 }
  0x20   : > { %p8395_p11 = scmp.lt.s32.totalorder %s8386_s18, %s8386_s18 }
  0x21   : > { %p8389_p5 = pnand %p8387_p2, %p8712_p7 }
  0x22   : > { %p8396_p10 = por %p8395_p11, %p8394_p9 }
  0x23   : > { %p8390_p8 = pneg %p8389_p5 }
  0x24   : > { %7568 = dma.hbm_to_vmem [thread:$0]  (!%p8704_p6), %s13532_s1, 64, %s223_s29, [#allocation6]  }
  0x25   : > { %p8397_p12 = pnand %p8396_p10, %p8390_p8 }
  0x27   : > { %8400 = shalt.err (!%p8397_p12)
}
  0x28   : > { %s8614_s19 = smov 192   ;;  %s8615_s20 = smov 12  }
  0x29   : > { %7574 = dma.hbm_to_vmem [thread:$0]  (!%p8704_p6), %s13273_s3, 6144, %s8700_s10, [#allocation9], %s8614_s19, %s8614_s19, %s8615_s20  }
  0x2a   : > { %s8412_s23 = scalar_lea.vmem %s8708_s13, 6144  ;;  %p8420_p5 = scmp.lt.s32.totalorder %s8708_s13, %s8708_s13 }
  0x2b   : > { %p8413_p13 = scmp.ne.s32.totalorder %s8708_s13, %s8412_s23  ;;  %p8421_p8 = scmp.lt.s32.totalorder %s8412_s23, %s8412_s23 }
  0x2d   : > { %p8415_p0 = pnand %p8413_p13, %p8712_p7  ;;  %p8422_p9 = por %p8421_p8, %p8420_p5 }
  0x2f   : > { %p8416_p2 = pneg %p8415_p0 }
  0x31   : > { %p8423_p11 = pnand %p8422_p9, %p8416_p2 }
  0x33   : > { %8426 = shalt.err (!%p8423_p11)
}
  0x34   : > { %7580 = dma.hbm_to_vmem [thread:$0]  (!%p8704_p6), %s13275_s5, 6144, %s8708_s13, [#allocation12], %s8614_s19, %s8614_s19, %s8615_s20  }
  0x35   : > { %s8616_s9 = smov [#allocation7]   ;;  %s8617_s12 = smov [#allocation10]  }
  0x36   : > { %s233_s10 = sshll.u32 %s8616_s9, 4  ;;  %s256_s15 = sshll.u32 %s8617_s12, 4  ;;  %s234_s10 = int_to_ptr.vmem [resolvable:$true] %s233_s10  ;;  %s257_s15 = int_to_ptr.vmem [resolvable:$true] %s256_s15 }
  0x37   : > { %s8438_s16 = scalar_lea.vmem %s234_s10, 128  ;;  %p8446_p0 = scmp.lt.s32.totalorder %s234_s10, %s234_s10 }
  0x38   : > { %p8439_p10 = scmp.ne.s32.totalorder %s234_s10, %s8438_s16  ;;  %p8447_p2 = scmp.lt.s32.totalorder %s8438_s16, %s8438_s16 }
  0x3a   : > { %p8441_p12 = pnand %p8439_p10, %p8712_p7  ;;  %p8448_p5 = por %p8447_p2, %p8446_p0 }
  0x3c   : > { %p8442_p13 = pneg %p8441_p12 }
  0x3e   : > { %p8449_p8 = pnand %p8448_p5, %p8442_p13 }
  0x40   : > { %8452 = shalt.err (!%p8449_p8)
}
  0x41   : > { %7571 = dma.hbm_to_vmem [thread:$0]  (!%p8704_p6), %s13272_s2, 128, %s234_s10, [#allocation6]  }
  0x42   : > { %s8464_s13 = scalar_lea.vmem %s257_s15, 1024  ;;  %p8472_p10 = scmp.lt.s32.totalorder %s257_s15, %s257_s15 }
  0x43   : > { %p8465_p9 = scmp.ne.s32.totalorder %s257_s15, %s8464_s13  ;;  %p8473_p12 = scmp.lt.s32.totalorder %s8464_s13, %s8464_s13 }
  0x45   : > { %p8467_p11 = pnand %p8465_p9, %p8712_p7  ;;  %p8474_p1 = por %p8473_p12, %p8472_p10 }
  0x47   : > { %p8468_p4 = pneg %p8467_p11 }
  0x49   : > { %p8475_p3 = pnand %p8474_p1, %p8468_p4 }
  0x4b   : > { %8478 = shalt.err (!%p8475_p3)
}
  0x4c   : > { %s8618_s19 = smov 64   ;;  %s8619_s20 = smov 4  }
  0x4d   : > { %7577 = dma.hbm_to_vmem [thread:$0]  (!%p8704_p6), %s13274_s4, 1024, %s257_s15, [#allocation9], %s8618_s19, %s8618_s19, %s8619_s20  }
  0x4e   : > { %s8620_s23 = smov [#allocation13]  }
  0x4f   : > { %s282_s28 = sshll.u32 %s8620_s23, 4  ;;  %s283_s28 = int_to_ptr.vmem [resolvable:$true] %s282_s28 }
  0x50   : > { %s8490_s29 = scalar_lea.vmem %s283_s28, 2048  ;;  %p8498_p5 = scmp.lt.s32.totalorder %s283_s28, %s283_s28 }
  0x51   : > { %p8491_p13 = scmp.ne.s32.totalorder %s283_s28, %s8490_s29  ;;  %p8499_p1 = scmp.lt.s32.totalorder %s8490_s29, %s8490_s29 }
  0x53   : > { %p8493_p0 = pnand %p8491_p13, %p8712_p7  ;;  %p8500_p3 = por %p8499_p1, %p8498_p5 }
  0x55   : > { %p8494_p2 = pneg %p8493_p0 }
  0x57   : > { %p8501_p4 = pnand %p8500_p3, %p8494_p2 }
  0x59   : > { %8504 = shalt.err (!%p8501_p4)
}
  0x5a   : > { %7583 = dma.hbm_to_vmem [thread:$0]  (!%p8704_p6), %s13276_s6, 2048, %s283_s28, [#allocation12], %s8618_s19, %s8618_s19, %s8619_s20  }
  0x5b   : > { %s6693_s14 = sadd.s32 4294967294, %s8609_s27   ;;  %s8770_s11 = sadd.s32 1, %s8609_s27  }
  0x5c   : > { %s30_s12 = ssub.s32 %s8609_s27, %s8770_s11  ;;  %s33_s15 = sadd.s32 1, %s8605_s26 }
  0x5d   : > { %p31_p7 = scmp.eq.s32.totalorder %s30_s12, 0  ;;  %p40_p8 = scmp.ne.s32.totalorder %s8605_s26, %s8601_s25 }
  0x5e   : > { %p41_p9 = scmp.eq.s32.totalorder %s8609_s27, 0  ;;  %p46_p11 = scmp.ne.s32.totalorder %s8601_s25, %s8597_s24 }
  0x5f   : > { %s8781_s16 = scalar_select %p31_p7, %s8605_s26, %s33_s15  }
  0x60   : > { %p8783_p10 = por %p41_p9, %p40_p8  ;;  %p13534_p12 = scmp.eq.s32.totalorder %s8688_s30, 0 }
  0x61   : > { %p196_p13 = scmp.eq.s32.totalorder %s8688_s30, 1  ;;  %p202_p0 = scmp.eq.s32.totalorder %s6693_s14, 1 }
  0x62   : > { %p8789_p6 = por %p13534_p12, %p46_p11  ;;  %p7598_p2 = scmp.lt.s32.totalorder %s8609_s27, 2 }
  0x63   : > { %s296_s13 = sand.u32 1, %s8605_s26   ;;  %p8796_p5 = por %p196_p13, %p40_p8 }
  0x64   : > { %s13535_s18 = scalar_select %p8789_p6, 1, 0 }
  0x65   : > { %s13536_s19 = scalar_select %p8796_p5, 1, 0 }
  0x66   : > { %p8800_p1 = por %p202_p0, %p46_p11  ;;  %s6702_s21 = sshll.u32 %s296_s13, 8 }
  0x67   : > { %s7095_s22 = sshll.u32 %s8609_s27, 12  ;;  %s300_s9 = scalar_lea.vmem [#allocation2], %s6702_s21 }
  0x68   : > { %s13537_s20 = scalar_select %p8800_p1, 1, 0 }
  0x69   : > { %s8808_s29 = scalar_lea.hbm %s13270_s0, %s7095_s22  ;;  %s307_s10 = sshll.u32 %s300_s9, 4  ;;  %s8810_s10 = int_to_ptr.vmem [resolvable:$true] %s307_s10 }
  0x6a   : > { %p8814_p3 = pnand %p7598_p2, %p8783_p10  ;;  %s8818_s12 = scalar_lea.sflag [#allocation3], %s296_s13 }
  0x6b   : > { %s8505_s15 = scalar_lea.hbm %s8808_s29, 4096  ;;  %s8510_s21 = scalar_lea.hbm %s13270_s0, 8192 }
  0x6c   : > { %p8506_p4 = scmp.ne.s32.totalorder %s8808_s29, %s8505_s15  ;;  %p8507_p7 = pneg %p8814_p3 }
  0x6d   : > { %p8511_p11 = scmp.lt.s32.totalorder %s8808_s29, %s13270_s0  ;;  %p8512_p10 = scmp.lt.s32.totalorder %s8510_s21, %s8505_s15 }
  0x6e   : > { %p8508_p8 = pnand %p8507_p7, %p8506_p4 }
  0x6f   : > { %p8513_p12 = por %p8512_p10, %p8511_p11 }
  0x70   : > { %p8509_p9 = pneg %p8508_p8 }
  0x72   : > { %p8514_p13 = pnand %p8513_p12, %p8509_p9 }
  0x74   : > { %8517 = shalt.err (!%p8514_p13)
}
  0x75   : > { %s8518_s17 = scalar_lea.vmem %s8810_s10, 4096  ;;  %s8621_s13 = smov [#allocation2]  }
  0x76   : > { %p8519_p0 = scmp.ne.s32.totalorder %s8810_s10, %s8518_s17  ;;  %s8523_s1 = sshll.u32 %s8621_s13, 4  ;;  %s8524_s1 = int_to_ptr.vmem [resolvable:$false] %s8523_s1 }
  0x77   : > { %s8525_s22 = scalar_lea.vmem %s8524_s1, 8192  ;;  %p8526_p8 = scmp.lt.s32.totalorder %s8810_s10, %s8524_s1 }
  0x78   : > { %p8521_p2 = pnand %p8519_p0, %p8507_p7  ;;  %p8527_p1 = scmp.lt.s32.totalorder %s8525_s22, %s8518_s17 }
  0x7a   : > { %p8522_p4 = pneg %p8521_p2  ;;  %p8528_p5 = por %p8527_p1, %p8526_p8 }
  0x7c   : > { %p8529_p6 = pnand %p8528_p5, %p8522_p4 }
  0x7e   : > { %8532 = shalt.err (!%p8529_p6)
}
  0x7f   : > { %s8622_s15 = smov 128   ;;  %s8623_s23 = smov 8  }
  0x80   : > { %7587 = dma.hbm_to_vmem [thread:$0]  (!%p8814_p3), %s8808_s29, 4096, %s8810_s10, %s8818_s12, %s8622_s15, %s8622_s15, %s8623_s23  }
  0x81   : > { %p13539_p7 = scmp.ne.s32.totalorder %s13529_s8, 0 }
  0x83   : > { %319 = sbr.rel (%p13539_p7) target bundleno = 2101 (0x835), region = 48 }
  0x88   : > { %s8842_s21 = sand.u32 1, %s8601_s25   ;;  %p13540_p6 = scmp.ne.s32.totalorder %s13535_s18, 0 }
  0x89   : > { %s6706_s1 = sshll.u32 %s8842_s21, 8  ;;  %s322_s28 = scalar_lea.sflag [#allocation3], %s8842_s21 }
  0x8a   : > { %s8848_s9 = scalar_lea.vmem [#allocation2], %s6706_s1 }
  0x8b   : > { %8576 = dma.done.wait (%p13540_p6), %s322_s28, 4096  }
  0x8c   : > { %8578 = vsyncadd (%p13540_p6), %s322_s28, 4294963200  ;;  %p13541_p5 = scmp.eq.s32.totalorder %s8688_s30, 0 }
  0x8e   : > { %8580 = dma.done.wait (%p13541_p5), [#allocation6], 192   ;;  %p13542_p1 = pmov %p13541_p5 }
  0x90   : > { %8582 = vsyncadd (%p13542_p1), [#allocation6], 4294967104  ;;  %p13543_p3 = pmov %p13542_p1 }
  0x91   : > { %p13544_p9 = pmov %p13542_p1 }
  0x92   : > { %8584 = dma.done.wait (%p13543_p3), [#allocation9], 7168  }
  0x93   : > { %8586 = vsyncadd (%p13544_p9), [#allocation9], 4294960128  ;;  %p13545_p11 = pmov %p13542_p1 }
  0x94   : > { %p13546_p10 = pmov %p13542_p1 }
  0x95   : > { %8588 = dma.done.wait (%p13545_p11), [#allocation12], 8192  }
  0x96   : > { %8590 = vsyncadd (%p13546_p10), [#allocation12], 4294959104  ;;  %v8867_v0 = vld [vmem:[%s8848_s9] sm:$0xff]  ;;  %v8870_v1 = vld [vmem:[%s8848_s9 + $0x10] sm:$0xff]  ;;  %vm13369_vm0 = vcmask 1040384   ;;  %s13085_s8 = scalar_lea.vmem [#allocation14], %s6706_s1 }
  0x97   : > { %834 = vadd.xlane.f32.xlu0 %v8867_v0  ;;  %838 = vadd.xlane.f32.xlu1 %v8870_v1  ;;  %v8875_v2 = vld [vmem:[%s8848_s9 + $0x8] sm:$0xff]  ;;  %v8878_v3 = vld [vmem:[%s8848_s9 + $0x18] sm:$0xff]  ;;  %v8883_v4 = vld [vmem:[%s8848_s9 + $0x20] sm:$0xff]  ;;  %s7096_s18 = sshll.u32 %s8688_s30, 12  ;;  %s6563_s29 = sshll.u32 %s13085_s8, 4  ;;  %s13225_s29 = int_to_ptr.vmem [resolvable:$true] %s6563_s29 }
  0x98   : > { %v8886_v5 = vld [vmem:[%s8848_s9 + $0x28] sm:$0xff]  ;;  %v8889_v6 = vld [vmem:[%s8848_s9 + $0x30] sm:$0xff]  ;;  %v8892_v7 = vld [vmem:[%s8848_s9 + $0x38] sm:$0xff]  ;;  %s13223_s12 = scalar_lea.hbm %s13277_s7, %s7096_s18  ;;  %s6550_s17 = scalar_lea.sflag [#allocation4], %s8842_s21 }
  0x99   : > { %v8897_v8 = vld [vmem:[%s8848_s9 + $0x40] sm:$0xff]  ;;  %v8900_v9 = vld [vmem:[%s8848_s9 + $0x48] sm:$0xff]  ;;  %v8905_v10 = vld [vmem:[%s8848_s9 + $0x50] sm:$0xff]  ;;  %s8533_s13 = scalar_lea.vmem %s13225_s29, 4096  ;;  %p14314_p13 = scmp.ne.s32.totalorder %s13536_s19, 0 }
  0x9a   : > { %v8910_v11 = vld [vmem:[%s8848_s9 + $0x58] sm:$0xff]  ;;  %v8913_v12 = vld [vmem:[%s8848_s9 + $0x60] sm:$0xff]  ;;  %v8916_v13 = vld [vmem:[%s8848_s9 + $0x68] sm:$0xff]  ;;  %p8534_p12 = scmp.ne.s32.totalorder %s13225_s29, %s8533_s13  ;;  %s8624_s30 = smov [#allocation14]  }
  0x9b   : > { %836 = vadd.xlane.f32.xlu0 %v8875_v2  ;;  %840 = vadd.xlane.f32.xlu1 %v8878_v3  ;;  %v8921_v14 = vld [vmem:[%s8848_s9 + $0x70] sm:$0xff]  ;;  %v8926_v15 = vld [vmem:[%s8848_s9 + $0x78] sm:$0xff]  ;;  %v8929_v16 = vld [vmem:[%s8848_s9 + $0x80] sm:$0xff]  ;;  %s8537_s22 = sshll.u32 %s8624_s30, 4  ;;  %s8538_s22 = int_to_ptr.vmem [resolvable:$false] %s8537_s22 }
  0x9c   : > { %v8934_v17 = vld [vmem:[%s8848_s9 + $0x88] sm:$0xff]  ;;  %v8937_v18 = vld [vmem:[%s8848_s9 + $0x90] sm:$0xff]  ;;  %v8940_v19 = vld [vmem:[%s8848_s9 + $0x98] sm:$0xff]  ;;  %p8535_p0 = pnand %p8534_p12, %p14314_p13  ;;  %s8539_s15 = scalar_lea.vmem %s8538_s22, 8192 }
  0x9d   : > { %v7652_v20 = vld [vmem:[#allocation8 + $0xac] ss:$12 sps:$4 sm:$0xff]   ;;  %v7654_v21 = vld [vmem:[#allocation8 + $0xa8] ss:$12 sps:$4 sm:$0xff]   ;;  %v7657_v23 = vld [vmem:[#allocation8 + $0x90] ss:$12 sps:$4 sm:$0xff]   ;;  %p8540_p4 = scmp.lt.s32.totalorder %s13225_s29, %s8538_s22  ;;  %p8541_p8 = scmp.lt.s32.totalorder %s8539_s15, %s8533_s13 }
  0x9e   : > { %v7655_v22 = vld [vmem:[#allocation8 + $0x94] ss:$12 sps:$4 sm:$0xff]   ;;  %1804 = vmatprep.subr.bf16.mxu0 %v7652_v20  ;;  %v7658_v24 = vld [vmem:[#allocation8 + $0x7c] ss:$12 sps:$4 sm:$0xff]   ;;  %v7660_v25 = vld [vmem:[#allocation8 + $0x78] ss:$12 sps:$4 sm:$0xff]   ;;  %p8536_p2 = pneg %p8535_p0 }
  0x9f   : > { %842 = vadd.xlane.f32.xlu0 %v8883_v4  ;;  %844 = vadd.xlane.f32.xlu1 %v8886_v5  ;;  %v7661_v26 = vld [vmem:[#allocation8 + $0x64] ss:$12 sps:$4 sm:$0xff]   ;;  %v7663_v27 = vld [vmem:[#allocation8 + $0x60] ss:$12 sps:$4 sm:$0xff]   ;;  %v7666_v29 = vld [vmem:[#allocation8 + $0x48] ss:$12 sps:$4 sm:$0xff]   ;;  %p8542_p7 = por %p8541_p8, %p8540_p4 }
  0xa0   : > { %1805 = vmatpush1.bf16.msra.mxu0 %v7654_v21  ;;  %v7664_v28 = vld [vmem:[#allocation8 + $0x4c] ss:$12 sps:$4 sm:$0xff]   ;;  %v7667_v30 = vld [vmem:[#allocation8 + $0x34] ss:$12 sps:$4 sm:$0xff]   ;;  %v7669_v31 = vld [vmem:[#allocation8 + $0x30] ss:$12 sps:$4 sm:$0xff]  }
  0xa1   : > { %1806 = vmatprep.subr.bf16.mxu0 %v7655_v22  ;;  %v7670_v32 = vld [vmem:[#allocation8 + $0x1c] ss:$12 sps:$4 sm:$0xff]   ;;  %v7672_v33 = vld [vmem:[#allocation8 + $0x18] ss:$12 sps:$4 sm:$0xff]   ;;  %v7675_v35 = vld [vmem:[#allocation8] ss:$12 sps:$4 sm:$0xff]   ;;  %p8543_p6 = pnand %p8542_p7, %p8536_p2 }
  0xa2   : > { %v7673_v34 = vld [vmem:[#allocation8 + $0x4] ss:$12 sps:$4 sm:$0xff]   ;;  %v8958_v48 = vld [vmem:[%s8848_s9 + $0xa0] sm:$0xff]  ;;  %v8969_v54 = vld [vmem:[%s8848_s9 + $0xa8] sm:$0xff] }
  0xa3   : > { %846 = vadd.xlane.f32.xlu0 %v8889_v6  ;;  %848 = vadd.xlane.f32.xlu1 %v8892_v7  ;;  %v8978_v59 = vld [vmem:[%s8848_s9 + $0xb0] sm:$0xff]  ;;  %v7676_v61 = vld [vmem:[#allocation8 + $0x16c] ss:$12 sps:$4 sm:$0xff]   ;;  %v7678_v62 = vld [vmem:[#allocation8 + $0x170] ss:$12 sps:$4 sm:$0xff]  }
  0xa4   : > { %1807 = vmatpush1.bf16.msra.mxu0 %v7657_v23  ;;  %v7679_v63 = vld [vmem:[#allocation8 + $0x168] ss:$12 sps:$4 sm:$0xff]   ;;  %7097 = vmatprep.subr.bf16.mxu1 %v7678_v62  ;;  %v7683_v22 = vld [vmem:[#allocation8 + $0x158] ss:$12 sps:$4 sm:$0xff]   ;;  %v7684_v23 = vld [vmem:[#allocation8 + $0x150] ss:$12 sps:$4 sm:$0xff]  }
  0xa5   : > { %1808 = vmatprep.subr.bf16.mxu0 %v7658_v24  ;;  %v7681_v21 = vld [vmem:[#allocation8 + $0x154] ss:$12 sps:$4 sm:$0xff]   ;;  %v7685_v24 = vld [vmem:[#allocation8 + $0x98] ss:$12 sps:$4 sm:$0xff]  }
  0xa6   : > { %v7701_v62 = vld [vmem:[#allocation8 + $0xf4] ss:$12 sps:$4 sm:$0xff]  }
  0xa7   : > { %850 = vadd.xlane.f32.xlu0 %v8897_v8  ;;  %852 = vadd.xlane.f32.xlu1 %v8900_v9 }
  0xa8   : > { %1809 = vmatpush1.bf16.msra.mxu0 %v7660_v25 }
  0xa9   : > { %1810 = vmatprep.subr.bf16.mxu0 %v7661_v26 }
  0xab   : > { %854 = vadd.xlane.f32.xlu0 %v8905_v10  ;;  %856 = vadd.xlane.f32.xlu1 %v8910_v11 }
  0xac   : > { %1811 = vmatpush1.bf16.msra.mxu0 %v7663_v27  ;;  %v8996_v27 = vld [vmem:[%s8848_s9 + $0xc0] sm:$0xff] }
  0xad   : > { %1812 = vmatprep.subr.bf16.mxu0 %v7664_v28 }
  0xaf   : > { %858 = vadd.xlane.f32.xlu0 %v8913_v12  ;;  %860 = vadd.xlane.f32.xlu1 %v8916_v13 }
  0xb0   : > { %1813 = vmatpush1.bf16.msra.mxu0 %v7666_v29  ;;  %v7686_v29 = vld [vmem:[#allocation8 + $0x13c] ss:$12 sps:$4 sm:$0xff]  }
  0xb1   : > { %1814 = vmatprep.subr.bf16.mxu0 %v7667_v30  ;;  %v7688_v30 = vld [vmem:[#allocation8 + $0x140] ss:$12 sps:$4 sm:$0xff]  }
  0xb3   : > { %862 = vadd.xlane.f32.xlu0 %v8921_v14  ;;  %864 = vadd.xlane.f32.xlu1 %v8926_v15 }
  0xb4   : > { %1815 = vmatpush1.bf16.msra.mxu0 %v7669_v31  ;;  %v7689_v31 = vld [vmem:[#allocation8 + $0x138] ss:$12 sps:$4 sm:$0xff]  }
  0xb5   : > { %1816 = vmatprep.subr.bf16.mxu0 %v7670_v32  ;;  %v7690_v32 = vld [vmem:[#allocation8 + $0x80] ss:$12 sps:$4 sm:$0xff]  }
  0xb7   : > { %866 = vadd.xlane.f32.xlu0 %v8929_v16  ;;  %868 = vadd.xlane.f32.xlu1 %v8934_v17 }
  0xb8   : > { %1817 = vmatpush1.bf16.msra.mxu0 %v7672_v33 }
  0xb9   : > { %1818 = vmatprep.subr.bf16.mxu0 %v7673_v34 }
  0xbb   : > { %870 = vadd.xlane.f32.xlu0 %v8937_v18  ;;  %872 = vadd.xlane.f32.xlu1 %v8940_v19 }
  0xbc   : > { %1819 = vmatpush1.bf16.msra.mxu0 %v7675_v35  ;;  %v9005_v35 = vld [vmem:[%s8848_s9 + $0xc8] sm:$0xff] }
  0xbd   : > { %1820 = vmatprep.subr.bf16.mxu0 %v7676_v61  ;;  %v9023_v61 = vld [vmem:[%s8848_s9 + $0xd8] sm:$0xff] }
  0xc0   : > { %1821 = vmatpush2.bf16.msra.mxu0 %v7679_v63  ;;  %v7703_v63 = vld [vmem:[#allocation8 + $0xf8] ss:$12 sps:$4 sm:$0xff]  }
  0xc1   : > { %1822 = vmatprep.subr.bf16.mxu0 %v7681_v21 }
  0xc4   : > { %1823 = vmatpush2.bf16.msra.mxu0 %v7684_v23 }
  0xc5   : > { %1824 = vmatprep.subr.bf16.mxu0 %v7686_v29 }
  0xc8   : > { %1825 = vmatpush2.bf16.msra.mxu0 %v7689_v31  ;;  %v9041_v31 = vld [vmem:[%s8848_s9 + $0xe8] sm:$0xff] }
 0x120   : > { %v835_v36 = vpop.xlane.xlu0 %834  ;;  %v839_v37 = vpop.xlane.xlu1 %838 }
 0x121   : > { %v899_v38 = vmul.f32 0.0078125, %v835_v36  ;;  %v901_v40 = vmul.f32 0.0078125, %v839_v37  ;;  %v7691_v37 = vld [vmem:[#allocation8 + $0x124] ss:$12 sps:$4 sm:$0xff]  }
 0x122   : > { %1826 = vmatprep.subr.bf16.mxu0 %v7691_v37 }
 0x123   : > { %v8947_v39 = vsub.f32 %v8867_v0, %v899_v38  ;;  %v8955_v47 = vsub.f32 %v8870_v1, %v901_v40  ;;  %v7680_v0 = vld [vmem:[#allocation8 + $0xb0] ss:$12 sps:$4 sm:$0xff]   ;;  %v7693_v38 = vld [vmem:[#allocation8 + $0x128] ss:$12 sps:$4 sm:$0xff]  }
 0x124   : > { %v837_v41 = vpop.xlane.xlu0 %836  ;;  %v841_v42 = vpop.xlane.xlu1 %840  ;;  %7098 = vmatpush3.bf16.msra.mxu1 %v7680_v0 }
 0x125   : > { %v900_v43 = vmul.f32 0.0078125, %v837_v41  ;;  %v963_v44 = vmul.f32 %v8947_v39, %v8947_v39  ;;  %v902_v46 = vmul.f32 0.0078125, %v841_v42  ;;  %v965_v51 = vmul.f32 %v8955_v47, %v8955_v47  ;;  %7099 = vmatprep.subr.bf16.mxu1 %v7683_v22  ;;  %v7694_v41 = vld [vmem:[#allocation8 + $0x120] ss:$12 sps:$4 sm:$0xff]   ;;  %v7695_v42 = vld [vmem:[#allocation8 + $0x68] ss:$12 sps:$4 sm:$0xff]  }
 0x126   : > { %1827 = vmatpush2.bf16.msra.mxu0 %v7694_v41  ;;  %v9032_v22 = vld [vmem:[%s8848_s9 + $0xe0] sm:$0xff] }
 0x127   : > { %995 = vadd.xlane.f32.xlu0 %v963_v44  ;;  %v8952_v45 = vsub.f32 %v8875_v2, %v900_v43  ;;  %v8966_v53 = vsub.f32 %v8878_v3, %v902_v46  ;;  %v9014_v46 = vld [vmem:[%s8848_s9 + $0xd0] sm:$0xff] }
 0x128   : > { %v843_v49 = vpop.xlane.xlu0 %842  ;;  %v845_v55 = vpop.xlane.xlu1 %844  ;;  %7100 = vmatpush3.bf16.msra.mxu1 %v7685_v24  ;;  %v7706_v24 = vld [vmem:[#allocation8 + $0xdc] ss:$12 sps:$4 sm:$0xff]  }
 0x129   : > { %v964_v50 = vmul.f32 %v8952_v45, %v8952_v45  ;;  %v903_v52 = vmul.f32 0.0078125, %v843_v49  ;;  %v966_v56 = vmul.f32 %v8966_v53, %v8966_v53  ;;  %v904_v57 = vmul.f32 0.0078125, %v845_v55  ;;  %7101 = vmatprep.subr.bf16.mxu1 %v7688_v30  ;;  %v7696_v49 = vld [vmem:[#allocation8 + $0x10c] ss:$12 sps:$4 sm:$0xff]   ;;  %v7699_v55 = vld [vmem:[#allocation8 + $0x108] ss:$12 sps:$4 sm:$0xff]  }
 0x12a   : > { %1828 = vmatprep.subr.bf16.mxu0 %v7696_v49 }
 0x12b   : > { %874 = vadd.xlane.f32.xlu0 %v8958_v48  ;;  %997 = vadd.xlane.f32.xlu1 %v964_v50  ;;  %v8975_v58 = vsub.f32 %v8883_v4, %v903_v52  ;;  %v8984_v3 = vsub.f32 %v8886_v5, %v904_v57  ;;  %v8987_v4 = vld [vmem:[%s8848_s9 + $0xb8] sm:$0xff] }
 0x12c   : > { %v847_v60 = vpop.xlane.xlu0 %846  ;;  %v849_v20 = vpop.xlane.xlu1 %848  ;;  %7102 = vmatpush3.bf16.msra.mxu1 %v7690_v32  ;;  %v7698_v50 = vld [vmem:[#allocation8 + $0x110] ss:$12 sps:$4 sm:$0xff]   ;;  %1829 = vmatpush2.bf16.msra.mxu0 %v7699_v55 }
 0x12d   : > { %v967_v1 = vmul.f32 %v8975_v58, %v8975_v58  ;;  %v905_v2 = vmul.f32 0.0078125, %v847_v60  ;;  %v968_v25 = vmul.f32 %v8984_v3, %v8984_v3  ;;  %v906_v5 = vmul.f32 0.0078125, %v849_v20  ;;  %7103 = vmatprep.subr.bf16.mxu1 %v7693_v38  ;;  %1830 = vmatprep.subr.bf16.mxu0 %v7701_v62  ;;  %v7714_v38 = vld [vmem:[#allocation8 + $0xc0] ss:$12 sps:$4 sm:$0xff]  }
 0x12e   : > { %v9062_v55 = vld [vmem:[%s8848_s9 + $0xf8] sm:$0xff] }
 0x12f   : > { %999 = vadd.xlane.f32.xlu0 %v965_v51  ;;  %876 = vadd.xlane.f32.xlu1 %v8969_v54  ;;  %v8993_v26 = vsub.f32 %v8889_v6, %v905_v2  ;;  %v9002_v34 = vsub.f32 %v8892_v7, %v906_v5  ;;  %v7705_v2 = vld [vmem:[#allocation8 + $0x38] ss:$12 sps:$4 sm:$0xff]  }
 0x130   : > { %v851_v28 = vpop.xlane.xlu0 %850  ;;  %v853_v36 = vpop.xlane.xlu1 %852  ;;  %7104 = vmatpush3.bf16.msra.mxu1 %v7695_v42  ;;  %v7709_v5 = vld [vmem:[#allocation8 + $0xd8] ss:$12 sps:$4 sm:$0xff]  }
 0x131   : > { %v969_v33 = vmul.f32 %v8993_v26, %v8993_v26  ;;  %v907_v6 = vmul.f32 0.0078125, %v851_v28  ;;  %v970_v7 = vmul.f32 %v9002_v34, %v9002_v34  ;;  %v908_v43 = vmul.f32 0.0078125, %v853_v36  ;;  %7105 = vmatprep.subr.bf16.mxu1 %v7698_v50  ;;  %v7710_v28 = vld [vmem:[#allocation8 + $0x20] ss:$12 sps:$4 sm:$0xff]  }
 0x133   : > { %878 = vadd.xlane.f32.xlu0 %v8978_v59  ;;  %1001 = vadd.xlane.f32.xlu1 %v966_v56  ;;  %v9011_v44 = vsub.f32 %v8897_v8, %v907_v6  ;;  %v7700_v56 = vld [vmem:[#allocation8 + $0x50] ss:$12 sps:$4 sm:$0xff]   ;;  %v9020_v60 = vsub.f32 %v8900_v9, %v908_v43  ;;  %v7713_v6 = vld [vmem:[#allocation8 + $0xc8] ss:$12 sps:$4 sm:$0xff]  }
 0x134   : > { %v855_v40 = vpop.xlane.xlu0 %854  ;;  %v857_v51 = vpop.xlane.xlu1 %856  ;;  %7106 = vmatpush3.bf16.msra.mxu1 %v7700_v56 }
 0x135   : > { %v971_v8 = vmul.f32 %v9011_v44, %v9011_v44  ;;  %v909_v57 = vmul.f32 0.0078125, %v855_v40  ;;  %v972_v20 = vmul.f32 %v9020_v60, %v9020_v60  ;;  %v910_v9 = vmul.f32 0.0078125, %v857_v51  ;;  %7107 = vmatprep.subr.bf16.mxu1 %v7703_v63  ;;  %v7715_v40 = vld [vmem:[#allocation8 + $0x8] ss:$12 sps:$4 sm:$0xff]  }
 0x137   : > { %880 = vadd.xlane.f32.xlu1 %v8987_v4  ;;  %1003 = vadd.xlane.f32.xlu0 %v967_v1  ;;  %v7704_v1 = vld [vmem:[#allocation8 + $0xf0] ss:$12 sps:$4 sm:$0xff]   ;;  %v9029_v21 = vsub.f32 %v8905_v10, %v909_v57  ;;  %v9038_v30 = vsub.f32 %v8910_v11, %v910_v9 }
 0x138   : > { %v859_v52 = vpop.xlane.xlu0 %858  ;;  %v861_v0 = vpop.xlane.xlu1 %860  ;;  %1831 = vmatpush2.bf16.msra.mxu0 %v7704_v1  ;;  %7108 = vmatpush3.bf16.msra.mxu1 %v7705_v2 }
 0x139   : > { %v973_v29 = vmul.f32 %v9029_v21, %v9029_v21  ;;  %v911_v10 = vmul.f32 0.0078125, %v859_v52  ;;  %1832 = vmatprep.subr.bf16.mxu0 %v7706_v24  ;;  %v912_v36 = vmul.f32 0.0078125, %v861_v0  ;;  %v974_v11 = vmul.f32 %v9038_v30, %v9038_v30 }
 0x13b   : > { %1005 = vadd.xlane.f32.xlu1 %v968_v25  ;;  %882 = vadd.xlane.f32.xlu0 %v8996_v27  ;;  %v7708_v25 = vld [vmem:[#allocation8 + $0xe0] ss:$12 sps:$4 sm:$0xff]   ;;  %v9047_v42 = vsub.f32 %v8913_v12, %v911_v10  ;;  %v9053_v49 = vsub.f32 %v8916_v13, %v912_v36 }
 0x13c   : > { %v863_v23 = vpop.xlane.xlu0 %862  ;;  %v865_v32 = vpop.xlane.xlu1 %864  ;;  %7109 = vmatprep.subr.bf16.mxu1 %v7708_v25  ;;  %1833 = vmatpush2.bf16.msra.mxu0 %v7709_v5 }
 0x13d   : > { %7110 = vmatpush3.bf16.msra.mxu1 %v7710_v28  ;;  %v913_v41 = vmul.f32 0.0078125, %v863_v23  ;;  %v914_v43 = vmul.f32 0.0078125, %v865_v32  ;;  %v975_v51 = vmul.f32 %v9047_v42, %v9047_v42 }
 0x13e   : > { %7111 = vmatprep.subr.bf16.mxu1 %v7713_v6 }
 0x13f   : > { %884 = vadd.xlane.f32.xlu1 %v9005_v35  ;;  %1007 = vadd.xlane.f32.xlu0 %v969_v33  ;;  %v7711_v33 = vld [vmem:[#allocation8 + $0xc4] ss:$12 sps:$4 sm:$0xff]   ;;  %v9059_v12 = vsub.f32 %v8921_v14, %v913_v41  ;;  %v9067_v13 = vsub.f32 %v8926_v15, %v914_v43 }
 0x140   : > { %v867_v37 = vpop.xlane.xlu0 %866  ;;  %1834 = vmatprep.subr.bf16.mxu0 %v7711_v33  ;;  %v869_v50 = vpop.xlane.xlu1 %868  ;;  %v417_v33 = vlaneseq }
 0x141   : > { %1835 = vmatpush2.bf16.msra.mxu0 %v7714_v38  ;;  %7112 = vmatpush3.bf16.msra.mxu1 %v7715_v40  ;;  %v915_v52 = vmul.f32 0.0078125, %v867_v37  ;;  %v977_v57 = vmul.f32 %v9059_v12, %v9059_v12  ;;  %v916_v62 = vmul.f32 0.0078125, %v869_v50  ;;  %v978_v1 = vmul.f32 %v9067_v13, %v9067_v13 }
 0x142   : > { %v9099_v41 = vshrl.u32 %v417_v33, 7 }
 0x143   : > { %1009 = vadd.xlane.f32.xlu1 %v970_v7  ;;  %886 = vadd.xlane.f32.xlu0 %v9014_v46  ;;  %v9050_v7 = vld [vmem:[%s8848_s9 + $0xf0] sm:$0xff]  ;;  %v9073_v14 = vsub.f32 %v8929_v16, %v915_v52 }
 0x144   : > { %v871_v56 = vpop.xlane.xlu0 %870  ;;  %v873_v0 = vpop.xlane.xlu1 %872 }
 0x145   : > { %v917_v63 = vmul.f32 0.0078125, %v871_v56  ;;  %v979_v15 = vmul.f32 %v9073_v14, %v9073_v14  ;;  %v918_v2 = vmul.f32 0.0078125, %v873_v0  ;;  %v415_v0 = vld [vmem:[#allocation5] sm:$0xf] }
 0x147   : > { %888 = vadd.xlane.f32.xlu1 %v9023_v61  ;;  %1011 = vadd.xlane.f32.xlu0 %v971_v8  ;;  %v976_v8 = vmul.f32 %v9053_v49, %v9053_v49  ;;  %v9083_v9 = vsub.f32 %v8937_v18, %v917_v63  ;;  %v9090_v24 = vsub.f32 %v8940_v19, %v918_v2 }
 0x149   : > { %v981_v23 = vmul.f32 %v9083_v9, %v9083_v9 }
 0x14b   : > { %1013 = vadd.xlane.f32.xlu1 %v972_v20  ;;  %890 = vadd.xlane.f32.xlu0 %v9032_v22  ;;  %v9080_v20 = vsub.f32 %v8934_v17, %v916_v62  ;;  %v982_v17 = vmul.f32 %v9090_v24, %v9090_v24 }
 0x14d   : > { %v980_v16 = vmul.f32 %v9080_v20, %v9080_v20 }
 0x14f   : > { %892 = vadd.xlane.f32.xlu1 %v9041_v31  ;;  %1015 = vadd.xlane.f32.xlu0 %v973_v29 }
 0x153   : > { %1017 = vadd.xlane.f32.xlu1 %v974_v11  ;;  %894 = vadd.xlane.f32.xlu0 %v9050_v7 }
 0x157   : > { %896 = vadd.xlane.f32.xlu1 %v9062_v55  ;;  %1019 = vadd.xlane.f32.xlu0 %v975_v51 }
 0x15b   : > { %1021 = vadd.xlane.f32.xlu1 %v976_v8  ;;  %1023 = vadd.xlane.f32.xlu0 %v977_v57  ;;  %v9107_v57 = vsub.s32 0, %v9099_v41 }
 0x15f   : > { %1025 = vadd.xlane.f32.xlu1 %v978_v1  ;;  %1027 = vadd.xlane.f32.xlu0 %v979_v15  ;;  %v9113_v15 = vsub.s32 1, %v9099_v41 }
 0x163   : > { %1029 = vadd.xlane.f32.xlu1 %v980_v16  ;;  %1031 = vadd.xlane.f32.xlu0 %v981_v23 }
 0x167   : > { %1033 = vadd.xlane.f32.xlu1 %v982_v17 }
 0x1b0   : > { %v996_v25 = vpop.xlane.xlu0 %995 }
 0x1b1   : > { %v1059_v18 = vmul.f32 0.0078125, %v996_v25  ;;  %v9118_v25 = vrot.slane %v415_v0, %v9107_v57 }
 0x1b3   : > { %v1091_v5 = vadd.f32 1e-05, %v1059_v18 }
 0x1b4   : > { %v998_v28 = vpop.xlane.xlu1 %997  ;;  %v875_v29 = vpop.xlane.xlu0 %874 }
 0x1b5   : > { %7804 = vrsqrt.f32 %v1091_v5  ;;  %v1060_v10 = vmul.f32 0.0078125, %v998_v28  ;;  %v919_v32 = vmul.f32 0.0078125, %v875_v29 }
 0x1b7   : > { %v1092_v6 = vadd.f32 1e-05, %v1060_v10  ;;  %v9095_v36 = vsub.f32 %v8958_v48, %v919_v32  ;;  %v419_v10 = vadd.s32 8, %v9099_v41  ;;  %v9126_v32 = vrot.slane %v415_v0, %v9113_v15 }
 0x1b8   : > { %v877_v19 = vpop.xlane.xlu1 %876  ;;  %v1000_v37 = vpop.xlane.xlu0 %999 }
 0x1b9   : > { %7806 = vrsqrt.f32 %v1092_v6  ;;  %v920_v38 = vmul.f32 0.0078125, %v877_v19  ;;  %v1061_v40 = vmul.f32 0.0078125, %v1000_v37  ;;  %v983_v11 = vmul.f32 %v9095_v36, %v9095_v36 }
 0x1bb   : > { %v1093_v43 = vadd.f32 1e-05, %v1061_v40  ;;  %1035 = vadd.xlane.f32.xlu0 %v983_v11  ;;  %v9102_v50 = vsub.f32 %v8969_v54, %v920_v38  ;;  %v9131_v38 = vand.u32 7, %v9099_v41 }
 0x1bc   : > { %v1002_v51 = vpop.xlane.xlu1 %1001  ;;  %v879_v52 = vpop.xlane.xlu0 %878 }
 0x1bd   : > { %7808 = vrsqrt.f32 %v1093_v43  ;;  %v1062_v48 = vmul.f32 0.0078125, %v1002_v51  ;;  %v921_v56 = vmul.f32 0.0078125, %v879_v52  ;;  %v984_v8 = vmul.f32 %v9102_v50, %v9102_v50 }
 0x1be   : > { %v9138_v52 = vand.u32 7, %v419_v10  ;;  %vm13314_vm1 = vcmp.ge.s32.totalorder %v9131_v38, 1 }
 0x1bf   : > { %v1094_v62 = vadd.f32 1e-05, %v1062_v48  ;;  %1037 = vadd.xlane.f32.xlu1 %v984_v8  ;;  %v9110_v63 = vsub.f32 %v8978_v59, %v921_v56 }
 0x1c0   : > { %v881_v1 = vpop.xlane.xlu1 %880  ;;  %v1004_v54 = vpop.xlane.xlu0 %1003  ;;  %vm13307_vm2 = vcmp.ge.s32.totalorder %v9138_v52, 1 }
 0x1c1   : > { %7810 = vrsqrt.f32 %v1094_v62  ;;  %v922_v2 = vmul.f32 0.0078125, %v881_v1  ;;  %v1063_v16 = vmul.f32 0.0078125, %v1004_v54  ;;  %v985_v23 = vmul.f32 %v9110_v63, %v9110_v63  ;;  %vm9171_vm3 = vmpackc.low %vm13307_vm2, %vm13314_vm1 }
 0x1c2   : > { %v7805_v17 = vpop.eup %7804 }
 0x1c3   : > { %v1095_v18 = vadd.f32 1e-05, %v1063_v16  ;;  %1039 = vadd.xlane.f32.xlu0 %v985_v23  ;;  %v9121_v59 = vsub.f32 %v8987_v4, %v922_v2  ;;  %v1155_v5 = vmul.f32 %v7805_v17, %v8947_v39  ;;  %v420_v2 = vadd.s32 16, %v9099_v41 }
 0x1c4   : > { %v1006_v28 = vpop.xlane.xlu1 %1005  ;;  %v883_v29 = vpop.xlane.xlu0 %882 }
 0x1c5   : > { %7812 = vrsqrt.f32 %v1095_v18  ;;  %v1064_v33 = vmul.f32 0.0078125, %v1006_v28  ;;  %v923_v6 = vmul.f32 0.0078125, %v883_v29  ;;  %v986_v19 = vmul.f32 %v9121_v59, %v9121_v59 }
 0x1c6   : > { %v7807_v37 = vpop.eup %7806  ;;  %v1191_v4 = vmul.f32 %v9118_v25, %v1155_v5  ;;  %v421_v5 = vadd.s32 24, %v9099_v41 }
 0x1c7   : > { %v1096_v39 = vadd.f32 1e-05, %v1064_v33  ;;  %v9135_v40 = vsub.f32 %v8996_v27, %v923_v6  ;;  %1041 = vadd.xlane.f32.xlu1 %v986_v19  ;;  %v1156_v11 = vmul.f32 %v7807_v37, %v8952_v45 }
 0x1c8   : > { %v885_v43 = vpop.xlane.xlu1 %884  ;;  %v1008_v51 = vpop.xlane.xlu0 %1007  ;;  %v1227_v48 = vadd.f32 %v9126_v32, %v1191_v4  ;;  %v9163_v4 = vand.u32 7, %v420_v2 }
 0x1c9   : > { %7814 = vrsqrt.f32 %v1096_v39  ;;  %v924_v56 = vmul.f32 0.0078125, %v885_v43  ;;  %v1065_v8 = vmul.f32 0.0078125, %v1008_v51  ;;  %v987_v62 = vmul.f32 %v9135_v40, %v9135_v40 }
 0x1ca   : > { %v7809_v0 = vpop.eup %7808  ;;  %v1192_v1 = vmul.f32 %v9118_v25, %v1156_v11  ;;  %v1292_v18 = vrot.slane %v1227_v48, 7  ;;  %vm13302_vm4 = vcmp.ge.s32.totalorder %v9163_v4, 1 }
 0x1cb   : > { %v1157_v45 = vmul.f32 %v7809_v0, %v8955_v47  ;;  %v9147_v27 = vsub.f32 %v9005_v35, %v924_v56  ;;  %v1097_v54 = vadd.f32 1e-05, %v1065_v8  ;;  %1043 = vadd.xlane.f32.xlu0 %v987_v62  ;;  %v13547_v56 = vmov 0 }
 0x1cc   : > { %v1010_v16 = vpop.xlane.xlu1 %1009  ;;  %v887_v23 = vpop.xlane.xlu0 %886  ;;  %v9151_v17 = vadd.f32 %v9126_v32, %v1192_v1  ;;  %v1387_v51 = vsel %vm13369_vm0, 0.0, %v1292_v18  ;;  %v13548_v56 = vsel %vm9171_vm3, 4294967295, %v13547_v56 }
 0x1cd   : > { %7816 = vrsqrt.f32 %v1097_v54  ;;  %v1066_v28 = vmul.f32 0.0078125, %v1010_v16  ;;  %v925_v47 = vmul.f32 0.0078125, %v887_v23  ;;  %v988_v35 = vmul.f32 %v9147_v27, %v9147_v27  ;;  %13549 = vst [vmem:[#allocation20_spill] sm:$0xff] %v13548_v56 }
 0x1ce   : > { %v7811_v29 = vpop.eup %7810  ;;  %v1293_v10 = vrot.slane %v9151_v17, 7  ;;  %v1193_v33 = vmul.f32 %v9118_v25, %v1157_v45  ;;  %v1452_v45 = vpack.c.bf16 %v9151_v17, %v1227_v48  ;;  %v422_v16 = vadd.s32 32, %v9099_v41 }
 0x1cf   : > { %v1158_v6 = vmul.f32 %v7811_v29, %v8966_v53  ;;  %v1098_v19 = vadd.f32 1e-05, %v1066_v28  ;;  %v9161_v37 = vsub.f32 %v9014_v46, %v925_v47  ;;  %1045 = vadd.xlane.f32.xlu1 %v988_v35  ;;  %v9175_v53 = vand.u32 7, %v421_v5 }
 0x1d0   : > { %v889_v39 = vpop.xlane.xlu1 %888  ;;  %v1012_v11 = vpop.xlane.xlu0 %1011  ;;  %v1294_v43 = vsel %vm13369_vm0, %v1292_v18, %v1293_v10  ;;  %v1229_v46 = vadd.f32 %v9126_v32, %v1193_v33 }
 0x1d1   : > { %7818 = vrsqrt.f32 %v1098_v19  ;;  %v926_v8 = vmul.f32 0.0078125, %v889_v39  ;;  %v1067_v62 = vmul.f32 0.0078125, %v1012_v11  ;;  %v6763_v0 = vpack.c.bf16 %v1294_v43, %v1387_v51 }
 0x1d2   : > { %v7813_v1 = vpop.eup %7812  ;;  %v989_v54 = vmul.f32 %v9161_v37, %v9161_v37  ;;  %v1194_v2 = vmul.f32 %v9118_v25, %v1158_v6  ;;  %vm13296_vm5 = vcmp.ge.s32.totalorder %v9175_v53, 1  ;;  %v9200_v19 = vand.u32 7, %v422_v16 }
 0x1d3   : > { %v1159_v23 = vmul.f32 %v7813_v1, %v8975_v58  ;;  %v9185_v18 = vsub.f32 %v9023_v61, %v926_v8  ;;  %v1099_v5 = vadd.f32 1e-05, %v1067_v62  ;;  %6764 = vmatprep.mubr.msk.bf16.mxu0 %vm9171_vm3, %v6763_v0  ;;  %6812 = vmatprep.mubr.msk.bf16.mxu1 %vm9171_vm3, %v6763_v0  ;;  %v1295_v58 = vrot.slane %v1229_v46, 7  ;;  %vm9213_vm6 = vmpackc.low %vm13296_vm5, %vm13302_vm4 }
 0x1d4   : > { %1837 = vmatmul.mubr.bf16.vlgmr.msra.gmra.mxu0 %v1452_v45  ;;  %2030 = vmatmul.mubr.bf16.vlgmr.msra.gmra.mxu1 %v1452_v45  ;;  %v1014_v48 = vpop.xlane.xlu1 %1013  ;;  %v891_v17 = vpop.xlane.xlu0 %890  ;;  %v9193_v28 = vadd.f32 %v9126_v32, %v1194_v2  ;;  %v423_v61 = vadd.s32 40, %v9099_v41  ;;  %v13550_v45 = vmov 0  ;;  %vm13289_vm7 = vcmp.ge.s32.totalorder %v9200_v19, 1 }
 0x1d5   : > { %7820 = vrsqrt.f32 %v1099_v5  ;;  %1047 = vadd.xlane.f32.xlu0 %v989_v54  ;;  %v1068_v47 = vmul.f32 0.0078125, %v1014_v48  ;;  %v927_v35 = vmul.f32 0.0078125, %v891_v17  ;;  %v990_v29 = vmul.f32 %v9185_v18, %v9185_v18 }
 0x1d6   : > { %v7815_v33 = vpop.eup %7814  ;;  %v1297_v6 = vrot.slane %v9193_v28, 7  ;;  %v1195_v39 = vmul.f32 %v9118_v25, %v1159_v23  ;;  %v1296_v0 = vsel %vm13369_vm0, %v1293_v10, %v1295_v58  ;;  %v13551_v45 = vsel %vm9213_vm6, 4294967295, %v13550_v45 }
 0x1d7   : > { %v1160_v11 = vmul.f32 %v7815_v33, %v8984_v3  ;;  %v1100_v43 = vadd.f32 1e-05, %v1068_v47  ;;  %v9205_v51 = vsub.f32 %v9032_v22, %v927_v35  ;;  %1049 = vadd.xlane.f32.xlu1 %v990_v29  ;;  %13552 = vst [vmem:[#allocation21_spill] sm:$0xff] %v13551_v45  ;;  %v9217_v3 = vand.u32 7, %v423_v61 }
 0x1d8   : > { %v893_v8 = vpop.xlane.xlu1 %892  ;;  %v1016_v62 = vpop.xlane.xlu0 %1015  ;;  %v1298_v1 = vsel %vm13369_vm0, %v1295_v58, %v1297_v6  ;;  %v1231_v22 = vadd.f32 %v9126_v32, %v1195_v39  ;;  %v1454_v10 = vpack.c.bf16 %v9193_v28, %v1229_v46  ;;  %v424_v46 = vadd.s32 48, %v9099_v41 }
 0x1d9   : > { %7822 = vrsqrt.f32 %v1100_v43  ;;  %v928_v54 = vmul.f32 0.0078125, %v893_v8  ;;  %v1069_v2 = vmul.f32 0.0078125, %v1016_v62  ;;  %v6766_v16 = vpack.c.bf16 %v1298_v1, %v1296_v0 }
 0x1da   : > { %v7817_v23 = vpop.eup %7816  ;;  %v991_v5 = vmul.f32 %v9205_v51, %v9205_v51  ;;  %v1196_v48 = vmul.f32 %v9118_v25, %v1160_v11  ;;  %vm13288_vm8 = vcmp.ge.s32.totalorder %v9217_v3, 1 }
 0x1db   : > { %v1161_v17 = vmul.f32 %v7817_v23, %v8993_v26  ;;  %v9227_v58 = vsub.f32 %v9041_v31, %v928_v54  ;;  %v1101_v61 = vadd.f32 1e-05, %v1069_v2  ;;  %6767 = vmatprep.mubr.msk.bf16.mxu0 %vm9213_vm6, %v6766_v16  ;;  %6815 = vmatprep.mubr.msk.bf16.mxu1 %vm9213_vm6, %v6766_v16  ;;  %v1299_v26 = vrot.slane %v1231_v22, 7  ;;  %vm9255_vm9 = vmpackc.low %vm13288_vm8, %vm13289_vm7 }
 0x1dc   : > { %1847 = vmatmul.mubr.bf16.gmra.mxu0 %v1454_v10  ;;  %2038 = vmatmul.mubr.bf16.gmra.mxu1 %v1454_v10  ;;  %v1018_v28 = vpop.xlane.xlu1 %1017  ;;  %v895_v47 = vpop.xlane.xlu0 %894  ;;  %v9235_v35 = vadd.f32 %v9126_v32, %v1196_v48  ;;  %v425_v31 = vadd.s32 56, %v9099_v41  ;;  %v9247_v54 = vand.u32 7, %v424_v46 }
 0x1dd   : > { %7824 = vrsqrt.f32 %v1101_v61  ;;  %1051 = vadd.xlane.f32.xlu0 %v991_v5  ;;  %v1070_v29 = vmul.f32 0.0078125, %v1018_v28  ;;  %v929_v33 = vmul.f32 0.0078125, %v895_v47  ;;  %v992_v39 = vmul.f32 %v9227_v58, %v9227_v58 }
 0x1de   : > { %v7819_v11 = vpop.eup %7818  ;;  %v1301_v43 = vrot.slane %v9235_v35, 7  ;;  %v1197_v8 = vmul.f32 %v9118_v25, %v1161_v17  ;;  %v1300_v23 = vsel %vm13369_vm0, %v1297_v6, %v1299_v26  ;;  %v13553_v5 = vmov 0 }
 0x1df   : > { %v1162_v62 = vmul.f32 %v7819_v11, %v9002_v34  ;;  %v1102_v0 = vadd.f32 1e-05, %v1070_v29  ;;  %v9245_v1 = vsub.f32 %v9050_v7, %v929_v33  ;;  %1053 = vadd.xlane.f32.xlu1 %v992_v39  ;;  %v13554_v5 = vsel %vm9255_vm9, 4294967295, %v13553_v5 }
 0x1e0   : > { %v897_v2 = vpop.xlane.xlu1 %896  ;;  %v1020_v16 = vpop.xlane.xlu0 %1019  ;;  %v1302_v10 = vsel %vm13369_vm0, %v1299_v26, %v1301_v43  ;;  %13555 = vst [vmem:[#allocation22_spill] sm:$0xff] %v13554_v5  ;;  %v9259_v34 = vand.u32 7, %v425_v31  ;;  %v1233_v7 = vadd.f32 %v9126_v32, %v1197_v8  ;;  %v1456_v6 = vpack.c.bf16 %v9235_v35, %v1231_v22 }
 0x1e1   : > { %7826 = vrsqrt.f32 %v1102_v0  ;;  %v930_v48 = vmul.f32 0.0078125, %v897_v2  ;;  %v1071_v17 = vmul.f32 0.0078125, %v1020_v16  ;;  %v6769_v61 = vpack.c.bf16 %v1302_v10, %v1300_v23 }
 0x1e2   : > { %v7821_v46 = vpop.eup %7820  ;;  %v993_v28 = vmul.f32 %v9245_v1, %v9245_v1  ;;  %v1198_v47 = vmul.f32 %v9118_v25, %v1162_v62  ;;  %v426_v26 = vadd.s32 64, %v9099_v41  ;;  %v427_v22 = vadd.s32 72, %v9099_v41 }
 0x1e3   : > { %v1163_v29 = vmul.f32 %v7821_v46, %v9011_v44  ;;  %v9269_v31 = vsub.f32 %v9062_v55, %v930_v48  ;;  %v1103_v33 = vadd.f32 1e-05, %v1071_v17  ;;  %6770 = vmatprep.mubr.msk.bf16.mxu0 %vm9255_vm9, %v6769_v61  ;;  %6818 = vmatprep.mubr.msk.bf16.mxu1 %vm9255_vm9, %v6769_v61  ;;  %v1303_v8 = vrot.slane %v1233_v7, 7 }
 0x1e4   : > { %1857 = vmatmul.mubr.bf16.gmra.mxu0 %v1456_v6  ;;  %2046 = vmatmul.mubr.bf16.gmra.mxu1 %v1456_v6  ;;  %v1022_v35 = vpop.xlane.xlu1 %1021  ;;  %v1024_v39 = vpop.xlane.xlu0 %1023  ;;  %v1234_v11 = vadd.f32 %v9126_v32, %v1198_v47  ;;  %vm13287_vm10 = vcmp.ge.s32.totalorder %v9247_v54, 1  ;;  %vm13284_vm11 = vcmp.ge.s32.totalorder %v9259_v34, 1  ;;  %v9281_v16 = vand.u32 7, %v426_v26 }
 0x1e5   : > { %7828 = vrsqrt.f32 %v1103_v33  ;;  %1055 = vadd.xlane.f32.xlu0 %v993_v28  ;;  %v1072_v44 = vmul.f32 0.0078125, %v1022_v35  ;;  %v1073_v55 = vmul.f32 0.0078125, %v1024_v39  ;;  %v994_v62 = vmul.f32 %v9269_v31, %v9269_v31  ;;  %vm9293_vm12 = vmpackc.low %vm13284_vm11, %vm13287_vm10 }
 0x1e6   : > { %v7823_v0 = vpop.eup %7822  ;;  %v1305_v2 = vrot.slane %v1234_v11, 7  ;;  %v1199_v23 = vmul.f32 %v9118_v25, %v1163_v29  ;;  %v9285_v61 = vand.u32 7, %v427_v22  ;;  %v1304_v28 = vsel %vm13369_vm0, %v1301_v43, %v1303_v8 }
 0x1e7   : > { %v1164_v10 = vmul.f32 %v7823_v0, %v9020_v60  ;;  %v1104_v48 = vadd.f32 1e-05, %v1072_v44  ;;  %v1105_v17 = vadd.f32 1e-05, %v1073_v55  ;;  %1057 = vadd.xlane.f32.xlu1 %v994_v62  ;;  %v13556_v26 = vmov 0 }
 0x1e8   : > { %v1026_v46 = vpop.xlane.xlu1 %1025  ;;  %v1028_v6 = vpop.xlane.xlu0 %1027  ;;  %v1306_v47 = vsel %vm13369_vm0, %v1303_v8, %v1305_v2  ;;  %v13557_v26 = vsel %vm9293_vm12, 4294967295, %v13556_v26  ;;  %v1235_v60 = vadd.f32 %v9126_v32, %v1199_v23  ;;  %v1458_v39 = vpack.c.bf16 %v1234_v11, %v1233_v7 }
 0x1e9   : > { %13558 = vst [vmem:[#allocation23_spill] sm:$0xff] %v13557_v26  ;;  %7830 = vrsqrt.f32 %v1104_v48  ;;  %v1074_v29 = vmul.f32 0.0078125, %v1026_v46  ;;  %v1075_v33 = vmul.f32 0.0078125, %v1028_v6  ;;  %v6772_v22 = vpack.c.bf16 %v1306_v47, %v1304_v28 }
 0x1ea   : > { %v7825_v35 = vpop.eup %7824  ;;  %7832 = vrsqrt.f32 %v1105_v17  ;;  %v1200_v43 = vmul.f32 %v9118_v25, %v1164_v10  ;;  %vm13283_vm13 = vcmp.ge.s32.totalorder %v9281_v16, 1  ;;  %vm13282_vm14 = vcmp.ge.s32.totalorder %v9285_v61, 1 }
 0x1eb   : > { %v1165_v8 = vmul.f32 %v7825_v35, %v9029_v21  ;;  %v1106_v44 = vadd.f32 1e-05, %v1074_v29  ;;  %v1107_v55 = vadd.f32 1e-05, %v1075_v33  ;;  %6773 = vmatprep.mubr.msk.bf16.mxu0 %vm9293_vm12, %v6772_v22  ;;  %6821 = vmatprep.mubr.msk.bf16.mxu1 %vm9293_vm12, %v6772_v22  ;;  %v1307_v0 = vrot.slane %v1235_v60, 7  ;;  %vm9318_vm15 = vmpackc.low %vm13282_vm14, %vm13283_vm13 }
 0x1ec   : > { %1867 = vmatmul.mubr.bf16.gmra.mxu0 %v1458_v39  ;;  %2054 = vmatmul.mubr.bf16.gmra.mxu1 %v1458_v39  ;;  %v1030_v62 = vpop.xlane.xlu1 %1029  ;;  %v1032_v7 = vpop.xlane.xlu0 %1031  ;;  %v1236_v11 = vadd.f32 %v9126_v32, %v1200_v43  ;;  %v428_v23 = vadd.s32 80, %v9099_v41  ;;  %v429_v21 = vadd.s32 88, %v9099_v41  ;;  %v13559_v43 = vmov 0 }
 0x1ed   : > { %7834 = vrsqrt.f32 %v1106_v44  ;;  %v1076_v10 = vmul.f32 0.0078125, %v1030_v62  ;;  %v1077_v48 = vmul.f32 0.0078125, %v1032_v7  ;;  %v1201_v17 = vmul.f32 %v9118_v25, %v1165_v8 }
 0x1ee   : > { %v7827_v46 = vpop.eup %7826  ;;  %7836 = vrsqrt.f32 %v1107_v55  ;;  %v1309_v6 = vrot.slane %v1236_v11, 7  ;;  %v1308_v35 = vsel %vm13369_vm0, %v1305_v2, %v1307_v0  ;;  %v13560_v43 = vsel %vm9318_vm15, 4294967295, %v13559_v43 }
 0x1ef   : > { %v1166_v28 = vmul.f32 %v7827_v46, %v9038_v30  ;;  %v1108_v47 = vadd.f32 1e-05, %v1076_v10  ;;  %v1109_v29 = vadd.f32 1e-05, %v1077_v48  ;;  %v1237_v33 = vadd.f32 %v9126_v32, %v1201_v17  ;;  %13561 = vst [vmem:[#allocation24_spill] sm:$0xff] %v13560_v43  ;;  %v7716_v46 = vld [vmem:[#allocation10 + $0x38] sm:$0xff]  }
 0x1f0   : > { %v1034_v22 = vpop.xlane.xlu1 %1033  ;;  %v1310_v39 = vsel %vm13369_vm0, %v1307_v0, %v1309_v6  ;;  %v9322_v8 = vand.u32 7, %v428_v23  ;;  %v9324_v30 = vand.u32 7, %v429_v21  ;;  %v1460_v7 = vpack.c.bf16 %v1236_v11, %v1235_v60  ;;  %7457 = vmatprep.subr.bf16.mxu1 %v7716_v46 }
 0x1f1   : > { %7838 = vrsqrt.f32 %v1108_v47  ;;  %v1078_v44 = vmul.f32 0.0078125, %v1034_v22  ;;  %v6775_v55 = vpack.c.bf16 %v1310_v39, %v1308_v35  ;;  %v1202_v62 = vmul.f32 %v9118_v25, %v1166_v28  ;;  %7458 = vmatpush3.bf16.msra.mxu1 %v7716_v46 }
 0x1f2   : > { %v7829_v2 = vpop.eup %7828  ;;  %7840 = vrsqrt.f32 %v1109_v29  ;;  %v430_v0 = vadd.s32 96, %v9099_v41  ;;  %v431_v10 = vadd.s32 104, %v9099_v41  ;;  %v1311_v21 = vrot.slane %v1237_v33, 7 }
 0x1f3   : > { %v1167_v48 = vmul.f32 %v7829_v2, %v9047_v42  ;;  %v1110_v17 = vadd.f32 1e-05, %v1078_v44  ;;  %6776 = vmatprep.mubr.msk.bf16.mxu0 %vm9318_vm15, %v6775_v55  ;;  %6824 = vmatprep.mubr.msk.bf16.mxu1 %vm9318_vm15, %v6775_v55  ;;  %v1238_v23 = vadd.f32 %v9126_v32, %v1202_v62  ;;  %vm13286_vm14 = vcmp.ge.s32.totalorder %v9322_v8, 1 }
 0x1f4   : > { %1877 = vmatmul.mubr.bf16.gmra.mxu0 %v1460_v7  ;;  %2062 = vmatmul.mubr.bf16.gmra.mxu1 %v1460_v7  ;;  %vm13285_vm13 = vcmp.ge.s32.totalorder %v9324_v30, 1  ;;  %v9338_v28 = vand.u32 7, %v430_v0  ;;  %v9340_v47 = vand.u32 7, %v431_v10  ;;  %v1312_v35 = vsel %vm13369_vm0, %v1309_v6, %v1311_v21 }
 0x1f5   : > { %7842 = vrsqrt.f32 %v1110_v17  ;;  %v1313_v60 = vrot.slane %v1238_v23, 7  ;;  %v1203_v42 = vmul.f32 %v9118_v25, %v1167_v48  ;;  %vm9349_vm11 = vmpackc.low %vm13285_vm13, %vm13286_vm14  ;;  %v13564_v44 = vmov 0 }
 0x1f6   : > { %v7831_v11 = vpop.eup %7830  ;;  %13562 = vst [vmem:[#allocation25_spill] sm:$0xff] %v9338_v28  ;;  %13563 = vst [vmem:[#allocation26_spill] sm:$0xff] %v9340_v47  ;;  %v13565_v44 = vsel %vm9349_vm11, 4294967295, %v13564_v44  ;;  %v432_v7 = vadd.s32 112, %v9099_v41  ;;  %v1462_v10 = vpack.c.bf16 %v1238_v23, %v1237_v33  ;;  %vm13293_vm13 = vcmp.ge.s32.totalorder %v9338_v28, 1 }
 0x1f7   : > { %v7833_v29 = vpop.eup %7832  ;;  %v1168_v22 = vmul.f32 %v7831_v11, %v9053_v49  ;;  %v1314_v39 = vsel %vm13369_vm0, %v1311_v21, %v1313_v60  ;;  %13566 = vst [vmem:[#allocation27_spill] sm:$0xff] %v13565_v44  ;;  %v1239_v55 = vadd.f32 %v9126_v32, %v1203_v42  ;;  %v433_v49 = vadd.s32 120, %v9099_v41 }
 0x1f8   : > { %v1169_v62 = vmul.f32 %v7833_v29, %v9059_v12  ;;  %v6778_v2 = vpack.c.bf16 %v1314_v39, %v1312_v35  ;;  %vm13290_vm14 = vcmp.ge.s32.totalorder %v9340_v47, 1  ;;  %v9368_v11 = vand.u32 7, %v432_v7 }
 0x1f9   : > { %v1204_v6 = vmul.f32 %v9118_v25, %v1168_v22  ;;  %v1315_v48 = vrot.slane %v1239_v55, 7  ;;  %v9370_v29 = vand.u32 7, %v433_v49  ;;  %vm9384_vm10 = vmpackc.low %vm13290_vm14, %vm13293_vm13 }
 0x1fa   : > { %v7835_v0 = vpop.eup %7834  ;;  %6779 = vmatprep.mubr.msk.bf16.mxu0 %vm9349_vm11, %v6778_v2  ;;  %6827 = vmatprep.mubr.msk.bf16.mxu1 %vm9349_vm11, %v6778_v2  ;;  %v1205_v17 = vmul.f32 %v9118_v25, %v1169_v62  ;;  %13567 = vst [vmem:[#allocation28_spill] sm:$0xff] %v9368_v11  ;;  %v435_v62 = vadd.s32 136, %v9099_v41  ;;  %vm13292_vm8 = vcmp.ge.s32.totalorder %v9368_v11, 1 }
 0x1fb   : > { %v7837_v21 = vpop.eup %7836  ;;  %v1170_v12 = vmul.f32 %v7835_v0, %v9067_v13  ;;  %v1240_v46 = vadd.f32 %v9126_v32, %v1204_v6  ;;  %13568 = vst [vmem:[#allocation29_spill] sm:$0xff] %v9370_v29  ;;  %v434_v13 = vadd.s32 128, %v9099_v41  ;;  %v1316_v39 = vsel %vm13369_vm0, %v1313_v60, %v1315_v48 }
 0x1fc   : > { %v1171_v42 = vmul.f32 %v7837_v21, %v9073_v14  ;;  %1887 = vmatmul.mubr.bf16.gmra.mxu0 %v1462_v10  ;;  %2070 = vmatmul.mubr.bf16.gmra.mxu1 %v1462_v10  ;;  %v1241_v33 = vadd.f32 %v9126_v32, %v1205_v17  ;;  %v13569_v6 = vmov 0  ;;  %vm13291_vm7 = vcmp.ge.s32.totalorder %v9370_v29, 1 }
 0x1fd   : > { %v1317_v23 = vrot.slane %v1240_v46, 7  ;;  %v1206_v22 = vmul.f32 %v9118_v25, %v1170_v12  ;;  %v13570_v6 = vsel %vm9384_vm10, 4294967295, %v13569_v6  ;;  %vm9409_vm14 = vmpackc.low %vm13291_vm7, %vm13292_vm8 }
 0x1fe   : > { %v7839_v35 = vpop.eup %7838  ;;  %v1207_v14 = vmul.f32 %v9118_v25, %v1171_v42  ;;  %13571 = vst [vmem:[#allocation30_spill] sm:$0xff] %v13570_v6  ;;  %v1319_v60 = vrot.slane %v1241_v33, 7  ;;  %v1464_v42 = vpack.c.bf16 %v1240_v46, %v1239_v55  ;;  %v7717_v46 = vld [vmem:[#allocation10 + $0x30] sm:$0xff]  }
 0x1ff   : > { %v7841_v2 = vpop.eup %7840  ;;  %v1172_v7 = vmul.f32 %v7839_v35, %v9080_v20  ;;  %v1318_v49 = vsel %vm13369_vm0, %v1315_v48, %v1317_v23  ;;  %v1242_v0 = vadd.f32 %v9126_v32, %v1206_v22  ;;  %v9391_v20 = vand.u32 7, %v434_v13  ;;  %7459 = vmatprep.subr.bf16.mxu1 %v7717_v46 }
 0x200   : > { %v6781_v10 = vpack.c.bf16 %v1318_v49, %v1316_v39  ;;  %v1173_v12 = vmul.f32 %v7841_v2, %v9083_v9  ;;  %v9399_v22 = vand.u32 7, %v435_v62  ;;  %v1243_v35 = vadd.f32 %v9126_v32, %v1207_v14  ;;  %v7718_v14 = vld [vmem:[#allocation10 + $0x28] sm:$0xff]   ;;  %7460 = vmatpush3.bf16.msra.mxu1 %v7717_v46 }
 0x201   : > { %v1321_v17 = vrot.slane %v1242_v0, 7  ;;  %13572 = vst [vmem:[#allocation31_spill] sm:$0xff] %v9391_v20  ;;  %v1208_v48 = vmul.f32 %v9118_v25, %v1172_v7  ;;  %v1320_v13 = vsel %vm13369_vm0, %v1317_v23, %v1319_v60  ;;  %v13574_v9 = vmov 0  ;;  %7461 = vmatprep.subr.bf16.mxu1 %v7718_v14 }
 0x202   : > { %v7843_v21 = vpop.eup %7842  ;;  %6782 = vmatprep.mubr.msk.bf16.mxu0 %vm9384_vm10, %v6781_v10  ;;  %6830 = vmatprep.mubr.msk.bf16.mxu1 %vm9384_vm10, %v6781_v10  ;;  %13573 = vst [vmem:[#allocation32_spill] sm:$0xff] %v9399_v22  ;;  %v13575_v9 = vsel %vm9409_vm14, 4294967295, %v13574_v9  ;;  %v1323_v2 = vrot.slane %v1243_v35, 7  ;;  %v1209_v49 = vmul.f32 %v9118_v25, %v1173_v12  ;;  %vm13295_vm7 = vcmp.ge.s32.totalorder %v9391_v20, 1 }
 0x203   : > { %v1174_v39 = vmul.f32 %v7843_v21, %v9090_v24  ;;  %v1322_v7 = vsel %vm13369_vm0, %v1319_v60, %v1321_v17  ;;  %13576 = vst [vmem:[#allocation33_spill] sm:$0xff] %v13575_v9  ;;  %v1244_v55 = vadd.f32 %v9126_v32, %v1208_v48  ;;  %vm13294_vm8 = vcmp.ge.s32.totalorder %v9399_v22, 1 }
 0x204   : > { %1897 = vmatmul.mubr.bf16.gmra.mxu0 %v1464_v42  ;;  %2078 = vmatmul.mubr.bf16.gmra.mxu1 %v1464_v42  ;;  %v6784_v62 = vpack.c.bf16 %v1322_v7, %v1320_v13  ;;  %v436_v60 = vadd.s32 144, %v9099_v41  ;;  %v437_v10 = vadd.s32 152, %v9099_v41  ;;  %v1466_v42 = vpack.c.bf16 %v1242_v0, %v1241_v33  ;;  %vm9433_vm13 = vmpackc.low %vm13294_vm8, %vm13295_vm7 }
 0x205   : > { %v1325_v24 = vrot.slane %v1244_v55, 7  ;;  %v1210_v23 = vmul.f32 %v9118_v25, %v1174_v39  ;;  %v1324_v39 = vsel %vm13369_vm0, %v1321_v17, %v1323_v2  ;;  %v13577_v12 = vmov 0  ;;  %7462 = vmatpush3.bf16.msra.mxu1 %v7718_v14 }
 0x206   : > { %6785 = vmatprep.mubr.msk.bf16.mxu0 %vm9409_vm14, %v6784_v62  ;;  %6833 = vmatprep.mubr.msk.bf16.mxu1 %vm9409_vm14, %v6784_v62  ;;  %v13578_v12 = vsel %vm9433_vm13, 4294967295, %v13577_v12  ;;  %v1245_v13 = vadd.f32 %v9126_v32, %v1209_v49  ;;  %v9438_v46 = vand.u32 7, %v436_v60  ;;  %v9440_v62 = vand.u32 7, %v437_v10 }
 0x207   : > { %v1326_v48 = vsel %vm13369_vm0, %v1323_v2, %v1325_v24  ;;  %v9426_v21 = vadd.f32 %v9126_v32, %v1210_v23  ;;  %13579 = vst [vmem:[#allocation34_spill] sm:$0xff] %v13578_v12  ;;  %v1468_v14 = vpack.c.bf16 %v1244_v55, %v1243_v35  ;;  %v13582_v2 = vmov 0  ;;  %v7719_v35 = vld [vmem:[#allocation10 + $0x20] sm:$0xff]  }
 0x208   : > { %v6787_v7 = vpack.c.bf16 %v1326_v48, %v1324_v39  ;;  %13580 = vst [vmem:[#allocation35_spill] sm:$0xff] %v9438_v46  ;;  %13581 = vst [vmem:[#allocation36_spill] sm:$0xff] %v9440_v62  ;;  %v1327_v0 = vrot.slane %v1245_v13, 7  ;;  %vm13301_vm8 = vcmp.ge.s32.totalorder %v9438_v46, 1  ;;  %vm13300_vm7 = vcmp.ge.s32.totalorder %v9440_v62, 1  ;;  %7463 = vmatprep.subr.bf16.mxu1 %v7719_v35 }
 0x209   : > { %v13297_v33 = vrot.slane %v9426_v21, 7  ;;  %vm9457_vm5 = vmpackc.low %vm13300_vm7, %vm13301_vm8  ;;  %v1470_v55 = vpack.c.bf16 %v9426_v21, %v1245_v13  ;;  %7464 = vmatpush3.bf16.msra.mxu1 %v7719_v35 }
 0x20a   : > { %v1328_v23 = vsel %vm13369_vm0, %v1325_v24, %v1327_v0  ;;  %v13583_v2 = vsel %vm9457_vm5, 4294967295, %v13582_v2 }
 0x20b   : > { %v1330_v17 = vsel %vm13369_vm0, %v1327_v0, %v13297_v33  ;;  %13584 = vst [vmem:[#allocation37_spill] sm:$0xff] %v13583_v2 }
 0x20c   : > { %1907 = vmatmul.mubr.bf16.gmra.mxu0 %v1466_v42  ;;  %2086 = vmatmul.mubr.bf16.gmra.mxu1 %v1466_v42  ;;  %v6790_v49 = vpack.c.bf16 %v1330_v17, %v1328_v23 }
 0x20d   : > { %6788 = vmatprep.mubr.msk.bf16.mxu0 %vm9433_vm13, %v6787_v7  ;;  %6836 = vmatprep.mubr.msk.bf16.mxu1 %vm9433_vm13, %v6787_v7 }
 0x214   : > { %1917 = vmatmul.mubr.bf16.gmra.mxu0 %v1468_v14  ;;  %2094 = vmatmul.mubr.bf16.gmra.mxu1 %v1468_v14 }
 0x215   : > { %6791 = vmatprep.mubr.msk.bf16.mxu0 %vm9457_vm5, %v6790_v49  ;;  %6839 = vmatprep.mubr.msk.bf16.mxu1 %vm9457_vm5, %v6790_v49 }
 0x21c   : > { %1927 = vmatmul.mubr.bf16.gmra.mxu0 %v1470_v55  ;;  %2102 = vmatmul.mubr.bf16.gmra.mxu1 %v1470_v55 }
 0x244   : > { %v1036_v24 = vpop.xlane.xlu0 %1035 }
 0x245   : > { %v1079_v60 = vmul.f32 0.0078125, %v1036_v24 }
 0x247   : > { %v1111_v10 = vadd.f32 1e-05, %v1079_v60 }
 0x248   : > { %v1038_v48 = vpop.xlane.xlu1 %1037 }
 0x249   : > { %7844 = vrsqrt.f32 %v1111_v10  ;;  %v1080_v42 = vmul.f32 0.0078125, %v1038_v48  ;;  %v438_v10 = vadd.s32 160, %v9099_v41  ;;  %v439_v48 = vadd.s32 168, %v9099_v41 }
 0x24b   : > { %v1112_v39 = vadd.f32 1e-05, %v1080_v42 }
 0x24c   : > { %v1040_v7 = vpop.xlane.xlu0 %1039 }
 0x24d   : > { %7846 = vrsqrt.f32 %v1112_v39  ;;  %v1081_v0 = vmul.f32 0.0078125, %v1040_v7 }
 0x24f   : > { %v1113_v17 = vadd.f32 1e-05, %v1081_v0 }
 0x250   : > { %v1042_v14 = vpop.xlane.xlu1 %1041 }
 0x251   : > { %7848 = vrsqrt.f32 %v1113_v17  ;;  %v1082_v23 = vmul.f32 0.0078125, %v1042_v14 }
 0x253   : > { %v1114_v49 = vadd.f32 1e-05, %v1082_v23  ;;  %v9474_v23 = vand.u32 7, %v439_v48 }
 0x254   : > { %v1044_v33 = vpop.xlane.xlu0 %1043 }
 0x255   : > { %7850 = vrsqrt.f32 %v1114_v49  ;;  %v1083_v13 = vmul.f32 0.0078125, %v1044_v33  ;;  %v9472_v33 = vand.u32 7, %v438_v10  ;;  %13586 = vst [vmem:[#allocation39_spill] sm:$0xff] %v9474_v23  ;;  %vm13303_vm8 = vcmp.ge.s32.totalorder %v9474_v23, 1 }
 0x256   : > { %v7845_v35 = vpop.eup %7844  ;;  %v441_v10 = vadd.s32 184, %v9099_v41 }
 0x257   : > { %v1175_v55 = vmul.f32 %v7845_v35, %v9095_v36  ;;  %v1115_v24 = vadd.f32 1e-05, %v1083_v13  ;;  %13585 = vst [vmem:[#allocation38_spill] sm:$0xff] %v9472_v33  ;;  %vm13304_vm7 = vcmp.ge.s32.totalorder %v9472_v33, 1 }
 0x258   : > { %v1046_v60 = vpop.xlane.xlu1 %1045  ;;  %vm9493_vm4 = vmpackc.low %vm13303_vm8, %vm13304_vm7 }
 0x259   : > { %7852 = vrsqrt.f32 %v1115_v24  ;;  %v1084_v42 = vmul.f32 0.0078125, %v1046_v60  ;;  %v1211_v39 = vmul.f32 %v9118_v25, %v1175_v55 }
 0x25a   : > { %v7847_v7 = vpop.eup %7846 }
 0x25b   : > { %v1176_v0 = vmul.f32 %v7847_v7, %v9102_v50  ;;  %v1116_v17 = vadd.f32 1e-05, %v1084_v42  ;;  %v1247_v14 = vadd.f32 %v9126_v32, %v1211_v39  ;;  %v440_v50 = vadd.s32 176, %v9099_v41 }
 0x25d   : > { %7854 = vrsqrt.f32 %v1116_v17  ;;  %v1212_v36 = vmul.f32 %v9118_v25, %v1176_v0  ;;  %v1331_v35 = vrot.slane %v1247_v14, 7  ;;  %v13587_v0 = vrot.slane %v9426_v21, 7 }
 0x25e   : > { %v7849_v49 = vpop.eup %7848  ;;  %v1048_v13 = vpop.xlane.xlu0 %1047  ;;  %v9497_v21 = vand.u32 7, %v440_v50 }
 0x25f   : > { %v1177_v24 = vmul.f32 %v7849_v49, %v9110_v63  ;;  %v1085_v60 = vmul.f32 0.0078125, %v1048_v13  ;;  %v1248_v55 = vadd.f32 %v9126_v32, %v1212_v36  ;;  %v1332_v63 = vsel %vm13369_vm0, %v13587_v0, %v1331_v35 }
 0x260   : > { %v1050_v2 = vpop.xlane.xlu1 %1049  ;;  %13591 = vst [vmem:[#allocation41_spill] sm:$0xff] %v9497_v21  ;;  %v9499_v0 = vand.u32 7, %v441_v10  ;;  %vm13309_vm8 = vcmp.ge.s32.totalorder %v9497_v21, 1 }
 0x261   : > { %v1117_v48 = vadd.f32 1e-05, %v1085_v60  ;;  %v1086_v42 = vmul.f32 0.0078125, %v1050_v2  ;;  %v1333_v39 = vrot.slane %v1248_v55, 7  ;;  %v1213_v17 = vmul.f32 %v9118_v25, %v1177_v24 }
 0x262   : > { %v7851_v7 = vpop.eup %7850  ;;  %v13588_v2 = vmov 0  ;;  %13592 = vst [vmem:[#allocation42_spill] sm:$0xff] %v9499_v0  ;;  %vm13308_vm7 = vcmp.ge.s32.totalorder %v9499_v0, 1 }
 0x263   : > { %v1178_v36 = vmul.f32 %v7851_v7, %v9121_v59  ;;  %7856 = vrsqrt.f32 %v1117_v48  ;;  %v1118_v49 = vadd.f32 1e-05, %v1086_v42  ;;  %v1334_v13 = vsel %vm13369_vm0, %v1331_v35, %v1333_v39  ;;  %v7720_v59 = vld [vmem:[#allocation10 + $0x18] sm:$0xff]   ;;  %vm9521_vm2 = vmpackc.low %vm13308_vm7, %vm13309_vm8 }
 0x264   : > { %v13589_v2 = vsel %vm9493_vm4, 4294967295, %v13588_v2  ;;  %v6793_v60 = vpack.c.bf16 %v1334_v13, %v1332_v63  ;;  %v1249_v24 = vadd.f32 %v9126_v32, %v1213_v17  ;;  %v1472_v48 = vpack.c.bf16 %v1248_v55, %v1247_v14  ;;  %7465 = vmatprep.subr.bf16.mxu1 %v7720_v59 }
 0x265   : > { %13590 = vst [vmem:[#allocation40_spill] sm:$0xff] %v13589_v2  ;;  %7858 = vrsqrt.f32 %v1118_v49  ;;  %v1214_v35 = vmul.f32 %v9118_v25, %v1178_v36  ;;  %v442_v14 = vadd.s32 192, %v9099_v41  ;;  %v443_v55 = vadd.s32 200, %v9099_v41  ;;  %7466 = vmatpush3.bf16.msra.mxu1 %v7720_v59 }
 0x266   : > { %v7853_v42 = vpop.eup %7852  ;;  %v1052_v7 = vpop.xlane.xlu0 %1051  ;;  %6794 = vmatprep.mubr.msk.bf16.mxu0 %vm9493_vm4, %v6793_v60  ;;  %6842 = vmatprep.mubr.msk.bf16.mxu1 %vm9493_vm4, %v6793_v60  ;;  %v1335_v63 = vrot.slane %v1249_v24, 7 }
 0x267   : > { %v1179_v50 = vmul.f32 %v7853_v42, %v9135_v40  ;;  %v1087_v10 = vmul.f32 0.0078125, %v1052_v7  ;;  %1937 = vmatmul.mubr.bf16.gmra.mxu0 %v1472_v48  ;;  %2110 = vmatmul.mubr.bf16.gmra.mxu1 %v1472_v48  ;;  %v1250_v17 = vadd.f32 %v9126_v32, %v1214_v35 }
 0x268   : > { %v1054_v49 = vpop.xlane.xlu1 %1053  ;;  %v1336_v42 = vsel %vm13369_vm0, %v1333_v39, %v1335_v63  ;;  %v9527_v39 = vand.u32 7, %v443_v55 }
 0x269   : > { %v1119_v36 = vadd.f32 1e-05, %v1087_v10  ;;  %v1088_v13 = vmul.f32 0.0078125, %v1054_v49  ;;  %v1337_v60 = vrot.slane %v1250_v17, 7  ;;  %v1215_v48 = vmul.f32 %v9118_v25, %v1179_v50 }
 0x26a   : > { %v7855_v40 = vpop.eup %7854  ;;  %v13593_v10 = vmov 0  ;;  %v9525_v49 = vand.u32 7, %v442_v14  ;;  %13597 = vst [vmem:[#allocation45_spill] sm:$0xff] %v9527_v39  ;;  %vm13315_vm8 = vcmp.ge.s32.totalorder %v9527_v39, 1 }
 0x26b   : > { %v1180_v35 = vmul.f32 %v7855_v40, %v9147_v27  ;;  %7860 = vrsqrt.f32 %v1119_v36  ;;  %v1120_v7 = vadd.f32 1e-05, %v1088_v13  ;;  %v1338_v2 = vsel %vm13369_vm0, %v1335_v63, %v1337_v60 }
 0x26c   : > { %v13594_v10 = vsel %vm9521_vm2, 4294967295, %v13593_v10  ;;  %v6796_v59 = vpack.c.bf16 %v1338_v2, %v1336_v42  ;;  %13596 = vst [vmem:[#allocation44_spill] sm:$0xff] %v9525_v49  ;;  %v1251_v50 = vadd.f32 %v9126_v32, %v1215_v48  ;;  %v1474_v27 = vpack.c.bf16 %v1250_v17, %v1249_v24 }
 0x26d   : > { %13595 = vst [vmem:[#allocation43_spill] sm:$0xff] %v13594_v10  ;;  %7862 = vrsqrt.f32 %v1120_v7  ;;  %v1216_v36 = vmul.f32 %v9118_v25, %v1180_v35  ;;  %v444_v2 = vadd.s32 208, %v9099_v41  ;;  %vm13316_vm7 = vcmp.ge.s32.totalorder %v9525_v49, 1 }
 0x26e   : > { %v1056_v63 = vpop.xlane.xlu0 %1055  ;;  %6797 = vmatprep.mubr.msk.bf16.mxu0 %vm9521_vm2, %v6796_v59  ;;  %6845 = vmatprep.mubr.msk.bf16.mxu1 %vm9521_vm2, %v6796_v59  ;;  %v1339_v13 = vrot.slane %v1251_v50, 7  ;;  %v445_v24 = vadd.s32 216, %v9099_v41  ;;  %vm9550_vm1 = vmpackc.low %vm13315_vm8, %vm13316_vm7  ;;  %v3579_v49 = vsub.s32 6, %v9099_v41 }
 0x26f   : > { %v1089_v14 = vmul.f32 0.0078125, %v1056_v63  ;;  %1947 = vmatmul.mubr.bf16.gmra.mxu0 %v1474_v27  ;;  %2118 = vmatmul.mubr.bf16.gmra.mxu1 %v1474_v27  ;;  %v1252_v55 = vadd.f32 %v9126_v32, %v1216_v36  ;;  %v9542_v10 = vand.u32 7, %v444_v2 }
 0x270   : > { %v7857_v40 = vpop.eup %7856  ;;  %v1058_v42 = vpop.xlane.xlu1 %1057  ;;  %v1340_v63 = vsel %vm13369_vm0, %v1337_v60, %v1339_v13 }
 0x271   : > { %v1181_v17 = vmul.f32 %v7857_v40, %v9161_v37  ;;  %v1121_v48 = vadd.f32 1e-05, %v1089_v14  ;;  %v1090_v35 = vmul.f32 0.0078125, %v1058_v42  ;;  %v1341_v7 = vrot.slane %v1252_v55, 7  ;;  %13598 = vst [vmem:[#allocation46_spill] sm:$0xff] %v9542_v10 }
 0x272   : > { %v7859_v59 = vpop.eup %7858  ;;  %v13599_v37 = vmov 0  ;;  %v9554_v40 = vand.u32 7, %v445_v24  ;;  %v1476_v2 = vpack.c.bf16 %v1252_v55, %v1251_v50  ;;  %vm13320_vm8 = vcmp.ge.s32.totalorder %v9542_v10, 1 }
 0x273   : > { %v1182_v27 = vmul.f32 %v7859_v59, %v9185_v18  ;;  %7864 = vrsqrt.f32 %v1121_v48  ;;  %v1122_v36 = vadd.f32 1e-05, %v1090_v35  ;;  %v1342_v12 = vsel %vm13369_vm0, %v1339_v13, %v1341_v7 }
 0x274   : > { %v13600_v37 = vsel %vm9550_vm1, 4294967295, %v13599_v37  ;;  %v6799_v14 = vpack.c.bf16 %v1342_v12, %v1340_v63  ;;  %13602 = vst [vmem:[#allocation48_spill] sm:$0xff] %v9554_v40  ;;  %v1217_v60 = vmul.f32 %v9118_v25, %v1181_v17  ;;  %vm13319_vm7 = vcmp.ge.s32.totalorder %v9554_v40, 1 }
 0x275   : > { %13601 = vst [vmem:[#allocation47_spill] sm:$0xff] %v13600_v37  ;;  %7866 = vrsqrt.f32 %v1122_v36  ;;  %v1218_v18 = vmul.f32 %v9118_v25, %v1182_v27  ;;  %v446_v50 = vadd.s32 224, %v9099_v41  ;;  %v447_v55 = vadd.s32 232, %v9099_v41 }
 0x276   : > { %6800 = vmatprep.mubr.msk.bf16.mxu0 %vm9550_vm1, %v6799_v14  ;;  %6848 = vmatprep.mubr.msk.bf16.mxu1 %vm9550_vm1, %v6799_v14  ;;  %v1253_v13 = vadd.f32 %v9126_v32, %v1217_v60  ;;  %vm9576_vm1 = vmpackc.low %vm13319_vm7, %vm13320_vm8  ;;  %v13603_v36 = vmov 0 }
 0x277   : > { %1957 = vmatmul.mubr.bf16.gmra.mxu0 %v1476_v2  ;;  %2126 = vmatmul.mubr.bf16.gmra.mxu1 %v1476_v2  ;;  %v1254_v12 = vadd.f32 %v9126_v32, %v1218_v18  ;;  %v13604_v36 = vsel %vm9576_vm1, 4294967295, %v13603_v36  ;;  %v9583_v2 = vand.u32 7, %v447_v55 }
 0x278   : > { %v7861_v42 = vpop.eup %7860  ;;  %v1343_v24 = vrot.slane %v1253_v13, 7  ;;  %13605 = vst [vmem:[#allocation49_spill] sm:$0xff] %v13604_v36 }
 0x279   : > { %v1183_v17 = vmul.f32 %v7861_v42, %v9205_v51  ;;  %v1345_v48 = vrot.slane %v1254_v12, 7  ;;  %v9581_v51 = vand.u32 7, %v446_v50  ;;  %13607 = vst [vmem:[#allocation51_spill] sm:$0xff] %v9583_v2  ;;  %v7721_v42 = vld [vmem:[#allocation10 + $0x10] sm:$0xff]   ;;  %vm13323_vm8 = vcmp.ge.s32.totalorder %v9583_v2, 1 }
 0x27a   : > { %v7863_v35 = vpop.eup %7862  ;;  %v1344_v63 = vsel %vm13369_vm0, %v1341_v7, %v1343_v24  ;;  %7467 = vmatprep.subr.bf16.mxu1 %v7721_v42 }
 0x27b   : > { %v1184_v59 = vmul.f32 %v7863_v35, %v9227_v58  ;;  %v1346_v27 = vsel %vm13369_vm0, %v1343_v24, %v1345_v48  ;;  %v1219_v14 = vmul.f32 %v9118_v25, %v1183_v17  ;;  %13606 = vst [vmem:[#allocation50_spill] sm:$0xff] %v9581_v51  ;;  %v1478_v58 = vpack.c.bf16 %v1254_v12, %v1253_v13 }
 0x27c   : > { %v6802_v60 = vpack.c.bf16 %v1346_v27, %v1344_v63  ;;  %vm13324_vm7 = vcmp.ge.s32.totalorder %v9581_v51, 1  ;;  %v448_v13 = vadd.s32 240, %v9099_v41  ;;  %v449_v12 = vadd.s32 248, %v9099_v41  ;;  %7468 = vmatpush3.bf16.msra.mxu1 %v7721_v42 }
 0x27d   : > { %v1220_v7 = vmul.f32 %v9118_v25, %v1184_v59  ;;  %v1255_v18 = vadd.f32 %v9126_v32, %v1219_v14 }
 0x27e   : > { %6803 = vmatprep.mubr.msk.bf16.mxu0 %vm9576_vm1, %v6802_v60  ;;  %6851 = vmatprep.mubr.msk.bf16.mxu1 %vm9576_vm1, %v6802_v60  ;;  %vm9604_vm1 = vmpackc.low %vm13323_vm8, %vm13324_vm7  ;;  %v13608_v60 = vmov 0  ;;  %v9611_v42 = vand.u32 7, %v449_v12 }
 0x27f   : > { %1967 = vmatmul.mubr.bf16.gmra.mxu0 %v1478_v58  ;;  %2134 = vmatmul.mubr.bf16.gmra.mxu1 %v1478_v58  ;;  %v1256_v24 = vadd.f32 %v9126_v32, %v1220_v7  ;;  %v1347_v50 = vrot.slane %v1255_v18, 7  ;;  %v13609_v60 = vsel %vm9604_vm1, 4294967295, %v13608_v60  ;;  %v9609_v7 = vand.u32 7, %v448_v13 }
 0x280   : > { %v7865_v17 = vpop.eup %7864  ;;  %13610 = vst [vmem:[#allocation52_spill] sm:$0xff] %v13609_v60  ;;  %13612 = vst [vmem:[#allocation54_spill] sm:$0xff] %v9611_v42  ;;  %vm13337_vm7 = vcmp.ge.s32.totalorder %v9611_v42, 1  ;;  %v13613_v13 = vmov 0  ;;  %v3080_v42 = vsub.s32 5, %v9099_v41 }
 0x281   : > { %v1185_v55 = vmul.f32 %v7865_v17, %v9245_v1  ;;  %v1349_v35 = vrot.slane %v1256_v24, 7  ;;  %v1348_v27 = vsel %vm13369_vm0, %v1345_v48, %v1347_v50  ;;  %13611 = vst [vmem:[#allocation53_spill] sm:$0xff] %v9609_v7  ;;  %vm13354_vm8 = vcmp.ge.s32.totalorder %v9609_v7, 1 }
 0x282   : > { %v7867_v59 = vpop.eup %7866  ;;  %vm9628_vm2 = vmpackc.low %vm13337_vm7, %vm13354_vm8  ;;  %vm13619_vm7 = vcmp.ge.s32.totalorder %v9131_v38, 1  ;;  %vm13621_vm8 = vcmp.ge.s32.totalorder %v9138_v52, 1 }
 0x283   : > { %v1186_v63 = vmul.f32 %v7867_v59, %v9269_v31  ;;  %v1350_v14 = vsel %vm13369_vm0, %v1347_v50, %v1349_v35  ;;  %v1221_v58 = vmul.f32 %v9118_v25, %v1185_v55  ;;  %v1480_v31 = vpack.c.bf16 %v1256_v24, %v1255_v18 }
 0x284   : > { %v6805_v1 = vpack.c.bf16 %v1350_v14, %v1348_v27  ;;  %v13614_v13 = vsel %vm9628_vm2, 4294967295, %v13613_v13 }
 0x285   : > { %v1222_v48 = vmul.f32 %v9118_v25, %v1186_v63  ;;  %v1257_v50 = vadd.f32 %v9126_v32, %v1221_v58  ;;  %13615 = vst [vmem:[#allocation55_spill] sm:$0xff] %v13614_v13  ;;  %v7722_v58 = vld [vmem:[#allocation10 + $0x8] sm:$0xff]  }
 0x286   : > { %6806 = vmatprep.mubr.msk.bf16.mxu0 %vm9604_vm1, %v6805_v1  ;;  %6854 = vmatprep.mubr.msk.bf16.mxu1 %vm9604_vm1, %v6805_v1  ;;  %vm13636_vm1 = vcmp.ge.s32.totalorder %v9175_v53, 1 }
 0x287   : > { %1977 = vmatmul.mubr.bf16.gmra.mxu0 %v1480_v31  ;;  %2142 = vmatmul.mubr.bf16.gmra.mxu1 %v1480_v31  ;;  %v1258_v17 = vadd.f32 %v9126_v32, %v1222_v48  ;;  %v1351_v55 = vrot.slane %v1257_v50, 7  ;;  %vm13637_vm4 = vmmov %vm13636_vm1 }
 0x288   : > { %7469 = vmatprep.subr.bf16.mxu1 %v7722_v58 }
 0x289   : > { %v1353_v18 = vrot.slane %v1258_v17, 7  ;;  %v1352_v25 = vsel %vm13369_vm0, %v1349_v35, %v1351_v55  ;;  %v1482_v32 = vpack.c.bf16 %v1258_v17, %v1257_v50  ;;  %7470 = vmatpush3.bf16.msra.mxu1 %v7722_v58 }
 0x28b   : > { %v1354_v24 = vsel %vm13369_vm0, %v1351_v55, %v1353_v18 }
 0x28c   : > { %v6808_v12 = vpack.c.bf16 %v1354_v24, %v1352_v25  ;;  %v9638_v25 = vld [vmem:[#allocation7] sm:$0xff] }
 0x28e   : > { %6809 = vmatprep.mubr.msk.bf16.mxu0 %vm9628_vm2, %v6808_v12  ;;  %6857 = vmatprep.mubr.msk.bf16.mxu1 %vm9628_vm2, %v6808_v12  ;;  %v2578_v12 = vrot.slane %v9638_v25, %v9107_v57  ;;  %vm13630_vm2 = vcmp.ge.s32.totalorder %v9131_v38, 2 }
 0x28f   : > { %1987 = vmatmul.mubr.bf16.gmra.mxu0 %v1482_v32  ;;  %2150 = vmatmul.mubr.bf16.gmra.mxu1 %v1482_v32  ;;  %v2581_v32 = vsub.s32 4, %v9099_v41 }
 0x290   : > { %v9655_v60 = vrot.slane %v2578_v12, %v9107_v57 }
 0x291   : > { %v2582_v13 = vrot.slane %v9638_v25, %v2581_v32 }
 0x292   : > { %13617 = vst [vmem:[#allocation57_spill] sm:$0xff] %v9655_v60 }
 0x293   : > { %v9675_v26 = vrot.slane %v2582_v13, %v9107_v57  ;;  %v3081_v13 = vrot.slane %v9638_v25, %v3080_v42 }
 0x294   : > { %v1838_v35 = vpop.f32.mrf.mxu0  ;;  %v7113_v1 = vpop.f32.mrf.mxu1 }
 0x295   : > { %v2158_v59 = vmul.f32 1.442695, %v1838_v35  ;;  %13620 = vst [vmem:[#allocation59_spill] sm:$0xff] %v9675_v26 }
 0x296   : > { %v1840_v63 = vpop.f32.mrf.mxu0  ;;  %v7114_v17 = vpop.f32.mrf.mxu1 }
 0x297   : > { %7868 = vpow2.f32 %v2158_v59 }
 0x298   : > { %v1842_v27 = vpop.f32.mrf.mxu0  ;;  %v9636_v18 = vpop.f32.mrf.mxu1 }
 0x299   : > { %v2160_v14 = vmul.f32 1.442695, %v1842_v27 }
 0x29a   : > { %v1844_v31 = vpop.f32.mrf.mxu0 }
 0x29b   : > { %7870 = vpow2.f32 %v2160_v14  ;;  %v7117_v14 = vpop.f32.mrf.mxu1 }
 0x29c   : > { %v1848_v48 = vpop.f32.mrf.mxu0 }
 0x29d   : > { %v2162_v50 = vmul.f32 1.442695, %v1848_v48  ;;  %v9651_v48 = vsub.s32 3, %v9099_v41  ;;  %v9668_v32 = vpop.f32.mrf.mxu1 }
 0x29e   : > { %v1850_v55 = vpop.f32.mrf.mxu0 }
 0x29f   : > { %7872 = vpow2.f32 %v2162_v50  ;;  %13616 = vst [vmem:[#allocation56_spill] sm:$0xff] %v9651_v48  ;;  %v3722_v43 = vrot.slane %v9638_v25, %v9651_v48 }
 0x2a0   : > { %v1852_v35 = vpop.f32.mrf.mxu0 }
 0x2a1   : > { %v2164_v50 = vmul.f32 1.442695, %v1852_v35  ;;  %v9694_v51 = vrot.slane %v3722_v43, %v9651_v48 }
 0x2a2   : > { %v9670_v12 = vpop.f32.mrf.mxu0 }
 0x2a3   : > { %7874 = vpow2.f32 %v2164_v50  ;;  %13622 = vst [vmem:[#allocation60_spill] sm:$0xff] %v9694_v51 }
 0x2a4   : > { %v9640_v24 = vpop.eup %7868  ;;  %v1858_v2 = vpop.f32.mrf.mxu0 }
 0x2a5   : > { %v9646_v59 = vmul.f32 %v9640_v24, %v1840_v63  ;;  %v2319_v27 = vrot.slane %v9640_v24, 7  ;;  %v3725_v63 = vsub.s32 7, %v9099_v41 }
 0x2a7   : > { %v2318_v58 = vrot.slane %v9646_v59, 7  ;;  %v2509_v9 = vsel %vm13369_vm0, 0.0, %v2319_v27  ;;  %v3726_v50 = vrot.slane %v9638_v25, %v3725_v63 }
 0x2a8   : > { %v9657_v36 = vpop.eup %7870  ;;  %v2511_v56 = vsel %vm13619_vm7, %v2509_v9, 0.0 }
 0x2a9   : > { %13618 = vst [vmem:[#allocation58_spill] sm:$0xff] %v9657_v36  ;;  %v2508_v37 = vsel %vm13369_vm0, 0.0, %v2318_v58  ;;  %v9665_v44 = vmul.f32 %v9657_v36, %v1844_v31  ;;  %v2322_v35 = vrot.slane %v9657_v36, 7  ;;  %v9710_v39 = vrot.slane %v3726_v50, %v9651_v48 }
 0x2aa   : > { %v2510_v6 = vsel %vm13619_vm7, %v2508_v37, 0.0  ;;  %vm13623_vm7 = vmmov %vm13621_vm8 }
 0x2ab   : > { %v2593_v5 = vmul.f32 %v9655_v60, %v2510_v6  ;;  %v2320_v37 = vrot.slane %v9665_v44, 7  ;;  %v2323_v31 = vsel %vm13369_vm0, %v2319_v27, %v2322_v35  ;;  %v7120_v27 = vpop.f32.mrf.mxu1  ;;  %13625 = vst [vmem:[#allocation61_spill] sm:$0xff] %v9710_v39  ;;  %v9911_v28 = vmul.f32 %v9640_v24, %v9710_v39 }
 0x2ac   : > { %v9680_v45 = vpop.eup %7872  ;;  %v2513_v7 = vsel %vm13621_vm8, %v2323_v31, 0.0  ;;  %v2594_v31 = vmul.f32 %v9675_v26, %v2511_v56  ;;  %v3077_v56 = vrot.slane %v9638_v25, %v9113_v15  ;;  %vm13626_vm8 = vcmp.ge.s32.totalorder %v9163_v4, 1 }
 0x2ad   : > { %v2321_v57 = vsel %vm13369_vm0, %v2318_v58, %v2320_v37  ;;  %v9690_v6 = vmul.f32 %v9680_v45, %v1850_v55  ;;  %v2596_v40 = vmul.f32 %v9675_v26, %v2513_v7  ;;  %v9701_v63 = vadd.f32 %v2593_v5, %v9646_v59  ;;  %v7122_v42 = vpop.f32.mrf.mxu1  ;;  %13653 = vst [vmem:[#allocation68_spill] sm:$0xff] %v9911_v28 }
 0x2ae   : > { %v2512_v9 = vsel %vm13623_vm7, %v2321_v57, 0.0  ;;  %v13624_v10 = vrot.slane %v9680_v45, 7  ;;  %v2166_v57 = vmul.f32 1.442695, %v1858_v2  ;;  %v7115_v7 = vadd.f32 %v7114_v17, %v7113_v1  ;;  %vm13627_vm7 = vmmov %vm13626_vm8 }
 0x2af   : > { %v2595_v55 = vmul.f32 %v9655_v60, %v2512_v9  ;;  %v13370_v58 = vrot.slane %v9690_v6, 7  ;;  %v9729_v1 = vadd.f32 %v9640_v24, %v2594_v31  ;;  %v2786_v17 = vrot.slane %v9701_v63, 6  ;;  %v7123_v48 = vpop.f32.mrf.mxu1 }
 0x2b0   : > { %v2327_v43 = vsel %vm13369_vm0, %v2322_v35, %v13624_v10  ;;  %v9722_v10 = vadd.f32 %v9657_v36, %v2596_v40  ;;  %v7118_v40 = vadd.f32 %v7117_v14, %v9636_v18  ;;  %7876 = vpow2.f32 %v2166_v57  ;;  %v9755_v14 = vpop.eup %7874 }
 0x2b1   : > { %v9715_v5 = vadd.f32 %v2595_v55, %v9665_v44  ;;  %v2325_v9 = vsel %vm13369_vm0, %v2320_v37, %v13370_v58  ;;  %v2515_v35 = vsel %vm13627_vm7, %v2327_v43, 0.0  ;;  %vm13387_vm0 = vcmask 1041408   ;;  %v7125_v23 = vpop.f32.mrf.mxu1 }
 0x2b2   : > { %v2514_v2 = vsel %vm13626_vm8, %v2325_v9, 0.0  ;;  %v2598_v37 = vmul.f32 %v9675_v26, %v2515_v35  ;;  %v9737_v9 = vsub.s32 2, %v9099_v41  ;;  %v6858_v58 = vmul.f32 -1.442695, %v7115_v7  ;;  %v9753_v41 = vpop.f32.mrf.mxu0 }
 0x2b3   : > { %v2597_v50 = vmul.f32 %v9655_v60, %v2514_v2  ;;  %v2788_v55 = vrot.slane %v9715_v5, 6  ;;  %v9747_v2 = vrot.slane %v3077_v56, %v9113_v15  ;;  %v9750_v35 = vrot.slane %v3081_v13, %v9113_v15 }
 0x2b4   : > { %13628 = vst [vmem:[#allocation62_spill] sm:$0xff] %v9737_v9  ;;  %v9743_v31 = vadd.f32 %v9680_v45, %v2598_v37  ;;  %v2790_v18 = vrot.slane %v9722_v10, 6  ;;  %v2787_v57 = vrot.slane %v9729_v1, 6  ;;  %v2976_v7 = vsel %vm13387_vm0, 0.0, %v2786_v17 }
 0x2b5   : > { %v9740_v43 = vadd.f32 %v2597_v50, %v9690_v6  ;;  %13629 = vst [vmem:[#allocation63_spill] sm:$0xff] %v9750_v35  ;;  %v3580_v50 = vrot.slane %v9638_v25, %v3579_v49  ;;  %vm2980_vm7 = vcmp.ge.s32.totalorder %v9163_v4, 2  ;;  %v2789_v56 = vsel %vm13387_vm0, %v2786_v17, %v2788_v55 }
 0x2b6   : > { %v6859_v37 = vmul.f32 -1.442695, %v7118_v40  ;;  %v13382_v13 = vrot.slane %v9743_v31, 6  ;;  %v3576_v0 = vrot.slane %v9638_v25, %v9737_v9  ;;  %7878 = vpow2.f32 %v6858_v58  ;;  %v9778_v25 = vpop.f32.mrf.mxu0 }
 0x2b7   : > { %vm2979_vm8 = vcmp.ge.s32.totalorder %v9138_v52, 2  ;;  %v7121_v21 = vadd.f32 %v7120_v27, %v9668_v32  ;;  %v3010_v49 = vsel %vm13630_vm2, %v2976_v7, 0.0  ;;  %v2791_v33 = vsel %vm13387_vm0, %v2787_v57, %v2790_v18 }
 0x2b8   : > { %v2795_v17 = vsel %vm13387_vm0, %v2790_v18, %v13382_v13  ;;  %v9776_v40 = vmul.f32 %v9755_v14, %v9670_v12  ;;  %v2977_v58 = vsel %vm13387_vm0, 0.0, %v2787_v57  ;;  %v3012_v32 = vsel %vm2979_vm8, %v2789_v56, 0.0 }
 0x2b9   : > { %v3015_v27 = vsel %vm2980_vm7, %v2795_v17, 0.0  ;;  %v7124_v7 = vadd.f32 %v7123_v48, %v7122_v42  ;;  %v9786_v15 = vrot.slane %v3580_v50, %v9737_v9  ;;  %7880 = vpow2.f32 %v6859_v37  ;;  %v7126_v17 = vpop.f32.mrf.mxu1 }
 0x2ba   : > { %v13631_v18 = vrot.slane %v9740_v43, 6  ;;  %v2328_v13 = vrot.slane %v9776_v40, 7  ;;  %v3092_v62 = vmul.f32 %v9747_v2, %v3010_v49  ;;  %v3013_v57 = vsel %vm2979_vm8, %v2791_v33, 0.0 }
 0x2bb   : > { %v6860_v56 = vmul.f32 -1.442695, %v7121_v21  ;;  %v2330_v46 = vrot.slane %v9755_v14, 7  ;;  %v3011_v48 = vsel %vm13630_vm2, %v2977_v58, 0.0  ;;  %v3094_v42 = vmul.f32 %v9747_v2, %v3012_v32  ;;  %v7723_v32 = vld [vmem:[#allocation10] sm:$0xff]  }
 0x2bc   : > { %v2793_v12 = vsel %vm13387_vm0, %v2788_v55, %v13631_v18  ;;  %v3097_v50 = vmul.f32 %v9750_v35, %v3015_v27  ;;  %v13632_v55 = vrot.slane %v9690_v6, 7  ;;  %vm13633_vm0 = vcmask 1040384   ;;  %v9803_v18 = vpop.f32.mrf.mxu0  ;;  %7471 = vmatprep.subr.bf16.mxu1 %v7723_v32 }
 0x2bd   : > { %v3014_v33 = vsel %vm2980_vm7, %v2793_v12, 0.0  ;;  %v13634_v21 = vrot.slane %v9680_v45, 7  ;;  %vm13635_vm8 = vmmov %vm13633_vm0  ;;  %v6861_v22 = vmul.f32 -1.442695, %v7124_v7  ;;  %vm13418_vm2 = vcmask 1043456   ;;  %v9816_v29 = vpop.eup %7876  ;;  %7472 = vmatpush3.bf16.msra.mxu1 %v7723_v32 }
 0x2be   : > { %v2329_v37 = vsel %vm13633_vm0, %v13632_v55, %v2328_v13  ;;  %v3095_v27 = vmul.f32 %v9750_v35, %v3013_v57  ;;  %v7127_v36 = vadd.f32 %v7126_v17, %v7125_v23  ;;  %13638 = vst [vmem:[#allocation64_spill] sm:$0xff] %v9816_v29  ;;  %v3093_v12 = vmul.f32 %v9750_v35, %v3011_v48  ;;  %v9833_v17 = vpop.f32.mrf.mxu1  ;;  %v1868_v48 = vpop.f32.mrf.mxu0 }
 0x2bf   : > { %v2331_v49 = vsel %vm13635_vm8, %v13634_v21, %v2330_v46  ;;  %v2516_v58 = vsel %vm13636_vm1, %v2329_v37, 0.0  ;;  %v9820_v21 = vadd.f32 %v3092_v62, %v9701_v63  ;;  %v9823_v37 = vrot.slane %v3576_v0, %v9737_v9 }
 0x2c0   : > { %v2517_v55 = vsel %vm13637_vm4, %v2331_v49, 0.0  ;;  %v2599_v20 = vmul.f32 %v9655_v60, %v2516_v58  ;;  %v9827_v57 = vadd.f32 %v3094_v42, %v9715_v5  ;;  %v3096_v49 = vmul.f32 %v9747_v2, %v3014_v33  ;;  %v9864_v32 = vpop.f32.mrf.mxu0 }
 0x2c1   : > { %13639 = vst [vmem:[#allocation65_spill] sm:$0xff] %v9823_v37  ;;  %v2600_v7 = vmul.f32 %v9675_v26, %v2517_v55  ;;  %v9831_v23 = vadd.f32 %v3097_v50, %v9743_v31  ;;  %7882 = vpow2.f32 %v6860_v56  ;;  %vm3477_vm0 = vcmp.ge.s32.totalorder %v9131_v38, 4 }
 0x2c2   : > { %v9838_v62 = vadd.f32 %v2599_v20, %v9776_v40  ;;  %vm2981_vm4 = vcmp.ge.s32.totalorder %v9175_v53, 2  ;;  %v9845_v63 = vadd.f32 %v3095_v27, %v9722_v10  ;;  %7884 = vpow2.f32 %v6861_v22 }
 0x2c3   : > { %v9841_v0 = vadd.f32 %v9755_v14, %v2600_v7  ;;  %v9849_v5 = vmul.f32 %v9816_v29, %v9753_v41  ;;  %v6862_v56 = vmul.f32 -1.442695, %v7127_v36  ;;  %v9852_v42 = vadd.f32 %v3093_v12, %v9729_v1  ;;  %v7879_v58 = vpop.eup %7878  ;;  %v7129_v1 = vpop.f32.mrf.mxu1 }
 0x2c4   : > { %13640 = vst [vmem:[#allocation66_spill] sm:$0xff] %v9845_v63  ;;  %v3285_v20 = vrot.slane %v9820_v21, 4  ;;  %v13402_v33 = vrot.slane %v9816_v29, 7  ;;  %v3287_v10 = vrot.slane %v9827_v57, 4  ;;  %v9860_v22 = vadd.f32 %v3096_v49, %v9740_v43 }
 0x2c5   : > { %13641 = vst [vmem:[#allocation67_spill] sm:$0xff] %v9852_v42  ;;  %v13403_v50 = vrot.slane %v9841_v0, 6  ;;  %v13642_v55 = vrot.slane %v9743_v31, 6  ;;  %vm13643_vm8 = vcmask 1041408   ;;  %vm13644_vm7 = vcmask 1040384  }
 0x2c6   : > { %v2335_v7 = vsel %vm13644_vm7, %v2330_v46, %v13402_v33  ;;  %v2168_v49 = vmul.f32 1.442695, %v9778_v25  ;;  %v3289_v41 = vrot.slane %v9845_v63, 4  ;;  %v13645_v9 = vrot.slane %v9849_v5, 7  ;;  %vm13646_vm1 = vmmov %vm13644_vm7  ;;  %v7881_v11 = vpop.eup %7880  ;;  %v1872_v63 = vpop.f32.mrf.mxu0 }
 0x2c7   : > { %v2799_v12 = vsel %vm13643_vm8, %v13642_v55, %v13403_v50  ;;  %7886 = vpow2.f32 %v6862_v56  ;;  %v3475_v31 = vsel %vm13418_vm2, 0.0, %v3285_v20  ;;  %vm13647_vm8 = vcmp.ge.s32.totalorder %v9200_v19, 1  ;;  %v9894_v56 = vpop.f32.mrf.mxu1 }
 0x2c8   : > { %v3017_v36 = vsel %vm2981_vm4, %v2799_v12, 0.0  ;;  %v2333_v27 = vsel %vm13646_vm1, %v2328_v13, %v13645_v9  ;;  %vm13648_vm7 = vmmov %vm13647_vm8  ;;  %v3286_v33 = vrot.slane %v9852_v42, 4  ;;  %v3288_v12 = vsel %vm13418_vm2, %v3285_v20, %v3287_v10 }
 0x2c9   : > { %v3099_v55 = vmul.f32 %v9750_v35, %v3017_v36  ;;  %v2518_v46 = vsel %vm13647_vm8, %v2333_v27, 0.0  ;;  %v2519_v25 = vsel %vm13648_vm7, %v2335_v7, 0.0  ;;  %v13649_v9 = vrot.slane %v9831_v23, 4 }
 0x2ca   : > { %v13650_v36 = vrot.slane %v9838_v62, 6  ;;  %v13651_v27 = vrot.slane %v9740_v43, 6  ;;  %vm13652_vm1 = vcmask 1041408   ;;  %v2601_v7 = vmul.f32 %v9655_v60, %v2518_v46 }
 0x2cb   : > { %v3294_v13 = vsel %vm13418_vm2, %v3289_v41, %v13649_v9  ;;  %7888 = vpow2.f32 %v2168_v49  ;;  %v2170_v42 = vmul.f32 1.442695, %v1868_v48  ;;  %v3509_v20 = vsel %vm3477_vm0, %v3475_v31, 0.0 }
 0x2cc   : > { %v2797_v47 = vsel %vm13652_vm1, %v13651_v27, %v13650_v36  ;;  %v9905_v50 = vadd.f32 %v3099_v55, %v9841_v0  ;;  %vm3480_vm8 = vcmp.ge.s32.totalorder %v9175_v53, 4  ;;  %v2602_v9 = vmul.f32 %v9675_v26, %v2519_v25  ;;  %v9921_v25 = vpop.f32.mrf.mxu1 }
 0x2cd   : > { %v3737_v43 = vmul.f32 %v9694_v51, %v9646_v59  ;;  %v4121_v46 = vadd.f32 1.0, %v7879_v58  ;;  %vm13654_vm7 = vcmp.ge.s32.totalorder %v9163_v4, 4  ;;  %v2172_v49 = vmul.f32 1.442695, %v1872_v63 }
 0x2ce   : > { %v3514_v48 = vsel %vm13654_vm7, %v3294_v13, 0.0  ;;  %vm13655_vm1 = vcmp.ge.s32.totalorder %v9138_v52, 4  ;;  %v4122_v55 = vadd.f32 1.0, %v7881_v11  ;;  %v3016_v36 = vsel %vm2981_vm4, %v2797_v47, 0.0  ;;  %v7883_v24 = vpop.eup %7882 }
 0x2cf   : > { %v3511_v31 = vsel %vm13655_vm1, %v3288_v12, 0.0  ;;  %7890 = vpow2.f32 %v2170_v42  ;;  %v3476_v27 = vsel %vm13418_vm2, 0.0, %v3286_v33  ;;  %v3591_v59 = vmul.f32 %v9823_v37, %v3509_v20  ;;  %v7885_v42 = vpop.eup %7884  ;;  %v9945_v12 = vpop.f32.mrf.mxu0 }
 0x2d0   : > { %v13656_v58 = vrot.slane %v9860_v22, 4  ;;  %v9929_v63 = vadd.f32 %v2601_v7, %v9849_v5  ;;  %v3596_v11 = vmul.f32 %v9786_v15, %v3514_v48  ;;  %v9934_v47 = vadd.f32 %v9816_v29, %v2602_v9  ;;  %v9943_v9 = vpop.f32.mrf.mxu1 }
 0x2d1   : > { %vm2982_vm4 = vcmp.ge.s32.totalorder %v9200_v19, 2  ;;  %7892 = vpow2.f32 %v2172_v49  ;;  %v3290_v20 = vsel %vm13418_vm2, %v3286_v33, %v3289_v41  ;;  %v3593_v28 = vmul.f32 %v9823_v37, %v3511_v31 }
 0x2d2   : > { %v3292_v13 = vsel %vm13418_vm2, %v3287_v10, %v13656_v58  ;;  %7894 = vrcp.f32 %v4121_v46  ;;  %v3098_v10 = vmul.f32 %v9747_v2, %v3016_v36  ;;  %v3739_v7 = vmul.f32 %v9694_v51, %v9665_v44 }
 0x2d3   : > { %7896 = vrcp.f32 %v4122_v55  ;;  %v4123_v48 = vadd.f32 1.0, %v7883_v24  ;;  %v7130_v58 = vadd.f32 %v7129_v1, %v9833_v17  ;;  %v3510_v46 = vsel %vm3477_vm0, %v3476_v27, 0.0 }
 0x2d4   : > { %v3655_v33 = vadd.f32 %v3591_v59, %v9820_v21  ;;  %v3513_v41 = vsel %vm13654_vm7, %v3292_v13, 0.0  ;;  %v13411_v49 = vrot.slane %v9929_v63, 6  ;;  %v3512_v44 = vsel %vm13655_vm1, %v3290_v20, 0.0  ;;  %v7887_v36 = vpop.eup %7886  ;;  %v9976_v13 = vpop.f32.mrf.mxu1 }
 0x2d5   : > { %v3660_v31 = vadd.f32 %v3596_v11, %v9831_v23  ;;  %v13657_v17 = vrot.slane %v9905_v50, 4  ;;  %v13658_v1 = vrot.slane %v9831_v23, 4  ;;  %v13410_v38 = vrot.slane %v9934_v47, 6 }
 0x2d6   : > { %v3657_v21 = vadd.f32 %v3593_v28, %v9827_v57  ;;  %v9965_v4 = vmul.f32 %v9694_v51, %v9690_v6  ;;  %v3742_v52 = vmul.f32 %v9680_v45, %v9710_v39  ;;  %v9970_v24 = vadd.f32 %v3098_v10, %v9838_v62  ;;  %v1878_v28 = vpop.f32.mrf.mxu0 }
 0x2d7   : > { %v3298_v55 = vsel %vm13418_vm2, %v13658_v1, %v13657_v17  ;;  %v9973_v27 = vmul.f32 %v9786_v15, %v3510_v46  ;;  %v3595_v23 = vmul.f32 %v9823_v37, %v3513_v41  ;;  %7898 = vrcp.f32 %v4123_v48  ;;  %v10019_v17 = vpop.f32.mrf.mxu1 }
 0x2d8   : > { %v4124_v59 = vadd.f32 1.0, %v7885_v42  ;;  %v9978_v57 = vadd.f32 %v3737_v43, %v3655_v33  ;;  %v9981_v6 = vmul.f32 %v9786_v15, %v3512_v44  ;;  %v3516_v45 = vsel %vm3480_vm8, %v3298_v55, 0.0  ;;  %v9990_v10 = vpop.eup %7888 }
 0x2d9   : > { %v13660_v11 = vrot.slane %v9838_v62, 6  ;;  %vm13661_vm0 = vcmask 1041408   ;;  %13662 = vst [vmem:[#allocation70_spill] sm:$0xff] %v9990_v10  ;;  %v9992_v42 = vadd.f32 %v3742_v52, %v3660_v31  ;;  %v9996_v43 = vmul.f32 %v9694_v51, %v9776_v40 }
 0x2da   : > { %13659 = vst [vmem:[#allocation69_spill] sm:$0xff] %v9978_v57  ;;  %v3744_v48 = vmul.f32 %v9755_v14, %v9710_v39  ;;  %v13663_v46 = vrot.slane %v9841_v0, 6  ;;  %vm13664_vm7 = vmmov %vm13661_vm0  ;;  %v10005_v62 = vadd.f32 %v3739_v7, %v3657_v21  ;;  %v13413_v41 = vrot.slane %v9970_v24, 4  ;;  %v10021_v7 = vpop.f32.mrf.mxu0 }
 0x2db   : > { %v2801_v20 = vsel %vm13661_vm0, %v13660_v11, %v13411_v49  ;;  %v10010_v44 = vmul.f32 %v9990_v10, %v9803_v18  ;;  %v2338_v40 = vrot.slane %v9990_v10, 7  ;;  %v10014_v31 = vadd.f32 %v3595_v23, %v9860_v22 }
 0x2dc   : > { %v2803_v33 = vsel %vm13664_vm7, %v13663_v46, %v13410_v38  ;;  %13665 = vst [vmem:[#allocation71_spill] sm:$0xff] %v10005_v62  ;;  %v3598_v14 = vmul.f32 %v9786_v15, %v3516_v45  ;;  %7900 = vrcp.f32 %v4124_v59  ;;  %v3018_v0 = vsel %vm2982_vm4, %v2801_v20, 0.0  ;;  %v10023_v1 = vpop.eup %7890 }
 0x2dd   : > { %13666 = vst [vmem:[#allocation72_spill] sm:$0xff] %v10023_v1  ;;  %v3019_v18 = vsel %vm2982_vm4, %v2803_v33, 0.0  ;;  %v10027_v55 = vadd.f32 1.0, %v7887_v36  ;;  %v2336_v21 = vrot.slane %v10010_v44, 7  ;;  %v2174_v52 = vmul.f32 1.442695, %v1878_v28 }
 0x2de   : > { %7902 = vrcp.f32 %v9992_v42  ;;  %v13667_v23 = vrot.slane %v9816_v29, 7  ;;  %vm13668_vm1 = vcmask 1040384   ;;  %v6863_v45 = vmul.f32 -1.442695, %v7130_v58  ;;  %v10038_v20 = vpop.eup %7892 }
 0x2df   : > { %v10036_v11 = vmul.f32 %v10023_v1, %v9864_v32  ;;  %13669 = vst [vmem:[#allocation73_spill] sm:$0xff] %v10038_v20  ;;  %v13670_v36 = vrot.slane %v9860_v22, 4  ;;  %v3100_v28 = vmul.f32 %v9747_v2, %v3018_v0  ;;  %v13671_v33 = vrot.slane %v9849_v5, 7  ;;  %vm13672_vm4 = vmmov %vm13668_vm1 }
 0x2e0   : > { %v2339_v59 = vsel %vm13668_vm1, %v13667_v23, %v2338_v40  ;;  %v2342_v58 = vrot.slane %v10023_v1, 7  ;;  %v10050_v23 = vpop.eup %7894  ;;  %v3662_v32 = vadd.f32 %v3598_v14, %v9905_v50  ;;  %v3101_v49 = vmul.f32 %v9750_v35, %v3019_v18 }
 0x2e1   : > { %v3296_v46 = vsel %vm13418_vm2, %v13670_v36, %v13413_v41  ;;  %v2337_v38 = vsel %vm13672_vm4, %v13671_v33, %v2336_v21  ;;  %13673 = vst [vmem:[#allocation74_spill] sm:$0xff] %v10050_v23  ;;  %vm13674_vm0 = vcmp.ge.s32.totalorder %v9217_v3, 1  ;;  %v2340_v22 = vrot.slane %v10036_v11, 7  ;;  %v7138_v36 = vpop.f32.mrf.mxu1  ;;  %v1882_v41 = vpop.f32.mrf.mxu0  ;;  %vm13677_vm4 = vmmov %vm13668_vm1 }
 0x2e2   : > { %v2520_v29 = vsel %vm13674_vm0, %v2337_v38, 0.0  ;;  %v10057_v0 = vpop.eup %7896  ;;  %vm13676_vm7 = vmmov %vm13674_vm0  ;;  %v2343_v23 = vsel %vm13668_vm1, %v2338_v40, %v2342_v58  ;;  %7904 = vpow2.f32 %v2174_v52  ;;  %v3515_v14 = vsel %vm3480_vm8, %v3296_v46, 0.0 }
 0x2e3   : > { %13675 = vst [vmem:[#allocation75_spill] sm:$0xff] %v10057_v0  ;;  %v2521_v33 = vsel %vm13676_vm7, %v2339_v59, 0.0  ;;  %v2603_v62 = vmul.f32 %v9655_v60, %v2520_v29  ;;  %v2341_v18 = vsel %vm13677_vm4, %v2336_v21, %v2340_v22  ;;  %v7133_v38 = vadd.f32 %v9921_v25, %v9894_v56  ;;  %v10083_v59 = vpop.f32.mrf.mxu0 }
 0x2e4   : > { %v10070_v57 = vmul.f32 %v10038_v20, %v9945_v12  ;;  %vm13678_vm0 = vcmp.ge.s32.totalorder %v9247_v54, 1  ;;  %v2176_v53 = vmul.f32 1.442695, %v1882_v41  ;;  %v2604_v52 = vmul.f32 %v9675_v26, %v2521_v33  ;;  %v7140_v12 = vpop.f32.mrf.mxu1 }
 0x2e5   : > { %v10073_v0 = vadd.f32 %v2603_v62, %v10010_v44  ;;  %v2522_v29 = vsel %vm13678_vm0, %v2341_v18, 0.0  ;;  %vm13679_vm7 = vmmov %vm13678_vm0  ;;  %v13414_v25 = vrot.slane %v10038_v20, 7  ;;  %v10085_v62 = vpop.eup %7898  ;;  %v10087_v46 = vadd.f32 %v3744_v48, %v3662_v32 }
 0x2e6   : > { %v2523_v40 = vsel %vm13679_vm7, %v2343_v23, 0.0  ;;  %v2605_v21 = vmul.f32 %v9655_v60, %v2522_v29  ;;  %v13415_v56 = vrot.slane %v10070_v57, 7  ;;  %13680 = vst [vmem:[#allocation76_spill] sm:$0xff] %v10085_v62  ;;  %v10090_v18 = vadd.f32 %v3100_v28, %v9929_v63  ;;  %vm13681_vm0 = vmmov %vm13668_vm1 }
 0x2e7   : > { %v10093_v41 = vadd.f32 %v3101_v49, %v9934_v47  ;;  %vm2983_vm8 = vcmp.ge.s32.totalorder %v9217_v3, 2  ;;  %7906 = vpow2.f32 %v6863_v45  ;;  %v2606_v23 = vmul.f32 %v9675_v26, %v2523_v40  ;;  %vm13682_vm7 = vmmov %vm13681_vm0 }
 0x2e8   : > { %v10099_v33 = vadd.f32 %v2605_v21, %v10036_v11  ;;  %vm2984_vm4 = vcmp.ge.s32.totalorder %v9247_v54, 2  ;;  %v2345_v48 = vsel %vm13681_vm0, %v2340_v22, %v13415_v56  ;;  %v2347_v49 = vsel %vm13682_vm7, %v2342_v58, %v13414_v25  ;;  %v7141_v58 = vpop.f32.mrf.mxu1  ;;  %v1888_v25 = vpop.f32.mrf.mxu0 }
 0x2e9   : > { %v3597_v28 = vmul.f32 %v9823_v37, %v3515_v14  ;;  %v2804_v45 = vrot.slane %v10073_v0, 6  ;;  %v7136_v32 = vadd.f32 %v9976_v13, %v9943_v9  ;;  %7908 = vpow2.f32 %v2176_v53  ;;  %v10120_v14 = vpop.eup %7900 }
 0x2ea   : > { %v10113_v29 = vadd.f32 %v9990_v10, %v2604_v52  ;;  %vm13683_vm1 = vcmp.ge.s32.totalorder %v9259_v34, 1  ;;  %13685 = vst [vmem:[#allocation77_spill] sm:$0xff] %v10120_v14  ;;  %7910 = vrcp.f32 %v10087_v46  ;;  %v10126_v13 = vmul.f32 %v9694_v51, %v9849_v5 }
 0x2eb   : > { %v2524_v22 = vsel %vm13683_vm1, %v2345_v48, 0.0  ;;  %vm13684_vm0 = vmmov %vm13683_vm1  ;;  %v6864_v53 = vmul.f32 -1.442695, %v7133_v38  ;;  %v10130_v48 = vadd.f32 %v10023_v1, %v2606_v23  ;;  %v10134_v40 = vpop.eup %7902  ;;  %v3661_v10 = vadd.f32 %v3597_v28, %v9970_v24  ;;  %v7143_v28 = vpop.f32.mrf.mxu1 }
 0x2ec   : > { %v2525_v21 = vsel %vm13684_vm0, %v2347_v49, 0.0  ;;  %v2607_v49 = vmul.f32 %v9655_v60, %v2524_v22  ;;  %v13686_v9 = vrot.slane %v9929_v63, 6  ;;  %vm13687_vm1 = vcmask 1041408   ;;  %v10150_v1 = vpop.f32.mrf.mxu0 }
 0x2ed   : > { %v2608_v56 = vmul.f32 %v9675_v26, %v2525_v21  ;;  %v6865_v5 = vmul.f32 -1.442695, %v7136_v32  ;;  %v7139_v38 = vadd.f32 %v7138_v36, %v10019_v17  ;;  %v10143_v52 = vadd.f32 %v9965_v4, %v10014_v31  ;;  %vm13689_vm7 = vmmov %vm13687_vm1 }
 0x2ee   : > { %v2805_v14 = vsel %vm13687_vm1, %v13686_v9, %v2804_v45  ;;  %7912 = vrcp.f32 %v10027_v55  ;;  %v2806_v23 = vrot.slane %v10113_v29, 6  ;;  %v13688_v22 = vrot.slane %v10099_v33, 6 }
 0x2ef   : > { %v13690_v63 = vrot.slane %v10090_v18, 4  ;;  %v13691_v32 = vrot.slane %v9970_v24, 4  ;;  %7914 = vpow2.f32 %v6864_v53  ;;  %v10158_v4 = vadd.f32 %v2607_v49, %v10070_v57  ;;  %v10160_v55 = vpop.eup %7904 }
 0x2f0   : > { %v2809_v21 = vsel %vm13689_vm7, %v2804_v45, %v13688_v22  ;;  %v7142_v31 = vadd.f32 %v7141_v58, %v7140_v12  ;;  %13692 = vst [vmem:[#allocation78_spill] sm:$0xff] %v10160_v55  ;;  %v13693_v36 = vrot.slane %v10093_v41, 4  ;;  %v13694_v45 = vrot.slane %v9905_v50, 4 }
 0x2f1   : > { %v3300_v17 = vsel %vm13418_vm2, %v13691_v32, %v13690_v63  ;;  %v3020_v22 = vsel %vm2983_vm8, %v2805_v14, 0.0  ;;  %v2810_v24 = vrot.slane %v10130_v48, 6  ;;  %v10171_v63 = vadd.f32 %v10038_v20, %v2608_v56 }
 0x2f2   : > { %v3302_v9 = vsel %vm13418_vm2, %v13694_v45, %v13693_v36  ;;  %vm2985_vm0 = vcmp.ge.s32.totalorder %v9259_v34, 2  ;;  %v10175_v12 = vadd.f32 %v9996_v43, %v3661_v10  ;;  %v3022_v58 = vsel %vm2984_vm4, %v2809_v21, 0.0  ;;  %v7144_v36 = vpop.f32.mrf.mxu1  ;;  %v1892_v10 = vpop.f32.mrf.mxu0 }
 0x2f3   : > { %7916 = vpow2.f32 %v6865_v5  ;;  %v6866_v50 = vmul.f32 -1.442695, %v7139_v38  ;;  %v3899_v53 = vmul.f32 %v10134_v40, %v9992_v42  ;;  %vm13695_vm1 = vcmp.ge.s32.totalorder %v9200_v19, 4 }
 0x2f4   : > { %v3517_v14 = vsel %vm13695_vm1, %v3300_v17, 0.0  ;;  %v13696_v49 = vrot.slane %v9934_v47, 6  ;;  %v10186_v32 = vmul.f32 1.442695, %v1888_v25  ;;  %vm13697_vm2 = vmmov %vm13695_vm1  ;;  %v3102_v5 = vmul.f32 %v9747_v2, %v3020_v22  ;;  %v7907_v21 = vpop.eup %7906 }
 0x2f5   : > { %v3518_v43 = vsel %vm13697_vm2, %v3302_v9, 0.0  ;;  %v10194_v42 = vmul.f32 %v10160_v55, %v10021_v7  ;;  %vm13698_vm1 = vmmov %vm13689_vm7  ;;  %v3104_v17 = vmul.f32 %v9747_v2, %v3022_v58  ;;  %v13419_v25 = vrot.slane %v10171_v63, 6 }
 0x2f6   : > { %v2807_v56 = vsel %vm13689_vm7, %v13696_v49, %v2806_v23  ;;  %v2811_v47 = vsel %vm13698_vm1, %v2806_v23, %v2810_v24  ;;  %v6867_v45 = vmul.f32 -1.442695, %v7142_v31  ;;  %7918 = vpow2.f32 %v6866_v50  ;;  %v10205_v49 = vpop.eup %7908  ;;  %vm13703_vm2 = vmmov %vm13698_vm1 }
 0x2f7   : > { %v3021_v19 = vsel %vm2983_vm8, %v2807_v56, 0.0  ;;  %v10201_v9 = vadd.f32 %v7144_v36, %v7143_v28  ;;  %v10203_v22 = vmul.f32 1.442695, %v1892_v10  ;;  %13699 = vst [vmem:[#allocation79_spill] sm:$0xff] %v10205_v49  ;;  %v3931_v7 = vsub.f32 2.0, %v3899_v53  ;;  %vm13704_vm8 = vmmov %vm13698_vm1 }
 0x2f8   : > { %v3599_v38 = vmul.f32 %v9823_v37, %v3517_v14  ;;  %v10209_v23 = vmul.f32 %v9786_v15, %v3518_v43  ;;  %v2348_v58 = vrot.slane %v10194_v42, 7  ;;  %v10213_v31 = vadd.f32 %v3102_v5, %v10073_v0  ;;  %v7911_v14 = vpop.eup %7910 }
 0x2f9   : > { %v3023_v50 = vsel %vm2984_vm4, %v2811_v47, 0.0  ;;  %v13701_v28 = vrot.slane %v10158_v4, 6  ;;  %v13702_v56 = vrot.slane %v10099_v33, 6  ;;  %v2350_v53 = vrot.slane %v10160_v55, 7 }
 0x2fa   : > { %13700 = vst [vmem:[#allocation80_spill] sm:$0xff] %v10209_v23  ;;  %v3103_v10 = vmul.f32 %v9750_v35, %v3021_v19  ;;  %v10225_v43 = vadd.f32 %v3104_v17, %v10099_v33  ;;  %v2815_v0 = vsel %vm13704_vm8, %v2810_v24, %v13419_v25  ;;  %v13705_v5 = vrot.slane %v10070_v57, 7 }
 0x2fb   : > { %v2813_v36 = vsel %vm13703_vm2, %v13702_v56, %v13701_v28  ;;  %vm13706_vm4 = vcmask 1040384   ;;  %vm3482_vm7 = vcmp.ge.s32.totalorder %v9217_v3, 4  ;;  %v4126_v23 = vadd.f32 1.0, %v7907_v21 }
 0x2fc   : > { %v2349_v47 = vsel %vm13706_vm4, %v13705_v5, %v2348_v58  ;;  %v13707_v28 = vrot.slane %v10038_v20, 7  ;;  %vm13708_vm1 = vmmov %vm13706_vm4  ;;  %vm13709_vm2 = vcmp.ge.s32.totalorder %v9281_v16, 1  ;;  %v10241_v33 = vmul.f32 %v10205_v49, %v10083_v59 }
 0x2fd   : > { %v2526_v19 = vsel %vm13709_vm2, %v2349_v47, 0.0  ;;  %v3105_v24 = vmul.f32 %v9750_v35, %v3023_v50  ;;  %vm3483_vm8 = vcmp.ge.s32.totalorder %v9247_v54, 4  ;;  %v3024_v17 = vsel %vm2985_vm0, %v2813_v36, 0.0  ;;  %vm13710_vm4 = vmmov %vm13709_vm2 }
 0x2fe   : > { %v2351_v56 = vsel %vm13708_vm1, %v13707_v28, %v2350_v53  ;;  %v2609_v5 = vmul.f32 %v9655_v60, %v2526_v19  ;;  %v10250_v28 = vpop.eup %7912  ;;  %v3900_v47 = vmul.f32 %v7911_v14, %v10087_v46  ;;  %v3303_v25 = vrot.slane %v10213_v31, 4 }
 0x2ff   : > { %v2527_v21 = vsel %vm13710_vm4, %v2351_v56, 0.0  ;;  %13711 = vst [vmem:[#allocation81_spill] sm:$0xff] %v10250_v28  ;;  %v3025_v59 = vsel %vm2985_vm0, %v2815_v0, 0.0  ;;  %7920 = vpow2.f32 %v6867_v45  ;;  %v7915_v50 = vpop.eup %7914  ;;  %v3963_v20 = vmul.f32 %v10134_v40, %v3931_v7  ;;  %v10268_v45 = vpop.f32.mrf.mxu0  ;;  %vm13716_vm4 = vmmov %vm13708_vm1 }
 0x300   : > { %v10258_v36 = vadd.f32 %v3103_v10, %v10113_v29  ;;  %v3307_v56 = vrot.slane %v10225_v43, 4  ;;  %v2610_v19 = vmul.f32 %v9675_v26, %v2527_v21  ;;  %v3663_v28 = vadd.f32 %v3599_v38, %v10090_v18  ;;  %v7917_v39 = vpop.eup %7916 }
 0x301   : > { %v3106_v46 = vmul.f32 %v9747_v2, %v3024_v17  ;;  %v10265_v62 = vadd.f32 %v2609_v5, %v10194_v42  ;;  %v13423_v0 = vrot.slane %v10241_v33, 7  ;;  %7922 = vrcp.f32 %v4126_v23 }
 0x302   : > { %v10271_v29 = vadd.f32 %v3105_v24, %v10130_v48  ;;  %v3107_v40 = vmul.f32 %v9750_v35, %v3025_v59  ;;  %v13424_v7 = vrot.slane %v10205_v49, 7  ;;  %v3932_v10 = vsub.f32 2.0, %v3900_v47 }
 0x303   : > { %v13712_v38 = vrot.slane %v10090_v18, 4  ;;  %vm13713_vm0 = vcmask 1043456   ;;  %v10280_v21 = vmul.f32 %v9694_v51, %v10010_v44  ;;  %7924 = vpow2.f32 %v10186_v32  ;;  %v7919_v32 = vpop.eup %7918 }
 0x304   : > { %v10285_v48 = vmul.f32 %v3963_v20, %v10143_v52  ;;  %v3305_v23 = vrot.slane %v10258_v36, 4  ;;  %vm13714_vm2 = vmmov %vm13713_vm0  ;;  %v10290_v5 = vadd.f32 %v10160_v55, %v2610_v19  ;;  %v10293_v18 = vadd.f32 %v10126_v13, %v3663_v28  ;;  %v1898_v52 = vpop.f32.mrf.mxu0  ;;  %v13765_v55 = vld [vmem:[#allocation25_spill] sm:$0xff] }
 0x305   : > { %v3304_v17 = vsel %vm13713_vm0, %v13712_v38, %v3303_v25  ;;  %v3308_v24 = vsel %vm13714_vm2, %v3303_v25, %v3307_v56  ;;  %v10296_v44 = vadd.f32 %v3106_v46, %v10158_v4  ;;  %v2353_v20 = vsel %vm13716_vm4, %v2348_v58, %v13423_v0  ;;  %vm13718_vm2 = vmmov %vm13708_vm1 }
 0x306   : > { %13715 = vst [vmem:[#allocation82_spill] sm:$0xff] %v10293_v18  ;;  %v3519_v25 = vsel %vm3482_vm7, %v3304_v17, 0.0  ;;  %v3309_v59 = vrot.slane %v10271_v29, 4  ;;  %v10306_v19 = vadd.f32 %v3107_v40, %v10171_v63  ;;  %v2355_v13 = vsel %vm13718_vm2, %v2350_v53, %v13424_v7  ;;  %vm13720_vm4 = vmmov %vm13713_vm0 }
 0x307   : > { %v3964_v28 = vmul.f32 %v7911_v14, %v3932_v10  ;;  %v3521_v58 = vsel %vm3483_vm8, %v3308_v24, 0.0  ;;  %v4127_v46 = vadd.f32 1.0, %v7915_v50  ;;  %7926 = vpow2.f32 %v10203_v22 }
 0x308   : > { %13717 = vst [vmem:[#allocation83_spill] sm:$0xff] %v10306_v19  ;;  %v13719_v38 = vrot.slane %v10093_v41, 4  ;;  %v13427_v40 = vrot.slane %v10290_v5, 6  ;;  %vm13721_vm1 = vcmp.ge.s32.totalorder %v9285_v61, 1  ;;  %v2182_v47 = vmul.f32 1.442695, %v1898_v52  ;;  %v7146_v52 = vpop.f32.mrf.mxu1 }
 0x309   : > { %v2528_v0 = vsel %vm13721_vm1, %v2353_v20, 0.0  ;;  %v3601_v18 = vmul.f32 %v9823_v37, %v3519_v25  ;;  %v13426_v53 = vrot.slane %v10296_v44, 4  ;;  %v13722_v14 = vrot.slane %v10265_v62, 6  ;;  %vm13725_vm0 = vmmov %vm13721_vm1  ;;  %v10333_v25 = vpop.f32.mrf.mxu0 }
 0x30a   : > { %v3306_v17 = vsel %vm13720_vm4, %v13719_v38, %v3305_v23  ;;  %v13723_v50 = vrot.slane %v10158_v4, 6  ;;  %vm13724_vm2 = vcmask 1041408   ;;  %v2529_v10 = vsel %vm13725_vm0, %v2355_v13, 0.0 }
 0x30b   : > { %v3310_v24 = vsel %vm13720_vm4, %v3305_v23, %v3309_v59  ;;  %v3603_v38 = vmul.f32 %v9823_v37, %v3521_v58  ;;  %v13425_v20 = vrot.slane %v10306_v19, 4  ;;  %7928 = vpow2.f32 %v2182_v47  ;;  %vm13727_vm1 = vmmov %vm13724_vm2 }
 0x30c   : > { %v2817_v22 = vsel %vm13724_vm2, %v13723_v50, %v13722_v14  ;;  %v3520_v7 = vsel %vm3482_vm7, %v3306_v17, 0.0  ;;  %v3749_v4 = vmul.f32 %v9694_v51, %v10036_v11  ;;  %7930 = vrcp.f32 %v4127_v46  ;;  %v7921_v13 = vpop.eup %7920  ;;  %vm13729_vm7 = vmmov %vm13720_vm4 }
 0x30d   : > { %v2611_v14 = vmul.f32 %v9655_v60, %v2528_v0  ;;  %v4128_v50 = vadd.f32 1.0, %v7917_v39  ;;  %v13726_v23 = vrot.slane %v10171_v63, 6  ;;  %vm13728_vm0 = vcmp.ge.s32.totalorder %v9281_v16, 2  ;;  %vm13730_vm2 = vmmov %vm13720_vm4 }
 0x30e   : > { %v3026_v47 = vsel %vm13728_vm0, %v2817_v22, 0.0  ;;  %v2612_v3 = vmul.f32 %v9675_v26, %v2529_v10  ;;  %v10349_v17 = vmul.f32 %v3964_v28, %v10175_v12  ;;  %v3522_v11 = vsel %vm3483_vm8, %v3310_v24, 0.0  ;;  %v7147_v12 = vpop.f32.mrf.mxu1  ;;  %v1902_v28 = vpop.f32.mrf.mxu0  ;;  %vm13732_vm8 = vmmov %vm13728_vm0 }
 0x30f   : > { %v2819_v58 = vsel %vm13727_vm1, %v13726_v23, %v13427_v40  ;;  %v3312_v39 = vsel %vm13729_vm7, %v3307_v56, %v13426_v53  ;;  %v10358_v63 = vmul.f32 %v9694_v51, %v10070_v57  ;;  %v10361_v0 = vmul.f32 %v9786_v15, %v3520_v7  ;;  %v10368_v10 = vpop.eup %7922 }
 0x310   : > { %v3665_v46 = vadd.f32 %v3601_v18, %v10213_v31  ;;  %v3667_v22 = vadd.f32 %v3603_v38, %v10225_v43  ;;  %v3314_v54 = vsel %vm13730_vm2, %v3309_v59, %v13425_v20  ;;  %13731 = vst [vmem:[#allocation84_spill] sm:$0xff] %v10368_v10  ;;  %v3027_v56 = vsel %vm13732_vm8, %v2819_v58, 0.0  ;;  %v10376_v31 = vpop.eup %7924 }
 0x311   : > { %v3108_v57 = vmul.f32 %v9747_v2, %v3026_v47  ;;  %v4129_v24 = vadd.f32 1.0, %v7919_v32  ;;  %v10374_v7 = vadd.f32 %v2611_v14, %v10241_v33  ;;  %13733 = vst [vmem:[#allocation85_spill] sm:$0xff] %v10376_v31  ;;  %v10379_v43 = vmul.f32 %v9786_v15, %v3522_v11 }
 0x312   : > { %vm13734_vm4 = vcmp.ge.s32.totalorder %v9259_v34, 4  ;;  %7932 = vrcp.f32 %v4128_v50  ;;  %v10384_v59 = vadd.f32 %v10205_v49, %v2612_v3  ;;  %vm2987_vm1 = vcmp.ge.s32.totalorder %v9285_v61, 2  ;;  %v7149_v34 = vpop.f32.mrf.mxu1 }
 0x313   : > { %v3523_v18 = vsel %vm13734_vm4, %v3312_v39, 0.0  ;;  %vm13735_vm0 = vmmov %vm13734_vm4  ;;  %v10391_v38 = vmul.f32 %v10376_v31, %v10150_v1  ;;  %v2358_v14 = vrot.slane %v10376_v31, 7  ;;  %v2184_v23 = vmul.f32 1.442695, %v1902_v28 }
 0x314   : > { %v3524_v32 = vsel %vm13735_vm0, %v3314_v54, 0.0  ;;  %v10395_v58 = vadd.f32 %v10280_v21, %v3665_v46  ;;  %v10397_v47 = vadd.f32 %v3749_v4, %v3667_v22  ;;  %v3109_v50 = vmul.f32 %v9750_v35, %v3027_v56  ;;  %v10409_v54 = vpop.f32.mrf.mxu0  ;;  %v10411_v21 = vpop.eup %7926 }
 0x315   : > { %v10402_v3 = vmul.f32 %v9694_v51, %v10194_v42  ;;  %v10405_v11 = vadd.f32 %v3108_v57, %v10265_v62  ;;  %7934 = vrcp.f32 %v4129_v24  ;;  %v2820_v1 = vrot.slane %v10374_v7, 6  ;;  %13738 = vst [vmem:[#allocation88_spill] sm:$0xff] %v10411_v21  ;;  %v7150_v53 = vpop.f32.mrf.mxu1 }
 0x316   : > { %13736 = vst [vmem:[#allocation86_spill] sm:$0xff] %v10395_v58  ;;  %13737 = vst [vmem:[#allocation87_spill] sm:$0xff] %v10397_v47  ;;  %v2356_v39 = vrot.slane %v10391_v38, 7  ;;  %v3605_v4 = vmul.f32 %v9823_v37, %v3523_v18  ;;  %v10415_v46 = vmul.f32 %v9786_v15, %v3524_v32  ;;  %v4130_v22 = vadd.f32 1.0, %v7921_v13  ;;  %v1908_v10 = vpop.f32.mrf.mxu0 }
 0x317   : > { %v13740_v28 = vrot.slane %v10241_v33, 7  ;;  %vm13741_vm7 = vcmask 1040384   ;;  %v13742_v57 = vrot.slane %v10205_v49, 7  ;;  %v10426_v20 = vmul.f32 %v10411_v21, %v10268_v45 }
 0x318   : > { %13739 = vst [vmem:[#allocation89_spill] sm:$0xff] %v10415_v46  ;;  %vm13743_vm2 = vmmov %vm13741_vm7  ;;  %7936 = vpow2.f32 %v2184_v23  ;;  %v10429_v18 = vadd.f32 %v3109_v50, %v10290_v5  ;;  %vm13745_vm4 = vcmp.ge.s32.totalorder %v9322_v8, 1  ;;  %v2362_v32 = vrot.slane %v10411_v21, 7  ;;  %v10435_v40 = vpop.eup %7928  ;;  %v13809_v46 = vld [vmem:[#allocation28_spill] sm:$0xff] }
 0x319   : > { %v2357_v56 = vsel %vm13741_vm7, %v13740_v28, %v2356_v39  ;;  %v2359_v24 = vsel %vm13743_vm2, %v13742_v57, %v2358_v14  ;;  %v7148_v28 = vadd.f32 %v7147_v12, %v7146_v52  ;;  %13746 = vst [vmem:[#allocation91_spill] sm:$0xff] %v10435_v40  ;;  %v13747_v45 = vrot.slane %v10265_v62, 6  ;;  %v10443_v47 = vpop.eup %7930  ;;  %vm13753_vm2 = vmmov %vm13745_vm4 }
 0x31a   : > { %13744 = vst [vmem:[#allocation90_spill] sm:$0xff] %v10429_v18  ;;  %v2530_v13 = vsel %vm13745_vm4, %v2357_v56, 0.0  ;;  %vm13748_vm0 = vcmask 1041408   ;;  %v2360_v42 = vrot.slane %v10426_v20, 7  ;;  %13749 = vst [vmem:[#allocation92_spill] sm:$0xff] %v10443_v47  ;;  %v13750_v56 = vrot.slane %v10384_v59, 6 }
 0x31b   : > { %v2821_v23 = vsel %vm13748_vm0, %v13747_v45, %v2820_v1  ;;  %v2613_v50 = vmul.f32 %v9655_v60, %v2530_v13  ;;  %v13751_v52 = vrot.slane %v10290_v5, 6  ;;  %vm13752_vm7 = vmmov %vm13748_vm0  ;;  %v2531_v57 = vsel %vm13753_vm2, %v2359_v24, 0.0 }
 0x31c   : > { %vm13754_vm4 = vcmask 1040384   ;;  %v10455_v45 = vmul.f32 %v10435_v40, %v10333_v25  ;;  %vm13756_vm8 = vcmp.ge.s32.totalorder %v9324_v30, 1  ;;  %v7151_v5 = vadd.f32 %v7150_v53, %v7149_v34 }
 0x31d   : > { %v2823_v12 = vsel %vm13752_vm7, %v13751_v52, %v13750_v56  ;;  %v2363_v62 = vsel %vm13754_vm4, %v2358_v14, %v2362_v32  ;;  %v10458_v13 = vadd.f32 %v2613_v50, %v10391_v38  ;;  %vm13755_vm0 = vmmov %vm13754_vm4  ;;  %v3028_v56 = vsel %vm2987_vm1, %v2821_v23, 0.0 }
 0x31e   : > { %v2361_v47 = vsel %vm13755_vm0, %v2356_v39, %v2360_v42  ;;  %v2533_v58 = vsel %vm13756_vm8, %v2363_v62, 0.0  ;;  %vm2988_vm7 = vcmp.ge.s32.totalorder %v9322_v8, 2  ;;  %vm13757_vm2 = vmmov %vm13756_vm8  ;;  %v2186_v24 = vmul.f32 1.442695, %v1908_v10 }
 0x31f   : > { %v2532_v14 = vsel %vm13757_vm2, %v2361_v47, 0.0  ;;  %v3029_v50 = vsel %vm2987_vm1, %v2823_v12, 0.0  ;;  %v2614_v39 = vmul.f32 %v9675_v26, %v2531_v57  ;;  %v13758_v34 = vrot.slane %v10405_v11, 4  ;;  %vm13762_vm4 = vmmov %vm13755_vm0  ;;  %v10484_v49 = vpop.eup %7932 }
 0x320   : > { %v2615_v52 = vmul.f32 %v9655_v60, %v2532_v14  ;;  %v13759_v23 = vrot.slane %v10296_v44, 4  ;;  %vm13760_vm8 = vcmask 1043456   ;;  %v2824_v47 = vrot.slane %v10458_v13, 6  ;;  %13763 = vst [vmem:[#allocation93_spill] sm:$0xff] %v10484_v49 }
 0x321   : > { %v2616_v25 = vmul.f32 %v9675_v26, %v2533_v58  ;;  %v13761_v10 = vrot.slane %v10455_v45, 7  ;;  %v3317_v57 = vrot.slane %v10429_v18, 4  ;;  %v3110_v14 = vmul.f32 %v9747_v2, %v3028_v56 }
 0x322   : > { %v3316_v62 = vsel %vm13760_vm8, %v13759_v23, %v13758_v34  ;;  %v10489_v53 = vadd.f32 %v2615_v52, %v10426_v20  ;;  %vm2989_vm1 = vcmp.ge.s32.totalorder %v9324_v30, 2  ;;  %v13764_v34 = vrot.slane %v10435_v40, 7 }
 0x323   : > { %v2365_v12 = vsel %vm13762_vm4, %v2360_v42, %v13761_v10  ;;  %v3111_v58 = vmul.f32 %v9750_v35, %v3029_v50  ;;  %vm13766_vm2 = vcmp.ge.s32.totalorder %v13765_v55, 1  ;;  %7938 = vpow2.f32 %v2186_v24 }
 0x324   : > { %v2367_v23 = vsel %vm13755_vm0, %v2362_v32, %v13764_v34  ;;  %v2534_v42 = vsel %vm13766_vm2, %v2365_v12, 0.0  ;;  %vm13767_vm8 = vmmov %vm13766_vm2  ;;  %vm13768_vm4 = vcmp.ge.s32.totalorder %v9281_v16, 4  ;;  %v10503_v52 = vadd.f32 %v10376_v31, %v2614_v39  ;;  %v10507_v32 = vpop.eup %7934 }
 0x325   : > { %v2535_v10 = vsel %vm13767_vm8, %v2367_v23, 0.0  ;;  %v3525_v56 = vsel %vm13768_vm4, %v3316_v62, 0.0  ;;  %v2828_v49 = vrot.slane %v10489_v53, 6  ;;  %v2617_v18 = vmul.f32 %v9655_v60, %v2534_v42  ;;  %13769 = vst [vmem:[#allocation25_spill] sm:$0xff] %v10507_v32  ;;  %v10519_v31 = vpop.eup %7936 }
 0x326   : > { %vm13770_vm0 = vcmask 1041408   ;;  %v6868_v12 = vmul.f32 -1.442695, %v10201_v9  ;;  %v10512_v34 = vadd.f32 %v10411_v21, %v2616_v25  ;;  %v2618_v24 = vmul.f32 %v9675_v26, %v2535_v10  ;;  %13771 = vst [vmem:[#allocation94_spill] sm:$0xff] %v10519_v31  ;;  %v7152_v10 = vpop.f32.mrf.mxu1 }
 0x327   : > { %v2825_v50 = vsel %vm13770_vm0, %v2820_v1, %v2824_v47  ;;  %v3669_v62 = vadd.f32 %v3605_v4, %v10296_v44  ;;  %v10517_v39 = vadd.f32 %v3110_v14, %v10374_v7  ;;  %7940 = vrcp.f32 %v4130_v22  ;;  %vm13774_vm4 = vmmov %vm13770_vm0 }
 0x328   : > { %v6869_v23 = vmul.f32 -1.442695, %v7148_v28  ;;  %v13772_v42 = vrot.slane %v10306_v19, 4  ;;  %vm13773_vm2 = vcmask 1043456   ;;  %v3607_v9 = vmul.f32 %v9823_v37, %v3525_v56  ;;  %v1910_v56 = vpop.f32.mrf.mxu0 }
 0x329   : > { %v10526_v25 = vadd.f32 %v3111_v58, %v10384_v59  ;;  %v6870_v32 = vmul.f32 -1.442695, %v7151_v5  ;;  %vm3486_vm8 = vcmp.ge.s32.totalorder %v9285_v61, 4  ;;  %v2826_v44 = vrot.slane %v10503_v52, 6 }
 0x32a   : > { %v3318_v1 = vsel %vm13773_vm2, %v13772_v42, %v3317_v57  ;;  %v3030_v7 = vsel %vm2988_vm7, %v2825_v50, 0.0  ;;  %v2829_v4 = vsel %vm13774_vm4, %v2824_v47, %v2828_v49  ;;  %v10534_v22 = vadd.f32 %v2617_v18, %v10455_v45  ;;  %vm13778_vm4 = vmmov %vm13770_vm0 }
 0x32b   : > { %v10538_v28 = vmul.f32 %v9694_v51, %v10241_v33  ;;  %7942 = vpow2.f32 %v6868_v12  ;;  %v2830_v5 = vrot.slane %v10512_v34, 6  ;;  %v10542_v14 = vadd.f32 %v10435_v40, %v2618_v24  ;;  %v7153_v24 = vpop.f32.mrf.mxu1 }
 0x32c   : > { %vm13775_vm2 = vcmp.ge.s32.totalorder %v9281_v16, 4  ;;  %v13432_v47 = vrot.slane %v10517_v39, 4  ;;  %7944 = vpow2.f32 %v6869_v23  ;;  %v10550_v18 = vmul.f32 %v10519_v31, %v10409_v54 }
 0x32d   : > { %v3526_v58 = vsel %vm13775_vm2, %v3318_v1, 0.0  ;;  %v3671_v33 = vadd.f32 %v3607_v9, %v10405_v11  ;;  %v3112_v50 = vmul.f32 %v9747_v2, %v3030_v7  ;;  %v3032_v12 = vsel %vm2989_vm1, %v2829_v4, 0.0  ;;  %vm13780_vm2 = vmmov %vm13770_vm0 }
 0x32e   : > { %v10558_v16 = vadd.f32 %v10358_v63, %v3669_v62  ;;  %v13777_v42 = vrot.slane %v10384_v59, 6  ;;  %7946 = vpow2.f32 %v6870_v32  ;;  %v10565_v1 = vmul.f32 %v9786_v15, %v3526_v58 }
 0x32f   : > { %v2831_v9 = vsel %vm13780_vm2, %v2826_v44, %v2830_v5  ;;  %v2368_v4 = vrot.slane %v10550_v18, 7  ;;  %v13781_v63 = vrot.slane %v10405_v11, 4  ;;  %vm13782_vm0 = vcmask 1043456  }
 0x330   : > { %13776 = vst [vmem:[#allocation95_spill] sm:$0xff] %v10558_v16  ;;  %v2827_v23 = vsel %vm13778_vm4, %v13777_v42, %v2826_v44  ;;  %13779 = vst [vmem:[#allocation96_spill] sm:$0xff] %v10565_v1  ;;  %v3114_v62 = vmul.f32 %v9747_v2, %v3032_v12  ;;  %v2370_v32 = vrot.slane %v10519_v31, 7  ;;  %v7154_v42 = vadd.f32 %v7153_v24, %v7152_v10  ;;  %v10588_v11 = vpop.eup %7938 }
 0x331   : > { %v3320_v59 = vsel %vm13782_vm0, %v13781_v63, %v13432_v47  ;;  %v10578_v58 = vadd.f32 %v10402_v3, %v3671_v33  ;;  %v13784_v44 = vrot.slane %v10526_v25, 4  ;;  %vm13785_vm4 = vmmov %vm13782_vm0  ;;  %v3031_v54 = vsel %vm2988_vm7, %v2827_v23, 0.0 }
 0x332   : > { %v10586_v16 = vadd.f32 %v3112_v50, %v10458_v13  ;;  %v3033_v12 = vsel %vm2989_vm1, %v2831_v9, 0.0  ;;  %v13786_v10 = vrot.slane %v10534_v22, 6  ;;  %vm13787_vm0 = vmmov %vm13780_vm2  ;;  %v13788_v33 = vrot.slane %v10455_v45, 7  ;;  %v13794_v9 = vld [vmem:[#allocation26_spill] sm:$0xff] }
 0x333   : > { %13783 = vst [vmem:[#allocation97_spill] sm:$0xff] %v10578_v58  ;;  %v3322_v7 = vsel %vm13785_vm4, %v3317_v57, %v13784_v44  ;;  %vm13789_vm2 = vcmask 1040384   ;;  %v13790_v57 = vrot.slane %v10435_v40, 7  ;;  %v3527_v13 = vsel %vm3486_vm8, %v3320_v59, 0.0  ;;  %vm13793_vm7 = vmmov %vm13787_vm0 }
 0x334   : > { %v2833_v3 = vsel %vm13787_vm0, %v2828_v49, %v13786_v10  ;;  %v2369_v24 = vsel %vm13789_vm2, %v13788_v33, %v2368_v4  ;;  %vm13791_vm4 = vmmov %vm13789_vm2  ;;  %v13792_v50 = vrot.slane %v10542_v14, 6  ;;  %vm13795_vm1 = vcmp.ge.s32.totalorder %v13794_v9, 1  ;;  %v1912_v10 = vpop.f32.mrf.mxu0  ;;  %v10617_v58 = vpop.eup %7940 }
 0x335   : > { %v2371_v23 = vsel %vm13791_vm4, %v13790_v57, %v2370_v32  ;;  %v2536_v44 = vsel %vm13795_vm1, %v2369_v24, 0.0  ;;  %vm13796_vm0 = vmmov %vm13795_vm1  ;;  %v3113_v33 = vmul.f32 %v9750_v35, %v3031_v54  ;;  %vm3487_vm2 = vcmp.ge.s32.totalorder %v9322_v8, 4  ;;  %13797 = vst [vmem:[#allocation26_spill] sm:$0xff] %v10617_v58 }
 0x336   : > { %v2835_v63 = vsel %vm13793_vm7, %v2830_v5, %v13792_v50  ;;  %v2537_v49 = vsel %vm13796_vm0, %v2371_v23, 0.0  ;;  %v10613_v57 = vadd.f32 %v3114_v62, %v10489_v53  ;;  %v2619_v59 = vmul.f32 %v9655_v60, %v2536_v44 }
 0x337   : > { %v2620_v47 = vmul.f32 %v9675_v26, %v2537_v49  ;;  %v3115_v5 = vmul.f32 %v9750_v35, %v3033_v12  ;;  %vm13798_vm4 = vcmp.ge.s32.totalorder %v13765_v55, 2  ;;  %v10622_v23 = vmul.f32 -1.442695, %v7154_v42 }
 0x338   : > { %v3034_v24 = vsel %vm13798_vm4, %v2833_v3, 0.0  ;;  %v10625_v54 = vmul.f32 %v10588_v11, %v1910_v56  ;;  %v3528_v53 = vsel %vm3486_vm8, %v3322_v7, 0.0  ;;  %v3323_v62 = vrot.slane %v10586_v16, 4  ;;  %vm13799_vm1 = vmmov %vm13798_vm4  ;;  %v10646_v7 = vpop.f32.mrf.mxu0  ;;  %v7943_v44 = vpop.eup %7942 }
 0x339   : > { %vm3488_vm7 = vcmp.ge.s32.totalorder %v9324_v30, 4  ;;  %v3035_v50 = vsel %vm13799_vm1, %v2835_v63, 0.0  ;;  %v10634_v12 = vadd.f32 %v2619_v59, %v10550_v18  ;;  %v3609_v3 = vmul.f32 %v9823_v37, %v3527_v13  ;;  %v7945_v59 = vpop.eup %7944 }
 0x33a   : > { %v10639_v42 = vmul.f32 %v9694_v51, %v10391_v38  ;;  %v10642_v56 = vadd.f32 %v10519_v31, %v2620_v47  ;;  %v10649_v63 = vadd.f32 %v3113_v33, %v10503_v52  ;;  %v3327_v49 = vrot.slane %v10613_v57, 4  ;;  %v7155_v31 = vpop.f32.mrf.mxu1 }
 0x33b   : > { %v3116_v13 = vmul.f32 %v9747_v2, %v3034_v24  ;;  %v10655_v47 = vmul.f32 %v9786_v15, %v3528_v53  ;;  %v10658_v58 = vadd.f32 %v3115_v5, %v10512_v34  ;;  %v3117_v61 = vmul.f32 %v9750_v35, %v3035_v50  ;;  %v7947_v34 = vpop.eup %7946 }
 0x33c   : > { %13800 = vst [vmem:[#allocation98_spill] sm:$0xff] %v10649_v63  ;;  %v13803_v40 = vrot.slane %v10625_v54, 7  ;;  %vm13804_vm0 = vcmask 1040384   ;;  %v13805_v33 = vrot.slane %v10517_v39, 4  ;;  %vm13806_vm4 = vcmask 1043456  }
 0x33d   : > { %13801 = vst [vmem:[#allocation99_spill] sm:$0xff] %v10655_v47  ;;  %13802 = vst [vmem:[#allocation100_spill] sm:$0xff] %v10658_v58  ;;  %v13807_v21 = vrot.slane %v10588_v11, 7  ;;  %v2188_v47 = vmul.f32 1.442695, %v1912_v10  ;;  %v3673_v5 = vadd.f32 %v3609_v3, %v10517_v39  ;;  %v4131_v50 = vadd.f32 1.0, %v7943_v44  ;;  %v7156_v3 = vpop.f32.mrf.mxu1 }
 0x33e   : > { %v2373_v52 = vsel %vm13804_vm0, %v2368_v4, %v13803_v40  ;;  %v3324_v24 = vsel %vm13806_vm4, %v13805_v33, %v3323_v62  ;;  %vm13808_vm1 = vmmov %vm13804_vm0  ;;  %v13439_v1 = vrot.slane %v10642_v56, 6  ;;  %vm13810_vm8 = vcmp.ge.s32.totalorder %v13809_v46, 1  ;;  %v1918_v4 = vpop.f32.mrf.mxu0 }
 0x33f   : > { %v2375_v53 = vsel %vm13808_vm1, %v2370_v32, %v13807_v21  ;;  %v2538_v40 = vsel %vm13810_vm8, %v2373_v52, 0.0  ;;  %v3325_v19 = vrot.slane %v10649_v63, 4  ;;  %vm13811_vm0 = vmmov %vm13806_vm4  ;;  %v10678_v38 = vadd.f32 %v3116_v13, %v10534_v22 }
 0x340   : > { %v3328_v33 = vsel %vm13811_vm0, %v3323_v62, %v3327_v49  ;;  %vm13812_vm4 = vmmov %vm13810_vm8  ;;  %v3529_v39 = vsel %vm3487_vm2, %v3324_v24, 0.0  ;;  %v3329_v32 = vrot.slane %v10658_v58, 4  ;;  %v10686_v10 = vadd.f32 %v3117_v61, %v10542_v14  ;;  %v10705_v63 = vpop.f32.mrf.mxu0 }
 0x341   : > { %v2539_v21 = vsel %vm13812_vm4, %v2375_v53, 0.0  ;;  %7948 = vpow2.f32 %v2188_v47  ;;  %v3759_v62 = vmul.f32 %v9694_v51, %v10426_v20  ;;  %v4132_v44 = vadd.f32 1.0, %v7945_v59 }
 0x342   : > { %v13813_v13 = vrot.slane %v10634_v12, 6  ;;  %v13814_v52 = vrot.slane %v10534_v22, 6  ;;  %vm13815_vm1 = vcmask 1041408   ;;  %v2621_v24 = vmul.f32 %v9655_v60, %v2538_v40 }
 0x343   : > { %v3531_v61 = vsel %vm3488_vm7, %v3328_v33, 0.0  ;;  %v13816_v58 = vrot.slane %v10542_v14, 6  ;;  %vm13817_vm0 = vmmov %vm13815_vm1  ;;  %v2622_v20 = vmul.f32 %v9675_v26, %v2539_v21  ;;  %v2190_v59 = vmul.f32 1.442695, %v1918_v4  ;;  %v7158_v21 = vpop.f32.mrf.mxu1 }
 0x344   : > { %v2837_v53 = vsel %vm13815_vm1, %v13814_v52, %v13813_v13  ;;  %v13818_v22 = vrot.slane %v10526_v25, 4  ;;  %vm13819_vm4 = vcmask 1043456   ;;  %v3611_v40 = vmul.f32 %v9823_v37, %v3529_v39 }
 0x345   : > { %v2839_v47 = vsel %vm13817_vm0, %v13816_v58, %v13439_v1  ;;  %7950 = vrcp.f32 %v4131_v50  ;;  %v13443_v33 = vrot.slane %v10678_v38, 4  ;;  %vm13820_vm1 = vmmov %vm13819_vm4  ;;  %v13442_v14 = vrot.slane %v10686_v10, 4 }
 0x346   : > { %v3326_v13 = vsel %vm13819_vm4, %v13818_v22, %v3325_v19  ;;  %v3330_v52 = vsel %vm13820_vm1, %v3325_v19, %v3329_v32  ;;  %vm13821_vm0 = vcmp.ge.s32.totalorder %v13794_v9, 2  ;;  %7952 = vpow2.f32 %v2190_v59 }
 0x347   : > { %v3036_v58 = vsel %vm13821_vm0, %v2837_v53, 0.0  ;;  %v3613_v4 = vmul.f32 %v9823_v37, %v3531_v61  ;;  %v4133_v1 = vadd.f32 1.0, %v7947_v34  ;;  %vm13822_vm8 = vmmov %vm13821_vm0  ;;  %v10720_v39 = vadd.f32 %v2621_v24, %v10625_v54  ;;  %v1922_v61 = vpop.f32.mrf.mxu0 }
 0x348   : > { %v3037_v22 = vsel %vm13822_vm8, %v2839_v47, 0.0  ;;  %v10723_v50 = vadd.f32 %v10538_v28, %v3673_v5  ;;  %v3530_v19 = vsel %vm3487_vm2, %v3326_v13, 0.0  ;;  %7954 = vrcp.f32 %v4132_v44  ;;  %vm13824_vm8 = vmmov %vm13820_vm1 }
 0x349   : > { %v10728_v53 = vadd.f32 %v10588_v11, %v2622_v20  ;;  %vm2992_vm4 = vcmp.ge.s32.totalorder %v13809_v46, 2  ;;  %v3532_v34 = vsel %vm3488_vm7, %v3330_v52, 0.0  ;;  %v3332_v24 = vsel %vm13824_vm8, %v3327_v49, %v13443_v33  ;;  %vm13825_vm2 = vmmov %vm13820_vm1  ;;  %v7159_v20 = vpop.f32.mrf.mxu1 }
 0x34a   : > { %13823 = vst [vmem:[#allocation28_spill] sm:$0xff] %v10723_v50  ;;  %v3118_v28 = vmul.f32 %v9747_v2, %v3036_v58  ;;  %v7157_v5 = vadd.f32 %v7156_v3, %v7155_v31  ;;  %v3675_v8 = vadd.f32 %v3611_v40, %v10586_v16  ;;  %v3334_v44 = vsel %vm13825_vm2, %v3329_v32, %v13442_v14  ;;  %v10762_v40 = vpop.f32.mrf.mxu0 }
 0x34b   : > { %v10743_v47 = vmul.f32 %v9694_v51, %v10455_v45  ;;  %v3119_v30 = vmul.f32 %v9750_v35, %v3037_v22  ;;  %v3677_v59 = vadd.f32 %v3613_v4, %v10613_v57  ;;  %7956 = vrcp.f32 %v4133_v1 }
 0x34c   : > { %v13440_v49 = vrot.slane %v10720_v39, 6  ;;  %v2192_v13 = vmul.f32 1.442695, %v1922_v61  ;;  %v10749_v31 = vmul.f32 %v9786_v15, %v3530_v19  ;;  %v10752_v16 = vmul.f32 %v9786_v15, %v3532_v34 }
 0x34d   : > { %vm13826_vm7 = vcmp.ge.s32.totalorder %v13765_v55, 4  ;;  %v13441_v45 = vrot.slane %v10728_v53, 6  ;;  %v10760_v57 = vadd.f32 %v3118_v28, %v10634_v12  ;;  %v6872_v1 = vmul.f32 -1.442695, %v7157_v5  ;;  %v7161_v55 = vpop.f32.mrf.mxu1 }
 0x34e   : > { %v3533_v32 = vsel %vm13826_vm7, %v3332_v24, 0.0  ;;  %vm13827_vm1 = vmmov %vm13826_vm7  ;;  %7958 = vpow2.f32 %v2192_v13  ;;  %v10765_v52 = vadd.f32 %v10639_v42, %v3675_v8  ;;  %v10768_v58 = vadd.f32 %v3119_v30, %v10642_v56  ;;  %v10775_v22 = vpop.eup %7948  ;;  %v13832_v24 = vld [vmem:[#allocation67_spill] sm:$0xff]  ;;  %v13836_v30 = vld [vmem:[#allocation66_spill] sm:$0xff] }
 0x34f   : > { %v3534_v3 = vsel %vm13827_vm1, %v3334_v44, 0.0  ;;  %v10772_v4 = vmul.f32 %v9694_v51, %v10550_v18  ;;  %7960 = vpow2.f32 %v10622_v23  ;;  %v10777_v19 = vadd.f32 %v3759_v62, %v3677_v59 }
 0x350   : > { %13828 = vst [vmem:[#allocation101_spill] sm:$0xff] %v10765_v52  ;;  %v3615_v61 = vmul.f32 %v9823_v37, %v3533_v32  ;;  %v13830_v42 = vrot.slane %v10634_v12, 6  ;;  %vm13831_vm0 = vcmask 1041408   ;;  %v3656_v28 = vadd.f32 %v9973_v27, %v13832_v24  ;;  %v1928_v27 = vpop.f32.mrf.mxu0  ;;  %v7162_v24 = vpop.f32.mrf.mxu1 }
 0x351   : > { %13829 = vst [vmem:[#allocation102_spill] sm:$0xff] %v10777_v19  ;;  %v10788_v18 = vmul.f32 %v9786_v15, %v3534_v3  ;;  %v13833_v23 = vrot.slane %v10642_v56, 6  ;;  %vm13834_vm8 = vmmov %vm13831_vm0  ;;  %v10797_v5 = vmul.f32 %v10775_v22, %v10646_v7  ;;  %v2378_v12 = vrot.slane %v10775_v22, 7 }
 0x352   : > { %v2841_v34 = vsel %vm13831_vm0, %v13830_v42, %v13440_v49  ;;  %7962 = vpow2.f32 %v6872_v1  ;;  %v7160_v44 = vadd.f32 %v7159_v20, %v7158_v21  ;;  %v3658_v59 = vadd.f32 %v9981_v6, %v13836_v30  ;;  %v10803_v13 = vpop.eup %7950  ;;  %v13841_v21 = vld [vmem:[#allocation29_spill] sm:$0xff]  ;;  %v13844_v30 = vld [vmem:[#allocation58_spill] sm:$0xff]  ;;  %v13845_v49 = vld [vmem:[#allocation68_spill] sm:$0xff] }
 0x353   : > { %v2843_v62 = vsel %vm13834_vm8, %v13833_v23, %v13441_v45  ;;  %13835 = vst [vmem:[#allocation67_spill] sm:$0xff] %v10797_v5  ;;  %13837 = vst [vmem:[#allocation66_spill] sm:$0xff] %v10803_v13  ;;  %v3038_v32 = vsel %vm2992_vm4, %v2841_v34, 0.0  ;;  %v2376_v7 = vrot.slane %v10797_v5, 7  ;;  %v13838_v3 = vrot.slane %v10588_v11, 7  ;;  %v10812_v1 = vpop.eup %7952  ;;  %v13843_v23 = vld [vmem:[#allocation61_spill] sm:$0xff] }
 0x354   : > { %vm13839_vm2 = vcmask 1040384   ;;  %13840 = vst [vmem:[#allocation103_spill] sm:$0xff] %v10812_v1  ;;  %vm3490_vm7 = vcmp.ge.s32.totalorder %v13794_v9, 4  ;;  %v3039_v6 = vsel %vm2992_vm4, %v2843_v62, 0.0  ;;  %vm13842_vm1 = vcmp.ge.s32.totalorder %v13841_v21, 1 }
 0x355   : > { %v2379_v42 = vsel %vm13839_vm2, %v13838_v3, %v2378_v12  ;;  %v3740_v34 = vmul.f32 %v13844_v30, %v13843_v23  ;;  %v10822_v45 = vadd.f32 %v13845_v49, %v3656_v28  ;;  %v13846_v14 = vrot.slane %v10625_v54, 7  ;;  %vm13847_vm0 = vmmov %vm13839_vm2  ;;  %v10832_v8 = vpop.eup %7954 }
 0x356   : > { %v2541_v20 = vsel %vm13842_vm1, %v2379_v42, 0.0  ;;  %v10830_v33 = vmul.f32 %v10812_v1, %v10705_v63  ;;  %v2194_v62 = vmul.f32 1.442695, %v1928_v27  ;;  %13849 = vst [vmem:[#allocation61_spill] sm:$0xff] %v10832_v8  ;;  %vm13850_vm4 = vmmov %vm13842_vm1  ;;  %v2382_v30 = vrot.slane %v10812_v1, 7 }
 0x357   : > { %v2377_v3 = vsel %vm13847_vm0, %v13846_v14, %v2376_v7  ;;  %v2624_v56 = vmul.f32 %v9675_v26, %v2541_v20  ;;  %v7163_v49 = vadd.f32 %v7162_v24, %v7161_v55  ;;  %v10837_v28 = vadd.f32 %v3740_v34, %v3658_v59  ;;  %vm13851_vm8 = vmmov %vm13847_vm0 }
 0x358   : > { %13848 = vst [vmem:[#allocation29_spill] sm:$0xff] %v10830_v33  ;;  %v2540_v42 = vsel %vm13850_vm4, %v2377_v3, 0.0  ;;  %v3120_v13 = vmul.f32 %v9747_v2, %v3038_v32  ;;  %v2380_v63 = vrot.slane %v10830_v33, 7  ;;  %v3121_v27 = vmul.f32 %v9750_v35, %v3039_v6  ;;  %v10848_v3 = vpop.eup %7956  ;;  %vm13853_vm2 = vmmov %vm13847_vm0  ;;  %v13854_v32 = vld [vmem:[#allocation31_spill] sm:$0xff] }
 0x359   : > { %v2623_v14 = vmul.f32 %v9655_v60, %v2540_v42  ;;  %v10842_v20 = vadd.f32 %v10775_v22, %v2624_v56  ;;  %v6873_v8 = vmul.f32 -1.442695, %v7160_v44  ;;  %v2383_v19 = vsel %vm13851_vm8, %v2378_v12, %v2382_v30  ;;  %13852 = vst [vmem:[#allocation58_spill] sm:$0xff] %v10848_v3 }
 0x35a   : > { %7964 = vrcp.f32 %v10822_v45  ;;  %v2381_v59 = vsel %vm13853_vm2, %v2376_v7, %v2380_v63  ;;  %vm13855_vm1 = vcmp.ge.s32.totalorder %v13854_v32, 1  ;;  %v13856_v24 = vrot.slane %v10760_v57, 4 }
 0x35b   : > { %v10851_v55 = vadd.f32 %v2623_v14, %v10797_v5  ;;  %v2543_v56 = vsel %vm13855_vm1, %v2383_v19, 0.0  ;;  %7966 = vpow2.f32 %v2194_v62  ;;  %v13857_v6 = vrot.slane %v10678_v38, 4  ;;  %v10864_v42 = vpop.eup %7958  ;;  %v7164_v5 = vpop.f32.mrf.mxu1  ;;  %vm13861_vm8 = vmmov %vm13855_vm1 }
 0x35c   : > { %vm13858_vm0 = vcmask 1043456   ;;  %v2846_v12 = vrot.slane %v10842_v20, 6  ;;  %v2626_v34 = vmul.f32 %v9675_v26, %v2543_v56  ;;  %7968 = vrcp.f32 %v10837_v28  ;;  %13859 = vst [vmem:[#allocation68_spill] sm:$0xff] %v10864_v42 }
 0x35d   : > { %v3336_v44 = vsel %vm13858_vm0, %v13857_v6, %v13856_v24  ;;  %v3679_v7 = vadd.f32 %v3615_v61, %v10678_v38  ;;  %v10868_v14 = vadd.f32 %v3120_v13, %v10720_v39  ;;  %v10872_v19 = vmul.f32 %v9694_v51, %v10625_v54  ;;  %v7961_v24 = vpop.eup %7960  ;;  %vm13864_vm2 = vmmov %vm13858_vm0 }
 0x35e   : > { %v6874_v62 = vmul.f32 -1.442695, %v7163_v49  ;;  %v10875_v6 = vadd.f32 %v3121_v27, %v10728_v53  ;;  %v2542_v56 = vsel %vm13861_vm8, %v2381_v59, 0.0  ;;  %v10881_v38 = vadd.f32 %v10812_v1, %v2626_v34 }
 0x35f   : > { %13860 = vst [vmem:[#allocation31_spill] sm:$0xff] %v10872_v19  ;;  %v10885_v61 = vmul.f32 %v10864_v42, %v10762_v40  ;;  %v13862_v54 = vrot.slane %v10768_v58, 4  ;;  %v13863_v13 = vrot.slane %v10686_v10, 4  ;;  %v3535_v27 = vsel %vm3490_vm7, %v3336_v44, 0.0  ;;  %v7963_v3 = vpop.eup %7962 }
 0x360   : > { %vm2993_vm1 = vcmp.ge.s32.totalorder %v13841_v21, 2  ;;  %v13865_v59 = vrot.slane %v10728_v53, 6  ;;  %vm13866_vm0 = vcmask 1041408   ;;  %7970 = vpow2.f32 %v6873_v8 }
 0x361   : > { %v3338_v49 = vsel %vm13864_vm2, %v13863_v13, %v13862_v54  ;;  %v13448_v40 = vrot.slane %v10885_v61, 7  ;;  %v13449_v51 = vrot.slane %v10864_v42, 7  ;;  %v2625_v54 = vmul.f32 %v9655_v60, %v2542_v56  ;;  %v7165_v13 = vpop.f32.mrf.mxu1 }
 0x362   : > { %v2847_v34 = vsel %vm13866_vm0, %v13865_v59, %v2846_v12  ;;  %v2850_v44 = vrot.slane %v10881_v38, 6  ;;  %7972 = vpow2.f32 %v6874_v62  ;;  %v10905_v19 = vadd.f32 %v10743_v47, %v3679_v7 }
 0x363   : > { %vm13868_vm8 = vcmask 1040384   ;;  %v3617_v1 = vmul.f32 %v9823_v37, %v3535_v27  ;;  %v4134_v56 = vadd.f32 1.0, %v7961_v24  ;;  %v13870_v52 = vrot.slane %v10851_v55, 6 }
 0x364   : > { %13867 = vst [vmem:[#allocation104_spill] sm:$0xff] %v10905_v19  ;;  %v2385_v8 = vsel %vm13868_vm8, %v2380_v63, %v13448_v40  ;;  %vm13869_vm2 = vmmov %vm13868_vm8  ;;  %v13871_v62 = vrot.slane %v10720_v39, 6  ;;  %v3041_v7 = vsel %vm2993_vm1, %v2847_v34, 0.0  ;;  %v3536_v53 = vsel %vm3490_vm7, %v3338_v49, 0.0  ;;  %v13872_v63 = vld [vmem:[#allocation32_spill] sm:$0xff]  ;;  %v13900_v19 = vld [vmem:[#allocation74_spill] sm:$0xff] }
 0x365   : > { %v2387_v59 = vsel %vm13869_vm2, %v2382_v30, %v13449_v51  ;;  %vm13873_vm8 = vcmp.ge.s32.totalorder %v13872_v63, 1  ;;  %v7166_v27 = vadd.f32 %v7165_v13, %v7164_v5  ;;  %v13875_v24 = vrot.slane %v10868_v14, 4 }
 0x366   : > { %v2845_v47 = vsel %vm13866_vm0, %v13871_v62, %v13870_v52  ;;  %v2544_v40 = vsel %vm13873_vm8, %v2385_v8, 0.0  ;;  %vm13874_vm2 = vmmov %vm13873_vm8  ;;  %v13876_v51 = vrot.slane %v10760_v57, 4  ;;  %vm13877_vm4 = vcmask 1043456  }
 0x367   : > { %v2545_v30 = vsel %vm13874_vm2, %v2387_v59, 0.0  ;;  %v10934_v52 = vadd.f32 %v2625_v54, %v10830_v33  ;;  %v2851_v34 = vsel %vm13866_vm0, %v2846_v12, %v2850_v44  ;;  %vm2994_vm7 = vcmp.ge.s32.totalorder %v13854_v32, 2  ;;  %vm13880_vm8 = vmmov %vm13877_vm4  ;;  %v7965_v59 = vpop.eup %7964 }
 0x368   : > { %v3340_v39 = vsel %vm13877_vm4, %v13876_v51, %v13875_v24  ;;  %v13878_v9 = vrot.slane %v10875_v6, 4  ;;  %v13879_v49 = vrot.slane %v10768_v58, 4  ;;  %v3040_v5 = vsel %vm2993_vm1, %v2845_v47, 0.0  ;;  %v10952_v24 = vpop.eup %7966 }
 0x369   : > { %v3123_v13 = vmul.f32 %v9750_v35, %v3041_v7  ;;  %v2628_v51 = vmul.f32 %v9675_v26, %v2545_v30  ;;  %v10948_v54 = vmul.f32 %v9786_v15, %v3536_v53  ;;  %v3681_v12 = vadd.f32 %v3617_v1, %v10760_v57 }
 0x36a   : > { %v3342_v8 = vsel %vm13880_vm8, %v13879_v49, %v13878_v9  ;;  %7974 = vrcp.f32 %v4134_v56  ;;  %v2627_v62 = vmul.f32 %v9655_v60, %v2544_v40  ;;  %v3043_v9 = vsel %vm2994_vm7, %v2851_v34, 0.0  ;;  %v7969_v49 = vpop.eup %7968 }
 0x36b   : > { %v10957_v47 = vadd.f32 %v10864_v42, %v2628_v51  ;;  %v6875_v7 = vmul.f32 -1.442695, %v7166_v27  ;;  %v3897_v30 = vmul.f32 %v7965_v59, %v10822_v45  ;;  %vm13881_vm4 = vcmp.ge.s32.totalorder %v13809_v46, 4 }
 0x36c   : > { %v3537_v53 = vsel %vm13881_vm4, %v3340_v39, 0.0  ;;  %vm13882_vm1 = vmmov %vm13881_vm4  ;;  %v3122_v1 = vmul.f32 %v9747_v2, %v3040_v5  ;;  %v2848_v40 = vrot.slane %v10934_v52, 6  ;;  %v10967_v56 = vadd.f32 %v3123_v13, %v10842_v20 }
 0x36d   : > { %v3538_v57 = vsel %vm13882_vm1, %v3342_v8, 0.0  ;;  %v13450_v34 = vrot.slane %v10957_v47, 6  ;;  %v3898_v27 = vmul.f32 %v7969_v49, %v10837_v28  ;;  %v3929_v51 = vsub.f32 2.0, %v3897_v30  ;;  %v1930_v8 = vpop.f32.mrf.mxu0  ;;  %v7971_v13 = vpop.eup %7970 }
 0x36e   : > { %v4135_v45 = vadd.f32 1.0, %v7963_v3  ;;  %vm3492_vm2 = vcmp.ge.s32.totalorder %v13841_v21, 4  ;;  %v3125_v39 = vmul.f32 %v9750_v35, %v3043_v9  ;;  %v10974_v46 = vadd.f32 %v2627_v62, %v10885_v61 }
 0x36f   : > { %vm2995_vm0 = vcmp.ge.s32.totalorder %v13872_v63, 2  ;;  %v10978_v5 = vadd.f32 %v10772_v4, %v3681_v12  ;;  %v10981_v20 = vmul.f32 %v9823_v37, %v3537_v53  ;;  %vm13885_vm8 = vcmask 1041408   ;;  %v7973_v30 = vpop.eup %7972 }
 0x370   : > { %v2855_v28 = vsel %vm13885_vm8, %v2850_v44, %v13450_v34  ;;  %v10987_v3 = vmul.f32 %v10952_v24, %v1930_v8  ;;  %v10990_v62 = vmul.f32 %v9786_v15, %v3538_v57  ;;  %v10993_v9 = vadd.f32 %v3122_v1, %v10851_v55  ;;  %vm13888_vm4 = vmmov %vm13885_vm8  ;;  %v7167_v8 = vpop.f32.mrf.mxu1 }
 0x371   : > { %13883 = vst [vmem:[#allocation32_spill] sm:$0xff] %v10978_v5  ;;  %13884 = vst [vmem:[#allocation105_spill] sm:$0xff] %v10981_v20  ;;  %v13887_v4 = vrot.slane %v10851_v55, 6  ;;  %7976 = vpow2.f32 %v6875_v7  ;;  %v3345_v53 = vrot.slane %v10967_v56, 4  ;;  %v3045_v44 = vsel %vm2995_vm0, %v2855_v28, 0.0  ;;  %v13890_v20 = vld [vmem:[#allocation69_spill] sm:$0xff] }
 0x372   : > { %13886 = vst [vmem:[#allocation106_spill] sm:$0xff] %v10987_v3  ;;  %v3930_v34 = vsub.f32 2.0, %v3898_v27  ;;  %v3961_v33 = vmul.f32 %v7965_v59, %v3929_v51  ;;  %7978 = vrcp.f32 %v4135_v45  ;;  %v11002_v57 = vadd.f32 %v3125_v39, %v10881_v38  ;;  %v13893_v39 = vld [vmem:[#allocation35_spill] sm:$0xff] }
 0x373   : > { %v2849_v12 = vsel %vm13888_vm4, %v13887_v4, %v2848_v40  ;;  %v13454_v55 = vrot.slane %v10952_v24, 7  ;;  %v4136_v27 = vadd.f32 1.0, %v7971_v13  ;;  %v4137_v59 = vadd.f32 1.0, %v7973_v30  ;;  %v7168_v30 = vpop.f32.mrf.mxu1 }
 0x374   : > { %13889 = vst [vmem:[#allocation107_spill] sm:$0xff] %v11002_v57  ;;  %v3042_v7 = vsel %vm2994_vm7, %v2849_v12, 0.0  ;;  %v3962_v4 = vmul.f32 %v7969_v49, %v3930_v34  ;;  %v3993_v37 = vmul.f32 %v3961_v33, %v13890_v20  ;;  %v3127_v51 = vmul.f32 %v9750_v35, %v3045_v44  ;;  %v1932_v12 = vpop.f32.mrf.mxu0  ;;  %v13896_v34 = vld [vmem:[#allocation71_spill] sm:$0xff] }
 0x375   : > { %v13891_v38 = vrot.slane %v10864_v42, 7  ;;  %vm13892_vm8 = vcmask 1040384   ;;  %v13894_v49 = vrot.slane %v10875_v6, 4  ;;  %vm13895_vm7 = vcmask 1043456   ;;  %v13901_v42 = vld [vmem:[#allocation75_spill] sm:$0xff] }
 0x376   : > { %v3994_v20 = vmul.f32 %v3962_v4, %v13896_v34  ;;  %vm13897_vm1 = vcmp.ge.s32.totalorder %v13893_v39, 1  ;;  %v3124_v44 = vmul.f32 %v9747_v2, %v3042_v7  ;;  %v3349_v28 = vrot.slane %v11002_v57, 4 }
 0x377   : > { %v2391_v45 = vsel %vm13892_vm8, %v13891_v38, %v13454_v55  ;;  %v3346_v33 = vsel %vm13895_vm7, %v13894_v49, %v3345_v53  ;;  %v13898_v38 = vrot.slane %v10974_v46, 6  ;;  %vm13899_vm8 = vmmov %vm13888_vm4  ;;  %v11031_v5 = vpop.eup %7974  ;;  %v4217_v49 = vmul.f32 %v13900_v19, %v3993_v37 }
 0x378   : > { %v2547_v13 = vsel %vm13897_vm1, %v2391_v45, 0.0  ;;  %v4218_v4 = vmul.f32 %v13901_v42, %v3994_v20  ;;  %v13902_v34 = vrot.slane %v10987_v3, 7  ;;  %v13903_v45 = vrot.slane %v10885_v61, 7  ;;  %vm13908_vm4 = vmmov %vm13895_vm7 }
 0x379   : > { %v2853_v55 = vsel %vm13899_vm8, %v2848_v40, %v13898_v38  ;;  %v2630_v1 = vmul.f32 %v9675_v26, %v2547_v13  ;;  %vm13904_vm1 = vcmask 1040384   ;;  %v2196_v50 = vmul.f32 1.442695, %v1932_v12 }
 0x37a   : > { %v2389_v7 = vsel %vm13904_vm1, %v13903_v45, %v13902_v34  ;;  %7980 = vrcp.f32 %v4136_v27  ;;  %v11041_v57 = vadd.f32 %v3127_v51, %v10957_v47  ;;  %v11046_v13 = vadd.f32 %v7168_v30, %v7167_v8 }
 0x37b   : > { %v11044_v40 = vadd.f32 %v10952_v24, %v2630_v1  ;;  %v13905_v37 = vrot.slane %v10993_v9, 4  ;;  %v13906_v42 = vrot.slane %v10868_v14, 4  ;;  %v3540_v20 = vsel %vm3492_vm2, %v3346_v33, 0.0  ;;  %v13909_v33 = vld [vmem:[#allocation76_spill] sm:$0xff] }
 0x37c   : > { %v3044_v27 = vsel %vm2995_vm0, %v2853_v55, 0.0  ;;  %vm3494_vm8 = vcmp.ge.s32.totalorder %v13872_v63, 4  ;;  %v4249_v51 = vpack.c.bf16 %v4218_v4, %v4217_v49  ;;  %v11059_v1 = vadd.f32 %v3124_v44, %v10934_v52  ;;  %v13910_v55 = vld [vmem:[#allocation77_spill] sm:$0xff]  ;;  %v13988_v63 = vld [vmem:[#allocation31_spill] sm:$0xff] }
 0x37d   : > { %v3344_v19 = vsel %vm13895_vm7, %v13906_v42, %v13905_v37  ;;  %vm13907_vm1 = vcmp.ge.s32.totalorder %v13893_v39, 1  ;;  %v13457_v12 = vrot.slane %v11044_v40, 6  ;;  %7982 = vpow2.f32 %v2196_v50  ;;  %v13915_v42 = vld [vmem:[#allocation64_spill] sm:$0xff] }
 0x37e   : > { %v2546_v8 = vsel %vm13907_vm1, %v2389_v7, 0.0  ;;  %v3350_v30 = vsel %vm13908_vm4, %v3345_v53, %v3349_v28  ;;  %7984 = vrcp.f32 %v4137_v59  ;;  %7473 = vmatprep.mubr.bf16.mxu1 %v4249_v51  ;;  %v4219_v38 = vmul.f32 %v13909_v33, %v10285_v48  ;;  %v13913_v53 = vld [vmem:[#allocation80_spill] sm:$0xff]  ;;  %v11078_v4 = vpop.eup %7976  ;;  %v13917_v51 = vld [vmem:[#allocation70_spill] sm:$0xff] }
 0x37f   : > { %v4220_v34 = vmul.f32 %v13910_v55, %v10349_v17  ;;  %v3126_v49 = vmul.f32 %v9747_v2, %v3044_v27  ;;  %v13458_v52 = vrot.slane %v11041_v57, 4  ;;  %v13911_v44 = vrot.slane %v10957_v47, 6  ;;  %v11095_v21 = vpop.eup %7978 }
 0x380   : > { %vm13912_vm0 = vcmask 1041408   ;;  %v3664_v59 = vadd.f32 %v13913_v53, %v10093_v41  ;;  %v11082_v48 = vsel %vm3492_vm2, %v3344_v19, 0.0  ;;  %v11085_v17 = vmul.f32 %v9786_v15, %v3540_v20  ;;  %v7170_v20 = vpop.f32.mrf.mxu1 }
 0x381   : > { %v2859_v50 = vsel %vm13912_vm0, %v13911_v44, %v13457_v12  ;;  %v2629_v45 = vmul.f32 %v9655_v60, %v2546_v8  ;;  %v4250_v7 = vpack.c.bf16 %v4220_v34, %v4219_v38  ;;  %vm13914_vm4 = vcmp.ge.s32.totalorder %v13854_v32, 4  ;;  %v13919_v38 = vld [vmem:[#allocation89_spill] sm:$0xff]  ;;  %v13920_v44 = vld [vmem:[#allocation72_spill] sm:$0xff]  ;;  %v1934_v12 = vpop.f32.mrf.mxu0 }
 0x382   : > { %v3542_v47 = vsel %vm13914_vm4, %v3350_v30, 0.0  ;;  %v3666_v41 = vadd.f32 %v10361_v0, %v10258_v36  ;;  %v3746_v27 = vmul.f32 %v13915_v42, %v13843_v23  ;;  %vm13916_vm2 = vcmp.ge.s32.totalorder %v13893_v39, 2  ;;  %v13918_v30 = vld [vmem:[#allocation83_spill] sm:$0xff]  ;;  %v13922_v42 = vld [vmem:[#allocation90_spill] sm:$0xff] }
 0x383   : > { %v3047_v19 = vsel %vm13916_vm2, %v2859_v50, 0.0  ;;  %7474 = vmatmul.mubr.bf16.vlgmr.msra.gmra.mxu1 %v4250_v7  ;;  %v3748_v8 = vmul.f32 %v13917_v51, %v13843_v23  ;;  %v3668_v33 = vadd.f32 %v10379_v43, %v10271_v29  ;;  %v3670_v55 = vadd.f32 %v13919_v38, %v13918_v30  ;;  %v13921_v29 = vld [vmem:[#allocation73_spill] sm:$0xff]  ;;  %v13925_v38 = vld [vmem:[#allocation78_spill] sm:$0xff] }
 0x384   : > { %v11106_v36 = vadd.f32 %v3126_v49, %v10974_v46  ;;  %v3354_v0 = vsel %vm13895_vm7, %v3349_v28, %v13458_v52  ;;  %v11111_v34 = vadd.f32 %v3746_v27, %v3664_v59  ;;  %v3750_v50 = vmul.f32 %v13920_v44, %v13843_v23  ;;  %v13923_v49 = vld [vmem:[#allocation96_spill] sm:$0xff]  ;;  %v13924_v59 = vld [vmem:[#allocation99_spill] sm:$0xff] }
 0x385   : > { %v11116_v53 = vadd.f32 %v2629_v45, %v10987_v3  ;;  %v11118_v7 = vadd.f32 %v3748_v8, %v3666_v41  ;;  %v3752_v43 = vmul.f32 %v13921_v29, %v13843_v23  ;;  %v3672_v51 = vadd.f32 %v13923_v49, %v13922_v42  ;;  %v7171_v41 = vpop.f32.mrf.mxu1 }
 0x386   : > { %v3129_v30 = vmul.f32 %v9750_v35, %v3047_v19  ;;  %7986 = vrcp.f32 %v11111_v34  ;;  %v11126_v28 = vadd.f32 %v3750_v50, %v3668_v33  ;;  %v3674_v27 = vadd.f32 %v13924_v59, %v10526_v25  ;;  %v13926_v25 = vld [vmem:[#allocation79_spill] sm:$0xff] }
 0x387   : > { %v11131_v45 = vmul.f32 %v9786_v15, %v3542_v47  ;;  %7988 = vrcp.f32 %v11118_v7  ;;  %v11134_v8 = vadd.f32 %v3752_v43, %v3670_v55  ;;  %v3754_v44 = vmul.f32 %v13925_v38, %v13843_v23  ;;  %v11144_v47 = vpop.eup %7980  ;;  %v13927_v43 = vld [vmem:[#allocation98_spill] sm:$0xff]  ;;  %v13928_v38 = vld [vmem:[#allocation100_spill] sm:$0xff] }
 0x388   : > { %v3544_v33 = vsel %vm3494_vm8, %v3354_v0, 0.0  ;;  %7990 = vrcp.f32 %v11126_v28  ;;  %v3756_v50 = vmul.f32 %v13926_v25, %v13843_v23  ;;  %v13462_v29 = vrot.slane %v11116_v53, 6 }
 0x389   : > { %7992 = vrcp.f32 %v11134_v8  ;;  %v11148_v55 = vadd.f32 %v3754_v44, %v3672_v51  ;;  %v3676_v42 = vadd.f32 %v10749_v31, %v13927_v43  ;;  %v11153_v49 = vadd.f32 %v3129_v30, %v11044_v40  ;;  %v13929_v51 = vld [vmem:[#allocation85_spill] sm:$0xff]  ;;  %v13930_v31 = vld [vmem:[#allocation88_spill] sm:$0xff] }
 0x38a   : > { %v7172_v0 = vadd.f32 %v7171_v41, %v7170_v20  ;;  %v11155_v59 = vadd.f32 %v3756_v50, %v3674_v27  ;;  %v3678_v25 = vadd.f32 %v10752_v16, %v13928_v38  ;;  %v11159_v19 = vpop.eup %7982  ;;  %v6876_v37 = vmul.f32 -1.442695, %v11046_v13 }
 0x38b   : > { %7994 = vrcp.f32 %v11148_v55  ;;  %v3758_v44 = vmul.f32 %v13929_v51, %v13843_v23  ;;  %v3760_v30 = vmul.f32 %v13930_v31, %v13843_v23  ;;  %v11167_v43 = vpop.eup %7984  ;;  %v11170_v20 = vmul.f32 %v9786_v15, %v3544_v33 }
 0x38c   : > { %13931 = vst [vmem:[#allocation69_spill] sm:$0xff] %v11167_v43  ;;  %vm3495_vm1 = vcmp.ge.s32.totalorder %v13893_v39, 4  ;;  %v11174_v16 = vmul.f32 %v11159_v19, %v1934_v12  ;;  %v13460_v13 = vrot.slane %v11159_v19, 7  ;;  %7996 = vrcp.f32 %v11155_v59  ;;  %v13936_v43 = vld [vmem:[#allocation36_spill] sm:$0xff] }
 0x38d   : > { %v13933_v27 = vrot.slane %v10974_v46, 6  ;;  %v11183_v50 = vadd.f32 %v3758_v44, %v3676_v42  ;;  %v11185_v38 = vadd.f32 %v3760_v30, %v3678_v25  ;;  %v3680_v33 = vadd.f32 %v10788_v18, %v10686_v10  ;;  %v13938_v10 = vld [vmem:[#allocation91_spill] sm:$0xff] }
 0x38e   : > { %13932 = vst [vmem:[#allocation35_spill] sm:$0xff] %v11174_v16  ;;  %v13461_v12 = vrot.slane %v11153_v49, 4  ;;  %v13459_v51 = vrot.slane %v11174_v16, 7  ;;  %v13934_v31 = vrot.slane %v10952_v24, 7  ;;  %vm13935_vm4 = vcmask 1040384  }
 0x38f   : > { %v2857_v41 = vsel %vm13912_vm0, %v13933_v27, %v13462_v29  ;;  %v6877_v46 = vmul.f32 -1.442695, %v7172_v0  ;;  %vm13937_vm2 = vcmp.ge.s32.totalorder %v13936_v43, 1  ;;  %7998 = vrcp.f32 %v11183_v50  ;;  %vm13940_vm7 = vmmov %vm13935_vm4 }
 0x390   : > { %v2395_v52 = vsel %vm13935_vm4, %v13934_v31, %v13460_v13  ;;  %v3682_v25 = vadd.f32 %v10948_v54, %v10768_v58  ;;  %v3762_v18 = vmul.f32 %v13938_v10, %v13843_v23  ;;  %v13939_v44 = vrot.slane %v10987_v3, 7  ;;  %vm13942_vm0 = vmmov %vm13937_vm2 }
 0x391   : > { %v2549_v42 = vsel %vm13937_vm2, %v2395_v52, 0.0  ;;  %8000 = vrcp.f32 %v11185_v38  ;;  %v13941_v52 = vld [vmem:[#allocation94_spill] sm:$0xff]  ;;  %v3684_v31 = vadd.f32 %v10990_v62, %v10875_v6  ;;  %vm13943_vm4 = vcmp.ge.s32.totalorder %v13893_v39, 2 }
 0x392   : > { %v2393_v30 = vsel %vm13940_vm7, %v13939_v44, %v13459_v51  ;;  %v2632_v27 = vmul.f32 %v9675_v26, %v2549_v42  ;;  %v3764_v0 = vmul.f32 %v13941_v52, %v13843_v23  ;;  %8002 = vpow2.f32 %v6876_v37 }
 0x393   : > { %v2548_v58 = vsel %vm13942_vm0, %v2393_v30, 0.0  ;;  %v11214_v54 = vadd.f32 %v3762_v18, %v3680_v33  ;;  %v3046_v10 = vsel %vm13943_vm4, %v2857_v41, 0.0  ;;  %v7987_v52 = vpop.eup %7986  ;;  %v13944_v37 = vrot.slane %v11041_v57, 4 }
 0x394   : > { %v2631_v44 = vmul.f32 %v9655_v60, %v2548_v58  ;;  %v11222_v42 = vadd.f32 %v11159_v19, %v2632_v27  ;;  %v11224_v51 = vadd.f32 %v3764_v0, %v3682_v25  ;;  %vm13945_vm2 = vcmask 1043456   ;;  %v7989_v62 = vpop.eup %7988 }
 0x395   : > { %v3358_v33 = vsel %vm13945_vm2, %v13944_v37, %v13461_v12  ;;  %vm2997_vm7 = vcmp.ge.s32.totalorder %v13936_v43, 2  ;;  %8004 = vpow2.f32 %v6877_v46  ;;  %v3766_v6 = vmul.f32 %v10588_v11, %v13843_v23  ;;  %v7991_v30 = vpop.eup %7990 }
 0x396   : > { %v11235_v41 = vadd.f32 %v2631_v44, %v11174_v16  ;;  %v13463_v25 = vrot.slane %v11222_v42, 6  ;;  %v3901_v18 = vmul.f32 %v7987_v52, %v11111_v34  ;;  %8006 = vrcp.f32 %v11214_v54  ;;  %v7993_v11 = vpop.eup %7992  ;;  %v13954_v16 = vld [vmem:[#allocation87_spill] sm:$0xff] }
 0x397   : > { %v3128_v27 = vmul.f32 %v9747_v2, %v3046_v10  ;;  %v3902_v0 = vmul.f32 %v7989_v62, %v11118_v7  ;;  %8008 = vrcp.f32 %v11224_v51  ;;  %v11243_v46 = vadd.f32 %v3766_v6, %v3684_v31 }
 0x398   : > { %v13946_v44 = vrot.slane %v11044_v40, 6  ;;  %vm13947_vm0 = vcmask 1041408   ;;  %vm3496_vm4 = vcmp.ge.s32.totalorder %v13936_v43, 4  ;;  %v3933_v37 = vsub.f32 2.0, %v3901_v18  ;;  %v7995_v12 = vpop.eup %7994 }
 0x399   : > { %v3903_v10 = vmul.f32 %v7991_v30, %v11126_v28  ;;  %v3546_v7 = vsel %vm3495_vm1, %v3358_v33, 0.0  ;;  %v3934_v6 = vsub.f32 2.0, %v3902_v0  ;;  %v3904_v13 = vmul.f32 %v7993_v11, %v11134_v8  ;;  %v7997_v18 = vpop.eup %7996  ;;  %vm13950_vm2 = vmmov %vm13947_vm0 }
 0x39a   : > { %v2863_v34 = vsel %vm13947_vm0, %v13946_v44, %v13463_v25  ;;  %v3965_v40 = vmul.f32 %v7987_v52, %v3933_v37  ;;  %v3686_v44 = vadd.f32 %v11085_v17, %v10967_v56  ;;  %v3905_v60 = vmul.f32 %v7995_v12, %v11148_v55  ;;  %v13951_v52 = vld [vmem:[#allocation82_spill] sm:$0xff] }
 0x39b   : > { %v3049_v31 = vsel %vm2997_vm7, %v2863_v34, 0.0  ;;  %v3935_v58 = vsub.f32 2.0, %v3903_v10  ;;  %v3966_v25 = vmul.f32 %v7989_v62, %v3934_v6  ;;  %v3936_v28 = vsub.f32 2.0, %v3904_v13  ;;  %v13952_v56 = vld [vmem:[#allocation86_spill] sm:$0xff] }
 0x39c   : > { %v3131_v29 = vmul.f32 %v9750_v35, %v3049_v31  ;;  %8010 = vrcp.f32 %v11243_v46  ;;  %v13948_v33 = vrot.slane %v11235_v41, 6  ;;  %v13949_v0 = vrot.slane %v11116_v53, 6  ;;  %v7999_v31 = vpop.eup %7998  ;;  %v13953_v35 = vld [vmem:[#allocation81_spill] sm:$0xff] }
 0x39d   : > { %v3997_v37 = vmul.f32 %v3965_v40, %v13951_v52  ;;  %v3967_v10 = vmul.f32 %v7991_v30, %v3935_v58  ;;  %v3998_v17 = vmul.f32 %v3966_v25, %v13952_v56  ;;  %v3968_v62 = vmul.f32 %v7993_v11, %v3936_v28  ;;  %v13956_v30 = vld [vmem:[#allocation95_spill] sm:$0xff]  ;;  %v13960_v56 = vld [vmem:[#allocation93_spill] sm:$0xff] }
 0x39e   : > { %v2861_v8 = vsel %vm13950_vm2, %v13949_v0, %v13948_v33  ;;  %v11269_v34 = vadd.f32 %v3131_v29, %v11222_v42  ;;  %v3906_v13 = vmul.f32 %v7997_v18, %v11155_v59  ;;  %v3937_v55 = vsub.f32 2.0, %v3905_v60  ;;  %v8001_v33 = vpop.eup %8000  ;;  %v13955_v0 = vld [vmem:[#allocation84_spill] sm:$0xff] }
 0x39f   : > { %v4221_v26 = vmul.f32 %v13953_v35, %v3997_v37  ;;  %v3999_v3 = vmul.f32 %v3967_v10, %v13954_v16  ;;  %v3768_v29 = vmul.f32 %v10775_v22, %v13843_v23  ;;  %v4222_v40 = vmul.f32 %v13955_v0, %v3998_v17  ;;  %v11281_v28 = vpop.eup %8002  ;;  %v13959_v37 = vld [vmem:[#allocation92_spill] sm:$0xff]  ;;  %v13961_v0 = vld [vmem:[#allocation97_spill] sm:$0xff] }
 0x3a0   : > { %v3361_v6 = vrot.slane %v11269_v34, 4  ;;  %v4000_v58 = vmul.f32 %v3968_v62, %v13956_v30  ;;  %v3938_v25 = vsub.f32 2.0, %v3906_v13  ;;  %v3969_v11 = vmul.f32 %v7995_v12, %v3937_v55  ;;  %v11295_v62 = vpop.f32.mrf.mxu0 }
 0x3a1   : > { %v3048_v60 = vsel %vm2997_vm7, %v2861_v8, 0.0  ;;  %v13957_v35 = vrot.slane %v11153_v49, 4  ;;  %vm13958_vm0 = vcmask 1043456   ;;  %v3907_v22 = vmul.f32 %v7999_v31, %v11183_v50 }
 0x3a2   : > { %v11291_v16 = vadd.f32 %v3768_v29, %v3686_v44  ;;  %v4251_v52 = vpack.c.bf16 %v4222_v40, %v4221_v26  ;;  %v4223_v10 = vmul.f32 %v13959_v37, %v3999_v3  ;;  %v4224_v12 = vmul.f32 %v13960_v56, %v4000_v58  ;;  %v11297_v13 = vpop.eup %8004  ;;  %vm13978_vm7 = vmmov %vm13958_vm0 }
 0x3a3   : > { %v3362_v59 = vsel %vm13958_vm0, %v13957_v35, %v3361_v6  ;;  %v3970_v17 = vmul.f32 %v7997_v18, %v3938_v25  ;;  %v11300_v8 = vadd.f32 %v3128_v27, %v11116_v53  ;;  %v3628_v55 = vmul.f32 %v9786_v15, %v3546_v7  ;;  %v8007_v44 = vpop.eup %8006  ;;  %v13962_v18 = vld [vmem:[#allocation28_spill] sm:$0xff]  ;;  %v13963_v53 = vld [vmem:[#allocation25_spill] sm:$0xff]  ;;  %vm13981_vm2 = vmmov %vm13958_vm0 }
 0x3a4   : > { %v4001_v30 = vmul.f32 %v3969_v11, %v13961_v0  ;;  %v3908_v50 = vmul.f32 %v8001_v33, %v11185_v38  ;;  %v3548_v26 = vsel %vm3496_vm4, %v3362_v59, 0.0  ;;  %7477 = vmatprep.mubr.bf16.mxu1 %v4251_v52  ;;  %v4252_v3 = vpack.c.bf16 %v4224_v12, %v4223_v10  ;;  %v8009_v58 = vpop.eup %8008  ;;  %v11311_v11 = vpop.f32.mrf.mxu1  ;;  %v13964_v38 = vld [vmem:[#allocation26_spill] sm:$0xff]  ;;  %v13965_v12 = vld [vmem:[#allocation107_spill] sm:$0xff]  ;;  %v13966_v0 = vld [vmem:[#allocation101_spill] sm:$0xff] }
 0x3a5   : > { %v4002_v29 = vmul.f32 %v3970_v17, %v13962_v18  ;;  %v3939_v40 = vsub.f32 2.0, %v3907_v22  ;;  %v3130_v25 = vmul.f32 %v9747_v2, %v3048_v60  ;;  %v3909_v7 = vmul.f32 %v8007_v44, %v11214_v54  ;;  %v11316_v52 = vpop.f32.mrf.mxu0  ;;  %v13967_v18 = vld [vmem:[#allocation102_spill] sm:$0xff] }
 0x3a6   : > { %v4225_v27 = vmul.f32 %v13963_v53, %v4001_v30  ;;  %v3940_v35 = vsub.f32 2.0, %v3908_v50  ;;  %7478 = vmatmul.mubr.bf16.gmra.mxu1 %v4252_v3  ;;  %v3910_v59 = vmul.f32 %v8009_v58, %v11224_v51  ;;  %8012 = vrcp.f32 %v11291_v16  ;;  %v11330_v53 = vpop.f32.mrf.mxu1 }
 0x3a7   : > { %v4226_v37 = vmul.f32 %v13964_v38, %v4002_v29  ;;  %v3971_v56 = vmul.f32 %v7999_v31, %v3939_v40  ;;  %v3630_v22 = vmul.f32 %v9786_v15, %v3548_v26  ;;  %v3941_v10 = vsub.f32 2.0, %v3909_v7  ;;  %v1942_v38 = vpop.f32.mrf.mxu0 }
 0x3a8   : > { %v3972_v60 = vmul.f32 %v8001_v33, %v3940_v35  ;;  %v3688_v17 = vadd.f32 %v11131_v45, %v13965_v12  ;;  %v3942_v50 = vsub.f32 2.0, %v3910_v59  ;;  %v3690_v31 = vadd.f32 %v11170_v20, %v11041_v57  ;;  %v13968_v33 = vld [vmem:[#allocation103_spill] sm:$0xff]  ;;  %v13970_v57 = vld [vmem:[#allocation68_spill] sm:$0xff] }
 0x3a9   : > { %v4253_v54 = vpack.c.bf16 %v4226_v37, %v4225_v27  ;;  %v4003_v30 = vmul.f32 %v3971_v56, %v13966_v0  ;;  %v8011_v3 = vpop.eup %8010  ;;  %v11325_v51 = vadd.f32 %v3130_v25, %v11235_v41  ;;  %v3973_v40 = vmul.f32 %v8007_v44, %v3941_v10  ;;  %v13969_v27 = vld [vmem:[#allocation66_spill] sm:$0xff]  ;;  %v13971_v25 = vld [vmem:[#allocation61_spill] sm:$0xff]  ;;  %v13972_v56 = vld [vmem:[#allocation104_spill] sm:$0xff] }
 0x3aa   : > { %v4004_v29 = vmul.f32 %v3972_v60, %v13967_v18  ;;  %v3770_v26 = vmul.f32 %v13968_v33, %v13843_v23  ;;  %v3355_v45 = vrot.slane %v11300_v8, 4  ;;  %v3974_v7 = vmul.f32 %v8009_v58, %v3942_v50  ;;  %v13973_v10 = vld [vmem:[#allocation32_spill] sm:$0xff] }
 0x3ab   : > { %7481 = vmatprep.mubr.bf16.mxu1 %v4253_v54  ;;  %v4227_v35 = vmul.f32 %v13969_v27, %v4003_v30  ;;  %v3772_v20 = vmul.f32 %v13970_v57, %v13843_v23  ;;  %v4005_v59 = vmul.f32 %v3973_v40, %v13972_v56  ;;  %v3692_v60 = vadd.f32 %v3628_v55, %v11153_v49 }
 0x3ac   : > { %v4228_v37 = vmul.f32 %v13971_v25, %v4004_v29  ;;  %v11338_v44 = vadd.f32 %v3770_v26, %v3688_v17  ;;  %v4006_v12 = vmul.f32 %v3974_v7, %v13973_v10  ;;  %v3911_v0 = vmul.f32 %v8011_v3, %v11243_v46  ;;  %v11350_v17 = vpop.f32.mrf.mxu1  ;;  %v13974_v29 = vld [vmem:[#allocation58_spill] sm:$0xff] }
 0x3ad   : > { %v11343_v54 = vadd.f32 %v3772_v20, %v3690_v31  ;;  %v3694_v58 = vadd.f32 %v3630_v22, %v11269_v34  ;;  %v3359_v30 = vrot.slane %v11325_v51, 4  ;;  %v3774_v18 = vmul.f32 %v10952_v24, %v13843_v23  ;;  %v11357_v22 = vpop.f32.mrf.mxu0  ;;  %v13975_v31 = vld [vmem:[#allocation65_spill] sm:$0xff] }
 0x3ae   : > { %v4254_v50 = vpack.c.bf16 %v4228_v37, %v4227_v35  ;;  %8014 = vrcp.f32 %v11338_v44  ;;  %v4229_v49 = vmul.f32 %v13974_v29, %v4005_v59  ;;  %v4230_v55 = vmul.f32 %v11031_v5, %v4006_v12  ;;  %v13982_v37 = vld [vmem:[#allocation105_spill] sm:$0xff]  ;;  %v13987_v29 = vld [vmem:[#allocation60_spill] sm:$0xff] }
 0x3af   : > { %8016 = vrcp.f32 %v11343_v54  ;;  %v3776_v46 = vmul.f32 %v11159_v19, %v13843_v23  ;;  %v3621_v40 = vmul.f32 %v13975_v31, %v11082_v48  ;;  %v13976_v33 = vrot.slane %v11059_v1, 4 }
 0x3b0   : > { %v13977_v24 = vrot.slane %v10993_v9, 4  ;;  %7482 = vmatmul.mubr.bf16.gmra.mxu1 %v4254_v50  ;;  %v11366_v27 = vadd.f32 %v3774_v18, %v3692_v60  ;;  %v2198_v5 = vmul.f32 1.442695, %v11295_v62  ;;  %v13979_v35 = vrot.slane %v11106_v36, 4  ;;  %v11383_v62 = vpop.f32.mrf.mxu1  ;;  %v13986_v18 = vld [vmem:[#allocation67_spill] sm:$0xff] }
 0x3b1   : > { %v13980_v7 = vmov %v13976_v33  ;;  %v4255_v20 = vpack.c.bf16 %v4230_v55, %v4229_v49  ;;  %v3943_v25 = vsub.f32 2.0, %v3911_v0  ;;  %v11374_v48 = vadd.f32 %v3776_v46, %v3694_v58 }
 0x3b2   : > { %v3348_v26 = vsel %vm13978_vm7, %v13977_v24, %v13976_v33  ;;  %v3352_v57 = vsel %vm13981_vm2, %v13980_v7, %v13979_v35  ;;  %v3683_v56 = vadd.f32 %v13982_v37, %v10868_v14  ;;  %v4138_v59 = vadd.f32 1.0, %v11078_v4  ;;  %vm13985_vm2 = vmmov %vm13958_vm0  ;;  %v1948_v4 = vpop.f32.mrf.mxu0  ;;  %v11403_v24 = vpop.f32.mrf.mxu1 }
 0x3b3   : > { %v13983_v60 = vmov %v13979_v35  ;;  %8018 = vrcp.f32 %v11366_v27  ;;  %vm13984_vm7 = vcmp.ge.s32.totalorder %v13854_v32, 4  ;;  %v3360_v0 = vsel %vm13985_vm2, %v3355_v45, %v3359_v30  ;;  %7485 = vmatprep.mubr.bf16.mxu1 %v4255_v20  ;;  %v8013_v58 = vpop.eup %8012 }
 0x3b4   : > { %v3356_v10 = vsel %vm13958_vm0, %v13983_v60, %v3355_v45  ;;  %v3541_v12 = vsel %vm13984_vm7, %v3348_v26, 0.0  ;;  %8020 = vrcp.f32 %v11374_v48  ;;  %v2200_v14 = vmul.f32 1.442695, %v1942_v38 }
 0x3b5   : > { %v3685_v50 = vadd.f32 %v3621_v40, %v10993_v9  ;;  %v3767_v49 = vmul.f32 %v13987_v29, %v13986_v18  ;;  %v3543_v55 = vsel %vm3494_vm8, %v3352_v57, 0.0  ;;  %8022 = vpow2.f32 %v2198_v5 }
 0x3b6   : > { %v3545_v32 = vsel %vm3495_vm1, %v3356_v10, 0.0  ;;  %v4139_v45 = vadd.f32 1.0, %v11281_v28  ;;  %v3912_v46 = vmul.f32 %v8013_v58, %v11291_v16  ;;  %v3975_v33 = vmul.f32 %v8011_v3, %v3943_v25  ;;  %v11409_v3 = vpop.f32.mrf.mxu0  ;;  %v11413_v25 = vpop.f32.mrf.mxu1 }
 0x3b7   : > { %v3623_v38 = vmul.f32 %v13975_v31, %v3541_v12  ;;  %8024 = vrcp.f32 %v4138_v59  ;;  %v3547_v9 = vsel %vm3496_vm4, %v3360_v0, 0.0  ;;  %v2202_v40 = vmul.f32 1.442695, %v1948_v4  ;;  %v13989_v59 = vld [vmem:[#allocation29_spill] sm:$0xff] }
 0x3b8   : > { %v3829_v26 = vadd.f32 %v13988_v63, %v3683_v56  ;;  %v4140_v5 = vadd.f32 1.0, %v11297_v13  ;;  %v3944_v39 = vsub.f32 2.0, %v3912_v46  ;;  %8026 = vpow2.f32 %v2200_v14  ;;  %v1952_v14 = vpop.f32.mrf.mxu0 }
 0x3b9   : > { %v3831_v35 = vadd.f32 %v3767_v49, %v3685_v50  ;;  %v3625_v28 = vmul.f32 %v13975_v31, %v3543_v55  ;;  %v3627_v16 = vmul.f32 %v13975_v31, %v3545_v32  ;;  %8028 = vrcp.f32 %v4139_v45  ;;  %v13990_v55 = vld [vmem:[#allocation106_spill] sm:$0xff]  ;;  %v13991_v45 = vld [vmem:[#allocation35_spill] sm:$0xff] }
 0x3ba   : > { %v3629_v43 = vmul.f32 %v13975_v31, %v3547_v9  ;;  %v3976_v7 = vmul.f32 %v8013_v58, %v3944_v39  ;;  %v4007_v57 = vmul.f32 %v3975_v33, %v3829_v26  ;;  %v3687_v20 = vadd.f32 %v3623_v38, %v11059_v1  ;;  %v11435_v63 = vpop.f32.mrf.mxu0 }
 0x3bb   : > { %8030 = vpow2.f32 %v2202_v40  ;;  %v8015_v13 = vpop.eup %8014  ;;  %v3769_v60 = vmul.f32 %v13987_v29, %v13989_v59  ;;  %v3689_v10 = vadd.f32 %v3625_v28, %v11106_v36  ;;  %v3691_v12 = vadd.f32 %v3627_v16, %v11300_v8  ;;  %v11428_v8 = vpop.f32.mrf.mxu1 }
 0x3bc   : > { %8032 = vrcp.f32 %v4140_v5  ;;  %v4008_v37 = vmul.f32 %v3976_v7, %v3831_v35  ;;  %v8017_v56 = vpop.eup %8016  ;;  %v3913_v0 = vmul.f32 %v8015_v13, %v11338_v44  ;;  %v3693_v4 = vadd.f32 %v3629_v43, %v11325_v51 }
 0x3bd   : > { %v4231_v1 = vmul.f32 %v11095_v21, %v4007_v57  ;;  %v3914_v50 = vmul.f32 %v8017_v56, %v11343_v54  ;;  %v3833_v18 = vadd.f32 %v3769_v60, %v3687_v20  ;;  %v3771_v49 = vmul.f32 %v13987_v29, %v10885_v61  ;;  %v11445_v7 = vpop.f32.mrf.mxu1 }
 0x3be   : > { %v4232_v58 = vmul.f32 %v11144_v47, %v4008_v37  ;;  %v3773_v36 = vmul.f32 %v13987_v29, %v13990_v55  ;;  %v3945_v32 = vsub.f32 2.0, %v3913_v0  ;;  %v3775_v46 = vmul.f32 %v13987_v29, %v13991_v45  ;;  %v13996_v0 = vld [vmem:[#allocation69_spill] sm:$0xff] }
 0x3bf   : > { %v3946_v21 = vsub.f32 2.0, %v3914_v50  ;;  %v7175_v47 = vadd.f32 %v11330_v53, %v11311_v11  ;;  %v3835_v38 = vadd.f32 %v3771_v49, %v3689_v10  ;;  %v2204_v28 = vmul.f32 1.442695, %v1952_v14 }
 0x3c0   : > { %v8019_v44 = vpop.eup %8018  ;;  %v4256_v33 = vpack.c.bf16 %v4232_v58, %v4231_v1  ;;  %v3837_v9 = vadd.f32 %v3773_v36, %v3691_v12  ;;  %v3977_v40 = vmul.f32 %v8015_v13, %v3945_v32  ;;  %v3839_v5 = vadd.f32 %v3775_v46, %v3693_v4  ;;  %v13992_v13 = vld [vmem:[#allocation38_spill] sm:$0xff]  ;;  %v1958_v12 = vpop.f32.mrf.mxu0 }
 0x3c1   : > { %v8021_v54 = vpop.eup %8020  ;;  %v3915_v61 = vmul.f32 %v8019_v44, %v11366_v27  ;;  %v3978_v39 = vmul.f32 %v8017_v56, %v3946_v21  ;;  %vm2998_vm8 = vcmp.ge.s32.totalorder %v13992_v13, 2  ;;  %v6878_v37 = vmul.f32 -1.442695, %v7175_v47  ;;  %v11463_v32 = vpop.f32.mrf.mxu1 }
 0x3c2   : > { %v11437_v26 = vpop.eup %8022  ;;  %7486 = vmatmul.mubr.bf16.gmra.mxu1 %v4256_v33  ;;  %v3916_v35 = vmul.f32 %v8021_v54, %v11374_v48  ;;  %v4009_v16 = vmul.f32 %v3977_v40, %v3833_v18  ;;  %v13994_v60 = vrot.slane %v11159_v19, 7  ;;  %vm13995_vm1 = vcmask 1040384   ;;  %v14000_v19 = vld [vmem:[#allocation59_spill] sm:$0xff] }
 0x3c3   : > { %v3947_v43 = vsub.f32 2.0, %v3915_v61  ;;  %v11442_v11 = vmul.f32 %v11437_v26, %v11316_v52  ;;  %v2398_v53 = vrot.slane %v11437_v26, 7  ;;  %v4010_v57 = vmul.f32 %v3978_v39, %v3835_v38  ;;  %vm13999_vm0 = vmmov %vm13995_vm1  ;;  %v11479_v61 = vpop.f32.mrf.mxu0 }
 0x3c4   : > { %v8025_v27 = vpop.eup %8024  ;;  %v3948_v20 = vsub.f32 2.0, %v3916_v35  ;;  %v7178_v10 = vadd.f32 %v11383_v62, %v11350_v17  ;;  %v4233_v14 = vmul.f32 %v13996_v0, %v4009_v16  ;;  %vm13997_vm4 = vcmp.ge.s32.totalorder %v13992_v13, 1 }
 0x3c5   : > { %v11448_v56 = vpop.eup %8026  ;;  %v3979_v48 = vmul.f32 %v8019_v44, %v3947_v43  ;;  %v2396_v59 = vrot.slane %v11442_v11, 7  ;;  %v2399_v52 = vsel %vm13995_vm1, %v13994_v60, %v2398_v53  ;;  %v4234_v4 = vmul.f32 %v8025_v27, %v4010_v57  ;;  %vm14002_vm7 = vmmov %vm13997_vm4  ;;  %v11488_v57 = vpop.f32.mrf.mxu1 }
 0x3c6   : > { %13993 = vst [vmem:[#allocation71_spill] sm:$0xff] %v11448_v56  ;;  %v3980_v1 = vmul.f32 %v8021_v54, %v3948_v20  ;;  %v2551_v58 = vsel %vm13997_vm4, %v2399_v52, 0.0  ;;  %v8029_v50 = vpop.eup %8028  ;;  %v13998_v49 = vrot.slane %v13991_v45, 7  ;;  %8034 = vpow2.f32 %v2204_v28  ;;  %v14003_v45 = vld [vmem:[#allocation57_spill] sm:$0xff]  ;;  %vm14005_vm1 = vmmov %vm13999_vm0 }
 0x3c7   : > { %v4011_v18 = vmul.f32 %v3979_v48, %v3837_v9  ;;  %v2634_v36 = vmul.f32 %v14000_v19, %v2551_v58  ;;  %v4257_v62 = vpack.c.bf16 %v4234_v4, %v4233_v14  ;;  %v11471_v33 = vmul.f32 %v11448_v56, %v11357_v22  ;;  %v14004_v9 = vld [vmem:[#allocation39_spill] sm:$0xff]  ;;  %vm14006_vm4 = vmmov %vm13999_vm0 }
 0x3c8   : > { %v2397_v55 = vsel %vm13999_vm0, %v13998_v49, %v2396_v59  ;;  %v11465_v17 = vpop.eup %8030  ;;  %v4012_v44 = vmul.f32 %v3980_v1, %v3839_v5  ;;  %v2402_v38 = vrot.slane %v11448_v56, 7  ;;  %vm2999_vm2 = vcmp.ge.s32.totalorder %v14004_v9, 2  ;;  %v14013_v1 = vld [vmem:[#allocation63_spill] sm:$0xff] }
 0x3c9   : > { %14001 = vst [vmem:[#allocation74_spill] sm:$0xff] %v11465_v17  ;;  %v2550_v46 = vsel %vm14002_vm7, %v2397_v55, 0.0  ;;  %v8033_v21 = vpop.eup %8032  ;;  %v2698_v54 = vadd.f32 %v11437_v26, %v2634_v36  ;;  %v7181_v40 = vadd.f32 %v11413_v25, %v11403_v24  ;;  %7489 = vmatprep.mubr.bf16.mxu1 %v4257_v62  ;;  %v4235_v5 = vmul.f32 %v8029_v50, %v4011_v18  ;;  %v7188_v18 = vpop.f32.mrf.mxu1 }
 0x3ca   : > { %v2633_v47 = vmul.f32 %v14003_v45, %v2550_v46  ;;  %v4236_v39 = vmul.f32 %v8033_v21, %v4012_v44  ;;  %v2400_v22 = vrot.slane %v11471_v33, 7  ;;  %v2206_v35 = vmul.f32 1.442695, %v1958_v12  ;;  %v1962_v12 = vpop.f32.mrf.mxu0  ;;  %v14016_v21 = vld [vmem:[#allocation41_spill] sm:$0xff] }
 0x3cb   : > { %v2866_v16 = vrot.slane %v2698_v54, 6  ;;  %v2403_v43 = vsel %vm14005_vm1, %v2398_v53, %v2402_v38  ;;  %v11486_v27 = vmul.f32 %v11465_v17, %v11409_v3  ;;  %8036 = vpow2.f32 %v6878_v37 }
 0x3cc   : > { %v2697_v28 = vadd.f32 %v2633_v47, %v11442_v11  ;;  %v4258_v24 = vpack.c.bf16 %v4236_v39, %v4235_v5  ;;  %v2401_v25 = vsel %vm14006_vm4, %v2396_v59, %v2400_v22  ;;  %vm14007_vm0 = vcmp.ge.s32.totalorder %v14004_v9, 1  ;;  %v11524_v5 = vpop.f32.mrf.mxu0 }
 0x3cd   : > { %v2553_v20 = vsel %vm14007_vm0, %v2403_v43, 0.0  ;;  %v14008_v60 = vrot.slane %v11222_v42, 6  ;;  %vm14009_vm7 = vcmask 1041408   ;;  %vm14010_vm1 = vmmov %vm14007_vm0  ;;  %v2404_v0 = vrot.slane %v11486_v27, 7 }
 0x3ce   : > { %v2864_v48 = vrot.slane %v2697_v28, 6  ;;  %v2552_v53 = vsel %vm14010_vm1, %v2401_v25, 0.0  ;;  %v2636_v3 = vmul.f32 %v14000_v19, %v2553_v20  ;;  %7490 = vmatmul.mubr.bf16.gmra.mxu1 %v4258_v24  ;;  %v2406_v14 = vrot.slane %v11465_v17, 7  ;;  %vm14012_vm4 = vmmov %vm14009_vm7  ;;  %v7189_v20 = vpop.f32.mrf.mxu1 }
 0x3cf   : > { %v2867_v52 = vsel %vm14009_vm7, %v14008_v60, %v2866_v16  ;;  %v2635_v59 = vmul.f32 %v14003_v45, %v2552_v53  ;;  %v14011_v42 = vrot.slane %v11235_v41, 6  ;;  %8038 = vpow2.f32 %v2206_v35 }
 0x3d0   : > { %v3051_v37 = vsel %vm2998_vm8, %v2867_v52, 0.0  ;;  %v11509_v50 = vadd.f32 %v11448_v56, %v2636_v3  ;;  %vm14014_vm0 = vcmask 1040384   ;;  %vm14017_vm1 = vcmp.ge.s32.totalorder %v14016_v21, 1 }
 0x3d1   : > { %v2865_v4 = vsel %vm14012_vm4, %v14011_v42, %v2864_v48  ;;  %v3133_v58 = vmul.f32 %v14013_v1, %v3051_v37  ;;  %v2699_v55 = vadd.f32 %v2635_v59, %v11471_v33  ;;  %v2405_v36 = vsel %vm14014_vm0, %v2400_v22, %v2404_v0  ;;  %vm14015_vm7 = vmmov %vm14014_vm0 }
 0x3d2   : > { %v3050_v49 = vsel %vm2998_vm8, %v2865_v4, 0.0  ;;  %v2407_v41 = vsel %vm14015_vm7, %v2402_v38, %v2406_v14  ;;  %v2870_v46 = vrot.slane %v11509_v50, 6  ;;  %v2554_v47 = vsel %vm14017_vm1, %v2405_v36, 0.0  ;;  %vm14018_vm8 = vmmov %vm14017_vm1 }
 0x3d3   : > { %v3132_v62 = vmul.f32 %v9747_v2, %v3050_v49  ;;  %v11519_v44 = vadd.f32 %v3133_v58, %v2698_v54  ;;  %v2868_v39 = vrot.slane %v2699_v55, 6  ;;  %v6879_v35 = vmul.f32 -1.442695, %v7178_v10  ;;  %v11533_v60 = vpop.eup %8034  ;;  %vm14020_vm0 = vmmov %vm14012_vm4  ;;  %v7191_v49 = vpop.f32.mrf.mxu1 }
 0x3d4   : > { %v2555_v22 = vsel %vm14018_vm8, %v2407_v41, 0.0  ;;  %v2637_v43 = vmul.f32 %v14003_v45, %v2554_v47  ;;  %v2871_v54 = vsel %vm14012_vm4, %v2866_v16, %v2870_v46  ;;  %v2208_v25 = vmul.f32 1.442695, %v1962_v12  ;;  %14019 = vst [vmem:[#allocation75_spill] sm:$0xff] %v11533_v60 }
 0x3d5   : > { %v3196_v24 = vadd.f32 %v3132_v62, %v2697_v28  ;;  %v3365_v38 = vrot.slane %v11519_v44, 4  ;;  %v2869_v52 = vsel %vm14020_vm0, %v2864_v48, %v2868_v39  ;;  %v3053_v10 = vsel %vm2999_vm2, %v2871_v54, 0.0  ;;  %v1968_v48 = vpop.f32.mrf.mxu0 }
 0x3d6   : > { %v2638_v53 = vmul.f32 %v14000_v19, %v2555_v22  ;;  %v11540_v3 = vadd.f32 %v2637_v43, %v11486_v27  ;;  %vm14021_vm7 = vcmask 1043456   ;;  %v3052_v16 = vsel %vm2999_vm2, %v2869_v52, 0.0 }
 0x3d7   : > { %v3363_v28 = vrot.slane %v3196_v24, 4  ;;  %v11545_v37 = vsel %vm14021_vm7, %v3361_v6, %v3365_v38  ;;  %v3135_v12 = vmul.f32 %v14013_v1, %v3053_v10  ;;  %vm3497_vm1 = vcmp.ge.s32.totalorder %v13992_v13, 4  ;;  %vm14022_vm8 = vmmov %vm14021_vm7 }
 0x3d8   : > { %v3134_v59 = vmul.f32 %v9747_v2, %v3052_v16  ;;  %8040 = vpow2.f32 %v6879_v35  ;;  %v6880_v42 = vmul.f32 -1.442695, %v7181_v40  ;;  %v11560_v6 = vmul.f32 %v11533_v60, %v11435_v63  ;;  %vm14023_vm2 = vmmov %vm14021_vm7 }
 0x3d9   : > { %v3364_v4 = vsel %vm14022_vm8, %v3359_v30, %v3363_v28  ;;  %v11556_v34 = vadd.f32 %v3135_v12, %v11509_v50  ;;  %v7184_v58 = vadd.f32 %v11445_v7, %v11428_v8  ;;  %v11569_v51 = vadd.f32 %v11465_v17, %v2638_v53  ;;  %v8037_v30 = vpop.eup %8036  ;;  %v11575_v8 = vpop.f32.mrf.mxu0  ;;  %vm14026_vm0 = vmmov %vm14023_vm2 }
 0x3da   : > { %v3549_v36 = vsel %vm3497_vm1, %v3364_v4, 0.0  ;;  %v11566_v41 = vadd.f32 %v3134_v59, %v2699_v55  ;;  %8042 = vpow2.f32 %v2208_v25  ;;  %v2872_v63 = vrot.slane %v11540_v3, 6  ;;  %v7192_v25 = vpop.f32.mrf.mxu1  ;;  %v14029_v59 = vld [vmem:[#allocation42_spill] sm:$0xff] }
 0x3db   : > { %v3631_v40 = vmul.f32 %v13975_v31, %v3549_v36  ;;  %v3369_v62 = vrot.slane %v11556_v34, 4  ;;  %v2408_v47 = vrot.slane %v11560_v6, 7  ;;  %8044 = vpow2.f32 %v6880_v42  ;;  %v1972_v16 = vpop.f32.mrf.mxu0 }
 0x3dc   : > { %v3367_v7 = vrot.slane %v11566_v41, 4  ;;  %v2410_v55 = vrot.slane %v11533_v60, 7  ;;  %vm14024_vm4 = vcmask 1040384   ;;  %v7187_v54 = vadd.f32 %v11488_v57, %v11463_v32  ;;  %v11589_v52 = vpop.eup %8038 }
 0x3dd   : > { %v11579_v35 = vadd.f32 %v3631_v40, %v3196_v24  ;;  %v11584_v22 = vsel %vm14023_vm2, %v3365_v38, %v3369_v62  ;;  %v2409_v43 = vsel %vm14024_vm4, %v2404_v0, %v2408_v47  ;;  %14025 = vst [vmem:[#allocation76_spill] sm:$0xff] %v11589_v52  ;;  %vm13473_vm7 = vcmp.ge.s32.totalorder %v14004_v9, 4  ;;  %vm14028_vm2 = vmmov %vm14024_vm4 }
 0x3de   : > { %v3368_v10 = vsel %vm14026_vm0, %v3363_v28, %v3367_v7  ;;  %v6881_v24 = vmul.f32 -1.442695, %v7184_v58  ;;  %v7190_v53 = vadd.f32 %v7189_v20, %v7188_v18  ;;  %vm14027_vm8 = vcmask 1041408  }
 0x3df   : > { %v3551_v38 = vsel %vm13473_vm7, %v3368_v10, 0.0  ;;  %v2873_v0 = vsel %vm14027_vm8, %v2868_v39, %v2872_v63  ;;  %v2874_v32 = vrot.slane %v11569_v51, 6  ;;  %v2210_v57 = vmul.f32 1.442695, %v1968_v48 }
 0x3e0   : > { %v3633_v12 = vmul.f32 %v13975_v31, %v3551_v38  ;;  %v2411_v28 = vsel %vm14028_vm2, %v2406_v14, %v2410_v55  ;;  %vm14030_vm4 = vcmp.ge.s32.totalorder %v14029_v59, 1  ;;  %v7193_v20 = vadd.f32 %v7192_v25, %v7191_v49 }
 0x3e1   : > { %v2556_v18 = vsel %vm14030_vm4, %v2409_v43, 0.0  ;;  %vm3000_vm0 = vcmp.ge.s32.totalorder %v14016_v21, 2  ;;  %v6882_v4 = vmul.f32 -1.442695, %v7187_v54  ;;  %v6883_v58 = vmul.f32 -1.442695, %v7190_v53  ;;  %vm14031_vm2 = vmmov %vm14030_vm4 }
 0x3e2   : > { %v2639_v42 = vmul.f32 %v14003_v45, %v2556_v18  ;;  %v11610_v39 = vadd.f32 %v3633_v12, %v11566_v41  ;;  %v3054_v48 = vsel %vm3000_vm0, %v2873_v0, 0.0  ;;  %v2212_v36 = vmul.f32 1.442695, %v1972_v16  ;;  %v14035_v12 = vld [vmem:[#allocation44_spill] sm:$0xff] }
 0x3e3   : > { %v2875_v14 = vsel %vm14027_vm8, %v2870_v46, %v2874_v32  ;;  %v2557_v49 = vsel %vm14031_vm2, %v2411_v28, 0.0  ;;  %v11623_v40 = vmul.f32 %v11589_v52, %v11479_v61  ;;  %8046 = vpow2.f32 %v2210_v57 }
 0x3e4   : > { %v11626_v43 = vadd.f32 %v2639_v42, %v11560_v6  ;;  %8048 = vpow2.f32 %v6881_v24  ;;  %v6884_v54 = vmul.f32 -1.442695, %v7193_v20  ;;  %v3136_v10 = vmul.f32 %v9747_v2, %v3054_v48 }
 0x3e5   : > { %v8041_v25 = vpop.eup %8040  ;;  %v2412_v50 = vrot.slane %v11623_v40, 7  ;;  %v2414_v46 = vrot.slane %v11589_v52, 7  ;;  %8050 = vpow2.f32 %v6882_v4  ;;  %v4141_v53 = vadd.f32 1.0, %v8037_v30 }
 0x3e6   : > { %v3055_v38 = vsel %vm3000_vm0, %v2875_v14, 0.0  ;;  %v2640_v61 = vmul.f32 %v14000_v19, %v2557_v49  ;;  %8052 = vpow2.f32 %v6883_v58  ;;  %vm3001_vm4 = vcmp.ge.s32.totalorder %v14029_v59, 2 }
 0x3e7   : > { %v11634_v0 = vpop.eup %8042  ;;  %vm14033_vm8 = vcmask 1040384   ;;  %8054 = vpow2.f32 %v2212_v36  ;;  %v3777_v16 = vmul.f32 %v13987_v29, %v11442_v11  ;;  %v2876_v30 = vrot.slane %v11626_v43, 6 }
 0x3e8   : > { %14032 = vst [vmem:[#allocation77_spill] sm:$0xff] %v11634_v0  ;;  %v2413_v24 = vsel %vm14033_vm8, %v2408_v47, %v2412_v50  ;;  %vm14034_vm2 = vmmov %vm14033_vm8  ;;  %vm14036_vm7 = vcmp.ge.s32.totalorder %v14035_v12, 1  ;;  %8056 = vpow2.f32 %v6884_v54  ;;  %v8045_v18 = vpop.eup %8044  ;;  %v3137_v20 = vmul.f32 %v14013_v1, %v3055_v38 }
 0x3e9   : > { %v2415_v57 = vsel %vm14034_vm2, %v2410_v55, %v2414_v46  ;;  %v2558_v28 = vsel %vm14036_vm7, %v2413_v24, 0.0  ;;  %v11646_v42 = vadd.f32 %v3136_v10, %v11540_v3  ;;  %vm14037_vm0 = vmmov %vm14036_vm7  ;;  %8058 = vrcp.f32 %v4141_v53  ;;  %v14042_v24 = vld [vmem:[#allocation45_spill] sm:$0xff] }
 0x3ea   : > { %v2559_v47 = vsel %vm14037_vm0, %v2415_v57, 0.0  ;;  %v2641_v55 = vmul.f32 %v14003_v45, %v2558_v28  ;;  %v4142_v4 = vadd.f32 1.0, %v8041_v25  ;;  %v11652_v11 = vadd.f32 %v11533_v60, %v2640_v61  ;;  %vm14040_vm0 = vmmov %vm14033_vm8 }
 0x3eb   : > { %v11656_v48 = vmul.f32 %v11634_v0, %v11524_v5  ;;  %v11660_v58 = vmul.f32 %v13987_v29, %v11471_v33  ;;  %vm3499_vm7 = vcmp.ge.s32.totalorder %v14016_v21, 4  ;;  %v2642_v36 = vmul.f32 %v14000_v19, %v2559_v47 }
 0x3ec   : > { %v11665_v14 = vadd.f32 %v2641_v55, %v11623_v40  ;;  %v2418_v49 = vrot.slane %v11634_v0, 7  ;;  %v3550_v5 = vsel %vm3497_vm1, %v11545_v37, 0.0  ;;  %v4143_v54 = vadd.f32 1.0, %v8045_v18  ;;  %vm14041_vm1 = vmmov %vm14040_vm0 }
 0x3ed   : > { %vm14038_vm2 = vcmask 1041408   ;;  %v2416_v25 = vrot.slane %v11656_v48, 7  ;;  %v11677_v10 = vadd.f32 %v3137_v20, %v11569_v51  ;;  %v13474_v53 = vrot.slane %v11646_v42, 4 }
 0x3ee   : > { %v2877_v33 = vsel %vm14038_vm2, %v2872_v63, %v2876_v30  ;;  %v2880_v38 = vrot.slane %v11665_v14, 6  ;;  %v2419_v61 = vsel %vm14040_vm0, %v2414_v46, %v2418_v49  ;;  %8060 = vrcp.f32 %v4142_v4 }
 0x3ef   : > { %14039 = vst [vmem:[#allocation80_spill] sm:$0xff] %v11677_v10  ;;  %v2878_v13 = vrot.slane %v11652_v11, 6  ;;  %v2417_v37 = vsel %vm14041_vm1, %v2412_v50, %v2416_v25  ;;  %vm14043_vm8 = vcmp.ge.s32.totalorder %v14042_v24, 1  ;;  %v3056_v63 = vsel %vm3001_vm4, %v2877_v33, 0.0 }
 0x3f0   : > { %v2561_v3 = vsel %vm14043_vm8, %v2419_v61, 0.0  ;;  %v11689_v57 = vadd.f32 %v11589_v52, %v2642_v36  ;;  %vm14044_vm2 = vmmov %vm14043_vm8  ;;  %v11694_v46 = vpop.eup %8046  ;;  %v11697_v20 = vmul.f32 %v9786_v15, %v3550_v5  ;;  %vm14046_vm0 = vcmp.ge.s32.totalorder %v14004_v9, 4  ;;  %v14054_v52 = vld [vmem:[#allocation46_spill] sm:$0xff] }
 0x3f1   : > { %v2560_v28 = vsel %vm14044_vm2, %v2417_v37, 0.0  ;;  %v2644_v18 = vmul.f32 %v14000_v19, %v2561_v3  ;;  %14045 = vst [vmem:[#allocation64_spill] sm:$0xff] %v11694_v46  ;;  %v3552_v50 = vsel %vm14046_vm0, %v11584_v22, 0.0  ;;  %v11704_v47 = vmul.f32 %v13987_v29, %v11486_v27  ;;  %v8049_v55 = vpop.eup %8048 }
 0x3f2   : > { %8062 = vrcp.f32 %v4143_v54  ;;  %vm3003_vm8 = vcmp.ge.s32.totalorder %v14042_v24, 2  ;;  %v11708_v4 = vadd.f32 %v3777_v16, %v11579_v35  ;;  %vm14048_vm1 = vcmask 1043456   ;;  %v11717_v5 = vpop.eup %8050 }
 0x3f3   : > { %v3372_v36 = vsel %vm14048_vm1, %v3367_v7, %v13474_v53  ;;  %v13477_v9 = vrot.slane %v11677_v10, 4  ;;  %vm14049_vm2 = vcmask 1041408   ;;  %v3138_v54 = vmul.f32 %v9747_v2, %v3056_v63  ;;  %v11727_v41 = vpop.eup %8052 }
 0x3f4   : > { %14047 = vst [vmem:[#allocation70_spill] sm:$0xff] %v11708_v4  ;;  %v2881_v22 = vsel %vm14049_vm2, %v2876_v30, %v2880_v38  ;;  %vm14050_vm0 = vmmov %vm14049_vm2  ;;  %v2643_v35 = vmul.f32 %v14003_v45, %v2560_v28  ;;  %v11725_v16 = vadd.f32 %v11634_v0, %v2644_v18  ;;  %v11730_v7 = vmul.f32 %v9786_v15, %v3552_v50  ;;  %v11747_v28 = vpop.f32.mrf.mxu1 }
 0x3f5   : > { %v2879_v27 = vsel %vm14050_vm0, %v2874_v32, %v2878_v13  ;;  %v2882_v30 = vrot.slane %v11689_v57, 6  ;;  %v11735_v33 = vmul.f32 %v11694_v46, %v11575_v8  ;;  %v13478_v51 = vrot.slane %v11694_v46, 7  ;;  %v11738_v32 = vpop.eup %8054 }
 0x3f6   : > { %v3553_v61 = vsel %vm3499_vm7, %v3372_v36, 0.0  ;;  %v4144_v37 = vadd.f32 1.0, %v8049_v55  ;;  %vm14051_vm1 = vcmp.ge.s32.totalorder %v14035_v12, 2  ;;  %v11745_v63 = vadd.f32 %v2643_v35, %v11656_v48  ;;  %v11749_v18 = vpop.eup %8056 }
 0x3f7   : > { %v3058_v3 = vsel %vm14051_vm1, %v2881_v22, 0.0  ;;  %vm14052_vm2 = vcmask 1043456   ;;  %v3057_v50 = vsel %vm3001_vm4, %v2879_v27, 0.0  ;;  %vm14053_vm0 = vcmask 1040384   ;;  %v1974_v22 = vpop.f32.mrf.mxu0 }
 0x3f8   : > { %v3374_v8 = vsel %vm14052_vm2, %v3369_v62, %v13477_v9  ;;  %v2423_v36 = vsel %vm14053_vm0, %v2418_v49, %v13478_v51  ;;  %v11763_v35 = vadd.f32 %v3138_v54, %v11626_v43  ;;  %v2884_v53 = vrot.slane %v11745_v63, 6  ;;  %v11769_v9 = vpop.eup %8058  ;;  %vm14059_vm2 = vmmov %vm14053_vm0 }
 0x3f9   : > { %v2886_v0 = vrot.slane %v11725_v16, 6  ;;  %vm14055_vm1 = vcmp.ge.s32.totalorder %v14054_v52, 1  ;;  %14056 = vst [vmem:[#allocation83_spill] sm:$0xff] %v11769_v9  ;;  %vm14057_vm4 = vcmask 1041408   ;;  %v3140_v55 = vmul.f32 %v9747_v2, %v3058_v3 }
 0x3fa   : > { %v2563_v62 = vsel %vm14055_vm1, %v2423_v36, 0.0  ;;  %v2883_v27 = vsel %vm14057_vm4, %v2878_v13, %v2882_v30  ;;  %v14058_v4 = vrot.slane %v11735_v33, 7  ;;  %v3139_v54 = vmul.f32 %v14013_v1, %v3057_v50  ;;  %vm14060_vm0 = vmmov %vm14057_vm4  ;;  %v11784_v13 = vpop.f32.mrf.mxu1 }
 0x3fb   : > { %v2646_v43 = vmul.f32 %v14000_v19, %v2563_v62  ;;  %v11780_v51 = vmul.f32 %v13987_v29, %v11560_v6  ;;  %8064 = vrcp.f32 %v4144_v37  ;;  %v2885_v36 = vsel %vm14060_vm0, %v2880_v38, %v2884_v53  ;;  %v1978_v38 = vpop.f32.mrf.mxu0  ;;  %v11802_v21 = vpop.eup %8060 }
 0x3fc   : > { %v2421_v49 = vsel %vm14059_vm2, %v2416_v25, %v14058_v4  ;;  %v11788_v3 = vadd.f32 %v11660_v58, %v11610_v39  ;;  %v3554_v25 = vsel %vm3499_vm7, %v3374_v8, 0.0  ;;  %vm3500_vm4 = vcmp.ge.s32.totalorder %v14029_v59, 4  ;;  %vm14062_vm2 = vmmov %vm14055_vm1  ;;  %14065 = vst [vmem:[#allocation72_spill] sm:$0xff] %v11802_v21  ;;  %v11824_v21 = vpop.f32.mrf.mxu1 }
 0x3fd   : > { %v3060_v6 = vsel %vm3003_vm8, %v2885_v36, 0.0  ;;  %v2562_v4 = vsel %vm14062_vm2, %v2421_v49, 0.0  ;;  %v3635_v37 = vmul.f32 %v13975_v31, %v3553_v61  ;;  %vm14063_vm0 = vcmp.ge.s32.totalorder %v14035_v12, 2 }
 0x3fe   : > { %14061 = vst [vmem:[#allocation89_spill] sm:$0xff] %v11788_v3  ;;  %v3059_v50 = vsel %vm14063_vm0, %v2883_v27, 0.0  ;;  %vm14064_vm1 = vcmask 1041408   ;;  %v2645_v58 = vmul.f32 %v14003_v45, %v2562_v4  ;;  %v3375_v8 = vrot.slane %v11763_v35, 4 }
 0x3ff   : > { %v2887_v39 = vsel %vm14064_vm1, %v2882_v30, %v2886_v0  ;;  %v11806_v62 = vadd.f32 %v3140_v55, %v11665_v14  ;;  %v3142_v36 = vmul.f32 %v9747_v2, %v3060_v6  ;;  %v11810_v49 = vadd.f32 %v11694_v46, %v2646_v43  ;;  %v11826_v14 = vpop.eup %8062 }
 0x400   : > { %v11813_v61 = vmul.f32 %v9786_v15, %v3554_v25  ;;  %v11816_v27 = vadd.f32 %v3139_v54, %v11652_v11  ;;  %v11819_v30 = vadd.f32 %v2645_v58, %v11735_v33  ;;  %v11822_v4 = vmul.f32 %v11738_v32, %v1974_v22  ;;  %14068 = vst [vmem:[#allocation96_spill] sm:$0xff] %v11826_v14  ;;  %v11834_v25 = vpop.f32.mrf.mxu0 }
 0x401   : > { %v3141_v55 = vmul.f32 %v14013_v1, %v3059_v50  ;;  %v3061_v43 = vsel %vm3003_vm8, %v2887_v39, 0.0  ;;  %v3699_v22 = vadd.f32 %v3635_v37, %v11646_v42  ;;  %v11839_v6 = vmul.f32 %v13987_v29, %v11623_v40 }
 0x402   : > { %14066 = vst [vmem:[#allocation73_spill] sm:$0xff] %v11813_v61  ;;  %14067 = vst [vmem:[#allocation90_spill] sm:$0xff] %v11816_v27  ;;  %v2888_v58 = vrot.slane %v11819_v30, 6  ;;  %v14069_v14 = vrot.slane %v11646_v42, 4  ;;  %vm14070_vm1 = vcmask 1043456   ;;  %v3379_v11 = vrot.slane %v11806_v62, 4 }
 0x403   : > { %v11848_v54 = vadd.f32 %v3142_v36, %v11745_v63  ;;  %v14071_v9 = vrot.slane %v11738_v32, 7  ;;  %v14072_v37 = vrot.slane %v11694_v46, 7  ;;  %vm14073_vm8 = vcmask 1040384   ;;  %v14082_v46 = vld [vmem:[#allocation48_spill] sm:$0xff] }
 0x404   : > { %v3376_v39 = vsel %vm14070_vm1, %v14069_v14, %v3375_v8  ;;  %v3377_v3 = vrot.slane %v11816_v27, 4  ;;  %v4145_v60 = vadd.f32 1.0, %v11717_v5  ;;  %v3143_v50 = vmul.f32 %v14013_v1, %v3061_v43  ;;  %v11859_v14 = vpop.f32.mrf.mxu1 }
 0x405   : > { %v2427_v40 = vsel %vm14073_vm8, %v14072_v37, %v14071_v9  ;;  %vm14074_vm2 = vcmask 1041408   ;;  %v11862_v17 = vadd.f32 %v3141_v55, %v11689_v57  ;;  %v14076_v63 = vrot.slane %v11810_v49, 6  ;;  %v1982_v37 = vpop.f32.mrf.mxu0 }
 0x406   : > { %v2889_v42 = vsel %vm14074_vm2, %v2884_v53, %v2888_v58  ;;  %vm14077_vm1 = vmmov %vm14074_vm2  ;;  %vm14078_vm8 = vcmp.ge.s32.totalorder %v14054_v52, 2  ;;  %v14079_v5 = vrot.slane %v11822_v4, 7  ;;  %v14080_v43 = vrot.slane %v11735_v33, 7 }
 0x407   : > { %14075 = vst [vmem:[#allocation99_spill] sm:$0xff] %v11862_v17  ;;  %v2891_v36 = vsel %vm14077_vm1, %v2886_v0, %v14076_v63  ;;  %v3062_v9 = vsel %vm14078_vm8, %v2889_v42, 0.0  ;;  %vm14081_vm7 = vcmask 1040384   ;;  %v3555_v57 = vsel %vm3500_vm4, %v3376_v39, 0.0 }
 0x408   : > { %v2425_v53 = vsel %vm14081_vm7, %v14080_v43, %v14079_v5  ;;  %v3144_v55 = vmul.f32 %v9747_v2, %v3062_v9  ;;  %vm14083_vm2 = vcmp.ge.s32.totalorder %v14082_v46, 1  ;;  %vm14085_vm0 = vcmask 1043456  }
 0x409   : > { %v2564_v27 = vsel %vm14083_vm2, %v2425_v53, 0.0  ;;  %vm14084_vm1 = vmmov %vm14083_vm2  ;;  %v3380_v42 = vsel %vm14085_vm0, %v3375_v8, %v3379_v11  ;;  %v3383_v63 = vrot.slane %v11848_v54, 4  ;;  %vm3005_vm7 = vcmp.ge.s32.totalorder %v14082_v46, 2  ;;  %v11895_v8 = vpop.eup %8064 }
 0x40a   : > { %v2565_v0 = vsel %vm14084_vm1, %v2427_v40, 0.0  ;;  %v2647_v61 = vmul.f32 %v14003_v45, %v2564_v27  ;;  %v11888_v39 = vadd.f32 %v3143_v50, %v11725_v16  ;;  %v4146_v9 = vadd.f32 1.0, %v11727_v41  ;;  %v11893_v40 = vpop.f32.mrf.mxu1  ;;  %14086 = vst [vmem:[#allocation78_spill] sm:$0xff] %v11895_v8  ;;  %v11907_v41 = vpop.f32.mrf.mxu0  ;;  %vm14089_vm1 = vmmov %vm14085_vm0 }
 0x40b   : > { %v2648_v5 = vmul.f32 %v14000_v19, %v2565_v0  ;;  %v3063_v43 = vsel %vm14078_vm8, %v2891_v36, 0.0  ;;  %v2214_v53 = vmul.f32 1.442695, %v1978_v38  ;;  %v3381_v56 = vrot.slane %v11862_v17, 4 }
 0x40c   : > { %v11899_v27 = vadd.f32 %v3144_v55, %v11819_v30  ;;  %v11902_v0 = vadd.f32 %v2647_v61, %v11822_v4  ;;  %v14087_v50 = vrot.slane %v11677_v10, 4  ;;  %v3637_v36 = vmul.f32 %v13975_v31, %v3555_v57  ;;  %v7201_v10 = vpop.f32.mrf.mxu1  ;;  %v1988_v55 = vpop.f32.mrf.mxu0 }
 0x40d   : > { %v11905_v16 = vadd.f32 %v11738_v32, %v2648_v5  ;;  %vm14088_vm2 = vcmp.ge.s32.totalorder %v14035_v12, 4  ;;  %8066 = vpow2.f32 %v2214_v53  ;;  %v3384_v30 = vsel %vm14089_vm1, %v3379_v11, %v3383_v63 }
 0x40e   : > { %v3378_v38 = vsel %vm14085_vm0, %v14087_v50, %v3377_v3  ;;  %v3557_v8 = vsel %vm14088_vm2, %v3380_v42, 0.0  ;;  %v3145_v61 = vmul.f32 %v14013_v1, %v3063_v43  ;;  %vm3503_vm8 = vcmp.ge.s32.totalorder %v14054_v52, 4 }
 0x40f   : > { %v11921_v17 = vadd.f32 %v11704_v47, %v3699_v22  ;;  %8068 = vrcp.f32 %v4145_v60  ;;  %v3385_v57 = vrot.slane %v11888_v39, 4  ;;  %v2216_v50 = vmul.f32 1.442695, %v1982_v37 }
 0x410   : > { %v3556_v42 = vsel %vm3500_vm4, %v3378_v38, 0.0  ;;  %v3382_v11 = vsel %vm14085_vm0, %v3377_v3, %v3381_v56  ;;  %v3787_v43 = vmul.f32 %v13987_v29, %v11656_v48  ;;  %v3387_v53 = vrot.slane %v11899_v27, 4 }
 0x411   : > { %v3639_v5 = vmul.f32 %v13975_v31, %v3557_v8  ;;  %vm14090_vm2 = vcmp.ge.s32.totalorder %v14042_v24, 4  ;;  %8070 = vrcp.f32 %v4146_v9  ;;  %v14091_v47 = vrot.slane %v11902_v0, 6 }
 0x412   : > { %v3559_v60 = vsel %vm14090_vm2, %v3384_v30, 0.0  ;;  %vm14092_vm1 = vcmask 1041408   ;;  %v3701_v59 = vadd.f32 %v3637_v36, %v11763_v35  ;;  %v11938_v3 = vadd.f32 %v3145_v61, %v11810_v49  ;;  %v7203_v35 = vpop.f32.mrf.mxu1 }
 0x413   : > { %v2893_v22 = vsel %vm14092_vm1, %v2888_v58, %v14091_v47  ;;  %v14093_v48 = vrot.slane %v11905_v16, 6  ;;  %v14094_v37 = vrot.slane %v11810_v49, 6  ;;  %vm14095_vm4 = vmmov %vm14092_vm1  ;;  %8072 = vpow2.f32 %v2216_v50 }
 0x414   : > { %v11946_v8 = vmul.f32 %v9786_v15, %v3556_v42  ;;  %vm14096_vm0 = vcmp.ge.s32.totalorder %v14035_v12, 4  ;;  %vm14097_vm2 = vcmask 1043456   ;;  %v2218_v30 = vmul.f32 1.442695, %v1988_v55 }
 0x415   : > { %v2895_v38 = vsel %vm14095_vm4, %v14094_v37, %v14093_v48  ;;  %v3558_v9 = vsel %vm14096_vm0, %v3382_v11, 0.0  ;;  %v3386_v58 = vsel %vm14097_vm2, %v3381_v56, %v3385_v57  ;;  %v3641_v36 = vmul.f32 %v13975_v31, %v3559_v60  ;;  %vm14098_vm1 = vmmov %vm14097_vm2 }
 0x416   : > { %v3388_v61 = vsel %vm14098_vm1, %v3383_v63, %v3387_v53  ;;  %v3064_v49 = vsel %vm3005_vm7, %v2893_v22, 0.0  ;;  %v7196_v50 = vadd.f32 %v11784_v13, %v11747_v28  ;;  %v3703_v42 = vadd.f32 %v3639_v5, %v11806_v62  ;;  %v11971_v28 = vpop.f32.mrf.mxu0  ;;  %v7204_v62 = vpop.f32.mrf.mxu1 }
 0x417   : > { %v4147_v12 = vadd.f32 1.0, %v11749_v18  ;;  %v3065_v56 = vsel %vm3005_vm7, %v2895_v38, 0.0  ;;  %8074 = vpow2.f32 %v2218_v30  ;;  %v11964_v55 = vadd.f32 %v11780_v51, %v3701_v59  ;;  %vm14102_vm7 = vmmov %vm14098_vm1 }
 0x418   : > { %vm14100_vm4 = vcmp.ge.s32.totalorder %v14042_v24, 4  ;;  %v13486_v11 = vrot.slane %v11938_v3, 4  ;;  %v7199_v60 = vadd.f32 %v11859_v14, %v11824_v21  ;;  %v11974_v13 = vmul.f32 %v9786_v15, %v3558_v9 }
 0x419   : > { %14099 = vst [vmem:[#allocation79_spill] sm:$0xff] %v11964_v55  ;;  %v3560_v63 = vsel %vm14100_vm4, %v3386_v58, 0.0  ;;  %v3561_v18 = vsel %vm3503_vm8, %v3388_v61, 0.0  ;;  %v11980_v51 = vmul.f32 %v13987_v29, %v11735_v33  ;;  %v3146_v24 = vmul.f32 %v9747_v2, %v3064_v49 }
 0x41a   : > { %v3705_v5 = vadd.f32 %v3641_v36, %v11848_v54  ;;  %v3147_v47 = vmul.f32 %v14013_v1, %v3065_v56  ;;  %v6885_v21 = vmul.f32 -1.442695, %v7196_v50  ;;  %v3696_v14 = vadd.f32 %v11697_v20, %v11519_v44  ;;  %v11997_v48 = vpop.eup %8066  ;;  %v1992_v20 = vpop.f32.mrf.mxu0 }
 0x41b   : > { %v11988_v22 = vadd.f32 %v11839_v6, %v3703_v42  ;;  %v11991_v59 = vmul.f32 %v9786_v15, %v3560_v63  ;;  %8076 = vrcp.f32 %v4147_v12  ;;  %v11995_v33 = vmul.f32 %v13987_v29, %v11822_v4  ;;  %v7206_v36 = vpop.f32.mrf.mxu1 }
 0x41c   : > { %v3390_v54 = vsel %vm14102_vm7, %v3385_v57, %v13486_v11  ;;  %v3643_v37 = vmul.f32 %v13975_v31, %v3561_v18  ;;  %v6886_v44 = vmul.f32 -1.442695, %v7199_v60  ;;  %v3698_v6 = vadd.f32 %v11730_v7, %v11556_v34  ;;  %v12014_v57 = vpop.eup %8068  ;;  %v14105_v34 = vld [vmem:[#allocation50_spill] sm:$0xff] }
 0x41d   : > { %14101 = vst [vmem:[#allocation98_spill] sm:$0xff] %v11988_v22  ;;  %v12006_v38 = vadd.f32 %v3146_v24, %v11902_v0  ;;  %v12010_v9 = vmul.f32 %v11997_v48, %v11834_v25  ;;  %v2430_v58 = vrot.slane %v11997_v48, 7  ;;  %v7202_v30 = vadd.f32 %v7201_v10, %v11893_v40  ;;  %14103 = vst [vmem:[#allocation100_spill] sm:$0xff] %v12014_v57 }
 0x41e   : > { %v12016_v61 = vadd.f32 %v3787_v43, %v3705_v5  ;;  %v12019_v49 = vadd.f32 %v3147_v47, %v11905_v16  ;;  %8078 = vpow2.f32 %v6885_v21  ;;  %vm3006_vm0 = vcmp.ge.s32.totalorder %v14105_v34, 2  ;;  %v12026_v10 = vpop.eup %8070 }
 0x41f   : > { %v2428_v7 = vrot.slane %v12010_v9, 7  ;;  %v14106_v25 = vrot.slane %v11738_v32, 7  ;;  %vm14107_vm2 = vcmask 1040384   ;;  %v7205_v42 = vadd.f32 %v7204_v62, %v7203_v35  ;;  %14108 = vst [vmem:[#allocation88_spill] sm:$0xff] %v12026_v10  ;;  %v7207_v62 = vpop.f32.mrf.mxu1 }
 0x420   : > { %14104 = vst [vmem:[#allocation85_spill] sm:$0xff] %v12016_v61  ;;  %v2220_v12 = vmul.f32 1.442695, %v1992_v20  ;;  %v12030_v40 = vsel %vm3503_vm8, %v3390_v54, 0.0  ;;  %v12033_v43 = vadd.f32 %v3643_v37, %v11899_v27  ;;  %vm14109_vm1 = vcmp.ge.s32.totalorder %v14105_v34, 1  ;;  %v12037_v63 = vpop.eup %8072  ;;  %vm14111_vm4 = vmmov %vm14107_vm2  ;;  %v14113_v37 = vld [vmem:[#allocation51_spill] sm:$0xff] }
 0x421   : > { %v2431_v50 = vsel %vm14107_vm2, %v14106_v25, %v2430_v58  ;;  %8080 = vpow2.f32 %v6886_v44  ;;  %v13487_v60 = vrot.slane %v12006_v38, 4  ;;  %v14110_v35 = vrot.slane %v11822_v4, 7  ;;  %vm14112_vm8 = vmmov %vm14109_vm1 }
 0x422   : > { %v2567_v56 = vsel %vm14109_vm1, %v2431_v50, 0.0  ;;  %v12044_v52 = vmul.f32 -1.442695, %v7202_v30  ;;  %v12051_v21 = vmul.f32 %v12037_v63, %v11907_v41  ;;  %v2434_v54 = vrot.slane %v12037_v63, 7  ;;  %vm14114_vm1 = vmmov %vm14111_vm4 }
 0x423   : > { %v2429_v18 = vsel %vm14111_vm4, %v14110_v35, %v2428_v7  ;;  %v2650_v24 = vmul.f32 %v14000_v19, %v2567_v56  ;;  %v12057_v20 = vmul.f32 -1.442695, %v7205_v42  ;;  %8082 = vpow2.f32 %v2220_v12  ;;  %v14116_v12 = vld [vmem:[#allocation71_spill] sm:$0xff] }
 0x424   : > { %v2566_v47 = vsel %vm14112_vm8, %v2429_v18, 0.0  ;;  %v12059_v30 = vpop.eup %8074  ;;  %vm3504_vm2 = vcmp.ge.s32.totalorder %v14082_v46, 4  ;;  %v2432_v25 = vrot.slane %v12051_v21, 7  ;;  %v2435_v41 = vsel %vm14114_vm1, %v2430_v58, %v2434_v54  ;;  %vm14117_vm8 = vmmov %vm14114_vm1 }
 0x425   : > { %v2649_v4 = vmul.f32 %v14003_v45, %v2566_v47  ;;  %v2714_v44 = vadd.f32 %v11997_v48, %v2650_v24  ;;  %v7208_v50 = vadd.f32 %v7207_v62, %v7206_v36  ;;  %v3778_v56 = vmul.f32 %v11437_v26, %v13843_v23 }
 0x426   : > { %vm14115_vm4 = vcmp.ge.s32.totalorder %v14113_v37, 1  ;;  %v3780_v24 = vmul.f32 %v14116_v12, %v13843_v23  ;;  %v2433_v47 = vsel %vm14117_vm8, %v2428_v7, %v2432_v25  ;;  %v12077_v58 = vmul.f32 %v12059_v30, %v11971_v28  ;;  %vm14121_vm8 = vmmov %vm14102_vm7 }
 0x427   : > { %v12067_v35 = vadd.f32 %v2649_v4, %v12010_v9  ;;  %v2898_v18 = vrot.slane %v2714_v44, 6  ;;  %v2569_v42 = vsel %vm14115_vm4, %v2435_v41, 0.0  ;;  %v14118_v62 = vrot.slane %v11905_v16, 6 }
 0x428   : > { %v2652_v11 = vmul.f32 %v14000_v19, %v2569_v42  ;;  %vm14119_vm1 = vcmask 1041408   ;;  %v2568_v41 = vsel %vm14115_vm4, %v2433_v47, 0.0  ;;  %v12086_v12 = vadd.f32 %v3778_v56, %v3696_v14  ;;  %v12088_v7 = vpop.eup %8076 }
 0x429   : > { %v2896_v36 = vrot.slane %v12067_v35, 6  ;;  %v2899_v4 = vsel %vm14119_vm1, %v14118_v62, %v2898_v18  ;;  %14120 = vst [vmem:[#allocation36_spill] sm:$0xff] %v12088_v7  ;;  %v2651_v28 = vmul.f32 %v14003_v45, %v2568_v41  ;;  %v3392_v16 = vsel %vm14121_vm8, %v3387_v53, %v13487_v60 }
 0x42a   : > { %v3067_v42 = vsel %vm3006_vm0, %v2899_v4, 0.0  ;;  %v2716_v5 = vadd.f32 %v12037_v63, %v2652_v11  ;;  %v14122_v14 = vrot.slane %v11902_v0, 6  ;;  %v14123_v47 = vrot.slane %v12059_v30, 7 }
 0x42b   : > { %vm14124_vm4 = vcmask 1040384   ;;  %v12106_v4 = vadd.f32 %v3780_v24, %v3698_v6  ;;  %v3149_v41 = vmul.f32 %v14013_v1, %v3067_v42  ;;  %v14125_v27 = vrot.slane %v12077_v58, 7  ;;  %v8079_v60 = vpop.eup %8078 }
 0x42c   : > { %v2897_v56 = vsel %vm14119_vm1, %v14122_v14, %v2896_v36  ;;  %v2439_v62 = vsel %vm14124_vm4, %v2434_v54, %v14123_v47  ;;  %v2902_v26 = vrot.slane %v2716_v5, 6  ;;  %vm14126_vm7 = vmmov %vm14124_vm4  ;;  %v12115_v0 = vadd.f32 %v2651_v28, %v12051_v21  ;;  %v14127_v14 = vld [vmem:[#allocation53_spill] sm:$0xff] }
 0x42d   : > { %v3066_v11 = vsel %vm3006_vm0, %v2897_v56, 0.0  ;;  %v2437_v53 = vsel %vm14126_vm7, %v2432_v25, %v14125_v27  ;;  %vm14128_vm8 = vcmp.ge.s32.totalorder %v14127_v14, 1  ;;  %8084 = vrcp.f32 %v12086_v12 }
 0x42e   : > { %v2570_v7 = vsel %vm14128_vm8, %v2437_v53, 0.0  ;;  %vm14129_vm1 = vmmov %vm14128_vm8  ;;  %v14130_v54 = vrot.slane %v12019_v49, 4  ;;  %v14131_v24 = vrot.slane %v11938_v3, 4  ;;  %vm14132_vm0 = vcmask 1043456   ;;  %v12130_v47 = vpop.eup %8080 }
 0x42f   : > { %v2571_v6 = vsel %vm14129_vm1, %v2439_v62, 0.0  ;;  %vm14133_vm4 = vcmask 1041408   ;;  %v2653_v56 = vmul.f32 %v14003_v45, %v2570_v7  ;;  %v3563_v27 = vsel %vm3504_vm2, %v3392_v16, 0.0 }
 0x430   : > { %v3394_v42 = vsel %vm14132_vm0, %v14131_v24, %v14130_v54  ;;  %v2903_v25 = vsel %vm14133_vm4, %v2898_v18, %v2902_v26  ;;  %v2654_v28 = vmul.f32 %v14000_v19, %v2571_v6  ;;  %v3148_v62 = vmul.f32 %v9747_v2, %v3066_v11  ;;  %v12155_v54 = vpop.eup %8082 }
 0x431   : > { %vm14134_vm7 = vcmp.ge.s32.totalorder %v14113_v37, 2  ;;  %8086 = vrcp.f32 %v12106_v4  ;;  %v12138_v10 = vadd.f32 %v3149_v41, %v2714_v44  ;;  %vm3505_vm8 = vcmp.ge.s32.totalorder %v14105_v34, 4 }
 0x432   : > { %v3069_v53 = vsel %vm14134_vm7, %v2903_v25, 0.0  ;;  %v12143_v7 = vadd.f32 %v2653_v56, %v12077_v58  ;;  %v12146_v6 = vadd.f32 %v12059_v30, %v2654_v28  ;;  %v12150_v16 = vmul.f32 %v9786_v15, %v12030_v40 }
 0x433   : > { %v3151_v18 = vmul.f32 %v14013_v1, %v3069_v53  ;;  %v3564_v11 = vsel %vm3504_vm2, %v3394_v42, 0.0  ;;  %v2900_v44 = vrot.slane %v12115_v0, 6  ;;  %v6889_v41 = vmul.f32 -1.442695, %v7208_v50  ;;  %vm14136_vm2 = vmmov %vm14133_vm4 }
 0x434   : > { %v3645_v24 = vmul.f32 %v13975_v31, %v3563_v27  ;;  %v13489_v56 = vrot.slane %v12143_v7, 6  ;;  %vm3008_vm0 = vcmp.ge.s32.totalorder %v14127_v14, 2  ;;  %v12165_v40 = vadd.f32 %v11980_v51, %v12033_v43  ;;  %v1994_v27 = vpop.f32.mrf.mxu0  ;;  %vm14137_vm4 = vmmov %vm14136_vm2 }
 0x435   : > { %v12158_v25 = vadd.f32 %v3151_v18, %v2716_v5  ;;  %v4148_v46 = vadd.f32 1.0, %v8079_v60  ;;  %8088 = vpow2.f32 %v12044_v52  ;;  %v13488_v50 = vrot.slane %v12146_v6, 6  ;;  %vm14139_vm7 = vmmov %vm14136_vm2  ;;  %v14141_v18 = vld [vmem:[#allocation73_spill] sm:$0xff] }
 0x436   : > { %14135 = vst [vmem:[#allocation91_spill] sm:$0xff] %v12165_v40  ;;  %v12170_v42 = vmul.f32 %v9786_v15, %v3564_v11  ;;  %v12173_v5 = vadd.f32 %v3148_v62, %v12067_v35  ;;  %v3397_v28 = vrot.slane %v12138_v10, 4  ;;  %8090 = vpow2.f32 %v12057_v20  ;;  %v14140_v62 = vld [vmem:[#allocation80_spill] sm:$0xff] }
 0x437   : > { %v2901_v53 = vsel %vm14136_vm2, %v2896_v36, %v2900_v44  ;;  %v2907_v51 = vsel %vm14137_vm4, %v2902_v26, %v13488_v50  ;;  %v12182_v43 = vmul.f32 %v12155_v54, %v1994_v27  ;;  %8092 = vpow2.f32 %v6889_v41  ;;  %v14149_v41 = vld [vmem:[#allocation74_spill] sm:$0xff] }
 0x438   : > { %v12185_v60 = vadd.f32 %v3645_v24, %v12006_v38  ;;  %v3401_v52 = vrot.slane %v12158_v25, 4  ;;  %v2905_v20 = vsel %vm14139_vm7, %v2900_v44, %v13489_v56  ;;  %v3071_v35 = vsel %vm3008_vm0, %v2907_v51, 0.0  ;;  %v14145_v51 = vld [vmem:[#allocation54_spill] sm:$0xff] }
 0x439   : > { %14138 = vst [vmem:[#allocation94_spill] sm:$0xff] %v12182_v43  ;;  %8094 = vrcp.f32 %v4148_v46  ;;  %v3153_v36 = vmul.f32 %v14013_v1, %v3071_v35  ;;  %v2440_v26 = vrot.slane %v12182_v43, 7  ;;  %v3700_v11 = vadd.f32 %v14141_v18, %v14140_v62  ;;  %v14148_v18 = vld [vmem:[#allocation90_spill] sm:$0xff] }
 0x43a   : > { %v14142_v24 = vrot.slane %v12019_v49, 4  ;;  %vm14143_vm2 = vcmask 1043456   ;;  %vm14144_vm4 = vcmp.ge.s32.totalorder %v14113_v37, 2  ;;  %v2442_v50 = vrot.slane %v12155_v54, 7  ;;  %v8085_v40 = vpop.eup %8084 }
 0x43b   : > { %v3068_v44 = vsel %vm14144_vm4, %v2901_v53, 0.0  ;;  %v3070_v46 = vsel %vm3008_vm0, %v2905_v20, 0.0  ;;  %v14146_v35 = vrot.slane %v12077_v58, 7  ;;  %vm14147_vm1 = vcmask 1040384  }
 0x43c   : > { %v3398_v27 = vsel %vm14143_vm2, %v14142_v24, %v3397_v28  ;;  %v3702_v56 = vadd.f32 %v11946_v8, %v14148_v18  ;;  %v3782_v24 = vmul.f32 %v14149_v41, %v13843_v23  ;;  %v3402_v53 = vsel %vm14143_vm2, %v3397_v28, %v3401_v52  ;;  %vm14151_vm0 = vmmov %vm14147_vm1 }
 0x43d   : > { %v2441_v62 = vsel %vm14147_vm1, %v14146_v35, %v2440_v26  ;;  %v12216_v57 = vadd.f32 %v3153_v36, %v12146_v6  ;;  %vm3507_vm4 = vcmp.ge.s32.totalorder %v14127_v14, 4  ;;  %v14150_v20 = vrot.slane %v12059_v30, 7 }
 0x43e   : > { %vm14152_vm1 = vcmp.ge.s32.totalorder %v14145_v51, 1  ;;  %v3566_v8 = vsel %vm3505_vm8, %v3398_v27, 0.0  ;;  %v3150_v41 = vmul.f32 %v9747_v2, %v3068_v44  ;;  %v8087_v35 = vpop.eup %8086  ;;  %v14154_v18 = vrot.slane %v12173_v5, 4 }
 0x43f   : > { %v2443_v61 = vsel %vm14151_vm0, %v14150_v20, %v2442_v50  ;;  %v2572_v26 = vsel %vm14152_vm1, %v2441_v62, 0.0  ;;  %vm14153_vm7 = vmmov %vm14152_vm1  ;;  %v14155_v22 = vrot.slane %v12006_v38, 4  ;;  %v12236_v20 = vadd.f32 1.0, %v12130_v47 }
 0x440   : > { %v2573_v28 = vsel %vm14153_vm7, %v2443_v61, 0.0  ;;  %v2655_v36 = vmul.f32 %v14003_v45, %v2572_v26  ;;  %v12239_v27 = vadd.f32 %v3782_v24, %v3700_v11  ;;  %vm14156_vm0 = vcmp.ge.s32.totalorder %v14113_v37, 4  ;;  %vm14160_vm1 = vmmov %vm14143_vm2 }
 0x441   : > { %v3396_v50 = vsel %vm14143_vm2, %v14155_v22, %v14154_v18  ;;  %v2656_v62 = vmul.f32 %v14000_v19, %v2573_v28  ;;  %v3568_v44 = vsel %vm14156_vm0, %v3402_v53, 0.0  ;;  %v3152_v61 = vmul.f32 %v9747_v2, %v3070_v46  ;;  %v14157_v18 = vld [vmem:[#allocation75_spill] sm:$0xff] }
 0x442   : > { %v2719_v45 = vadd.f32 %v2655_v36, %v12182_v43  ;;  %v3917_v26 = vmul.f32 %v8085_v40, %v12086_v12  ;;  %v3648_v38 = vmul.f32 %v9786_v15, %v3566_v8  ;;  %v3405_v22 = vrot.slane %v12216_v57, 4  ;;  %v12259_v12 = vpop.eup %8088  ;;  %v14163_v43 = vld [vmem:[#allocation99_spill] sm:$0xff] }
 0x443   : > { %v2720_v47 = vadd.f32 %v12155_v54, %v2656_v62  ;;  %v3784_v19 = vmul.f32 %v14157_v18, %v13843_v23  ;;  %v12253_v11 = vsel %vm3505_vm8, %v3396_v50, 0.0  ;;  %v12256_v24 = vadd.f32 %v3150_v41, %v12115_v0  ;;  %v12265_v18 = vpop.eup %8090 }
 0x444   : > { %v2908_v46 = vrot.slane %v2719_v45, 6  ;;  %v3918_v53 = vmul.f32 %v8087_v35, %v12106_v4  ;;  %v3650_v8 = vmul.f32 %v9786_v15, %v3568_v44  ;;  %vm3508_vm7 = vcmp.ge.s32.totalorder %v14145_v51, 4  ;;  %v12274_v50 = vpop.eup %8092 }
 0x445   : > { %v2910_v28 = vrot.slane %v2720_v47, 6  ;;  %v3949_v36 = vsub.f32 2.0, %v3917_v26  ;;  %v12263_v62 = vadd.f32 %v3784_v19, %v3702_v56  ;;  %v12268_v34 = vadd.f32 %v3152_v61, %v12143_v7 }
 0x446   : > { %v14158_v0 = vrot.slane %v12143_v7, 6  ;;  %vm14159_vm8 = vcmask 1041408   ;;  %v3950_v4 = vsub.f32 2.0, %v3918_v53  ;;  %8096 = vrcp.f32 %v12239_v27 }
 0x447   : > { %v3406_v44 = vsel %vm14160_vm1, %v3401_v52, %v3405_v22  ;;  %v14161_v26 = vrot.slane %v12146_v6, 6  ;;  %vm14162_vm2 = vmmov %vm14159_vm8  ;;  %v3981_v19 = vmul.f32 %v8085_v40, %v3949_v36  ;;  %v3704_v61 = vadd.f32 %v11974_v13, %v14163_v43  ;;  %v14166_v6 = vld [vmem:[#allocation70_spill] sm:$0xff]  ;;  %v14167_v13 = vld [vmem:[#allocation76_spill] sm:$0xff] }
 0x448   : > { %v2909_v41 = vsel %vm14159_vm8, %v14158_v0, %v2908_v46  ;;  %vm14164_vm0 = vcmp.ge.s32.totalorder %v14145_v51, 2  ;;  %v3982_v53 = vmul.f32 %v8087_v35, %v3950_v4  ;;  %8098 = vrcp.f32 %v12263_v62  ;;  %v12287_v0 = vpop.eup %8094  ;;  %v14168_v36 = vld [vmem:[#allocation89_spill] sm:$0xff] }
 0x449   : > { %v2911_v56 = vsel %vm14162_vm2, %v14161_v26, %v2910_v28  ;;  %v3072_v7 = vsel %vm14164_vm0, %v2909_v41, 0.0  ;;  %vm14165_vm8 = vmmov %vm14164_vm0  ;;  %v4013_v55 = vmul.f32 %v3981_v19, %v14166_v6  ;;  %v3706_v40 = vadd.f32 %v11991_v59, %v11888_v39  ;;  %v14169_v35 = vld [vmem:[#allocation77_spill] sm:$0xff]  ;;  %v14170_v59 = vld [vmem:[#allocation83_spill] sm:$0xff] }
 0x44a   : > { %v3073_v46 = vsel %vm14165_vm8, %v2911_v56, 0.0  ;;  %v3786_v43 = vmul.f32 %v14167_v13, %v13843_v23  ;;  %v3570_v28 = vsel %vm3507_vm4, %v3406_v44, 0.0  ;;  %v4014_v41 = vmul.f32 %v3982_v53, %v14168_v36  ;;  %v14171_v6 = vld [vmem:[#allocation72_spill] sm:$0xff]  ;;  %vm14174_vm2 = vmmov %vm14160_vm1 }
 0x44b   : > { %v3155_v52 = vmul.f32 %v14013_v1, %v3073_v46  ;;  %v3788_v4 = vmul.f32 %v14169_v35, %v13843_v23  ;;  %v3708_v26 = vadd.f32 %v12150_v16, %v11938_v3  ;;  %v3154_v1 = vmul.f32 %v9747_v2, %v3072_v7  ;;  %v14172_v53 = vld [vmem:[#allocation64_spill] sm:$0xff]  ;;  %vm14175_vm0 = vmmov %vm14160_vm1 }
 0x44c   : > { %v12303_v19 = vadd.f32 %v3786_v43, %v3704_v61  ;;  %v3710_v39 = vadd.f32 %v12170_v42, %v12019_v49  ;;  %v4237_v46 = vmul.f32 %v14170_v59, %v4013_v55  ;;  %v4238_v44 = vmul.f32 %v14171_v6, %v4014_v41  ;;  %vm14176_vm8 = vmmov %vm14175_vm0 }
 0x44d   : > { %v3219_v56 = vadd.f32 %v3155_v52, %v2720_v47  ;;  %v12309_v13 = vadd.f32 %v3788_v4, %v3706_v40  ;;  %v3790_v36 = vmul.f32 %v14172_v53, %v13843_v23  ;;  %v3652_v35 = vmul.f32 %v9786_v15, %v3570_v28 }
 0x44e   : > { %8100 = vrcp.f32 %v12303_v19  ;;  %v3792_v2 = vmul.f32 %v11738_v32, %v13843_v23  ;;  %v4259_v16 = vpack.c.bf16 %v4238_v44, %v4237_v46  ;;  %v3712_v55 = vadd.f32 %v3648_v38, %v12138_v10 }
 0x44f   : > { %v3409_v3 = vrot.slane %v3219_v56, 4  ;;  %8102 = vrcp.f32 %v12309_v13  ;;  %v12318_v49 = vadd.f32 %v3790_v36, %v3708_v26  ;;  %v12321_v42 = vadd.f32 %v3154_v1, %v2719_v45 }
 0x450   : > { %v12324_v61 = vadd.f32 %v3792_v2, %v3710_v39  ;;  %v3714_v7 = vadd.f32 %v3650_v8, %v12158_v25  ;;  %v3399_v52 = vrot.slane %v12256_v24, 4  ;;  %7493 = vmatprep.mubr.bf16.mxu1 %v4259_v16  ;;  %v3794_v40 = vmul.f32 %v11997_v48, %v13843_v23  ;;  %v14178_v16 = vld [vmem:[#allocation79_spill] sm:$0xff] }
 0x451   : > { %v3410_v47 = vsel %vm14160_vm1, %v3405_v22, %v3409_v3  ;;  %8104 = vrcp.f32 %v12318_v49  ;;  %v3796_v45 = vmul.f32 %v12037_v63, %v13843_v23  ;;  %v3716_v25 = vadd.f32 %v3652_v35, %v12216_v57 }
 0x452   : > { %v3572_v32 = vsel %vm3508_vm7, %v3410_v47, 0.0  ;;  %8106 = vrcp.f32 %v12324_v61  ;;  %v3403_v38 = vrot.slane %v12268_v34, 4  ;;  %v12340_v22 = vadd.f32 %v3794_v40, %v3712_v55 }
 0x453   : > { %v3654_v10 = vmul.f32 %v9786_v15, %v3572_v32  ;;  %8108 = vrcp.f32 %v12236_v20  ;;  %v3798_v8 = vmul.f32 %v12059_v30, %v13843_v23  ;;  %v8097_v43 = vpop.eup %8096  ;;  %v3407_v48 = vrot.slane %v12321_v42, 4 }
 0x454   : > { %v12345_v15 = vadd.f32 %v3796_v45, %v3714_v7  ;;  %v3800_v63 = vmul.f32 %v12155_v54, %v13843_v23  ;;  %v3647_v57 = vmul.f32 %v13975_v31, %v12253_v11  ;;  %v3919_v20 = vmul.f32 %v8097_v43, %v12239_v27  ;;  %v14181_v45 = vld [vmem:[#allocation96_spill] sm:$0xff] }
 0x455   : > { %v3718_v28 = vadd.f32 %v3654_v10, %v3219_v56  ;;  %8110 = vrcp.f32 %v12340_v22  ;;  %v12353_v41 = vadd.f32 %v3798_v8, %v3716_v25  ;;  %v8099_v4 = vpop.eup %8098  ;;  %v14173_v30 = vrot.slane %v12173_v5, 4 }
 0x456   : > { %v4150_v1 = vadd.f32 1.0, %v12259_v12  ;;  %8112 = vrcp.f32 %v12345_v15  ;;  %v3404_v23 = vsel %vm14175_vm0, %v3399_v52, %v3403_v38  ;;  %v3920_v54 = vmul.f32 %v8099_v4, %v12263_v62 }
 0x457   : > { %v3400_v26 = vsel %vm14174_vm2, %v14173_v30, %v3399_v52  ;;  %v12360_v56 = vadd.f32 %v3800_v63, %v3718_v28  ;;  %v3951_v27 = vsub.f32 2.0, %v3919_v20  ;;  %8114 = vrcp.f32 %v12353_v41  ;;  %v14179_v52 = vld [vmem:[#allocation94_spill] sm:$0xff] }
 0x458   : > { %v3793_v11 = vmul.f32 %v13987_v29, %v12010_v9  ;;  %v4151_v39 = vadd.f32 1.0, %v12265_v18  ;;  %v3408_v59 = vsel %vm14176_vm8, %v3403_v38, %v3407_v48  ;;  %v3711_v12 = vadd.f32 %v3647_v57, %v12173_v5  ;;  %v14182_v38 = vld [vmem:[#allocation78_spill] sm:$0xff] }
 0x459   : > { %8116 = vrcp.f32 %v12360_v56  ;;  %vm14177_vm1 = vcmp.ge.s32.totalorder %v14113_v37, 4  ;;  %v3952_v6 = vsub.f32 2.0, %v3920_v54  ;;  %v3983_v44 = vmul.f32 %v8097_v43, %v3951_v27  ;;  %v8317_v27 = vld [vmem:[%s8848_s9 + $0x10] sm:$0xff] }
 0x45a   : > { %v3567_v46 = vsel %vm14177_vm1, %v3400_v26, 0.0  ;;  %v12375_v62 = vadd.f32 %v11995_v33, %v12185_v60  ;;  %v12379_v9 = vmul.f32 %v13987_v29, %v12051_v21  ;;  %8118 = vrcp.f32 %v4150_v1  ;;  %v7475_v60 = vpop.f32.mrf.mxu1 }
 0x45b   : > { %v3569_v18 = vsel %vm3507_vm4, %v3404_v23, 0.0  ;;  %v8101_v53 = vpop.eup %8100  ;;  %v12385_v5 = vmul.f32 %v13987_v29, %v12077_v58  ;;  %v3571_v37 = vsel %vm3508_vm7, %v3408_v59, 0.0  ;;  %v3984_v36 = vmul.f32 %v8099_v4, %v3952_v6 }
 0x45c   : > { %v4015_v33 = vmul.f32 %v3983_v44, %v11921_v17  ;;  %v8103_v35 = vpop.eup %8102  ;;  %v3649_v21 = vmul.f32 %v13975_v31, %v3567_v46  ;;  %8120 = vrcp.f32 %v4151_v39  ;;  %v4152_v14 = vadd.f32 1.0, %v12274_v50  ;;  %v4363_v47 = vpop.f32.mrf.mxu1  ;;  %v8316_v50 = vld [vmem:[%s8848_s9] sm:$0xff] }
 0x45d   : > { %v3921_v3 = vmul.f32 %v8101_v53, %v12303_v19  ;;  %v12393_v2 = vadd.f32 %v3793_v11, %v3711_v12  ;;  %v3651_v58 = vmul.f32 %v13975_v31, %v3569_v18  ;;  %v4016_v51 = vmul.f32 %v3984_v36, %v14178_v16  ;;  %v14186_v12 = vld [vmem:[#allocation85_spill] sm:$0xff]  ;;  %v14187_v18 = vld [vmem:[#allocation100_spill] sm:$0xff] }
 0x45e   : > { %v3922_v55 = vmul.f32 %v8103_v35, %v12309_v13  ;;  %v8105_v17 = vpop.eup %8104  ;;  %v3653_v7 = vmul.f32 %v13975_v31, %v3571_v37  ;;  %v12401_v32 = vmul.f32 %v13987_v29, %v14179_v52  ;;  %v12404_v10 = vadd.f32 %v8316_v50, %v4363_v47  ;;  %v7476_v48 = vpop.f32.mrf.mxu1 }
 0x45f   : > { %v3953_v40 = vsub.f32 2.0, %v3921_v3  ;;  %v8107_v19 = vpop.eup %8106  ;;  %v4239_v25 = vmul.f32 %v14181_v45, %v4015_v33  ;;  %v4240_v8 = vmul.f32 %v14182_v38, %v4016_v51  ;;  %v3923_v13 = vmul.f32 %v8105_v17, %v12318_v49  ;;  %v14183_v49 = vld [vmem:[#allocation98_spill] sm:$0xff] }
 0x460   : > { %14180 = vst [vmem:[#allocation82_spill] sm:$0xff] %v12404_v10  ;;  %v3954_v43 = vsub.f32 2.0, %v3922_v55  ;;  %v8109_v28 = vpop.eup %8108  ;;  %v3713_v31 = vadd.f32 %v3649_v21, %v12256_v24  ;;  %8122 = vrcp.f32 %v4152_v14  ;;  %v3924_v63 = vmul.f32 %v8107_v19, %v12324_v61  ;;  %4522 = vadd.xlane.f32.xlu0 %v12404_v10  ;;  %v4366_v26 = vpop.f32.mrf.mxu1  ;;  %v8318_v24 = vld [vmem:[%s8848_s9 + $0x8] sm:$0xff]  ;;  %v8319_v51 = vld [vmem:[%s8848_s9 + $0x18] sm:$0xff] }
 0x461   : > { %v3985_v29 = vmul.f32 %v8101_v53, %v3953_v40  ;;  %v3715_v57 = vadd.f32 %v3651_v58, %v12268_v34  ;;  %v4260_v20 = vpack.c.bf16 %v4240_v8, %v4239_v25  ;;  %v3955_v30 = vsub.f32 2.0, %v3923_v13  ;;  %v14191_v40 = vld [vmem:[#allocation36_spill] sm:$0xff] }
 0x462   : > { %v3986_v4 = vmul.f32 %v8103_v35, %v3954_v43  ;;  %v8111_v1 = vpop.eup %8110  ;;  %v3956_v54 = vsub.f32 2.0, %v3924_v63  ;;  %v12415_v11 = vadd.f32 %v8317_v27, %v7475_v60  ;;  %v12418_v39 = vadd.f32 %v8318_v24, %v4366_v26  ;;  %v14188_v60 = vld [vmem:[#allocation88_spill] sm:$0xff]  ;;  %v14189_v35 = vld [vmem:[#allocation91_spill] sm:$0xff] }
 0x463   : > { %v4017_v23 = vmul.f32 %v3985_v29, %v14183_v49  ;;  %v8113_v59 = vpop.eup %8112  ;;  %v3717_v61 = vadd.f32 %v3653_v7, %v12321_v42  ;;  %7494 = vmatmul.mubr.bf16.gmra.mxu1 %v4260_v20  ;;  %v3987_v46 = vmul.f32 %v8105_v17, %v3955_v30  ;;  %v3925_v6 = vmul.f32 %v8111_v1, %v12340_v22  ;;  %v8320_v30 = vld [vmem:[%s8848_s9 + $0x20] sm:$0xff]  ;;  %v8321_v49 = vld [vmem:[%s8848_s9 + $0x30] sm:$0xff] }
 0x464   : > { %14184 = vst [vmem:[#allocation86_spill] sm:$0xff] %v12415_v11  ;;  %14185 = vst [vmem:[#allocation81_spill] sm:$0xff] %v12418_v39  ;;  %v4018_v34 = vmul.f32 %v3986_v4, %v14186_v12  ;;  %v8115_v44 = vpop.eup %8114  ;;  %v3988_v37 = vmul.f32 %v8107_v19, %v3956_v54  ;;  %v3926_v36 = vmul.f32 %v8113_v59, %v12345_v15  ;;  %4526 = vadd.xlane.f32.xlu0 %v12415_v11  ;;  %v8322_v54 = vld [vmem:[%s8848_s9 + $0x28] sm:$0xff]  ;;  %vm14222_vm4 = vcmask 1040384  }
 0x465   : > { %v4241_v53 = vmul.f32 %v14187_v18, %v4017_v23  ;;  %4524 = vadd.xlane.f32.xlu1 %v12418_v39  ;;  %v4019_v21 = vmul.f32 %v3987_v46, %v14189_v35  ;;  %v3957_v14 = vsub.f32 2.0, %v3925_v6  ;;  %v3927_v3 = vmul.f32 %v8115_v44, %v12353_v41  ;;  %v8325_v18 = vld [vmem:[%s8848_s9 + $0x50] sm:$0xff]  ;;  %vm14223_vm7 = vmmov %vm14222_vm4 }
 0x466   : > { %v8117_v33 = vpop.eup %8116  ;;  %v4242_v42 = vmul.f32 %v14188_v60, %v4018_v34  ;;  %v4020_v22 = vmul.f32 %v3988_v37, %v12375_v62  ;;  %v3958_v58 = vsub.f32 2.0, %v3926_v36  ;;  %v12433_v55 = vadd.f32 %v8319_v51, %v7476_v48  ;;  %v8324_v34 = vld [vmem:[%s8848_s9 + $0x40] sm:$0xff]  ;;  %v8326_v37 = vld [vmem:[%s8848_s9 + $0x48] sm:$0xff]  ;;  %vm14226_vm2 = vmmov %vm14222_vm4 }
 0x467   : > { %v3928_v16 = vmul.f32 %v8117_v33, %v12360_v56  ;;  %v8119_v15 = vpop.eup %8118  ;;  %v3859_v47 = vadd.f32 %v12379_v9, %v3713_v31  ;;  %v3989_v7 = vmul.f32 %v8111_v1, %v3957_v14  ;;  %v3959_v52 = vsub.f32 2.0, %v3927_v3  ;;  %v8330_v51 = vld [vmem:[%s8848_s9 + $0x68] sm:$0xff]  ;;  %vm14227_vm0 = vmmov %vm14226_vm2 }
 0x468   : > { %14190 = vst [vmem:[#allocation87_spill] sm:$0xff] %v12433_v55  ;;  %v4261_v17 = vpack.c.bf16 %v4242_v42, %v4241_v53  ;;  %v4243_v50 = vmul.f32 %v14191_v40, %v4019_v21  ;;  %v4244_v19 = vmul.f32 %v12287_v0, %v4020_v22  ;;  %v3990_v45 = vmul.f32 %v8113_v59, %v3958_v58  ;;  %v8323_v59 = vld [vmem:[%s8848_s9 + $0x38] sm:$0xff]  ;;  %v8328_v21 = vld [vmem:[%s8848_s9 + $0x60] sm:$0xff]  ;;  %v8329_v58 = vld [vmem:[%s8848_s9 + $0x70] sm:$0xff] }
 0x469   : > { %v3960_v41 = vsub.f32 2.0, %v3928_v16  ;;  %4528 = vadd.xlane.f32.xlu1 %v12433_v55  ;;  %v8121_v62 = vpop.eup %8120  ;;  %v3861_v56 = vadd.f32 %v12385_v5, %v3715_v57  ;;  %v4021_v25 = vmul.f32 %v3989_v7, %v12393_v2  ;;  %v3991_v38 = vmul.f32 %v8115_v44, %v3959_v52  ;;  %v8332_v40 = vld [vmem:[%s8848_s9 + $0x80] sm:$0xff]  ;;  %vm14229_vm8 = vmmov %vm14227_vm0 }
 0x46a   : > { %7497 = vmatprep.mubr.bf16.mxu1 %v4261_v17  ;;  %v3863_v9 = vadd.f32 %v12401_v32, %v3717_v61  ;;  %v4262_v8 = vpack.c.bf16 %v4244_v19, %v4243_v50  ;;  %v4022_v43 = vmul.f32 %v3990_v45, %v3859_v47  ;;  %v7479_v32 = vpop.f32.mrf.mxu1  ;;  %v8331_v47 = vld [vmem:[%s8848_s9 + $0x78] sm:$0xff]  ;;  %vm14230_vm1 = vmmov %vm14227_vm0 }
 0x46b   : > { %v3992_v13 = vmul.f32 %v8117_v33, %v3960_v41  ;;  %v4023_v48 = vmul.f32 %v3991_v38, %v3861_v56  ;;  %v4245_v0 = vmul.f32 %v8109_v28, %v4021_v25  ;;  %v12447_v23 = vadd.f32 %v8321_v49, %v7479_v32  ;;  %v8327_v33 = vld [vmem:[%s8848_s9 + $0x58] sm:$0xff]  ;;  %v8333_v41 = vld [vmem:[%s8848_s9 + $0x90] sm:$0xff]  ;;  %v8334_v56 = vld [vmem:[%s8848_s9 + $0x88] sm:$0xff] }
 0x46c   : > { %7498 = vmatmul.mubr.bf16.gmra.mxu1 %v4262_v8  ;;  %v4246_v31 = vmul.f32 %v8119_v15, %v4022_v43  ;;  %v4379_v4 = vpop.f32.mrf.mxu1  ;;  %v8335_v38 = vld [vmem:[%s8848_s9 + $0x98] sm:$0xff]  ;;  %v7724_v8 = vld [vmem:[#allocation11 + $0xa8] ss:$12 sps:$4 sm:$0xff]  }
 0x46d   : > { %v4024_v29 = vmul.f32 %v3992_v13, %v3863_v9  ;;  %v8123_v63 = vpop.eup %8122  ;;  %v4247_v5 = vmul.f32 %v8121_v62, %v4023_v48  ;;  %v12443_v26 = vadd.f32 %v8320_v30, %v4379_v4  ;;  %14193 = vst [vmem:[#allocation95_spill] sm:$0xff] %v12447_v23  ;;  %v7726_v43 = vld [vmem:[#allocation11 + $0xac] ss:$12 sps:$4 sm:$0xff]   ;;  %v7729_v13 = vld [vmem:[#allocation11 + $0x94] ss:$12 sps:$4 sm:$0xff]  }
 0x46e   : > { %v4263_v20 = vpack.c.bf16 %v4246_v31, %v4245_v0  ;;  %v7480_v1 = vpop.f32.mrf.mxu1  ;;  %5458 = vmatprep.subr.bf16.mxu0 %v7726_v43  ;;  %7505 = vmatprep.subr.bf16.mxu1 %v7726_v43  ;;  %v7727_v48 = vld [vmem:[#allocation11 + $0x90] ss:$12 sps:$4 sm:$0xff]   ;;  %v7733_v4 = vld [vmem:[#allocation11 + $0x60] ss:$12 sps:$4 sm:$0xff]   ;;  %v7736_v49 = vld [vmem:[#allocation11 + $0x48] ss:$12 sps:$4 sm:$0xff]  }
 0x46f   : > { %v4248_v57 = vmul.f32 %v8123_v63, %v4024_v29  ;;  %14192 = vst [vmem:[#allocation84_spill] sm:$0xff] %v12443_v26  ;;  %4530 = vadd.xlane.f32.xlu0 %v12443_v26  ;;  %v12455_v61 = vadd.f32 %v8323_v59, %v7480_v1  ;;  %5459 = vmatpush1.bf16.msra.mxu0 %v7724_v8  ;;  %v7732_v0 = vld [vmem:[#allocation11 + $0x7c] ss:$12 sps:$4 sm:$0xff]   ;;  %v7730_v63 = vld [vmem:[#allocation11 + $0x78] ss:$12 sps:$4 sm:$0xff]  }
 0x470   : > { %7501 = vmatprep.mubr.bf16.mxu1 %v4263_v20  ;;  %v4382_v28 = vpop.f32.mrf.mxu1  ;;  %7521 = vmatpush1.bf16.msra.mxu1 %v7724_v8  ;;  %v7738_v1 = vld [vmem:[#allocation11 + $0x4c] ss:$12 sps:$4 sm:$0xff]   ;;  %v7744_v59 = vld [vmem:[#allocation11 + $0x1c] ss:$12 sps:$4 sm:$0xff]  }
 0x471   : > { %v4264_v2 = vpack.c.bf16 %v4248_v57, %v4247_v5  ;;  %v12450_v27 = vadd.f32 %v8322_v54, %v4382_v28  ;;  %14195 = vst [vmem:[#allocation93_spill] sm:$0xff] %v12455_v61  ;;  %5460 = vmatprep.subr.bf16.mxu0 %v7729_v13  ;;  %7506 = vmatprep.subr.bf16.mxu1 %v7729_v13  ;;  %v7735_v5 = vld [vmem:[#allocation11 + $0x64] ss:$12 sps:$4 sm:$0xff]   ;;  %v7741_v54 = vld [vmem:[#allocation11 + $0x34] ss:$12 sps:$4 sm:$0xff]  }
 0x472   : > { %v7483_v24 = vpop.f32.mrf.mxu1 }
 0x473   : > { %14194 = vst [vmem:[#allocation92_spill] sm:$0xff] %v12450_v27  ;;  %4534 = vadd.xlane.f32.xlu0 %v12447_v23  ;;  %4532 = vadd.xlane.f32.xlu1 %v12450_v27  ;;  %v12463_v53 = vadd.f32 %v8325_v18, %v7483_v24  ;;  %v7739_v24 = vld [vmem:[#allocation11 + $0x30] ss:$12 sps:$4 sm:$0xff]   ;;  %v7750_v18 = vld [vmem:[#allocation11 + $0x16c] ss:$12 sps:$4 sm:$0xff]  }
 0x474   : > { %7502 = vmatmul.mubr.bf16.gmra.mxu1 %v4264_v2  ;;  %v4395_v12 = vpop.f32.mrf.mxu1  ;;  %5461 = vmatpush1.bf16.msra.mxu0 %v7727_v48 }
 0x475   : > { %v12458_v46 = vadd.f32 %v8324_v34, %v4395_v12  ;;  %14197 = vst [vmem:[#allocation28_spill] sm:$0xff] %v12463_v53  ;;  %7522 = vmatpush1.bf16.msra.mxu1 %v7727_v48  ;;  %5462 = vmatprep.subr.bf16.mxu0 %v7732_v0  ;;  %v7742_v12 = vld [vmem:[#allocation11 + $0x18] ss:$12 sps:$4 sm:$0xff]  }
 0x476   : > { %v7484_v6 = vpop.f32.mrf.mxu1  ;;  %7507 = vmatprep.subr.bf16.mxu1 %v7732_v0  ;;  %v7747_v34 = vld [vmem:[#allocation11 + $0x4] ss:$12 sps:$4 sm:$0xff]  }
 0x477   : > { %14196 = vst [vmem:[#allocation97_spill] sm:$0xff] %v12458_v46  ;;  %4536 = vadd.xlane.f32.xlu1 %v12455_v61  ;;  %4538 = vadd.xlane.f32.xlu0 %v12458_v46  ;;  %v12471_v60 = vadd.f32 %v8327_v33, %v7484_v6  ;;  %v7745_v6 = vld [vmem:[#allocation11] ss:$12 sps:$4 sm:$0xff]   ;;  %v8338_v48 = vld [vmem:[%s8848_s9 + $0xb0] sm:$0xff] }
 0x478   : > { %v4398_v44 = vpop.f32.mrf.mxu1  ;;  %5463 = vmatpush1.bf16.msra.mxu0 %v7730_v63 }
 0x479   : > { %v12466_v36 = vadd.f32 %v8326_v37, %v4398_v44  ;;  %14199 = vst [vmem:[#allocation26_spill] sm:$0xff] %v12471_v60  ;;  %7523 = vmatpush1.bf16.msra.mxu1 %v7730_v63  ;;  %5464 = vmatprep.subr.bf16.mxu0 %v7735_v5  ;;  %v7748_v44 = vld [vmem:[#allocation11 + $0x168] ss:$12 sps:$4 sm:$0xff]  }
 0x47a   : > { %7508 = vmatprep.subr.bf16.mxu1 %v7735_v5 }
 0x47b   : > { %14198 = vst [vmem:[#allocation25_spill] sm:$0xff] %v12466_v36  ;;  %4542 = vadd.xlane.f32.xlu0 %v12463_v53  ;;  %4540 = vadd.xlane.f32.xlu1 %v12466_v36 }
 0x47c   : > { %5465 = vmatpush1.bf16.msra.mxu0 %v7733_v4 }
 0x47d   : > { %7524 = vmatpush1.bf16.msra.mxu1 %v7733_v4  ;;  %5466 = vmatprep.subr.bf16.mxu0 %v7738_v1 }
 0x47e   : > { %7509 = vmatprep.subr.bf16.mxu1 %v7738_v1 }
 0x47f   : > { %4544 = vadd.xlane.f32.xlu1 %v12471_v60 }
 0x480   : > { %5467 = vmatpush1.bf16.msra.mxu0 %v7736_v49 }
 0x481   : > { %7525 = vmatpush1.bf16.msra.mxu1 %v7736_v49  ;;  %5468 = vmatprep.subr.bf16.mxu0 %v7741_v54  ;;  %v8340_v49 = vld [vmem:[%s8848_s9 + $0xc0] sm:$0xff] }
 0x482   : > { %v7487_v42 = vpop.f32.mrf.mxu1  ;;  %7510 = vmatprep.subr.bf16.mxu1 %v7741_v54 }
 0x483   : > { %v12479_v16 = vadd.f32 %v8329_v58, %v7487_v42 }
 0x484   : > { %v4411_v35 = vpop.f32.mrf.mxu1  ;;  %5469 = vmatpush1.bf16.msra.mxu0 %v7739_v24 }
 0x485   : > { %v12475_v14 = vadd.f32 %v8328_v21, %v4411_v35  ;;  %14201 = vst [vmem:[#allocation101_spill] sm:$0xff] %v12479_v16  ;;  %7526 = vmatpush1.bf16.msra.mxu1 %v7739_v24  ;;  %5470 = vmatprep.subr.bf16.mxu0 %v7744_v59 }
 0x486   : > { %v7488_v3 = vpop.f32.mrf.mxu1  ;;  %7511 = vmatprep.subr.bf16.mxu1 %v7744_v59  ;;  %v7751_v59 = vld [vmem:[#allocation11 + $0x150] ss:$12 sps:$4 sm:$0xff]  }
 0x487   : > { %14200 = vst [vmem:[#allocation107_spill] sm:$0xff] %v12475_v14  ;;  %4546 = vadd.xlane.f32.xlu0 %v12475_v14  ;;  %v12487_v17 = vadd.f32 %v8331_v47, %v7488_v3 }
 0x488   : > { %v4414_v22 = vpop.f32.mrf.mxu1  ;;  %5471 = vmatpush1.bf16.msra.mxu0 %v7742_v12 }
 0x489   : > { %v12482_v15 = vadd.f32 %v8330_v51, %v4414_v22  ;;  %14203 = vst [vmem:[#allocation103_spill] sm:$0xff] %v12487_v17  ;;  %7527 = vmatpush1.bf16.msra.mxu1 %v7742_v12  ;;  %5472 = vmatprep.subr.bf16.mxu0 %v7747_v34  ;;  %v8336_v51 = vld [vmem:[%s8848_s9 + $0xa0] sm:$0xff] }
 0x48a   : > { %7512 = vmatprep.subr.bf16.mxu1 %v7747_v34  ;;  %v7753_v12 = vld [vmem:[#allocation11 + $0x154] ss:$12 sps:$4 sm:$0xff]  }
 0x48b   : > { %14202 = vst [vmem:[#allocation102_spill] sm:$0xff] %v12482_v15  ;;  %4550 = vadd.xlane.f32.xlu0 %v12479_v16  ;;  %4548 = vadd.xlane.f32.xlu1 %v12482_v15 }
 0x48c   : > { %5473 = vmatpush1.bf16.msra.mxu0 %v7745_v6 }
 0x48d   : > { %7528 = vmatpush1.bf16.msra.mxu1 %v7745_v6  ;;  %5474 = vmatprep.subr.bf16.mxu0 %v7750_v18 }
 0x48e   : > { %v7491_v7 = vpop.f32.mrf.mxu1  ;;  %7513 = vmatprep.subr.bf16.mxu1 %v7750_v18 }
 0x48f   : > { %4552 = vadd.xlane.f32.xlu1 %v12487_v17  ;;  %v12495_v62 = vadd.f32 %v8333_v41, %v7491_v7  ;;  %v8337_v41 = vld [vmem:[%s8848_s9 + $0xa8] sm:$0xff] }
 0x490   : > { %v4427_v52 = vpop.f32.mrf.mxu1  ;;  %5475 = vmatpush2.bf16.msra.mxu0 %v7748_v44 }
 0x491   : > { %v12491_v50 = vadd.f32 %v8332_v40, %v4427_v52  ;;  %14205 = vst [vmem:[#allocation68_spill] sm:$0xff] %v12495_v62  ;;  %7529 = vmatpush2.bf16.msra.mxu1 %v7748_v44  ;;  %5476 = vmatprep.subr.bf16.mxu0 %v7753_v12 }
 0x492   : > { %v7492_v19 = vpop.f32.mrf.mxu1  ;;  %7514 = vmatprep.subr.bf16.mxu1 %v7753_v12 }
 0x493   : > { %14204 = vst [vmem:[#allocation66_spill] sm:$0xff] %v12491_v50  ;;  %4554 = vadd.xlane.f32.xlu0 %v12491_v50  ;;  %v12503_v9 = vadd.f32 %v8335_v38, %v7492_v19 }
 0x494   : > { %v4430_v45 = vpop.f32.mrf.mxu1  ;;  %5477 = vmatpush2.bf16.msra.mxu0 %v7751_v59 }
 0x495   : > { %v12498_v25 = vadd.f32 %v8334_v56, %v4430_v45  ;;  %14207 = vst [vmem:[#allocation104_spill] sm:$0xff] %v12503_v9  ;;  %7530 = vmatpush2.bf16.msra.mxu1 %v7751_v59 }
 0x497   : > { %14206 = vst [vmem:[#allocation61_spill] sm:$0xff] %v12498_v25  ;;  %4558 = vadd.xlane.f32.xlu0 %v12495_v62  ;;  %4556 = vadd.xlane.f32.xlu1 %v12498_v25 }
 0x49b   : > { %4560 = vadd.xlane.f32.xlu1 %v12503_v9 }
 0x4e9   : > { %v4523_v31 = vpop.xlane.xlu0 %4522 }
 0x4ea   : > { %v4586_v29 = vmul.f32 0.0078125, %v4523_v31 }
 0x4ec   : > { %v12507_v20 = vsub.f32 %v12404_v10, %v4586_v29 }
 0x4ed   : > { %v4527_v37 = vpop.xlane.xlu0 %4526 }
 0x4ee   : > { %v4525_v57 = vpop.xlane.xlu1 %4524  ;;  %v4650_v32 = vmul.f32 %v12507_v20, %v12507_v20  ;;  %v4588_v33 = vmul.f32 0.0078125, %v4527_v37  ;;  %v8341_v37 = vld [vmem:[%s8848_s9 + $0xc8] sm:$0xff] }
 0x4ef   : > { %v4587_v2 = vmul.f32 0.0078125, %v4525_v57 }
 0x4f0   : > { %4682 = vadd.xlane.f32.xlu0 %v4650_v32  ;;  %v12517_v22 = vsub.f32 %v12415_v11, %v4588_v33  ;;  %v8339_v32 = vld [vmem:[%s8848_s9 + $0xb8] sm:$0xff] }
 0x4f1   : > { %v12512_v30 = vsub.f32 %v12418_v39, %v4587_v2 }
 0x4f2   : > { %v4529_v35 = vpop.xlane.xlu1 %4528  ;;  %v4652_v38 = vmul.f32 %v12517_v22, %v12517_v22 }
 0x4f3   : > { %v4651_v28 = vmul.f32 %v12512_v30, %v12512_v30  ;;  %v4589_v58 = vmul.f32 0.0078125, %v4529_v35 }
 0x4f5   : > { %4684 = vadd.xlane.f32.xlu1 %v4651_v28  ;;  %v12524_v45 = vsub.f32 %v12433_v55, %v4589_v58 }
 0x4f7   : > { %v4653_v31 = vmul.f32 %v12524_v45, %v12524_v45 }
 0x4f8   : > { %v4531_v3 = vpop.xlane.xlu0 %4530 }
 0x4f9   : > { %v4590_v52 = vmul.f32 0.0078125, %v4531_v3 }
 0x4fb   : > { %v12533_v8 = vsub.f32 %v12443_v26, %v4590_v52 }
 0x4fc   : > { %v4533_v19 = vpop.xlane.xlu1 %4532  ;;  %v4535_v63 = vpop.xlane.xlu0 %4534 }
 0x4fd   : > { %v4591_v43 = vmul.f32 0.0078125, %v4533_v19  ;;  %v4654_v57 = vmul.f32 %v12533_v8, %v12533_v8  ;;  %v4592_v1 = vmul.f32 0.0078125, %v4535_v63  ;;  %v8342_v19 = vld [vmem:[%s8848_s9 + $0xd0] sm:$0xff] }
 0x4ff   : > { %v12542_v5 = vsub.f32 %v12450_v27, %v4591_v43  ;;  %v12556_v44 = vsub.f32 %v12447_v23, %v4592_v1  ;;  %v8344_v1 = vld [vmem:[%s8848_s9 + $0xe0] sm:$0xff] }
 0x500   : > { %v4537_v28 = vpop.xlane.xlu1 %4536  ;;  %v4539_v6 = vpop.xlane.xlu0 %4538 }
 0x501   : > { %v4655_v24 = vmul.f32 %v12542_v5, %v12542_v5  ;;  %v4593_v18 = vmul.f32 0.0078125, %v4537_v28  ;;  %v4656_v58 = vmul.f32 %v12556_v44, %v12556_v44 }
 0x503   : > { %v12563_v3 = vsub.f32 %v12455_v61, %v4593_v18 }
 0x504   : > { %v4541_v35 = vpop.xlane.xlu1 %4540  ;;  %v4543_v52 = vpop.xlane.xlu0 %4542 }
 0x510   : > { %v4547_v63 = vpop.xlane.xlu0 %4546 }
 0x523   : > { %v7495_v42 = vpop.f32.mrf.mxu1 }
 0x524   : > { %v12536_v0 = vadd.f32 %v8338_v48, %v7495_v42  ;;  %v4594_v42 = vmul.f32 0.0078125, %v4539_v6  ;;  %v4551_v6 = vpop.xlane.xlu0 %4550 }
 0x525   : > { %v4443_v21 = vpop.f32.mrf.mxu1 }
 0x526   : > { %v12520_v47 = vadd.f32 %v8336_v51, %v4443_v21  ;;  %14210 = vst [vmem:[#allocation65_spill] sm:$0xff] %v12536_v0  ;;  %v12569_v51 = vsub.f32 %v12458_v46, %v4594_v42  ;;  %v7754_v42 = vld [vmem:[#allocation11 + $0x138] ss:$12 sps:$4 sm:$0xff]  }
 0x527   : > { %v7496_v7 = vpop.f32.mrf.mxu1 }
 0x528   : > { %14208 = vst [vmem:[#allocation32_spill] sm:$0xff] %v12520_v47  ;;  %4562 = vadd.xlane.f32.xlu0 %v12520_v47  ;;  %v12547_v4 = vadd.f32 %v8339_v32, %v7496_v7  ;;  %v4595_v7 = vmul.f32 0.0078125, %v4541_v35  ;;  %v4658_v48 = vmul.f32 %v12569_v51, %v12569_v51  ;;  %v7756_v35 = vld [vmem:[#allocation11 + $0x13c] ss:$12 sps:$4 sm:$0xff]  }
 0x529   : > { %v4446_v40 = vpop.f32.mrf.mxu1  ;;  %5478 = vmatprep.subr.bf16.mxu0 %v7756_v35  ;;  %7515 = vmatprep.subr.bf16.mxu1 %v7756_v35  ;;  %v8347_v35 = vld [vmem:[%s8848_s9 + $0xf8] sm:$0xff] }
 0x52a   : > { %v12527_v56 = vadd.f32 %v8337_v41, %v4446_v40  ;;  %14211 = vst [vmem:[#allocation105_spill] sm:$0xff] %v12547_v4  ;;  %v12578_v43 = vsub.f32 %v12466_v36, %v4595_v7  ;;  %5479 = vmatpush2.bf16.msra.mxu0 %v7754_v42  ;;  %7531 = vmatpush2.bf16.msra.mxu1 %v7754_v42 }
 0x52c   : > { %14209 = vst [vmem:[#allocation58_spill] sm:$0xff] %v12527_v56  ;;  %4686 = vadd.xlane.f32.xlu0 %v4652_v38  ;;  %4564 = vadd.xlane.f32.xlu1 %v12527_v56  ;;  %v7499_v13 = vpop.f32.mrf.mxu1  ;;  %v4657_v38 = vmul.f32 %v12563_v3, %v12563_v3 }
 0x52d   : > { %v12572_v41 = vadd.f32 %v8342_v19, %v7499_v13  ;;  %v4596_v13 = vmul.f32 0.0078125, %v4543_v52  ;;  %v4600_v52 = vmul.f32 0.0078125, %v4551_v6  ;;  %v4555_v19 = vpop.xlane.xlu0 %4554 }
 0x52e   : > { %v4459_v29 = vpop.f32.mrf.mxu1  ;;  %v4602_v6 = vmul.f32 0.0078125, %v4555_v19 }
 0x52f   : > { %v12551_v54 = vadd.f32 %v8340_v49, %v4459_v29  ;;  %14214 = vst [vmem:[#allocation31_spill] sm:$0xff] %v12572_v41  ;;  %v4659_v49 = vmul.f32 %v12578_v43, %v12578_v43  ;;  %v12592_v12 = vsub.f32 %v12463_v53, %v4596_v13 }
 0x530   : > { %4566 = vadd.xlane.f32.xlu0 %v12536_v0  ;;  %4688 = vadd.xlane.f32.xlu1 %v4653_v31  ;;  %v7500_v2 = vpop.f32.mrf.mxu1  ;;  %v4545_v31 = vpop.xlane.xlu1 %4544 }
 0x531   : > { %14212 = vst [vmem:[#allocation67_spill] sm:$0xff] %v12551_v54  ;;  %v4660_v7 = vmul.f32 %v12592_v12, %v12592_v12  ;;  %v4559_v42 = vpop.xlane.xlu0 %4558 }
 0x532   : > { %v4462_v34 = vpop.f32.mrf.mxu1 }
 0x533   : > { %v12560_v33 = vadd.f32 %v8341_v37, %v4462_v34  ;;  %v4597_v34 = vmul.f32 0.0078125, %v4545_v31  ;;  %v4598_v37 = vmul.f32 0.0078125, %v4547_v63  ;;  %v7757_v31 = vld [vmem:[#allocation11 + $0x120] ss:$12 sps:$4 sm:$0xff]   ;;  %v7759_v63 = vld [vmem:[#allocation11 + $0x124] ss:$12 sps:$4 sm:$0xff]  }
 0x534   : > { %4690 = vadd.xlane.f32.xlu0 %v4654_v57  ;;  %4568 = vadd.xlane.f32.xlu1 %v12547_v4  ;;  %v7503_v21 = vpop.f32.mrf.mxu1  ;;  %v8343_v57 = vld [vmem:[%s8848_s9 + $0xd8] sm:$0xff]  ;;  %v4549_v59 = vpop.xlane.xlu1 %4548 }
 0x535   : > { %14213 = vst [vmem:[#allocation60_spill] sm:$0xff] %v12560_v33  ;;  %v12583_v32 = vadd.f32 %v8343_v57, %v7500_v2  ;;  %v8345_v2 = vld [vmem:[%s8848_s9 + $0xe8] sm:$0xff]  ;;  %v8346_v57 = vld [vmem:[%s8848_s9 + $0xf0] sm:$0xff]  ;;  %5480 = vmatprep.subr.bf16.mxu0 %v7759_v63  ;;  %7516 = vmatprep.subr.bf16.mxu1 %v7759_v63 }
 0x536   : > { %v4475_v40 = vpop.f32.mrf.mxu1  ;;  %v12608_v13 = vadd.f32 %v8346_v57, %v7503_v21  ;;  %5481 = vmatpush2.bf16.msra.mxu0 %v7757_v31  ;;  %7532 = vmatpush2.bf16.msra.mxu1 %v7757_v31  ;;  %v7763_v63 = vld [vmem:[#allocation11 + $0xf0] ss:$12 sps:$4 sm:$0xff]   ;;  %v7765_v57 = vld [vmem:[#allocation11 + $0xf4] ss:$12 sps:$4 sm:$0xff]  }
 0x537   : > { %14215 = vst [vmem:[#allocation29_spill] sm:$0xff] %v12583_v32  ;;  %v12587_v28 = vadd.f32 %v8344_v1, %v4475_v40 }
 0x538   : > { %4692 = vadd.xlane.f32.xlu1 %v4655_v24  ;;  %4570 = vadd.xlane.f32.xlu0 %v12551_v54  ;;  %v7504_v29 = vpop.f32.mrf.mxu1  ;;  %v4553_v40 = vpop.xlane.xlu1 %4552  ;;  %14218 = vst [vmem:[#allocation38_spill] sm:$0xff] %v12608_v13 }
 0x539   : > { %14216 = vst [vmem:[#allocation106_spill] sm:$0xff] %v12587_v28 }
 0x53a   : > { %v4478_v24 = vpop.f32.mrf.mxu1 }
 0x53b   : > { %v12596_v18 = vadd.f32 %v8345_v2, %v4478_v24  ;;  %v4601_v24 = vmul.f32 0.0078125, %v4553_v40  ;;  %v7760_v2 = vld [vmem:[#allocation11 + $0x108] ss:$12 sps:$4 sm:$0xff]  }
 0x53c   : > { %4694 = vadd.xlane.f32.xlu0 %v4656_v58  ;;  %4572 = vadd.xlane.f32.xlu1 %v12560_v33  ;;  %v12599_v58 = vsub.f32 %v12471_v60, %v4597_v34  ;;  %v4557_v34 = vpop.xlane.xlu1 %4556 }
 0x53d   : > { %14217 = vst [vmem:[#allocation35_spill] sm:$0xff] %v12596_v18  ;;  %v4603_v31 = vmul.f32 0.0078125, %v4557_v34 }
 0x53e   : > { %v4661_v1 = vmul.f32 %v12599_v58, %v12599_v58 }
 0x540   : > { %4574 = vadd.xlane.f32.xlu0 %v12572_v41  ;;  %4696 = vadd.xlane.f32.xlu1 %v4657_v38  ;;  %v12605_v38 = vsub.f32 %v12475_v14, %v4598_v37  ;;  %v7762_v37 = vld [vmem:[#allocation11 + $0x10c] ss:$12 sps:$4 sm:$0xff]  }
 0x541   : > { %5482 = vmatprep.subr.bf16.mxu0 %v7762_v37  ;;  %7517 = vmatprep.subr.bf16.mxu1 %v7762_v37  ;;  %v7766_v37 = vld [vmem:[#allocation11 + $0xd8] ss:$12 sps:$4 sm:$0xff]  }
 0x542   : > { %v4662_v21 = vmul.f32 %v12605_v38, %v12605_v38  ;;  %5483 = vmatpush2.bf16.msra.mxu0 %v7760_v2  ;;  %7533 = vmatpush2.bf16.msra.mxu1 %v7760_v2 }
 0x543   : > { %5484 = vmatprep.subr.bf16.mxu0 %v7765_v57  ;;  %7518 = vmatprep.subr.bf16.mxu1 %v7765_v57 }
 0x544   : > { %4698 = vadd.xlane.f32.xlu0 %v4658_v48  ;;  %4576 = vadd.xlane.f32.xlu1 %v12583_v32  ;;  %v4599_v48 = vmul.f32 0.0078125, %v4549_v59 }
 0x546   : > { %v12617_v59 = vsub.f32 %v12482_v15, %v4599_v48  ;;  %v12633_v48 = vsub.f32 %v12491_v50, %v4602_v6  ;;  %5485 = vmatpush2.bf16.msra.mxu0 %v7763_v63  ;;  %7534 = vmatpush2.bf16.msra.mxu1 %v7763_v63  ;;  %v12641_v6 = vsub.f32 %v12498_v25, %v4603_v31  ;;  %v7771_v31 = vld [vmem:[#allocation11 + $0xc4] ss:$12 sps:$4 sm:$0xff]  }
 0x548   : > { %4700 = vadd.xlane.f32.xlu1 %v4659_v49  ;;  %4578 = vadd.xlane.f32.xlu0 %v12587_v28  ;;  %v12613_v49 = vsub.f32 %v12479_v16, %v4600_v52  ;;  %v12625_v52 = vsub.f32 %v12487_v17, %v4601_v24  ;;  %v4663_v19 = vmul.f32 %v12617_v59, %v12617_v59 }
 0x549   : > { %v4666_v34 = vmul.f32 %v12633_v48, %v12633_v48 }
 0x54a   : > { %v4664_v40 = vmul.f32 %v12613_v49, %v12613_v49  ;;  %v4665_v24 = vmul.f32 %v12625_v52, %v12625_v52 }
 0x54c   : > { %4702 = vadd.xlane.f32.xlu0 %v4660_v7  ;;  %4580 = vadd.xlane.f32.xlu1 %v12596_v18  ;;  %v12622_v7 = vadd.f32 %v8347_v35, %v7504_v29  ;;  %v4604_v29 = vmul.f32 0.0078125, %v4559_v42  ;;  %v7768_v42 = vld [vmem:[#allocation11 + $0xdc] ss:$12 sps:$4 sm:$0xff]  }
 0x54d   : > { %5486 = vmatprep.subr.bf16.mxu0 %v7768_v42  ;;  %7519 = vmatprep.subr.bf16.mxu1 %v7768_v42  ;;  %v8348_v42 = vld [vmem:[#allocation5] sm:$0xf] }
 0x54e   : > { %14219 = vst [vmem:[#allocation69_spill] sm:$0xff] %v12622_v7  ;;  %5487 = vmatpush2.bf16.msra.mxu0 %v7766_v37  ;;  %7535 = vmatpush2.bf16.msra.mxu1 %v7766_v37 }
 0x54f   : > { %5488 = vmatprep.subr.bf16.mxu0 %v7771_v31  ;;  %7520 = vmatprep.subr.bf16.mxu1 %v7771_v31 }
 0x550   : > { %4582 = vadd.xlane.f32.xlu0 %v12608_v13  ;;  %4704 = vadd.xlane.f32.xlu1 %v4661_v1  ;;  %v4561_v1 = vpop.xlane.xlu1 %4560 }
 0x551   : > { %v4605_v2 = vmul.f32 0.0078125, %v4561_v1 }
 0x553   : > { %v12646_v35 = vsub.f32 %v12503_v9, %v4605_v2  ;;  %v14220_v9 = vld [vmem:[#allocation62_spill] sm:$0xff] }
 0x554   : > { %4706 = vadd.xlane.f32.xlu0 %v4662_v21  ;;  %4584 = vadd.xlane.f32.xlu1 %v12622_v7  ;;  %v12638_v21 = vsub.f32 %v12495_v62, %v4604_v29  ;;  %v7769_v29 = vld [vmem:[#allocation11 + $0xc0] ss:$12 sps:$4 sm:$0xff]   ;;  %v12655_v62 = vrot.slane %v8348_v42, %v14220_v9 }
 0x555   : > { %5489 = vmatpush2.bf16.msra.mxu0 %v7769_v29  ;;  %7536 = vmatpush2.bf16.msra.mxu1 %v7769_v29  ;;  %v4669_v63 = vmul.f32 %v12646_v35, %v12646_v35 }
 0x558   : > { %4710 = vadd.xlane.f32.xlu0 %v4664_v40  ;;  %4708 = vadd.xlane.f32.xlu1 %v4663_v19  ;;  %v4668_v40 = vmul.f32 %v12638_v21, %v12638_v21  ;;  %v4667_v19 = vmul.f32 %v12641_v6, %v12641_v6 }
 0x55c   : > { %4712 = vadd.xlane.f32.xlu1 %v4665_v24  ;;  %4714 = vadd.xlane.f32.xlu0 %v4666_v34 }
 0x560   : > { %4718 = vadd.xlane.f32.xlu0 %v4668_v40  ;;  %4716 = vadd.xlane.f32.xlu1 %v4667_v19  ;;  %v14221_v19 = vld [vmem:[#allocation56_spill] sm:$0xff] }
 0x561   : > { %v12659_v29 = vrot.slane %v8348_v42, %v14221_v19 }
 0x564   : > { %4720 = vadd.xlane.f32.xlu1 %v4669_v63 }
 0x579   : > { %v4683_v57 = vpop.xlane.xlu0 %4682 }
 0x57a   : > { %v4746_v1 = vmul.f32 0.0078125, %v4683_v57 }
 0x57c   : > { %v4778_v24 = vadd.f32 1e-05, %v4746_v1 }
 0x57e   : > { %v4685_v34 = vpop.xlane.xlu1 %4684  ;;  %8124 = vrsqrt.f32 %v4778_v24 }
 0x57f   : > { %v4747_v2 = vmul.f32 0.0078125, %v4685_v34 }
 0x581   : > { %v4779_v37 = vadd.f32 1e-05, %v4747_v2 }
 0x583   : > { %8126 = vrsqrt.f32 %v4779_v37 }
 0x58b   : > { %v8125_v31 = vpop.eup %8124 }
 0x58c   : > { %v4842_v40 = vmul.f32 %v8125_v31, %v12507_v20 }
 0x58e   : > { %v4878_v63 = vmul.f32 %v12655_v62, %v4842_v40 }
 0x590   : > { %v8127_v25 = vpop.eup %8126  ;;  %v4914_v1 = vadd.f32 %v12659_v29, %v4878_v63 }
 0x591   : > { %v4843_v57 = vmul.f32 %v8127_v25, %v12512_v30 }
 0x592   : > { %v4978_v9 = vrot.slane %v4914_v1, 7 }
 0x593   : > { %v4879_v24 = vmul.f32 %v12655_v62, %v4843_v57 }
 0x594   : > { %v5073_v37 = vsel %vm14223_vm7, 0.0, %v4978_v9  ;;  %vm14233_vm7 = vmmov %vm14227_vm0 }
 0x595   : > { %v12666_v34 = vadd.f32 %v12659_v29, %v4879_v24 }
 0x597   : > { %v13494_v2 = vrot.slane %v12666_v34, 7  ;;  %v12676_v25 = vpack.c.bf16 %v12666_v34, %v4914_v1 }
 0x599   : > { %v4980_v20 = vsel %vm14222_vm4, %v4978_v9, %v13494_v2  ;;  %vm14232_vm4 = vmmov %vm14227_vm0 }
 0x59a   : > { %v12673_v42 = vpack.c.bf16 %v4980_v20, %v5073_v37 }
 0x59c   : > { %6948 = vmatprep.mubr.msk.bf16.mxu0 %vm9171_vm3, %v12673_v42 }
 0x59d   : > { %5491 = vmatmul.mubr.bf16.vlgmr.msra.gmra.mxu0 %v12676_v25 }
 0x5b1   : > { %v4563_v31 = vpop.xlane.xlu0 %4562 }
 0x5b2   : > { %v4606_v40 = vmul.f32 0.0078125, %v4563_v31 }
 0x5b4   : > { %v12683_v19 = vsub.f32 %v12520_v47, %v4606_v40 }
 0x5b5   : > { %v4687_v63 = vpop.xlane.xlu0 %4686  ;;  %v4565_v57 = vpop.xlane.xlu1 %4564 }
 0x5b6   : > { %v4748_v24 = vmul.f32 0.0078125, %v4687_v63  ;;  %v4607_v9 = vmul.f32 0.0078125, %v4565_v57  ;;  %v4670_v20 = vmul.f32 %v12683_v19, %v12683_v19 }
 0x5b8   : > { %v4780_v1 = vadd.f32 1e-05, %v4748_v24  ;;  %v12688_v37 = vsub.f32 %v12527_v56, %v4607_v9  ;;  %4722 = vadd.xlane.f32.xlu0 %v4670_v20 }
 0x5b9   : > { %v4567_v2 = vpop.xlane.xlu0 %4566  ;;  %v4689_v50 = vpop.xlane.xlu1 %4688 }
 0x5ba   : > { %8128 = vrsqrt.f32 %v4780_v1  ;;  %v4608_v17 = vmul.f32 0.0078125, %v4567_v2  ;;  %v4749_v31 = vmul.f32 0.0078125, %v4689_v50  ;;  %v4671_v40 = vmul.f32 %v12688_v37, %v12688_v37 }
 0x5bc   : > { %v12693_v47 = vsub.f32 %v12536_v0, %v4608_v17  ;;  %v4781_v63 = vadd.f32 1e-05, %v4749_v31  ;;  %4724 = vadd.xlane.f32.xlu1 %v4671_v40 }
 0x5bd   : > { %v4691_v57 = vpop.xlane.xlu0 %4690  ;;  %v4569_v16 = vpop.xlane.xlu1 %4568 }
 0x5be   : > { %8130 = vrsqrt.f32 %v4781_v63  ;;  %v4750_v24 = vmul.f32 0.0078125, %v4691_v57  ;;  %v4609_v9 = vmul.f32 0.0078125, %v4569_v16  ;;  %v4672_v20 = vmul.f32 %v12693_v47, %v12693_v47 }
 0x5c0   : > { %v4782_v56 = vadd.f32 1e-05, %v4750_v24  ;;  %v12698_v2 = vsub.f32 %v12547_v4, %v4609_v9  ;;  %4726 = vadd.xlane.f32.xlu0 %v4672_v20 }
 0x5c1   : > { %v4693_v50 = vpop.xlane.xlu1 %4692  ;;  %v4571_v1 = vpop.xlane.xlu0 %4570 }
 0x5c2   : > { %8132 = vrsqrt.f32 %v4782_v56  ;;  %v4751_v17 = vmul.f32 0.0078125, %v4693_v50  ;;  %v4610_v0 = vmul.f32 0.0078125, %v4571_v1  ;;  %v4673_v31 = vmul.f32 %v12698_v2, %v12698_v2 }
 0x5c4   : > { %v4783_v40 = vadd.f32 1e-05, %v4751_v17  ;;  %v12703_v63 = vsub.f32 %v12551_v54, %v4610_v0  ;;  %4728 = vadd.xlane.f32.xlu1 %v4673_v31 }
 0x5c5   : > { %v4695_v16 = vpop.xlane.xlu0 %4694  ;;  %v4573_v57 = vpop.xlane.xlu1 %4572 }
 0x5c6   : > { %8134 = vrsqrt.f32 %v4783_v40  ;;  %v4752_v24 = vmul.f32 0.0078125, %v4695_v16  ;;  %v4611_v9 = vmul.f32 0.0078125, %v4573_v57  ;;  %v4674_v20 = vmul.f32 %v12703_v63, %v12703_v63 }
 0x5c7   : > { %v8129_v4 = vpop.eup %8128 }
 0x5c8   : > { %v4844_v56 = vmul.f32 %v8129_v4, %v12517_v22  ;;  %v4784_v50 = vadd.f32 1e-05, %v4752_v24  ;;  %v12709_v1 = vsub.f32 %v12560_v33, %v4611_v9  ;;  %4730 = vadd.xlane.f32.xlu0 %v4674_v20 }
 0x5c9   : > { %v4575_v17 = vpop.xlane.xlu0 %4574  ;;  %v4697_v0 = vpop.xlane.xlu1 %4696 }
 0x5ca   : > { %8136 = vrsqrt.f32 %v4784_v50  ;;  %v4612_v31 = vmul.f32 0.0078125, %v4575_v17  ;;  %v4753_v54 = vmul.f32 0.0078125, %v4697_v0  ;;  %v4675_v40 = vmul.f32 %v12709_v1, %v12709_v1 }
 0x5cb   : > { %v8131_v16 = vpop.eup %8130  ;;  %v4880_v57 = vmul.f32 %v12655_v62, %v4844_v56 }
 0x5cc   : > { %v4845_v15 = vmul.f32 %v8131_v16, %v12524_v45  ;;  %v12716_v22 = vsub.f32 %v12572_v41, %v4612_v31  ;;  %v4785_v4 = vadd.f32 1e-05, %v4753_v54  ;;  %4732 = vadd.xlane.f32.xlu1 %v4675_v40 }
 0x5cd   : > { %v4699_v24 = vpop.xlane.xlu0 %4698  ;;  %v4577_v9 = vpop.xlane.xlu1 %4576  ;;  %v4916_v20 = vadd.f32 %v12659_v29, %v4880_v57 }
 0x5ce   : > { %8138 = vrsqrt.f32 %v4785_v4  ;;  %v4754_v50 = vmul.f32 0.0078125, %v4699_v24  ;;  %v4613_v17 = vmul.f32 0.0078125, %v4577_v9  ;;  %v4676_v0 = vmul.f32 %v12716_v22, %v12716_v22 }
 0x5cf   : > { %v8133_v33 = vpop.eup %8132  ;;  %v4881_v56 = vmul.f32 %v12655_v62, %v4845_v15  ;;  %v4981_v4 = vrot.slane %v4916_v20, 7 }
 0x5d0   : > { %v4846_v45 = vmul.f32 %v8133_v33, %v12533_v8  ;;  %v4786_v16 = vadd.f32 1e-05, %v4754_v50  ;;  %v12724_v31 = vsub.f32 %v12583_v32, %v4613_v17  ;;  %4734 = vadd.xlane.f32.xlu0 %v4676_v0 }
 0x5d1   : > { %v4701_v54 = vpop.xlane.xlu1 %4700  ;;  %v4579_v40 = vpop.xlane.xlu0 %4578  ;;  %v4917_v57 = vadd.f32 %v12659_v29, %v4881_v56 }
 0x5d2   : > { %8140 = vrsqrt.f32 %v4786_v16  ;;  %v4755_v24 = vmul.f32 0.0078125, %v4701_v54  ;;  %v4614_v9 = vmul.f32 0.0078125, %v4579_v40  ;;  %v4677_v41 = vmul.f32 %v12724_v31, %v12724_v31 }
 0x5d3   : > { %v8135_v14 = vpop.eup %8134  ;;  %v4983_v15 = vrot.slane %v4917_v57, 7  ;;  %v4882_v8 = vmul.f32 %v12655_v62, %v4846_v45  ;;  %v14225_v16 = vrot.slane %v12666_v34, 7 }
 0x5d4   : > { %v4847_v33 = vmul.f32 %v8135_v14, %v12542_v5  ;;  %v4787_v50 = vadd.f32 1e-05, %v4755_v24  ;;  %v12732_v17 = vsub.f32 %v12587_v28, %v4614_v9  ;;  %4736 = vadd.xlane.f32.xlu1 %v4677_v41  ;;  %v12741_v5 = vpack.c.bf16 %v4917_v57, %v4916_v20 }
 0x5d5   : > { %v4703_v0 = vpop.xlane.xlu0 %4702  ;;  %v4581_v56 = vpop.xlane.xlu1 %4580  ;;  %v4982_v54 = vsel %vm14226_vm2, %v14225_v16, %v4981_v4  ;;  %v4984_v40 = vsel %vm14227_vm0, %v4981_v4, %v4983_v15  ;;  %v4918_v32 = vadd.f32 %v12659_v29, %v4882_v8  ;;  %vm14235_vm2 = vmmov %vm14227_vm0 }
 0x5d6   : > { %8142 = vrsqrt.f32 %v4787_v50  ;;  %v4756_v60 = vmul.f32 0.0078125, %v4703_v0  ;;  %v4615_v45 = vmul.f32 0.0078125, %v4581_v56  ;;  %v12739_v53 = vpack.c.bf16 %v4984_v40, %v4982_v54 }
 0x5d7   : > { %v8137_v14 = vpop.eup %8136  ;;  %v4678_v41 = vmul.f32 %v12732_v17, %v12732_v17  ;;  %v4883_v24 = vmul.f32 %v12655_v62, %v4847_v33  ;;  %v4985_v0 = vrot.slane %v4918_v32, 7 }
 0x5d8   : > { %v4848_v34 = vmul.f32 %v8137_v14, %v12556_v44  ;;  %v4788_v9 = vadd.f32 1e-05, %v4756_v60  ;;  %v12748_v4 = vsub.f32 %v12596_v18, %v4615_v45  ;;  %6951 = vmatprep.mubr.msk.bf16.mxu0 %vm9213_vm6, %v12739_v53 }
 0x5d9   : > { %5501 = vmatmul.mubr.bf16.gmra.mxu0 %v12741_v5  ;;  %4738 = vadd.xlane.f32.xlu0 %v4678_v41  ;;  %v4583_v20 = vpop.xlane.xlu0 %4582  ;;  %v4705_v57 = vpop.xlane.xlu1 %4704  ;;  %v4919_v50 = vadd.f32 %v12659_v29, %v4883_v24 }
 0x5da   : > { %8144 = vrsqrt.f32 %v4788_v9  ;;  %v4616_v33 = vmul.f32 0.0078125, %v4583_v20  ;;  %v4757_v56 = vmul.f32 0.0078125, %v4705_v57  ;;  %v4679_v60 = vmul.f32 %v12748_v4, %v12748_v4 }
 0x5db   : > { %v8139_v44 = vpop.eup %8138  ;;  %v4987_v16 = vrot.slane %v4919_v50, 7  ;;  %v4884_v54 = vmul.f32 %v12655_v62, %v4848_v34  ;;  %v4986_v9 = vsel %vm14229_vm8, %v4983_v15, %v4985_v0  ;;  %vm14237_vm8 = vmmov %vm14227_vm0 }
 0x5dc   : > { %v4849_v40 = vmul.f32 %v8139_v44, %v12563_v3  ;;  %v12760_v45 = vsub.f32 %v12608_v13, %v4616_v33  ;;  %v4789_v14 = vadd.f32 1e-05, %v4757_v56  ;;  %4740 = vadd.xlane.f32.xlu1 %v4679_v60  ;;  %v12767_v3 = vpack.c.bf16 %v4919_v50, %v4918_v32 }
 0x5dd   : > { %v4707_v41 = vpop.xlane.xlu0 %4706  ;;  %v4585_v24 = vpop.xlane.xlu1 %4584  ;;  %v4988_v20 = vsel %vm14230_vm1, %v4985_v0, %v4987_v16  ;;  %v4920_v57 = vadd.f32 %v12659_v29, %v4884_v54  ;;  %vm14238_vm1 = vmmov %vm14227_vm0 }
 0x5de   : > { %8146 = vrsqrt.f32 %v4789_v14  ;;  %v4758_v18 = vmul.f32 0.0078125, %v4707_v41  ;;  %v4617_v28 = vmul.f32 0.0078125, %v4585_v24  ;;  %v12765_v36 = vpack.c.bf16 %v4988_v20, %v4986_v9 }
 0x5df   : > { %v8141_v34 = vpop.eup %8140  ;;  %v4680_v33 = vmul.f32 %v12760_v45, %v12760_v45  ;;  %v4885_v56 = vmul.f32 %v12655_v62, %v4849_v40  ;;  %v4989_v14 = vrot.slane %v4920_v57, 7 }
 0x5e0   : > { %v4850_v60 = vmul.f32 %v8141_v34, %v12569_v51  ;;  %v4790_v15 = vadd.f32 1e-05, %v4758_v18  ;;  %v12774_v0 = vsub.f32 %v12622_v7, %v4617_v28  ;;  %6954 = vmatprep.mubr.msk.bf16.mxu0 %vm9255_vm9, %v12765_v36 }
 0x5e1   : > { %5511 = vmatmul.mubr.bf16.gmra.mxu0 %v12767_v3  ;;  %4742 = vadd.xlane.f32.xlu0 %v4680_v33  ;;  %v4711_v32 = vpop.xlane.xlu0 %4710  ;;  %v4709_v50 = vpop.xlane.xlu1 %4708  ;;  %v4921_v54 = vadd.f32 %v12659_v29, %v4885_v56  ;;  %v4990_v7 = vsel %vm14232_vm4, %v4987_v16, %v4989_v14  ;;  %vm14240_vm4 = vmmov %vm14227_vm0 }
 0x5e2   : > { %8148 = vrsqrt.f32 %v4790_v15  ;;  %v4760_v40 = vmul.f32 0.0078125, %v4711_v32  ;;  %v4759_v41 = vmul.f32 0.0078125, %v4709_v50  ;;  %v4681_v51 = vmul.f32 %v12774_v0, %v12774_v0 }
 0x5e3   : > { %v8143_v28 = vpop.eup %8142  ;;  %v4991_v18 = vrot.slane %v4921_v54, 7  ;;  %v4886_v24 = vmul.f32 %v12655_v62, %v4850_v60  ;;  %v12790_v60 = vpack.c.bf16 %v4921_v54, %v4920_v57 }
 0x5e4   : > { %v4851_v9 = vmul.f32 %v8143_v28, %v12578_v43  ;;  %v4792_v20 = vadd.f32 1e-05, %v4760_v40  ;;  %v4791_v34 = vadd.f32 1e-05, %v4759_v41  ;;  %4744 = vadd.xlane.f32.xlu1 %v4681_v51 }
 0x5e5   : > { %v4713_v33 = vpop.xlane.xlu1 %4712  ;;  %v4992_v56 = vsel %vm14233_vm7, %v4989_v14, %v4991_v18  ;;  %v4715_v15 = vpop.xlane.xlu0 %4714  ;;  %v4922_v32 = vadd.f32 %v12659_v29, %v4886_v24  ;;  %vm14241_vm7 = vmmov %vm14227_vm0 }
 0x5e6   : > { %8150 = vrsqrt.f32 %v4792_v20  ;;  %v4761_v50 = vmul.f32 0.0078125, %v4713_v33  ;;  %v12788_v13 = vpack.c.bf16 %v4992_v56, %v4990_v7  ;;  %v4762_v46 = vmul.f32 0.0078125, %v4715_v15 }
 0x5e7   : > { %v8145_v61 = vpop.eup %8144  ;;  %8152 = vrsqrt.f32 %v4791_v34  ;;  %v4887_v43 = vmul.f32 %v12655_v62, %v4851_v9  ;;  %v4993_v51 = vrot.slane %v4922_v32, 7 }
 0x5e8   : > { %v4852_v40 = vmul.f32 %v8145_v61, %v12592_v12  ;;  %v4793_v41 = vadd.f32 1e-05, %v4761_v50  ;;  %6957 = vmatprep.mubr.msk.bf16.mxu0 %vm9293_vm12, %v12788_v13  ;;  %v4794_v14 = vadd.f32 1e-05, %v4762_v46 }
 0x5e9   : > { %5521 = vmatmul.mubr.bf16.gmra.mxu0 %v12790_v60  ;;  %v4923_v7 = vadd.f32 %v12659_v29, %v4887_v43  ;;  %v4719_v28 = vpop.xlane.xlu0 %4718  ;;  %v4717_v24 = vpop.xlane.xlu1 %4716  ;;  %v4994_v56 = vsel %vm14235_vm2, %v4991_v18, %v4993_v51  ;;  %vm14243_vm2 = vmmov %vm14227_vm0 }
 0x5ea   : > { %8154 = vrsqrt.f32 %v4793_v41  ;;  %v4764_v57 = vmul.f32 0.0078125, %v4719_v28  ;;  %v4763_v54 = vmul.f32 0.0078125, %v4717_v24  ;;  %v4888_v9 = vmul.f32 %v12655_v62, %v4852_v40 }
 0x5eb   : > { %v8147_v20 = vpop.eup %8146  ;;  %8156 = vrsqrt.f32 %v4794_v14  ;;  %v4995_v61 = vrot.slane %v4923_v7, 7  ;;  %v12807_v14 = vpack.c.bf16 %v4923_v7, %v4922_v32 }
 0x5ec   : > { %v4853_v12 = vmul.f32 %v8147_v20, %v12599_v58  ;;  %v4796_v34 = vadd.f32 1e-05, %v4764_v57  ;;  %v4795_v33 = vadd.f32 1e-05, %v4763_v54  ;;  %v4924_v46 = vadd.f32 %v12659_v29, %v4888_v9 }
 0x5ed   : > { %v4996_v15 = vsel %vm14227_vm0, %v4993_v51, %v4995_v61  ;;  %v4721_v50 = vpop.xlane.xlu1 %4720 }
 0x5ee   : > { %v12804_v43 = vpack.c.bf16 %v4996_v15, %v4994_v56  ;;  %8158 = vrsqrt.f32 %v4796_v34  ;;  %v4765_v41 = vmul.f32 0.0078125, %v4721_v50  ;;  %v4889_v40 = vmul.f32 %v12655_v62, %v4853_v12 }
 0x5ef   : > { %v8149_v28 = vpop.eup %8148  ;;  %8160 = vrsqrt.f32 %v4795_v33  ;;  %v4997_v57 = vrot.slane %v4924_v46, 7 }
 0x5f0   : > { %v4854_v58 = vmul.f32 %v8149_v28, %v12605_v38  ;;  %6960 = vmatprep.mubr.msk.bf16.mxu0 %vm9318_vm15, %v12804_v43  ;;  %v4797_v18 = vadd.f32 1e-05, %v4765_v41  ;;  %v4925_v51 = vadd.f32 %v12659_v29, %v4889_v40 }
 0x5f1   : > { %5531 = vmatmul.mubr.bf16.gmra.mxu0 %v12807_v14  ;;  %v4998_v38 = vsel %vm14237_vm8, %v4995_v61, %v4997_v57  ;;  %vm14245_vm8 = vmmov %vm14227_vm0 }
 0x5f2   : > { %8162 = vrsqrt.f32 %v4797_v18  ;;  %v4999_v54 = vrot.slane %v4925_v51, 7  ;;  %v4890_v9 = vmul.f32 %v12655_v62, %v4854_v58  ;;  %v12827_v40 = vpack.c.bf16 %v4925_v51, %v4924_v46 }
 0x5f3   : > { %v8151_v20 = vpop.eup %8150 }
 0x5f4   : > { %v8153_v32 = vpop.eup %8152  ;;  %v4856_v7 = vmul.f32 %v8151_v20, %v12613_v49  ;;  %v5000_v12 = vsel %vm14238_vm1, %v4997_v57, %v4999_v54  ;;  %v4926_v34 = vadd.f32 %v12659_v29, %v4890_v9  ;;  %vm14246_vm1 = vmmov %vm14227_vm0 }
 0x5f5   : > { %v4855_v33 = vmul.f32 %v8153_v32, %v12617_v59  ;;  %v12821_v56 = vpack.c.bf16 %v5000_v12, %v4998_v38 }
 0x5f6   : > { %v4892_v15 = vmul.f32 %v12655_v62, %v4856_v7  ;;  %v5001_v58 = vrot.slane %v4926_v34, 7 }
 0x5f7   : > { %v8155_v50 = vpop.eup %8154  ;;  %6963 = vmatprep.mubr.msk.bf16.mxu0 %vm9349_vm11, %v12821_v56  ;;  %v4891_v49 = vmul.f32 %v12655_v62, %v4855_v33 }
 0x5f8   : > { %v8157_v61 = vpop.eup %8156  ;;  %v4857_v28 = vmul.f32 %v8155_v50, %v12625_v52  ;;  %v4928_v18 = vadd.f32 %v12659_v29, %v4892_v15  ;;  %v5002_v7 = vsel %vm14240_vm4, %v4999_v54, %v5001_v58  ;;  %vm14248_vm4 = vmmov %vm14227_vm0 }
 0x5f9   : > { %v4858_v59 = vmul.f32 %v8157_v61, %v12633_v48  ;;  %5541 = vmatmul.mubr.bf16.gmra.mxu0 %v12827_v40  ;;  %v4927_v57 = vadd.f32 %v12659_v29, %v4891_v49 }
 0x5fa   : > { %v4893_v9 = vmul.f32 %v12655_v62, %v4857_v28  ;;  %v5005_v38 = vrot.slane %v4928_v18, 7 }
 0x5fb   : > { %v8159_v20 = vpop.eup %8158  ;;  %v5003_v32 = vrot.slane %v4927_v57, 7  ;;  %v4894_v46 = vmul.f32 %v12655_v62, %v4858_v59  ;;  %v12845_v28 = vpack.c.bf16 %v4927_v57, %v4926_v34 }
 0x5fc   : > { %v8161_v51 = vpop.eup %8160  ;;  %v4929_v52 = vadd.f32 %v12659_v29, %v4893_v9  ;;  %v4860_v12 = vmul.f32 %v8159_v20, %v12638_v21 }
 0x5fd   : > { %v4859_v48 = vmul.f32 %v8161_v51, %v12641_v6  ;;  %v5004_v33 = vsel %vm14241_vm7, %v5001_v58, %v5003_v32  ;;  %v4930_v15 = vadd.f32 %v12659_v29, %v4894_v46  ;;  %v5006_v21 = vsel %vm14243_vm2, %v5003_v32, %v5005_v38  ;;  %v7778_v51 = vld [vmem:[#allocation13 + $0x78] sm:$0xff]   ;;  %vm14249_vm7 = vmmov %vm14227_vm0 }
 0x5fe   : > { %v12843_v50 = vpack.c.bf16 %v5004_v33, %v5002_v7  ;;  %v5007_v49 = vrot.slane %v4929_v52, 7  ;;  %v4896_v57 = vmul.f32 %v12655_v62, %v4860_v12  ;;  %7345 = vmatprep.subr.bf16.mxu0 %v7778_v51  ;;  %vm14254_vm2 = vmmov %vm14227_vm0 }
 0x5ff   : > { %v8163_v61 = vpop.eup %8162  ;;  %v4895_v59 = vmul.f32 %v12655_v62, %v4859_v48  ;;  %v5009_v34 = vrot.slane %v4930_v15, 7  ;;  %v7779_v48 = vld [vmem:[#allocation13 + $0x38] sm:$0xff]  }
 0x600   : > { %v4861_v54 = vmul.f32 %v8163_v61, %v12646_v35  ;;  %6966 = vmatprep.mubr.msk.bf16.mxu0 %vm9384_vm10, %v12843_v50  ;;  %v5008_v6 = vsel %vm14227_vm0, %v5005_v38, %v5007_v49  ;;  %v7772_v35 = vld [vmem:[#allocation11 + $0x170] ss:$12 sps:$4 sm:$0xff]   ;;  %v4932_v12 = vadd.f32 %v12659_v29, %v4896_v57  ;;  %7346 = vmatpush3.bf16.msra.mxu0 %v7779_v48  ;;  %v7791_v48 = vld [vmem:[#allocation13 + $0x20] sm:$0xff]  }
 0x601   : > { %5551 = vmatmul.mubr.bf16.gmra.mxu0 %v12845_v28  ;;  %v12855_v58 = vpack.c.bf16 %v5008_v6, %v5006_v21  ;;  %v4931_v20 = vadd.f32 %v12659_v29, %v4895_v59  ;;  %7233 = vmatprep.subr.bf16.mxu1 %v7772_v35  ;;  %v5010_v33 = vsel %vm14245_vm8, %v5007_v49, %v5009_v34  ;;  %v7782_v59 = vld [vmem:[#allocation13 + $0x70] sm:$0xff]  }
 0x602   : > { %v4897_v46 = vmul.f32 %v12655_v62, %v4861_v54  ;;  %v7783_v21 = vld [vmem:[#allocation13 + $0x30] sm:$0xff]   ;;  %v12871_v6 = vpack.c.bf16 %v4929_v52, %v4928_v18  ;;  %7347 = vmatprep.subr.bf16.mxu0 %v7782_v59  ;;  %v5013_v35 = vrot.slane %v4932_v12, 7  ;;  %v7790_v18 = vld [vmem:[#allocation13 + $0x60] sm:$0xff]  }
 0x603   : > { %6969 = vmatprep.mubr.msk.bf16.mxu0 %vm9409_vm14, %v12855_v58  ;;  %v5011_v32 = vrot.slane %v4931_v20, 7 }
 0x604   : > { %v12864_v38 = vadd.f32 %v12659_v29, %v4897_v46  ;;  %v7786_v46 = vld [vmem:[#allocation13 + $0x68] sm:$0xff]   ;;  %7348 = vmatpush3.bf16.msra.mxu0 %v7783_v21  ;;  %v7795_v21 = vld [vmem:[#allocation13 + $0x18] sm:$0xff]  }
 0x605   : > { %v5012_v61 = vsel %vm14246_vm1, %v5009_v34, %v5011_v32  ;;  %v7787_v34 = vld [vmem:[#allocation13 + $0x28] sm:$0xff]   ;;  %7349 = vmatprep.subr.bf16.mxu0 %v7786_v46  ;;  %v5014_v52 = vsel %vm14249_vm7, %v5011_v32, %v5013_v35  ;;  %v7798_v46 = vld [vmem:[#allocation13 + $0x50] sm:$0xff]   ;;  %vm14258_vm1 = vmmov %vm14227_vm0 }
 0x606   : > { %v12869_v54 = vpack.c.bf16 %v5012_v61, %v5010_v33  ;;  %v13518_v23 = vrot.slane %v12864_v38, 7  ;;  %v12884_v33 = vpack.c.bf16 %v4931_v20, %v4930_v15  ;;  %v7794_v61 = vld [vmem:[#allocation13 + $0x58] sm:$0xff]   ;;  %v7799_v32 = vld [vmem:[#allocation13 + $0x10] sm:$0xff]   ;;  %v7800_v15 = vld [vmem:[#allocation13 + $0x48] sm:$0xff]  }
 0x607   : > { %v7801_v20 = vld [vmem:[#allocation13 + $0x8] sm:$0xff]  }
 0x608   : > { %v5016_v57 = vsel %vm14248_vm4, %v5013_v35, %v13518_v23  ;;  %7350 = vmatpush3.bf16.msra.mxu0 %v7787_v34  ;;  %v12891_v35 = vpack.c.bf16 %v12864_v38, %v4932_v12  ;;  %v7802_v34 = vld [vmem:[#allocation13 + $0x40] sm:$0xff]   ;;  %vm14259_vm4 = vmmov %vm14227_vm0 }
 0x609   : > { %5561 = vmatmul.mubr.bf16.gmra.mxu0 %v12871_v6  ;;  %v12882_v51 = vpack.c.bf16 %v5016_v57, %v5014_v52  ;;  %7351 = vmatprep.subr.bf16.mxu0 %v7790_v18  ;;  %v7803_v57 = vld [vmem:[#allocation13] sm:$0xff]  }
 0x60a   : > { %6972 = vmatprep.mubr.msk.bf16.mxu0 %vm9433_vm13, %v12869_v54  ;;  %14252 = vst [vmem:[#allocation57_spill] sm:$0xff] %v12891_v35 }
 0x60b   : > { %14250 = vst [vmem:[#allocation59_spill] sm:$0xff] %v12882_v51 }
 0x60c   : > { %7352 = vmatpush3.bf16.msra.mxu0 %v7791_v48 }
 0x60d   : > { %7353 = vmatprep.subr.bf16.mxu0 %v7794_v61 }
 0x610   : > { %7354 = vmatpush3.bf16.msra.mxu0 %v7795_v21 }
 0x611   : > { %5571 = vmatmul.mubr.bf16.gmra.mxu0 %v12884_v33  ;;  %7355 = vmatprep.subr.bf16.mxu0 %v7798_v46 }
 0x612   : > { %6975 = vmatprep.mubr.msk.bf16.mxu0 %vm9457_vm5, %v12882_v51  ;;  %v14275_v49 = vld [vmem:[#allocation59_spill] sm:$0xff] }
 0x614   : > { %7356 = vmatpush3.bf16.msra.mxu0 %v7799_v32 }
 0x615   : > { %7357 = vmatprep.subr.bf16.mxu0 %v7800_v15 }
 0x618   : > { %7358 = vmatpush3.bf16.msra.mxu0 %v7801_v20 }
 0x619   : > { %5581 = vmatmul.mubr.bf16.gmra.mxu0 %v12891_v35  ;;  %7359 = vmatprep.subr.bf16.mxu0 %v7802_v34 }
 0x61c   : > { %7360 = vmatpush3.bf16.msra.mxu0 %v7803_v57 }
 0x641   : > { %v4723_v18 = vpop.xlane.xlu0 %4722 }
 0x642   : > { %v4766_v52 = vmul.f32 0.0078125, %v4723_v18 }
 0x644   : > { %v4798_v48 = vadd.f32 1e-05, %v4766_v52 }
 0x645   : > { %v4725_v61 = vpop.xlane.xlu1 %4724 }
 0x646   : > { %8164 = vrsqrt.f32 %v4798_v48  ;;  %v4767_v21 = vmul.f32 0.0078125, %v4725_v61 }
 0x648   : > { %v4799_v12 = vadd.f32 1e-05, %v4767_v21 }
 0x649   : > { %v4727_v23 = vpop.xlane.xlu0 %4726 }
 0x64a   : > { %8166 = vrsqrt.f32 %v4799_v12  ;;  %v4768_v46 = vmul.f32 0.0078125, %v4727_v23 }
 0x64c   : > { %v4800_v27 = vadd.f32 1e-05, %v4768_v46 }
 0x64d   : > { %v4729_v26 = vpop.xlane.xlu1 %4728 }
 0x64e   : > { %8168 = vrsqrt.f32 %v4800_v27  ;;  %v4769_v32 = vmul.f32 0.0078125, %v4729_v26 }
 0x650   : > { %v4801_v15 = vadd.f32 1e-05, %v4769_v32 }
 0x651   : > { %v4731_v20 = vpop.xlane.xlu0 %4730 }
 0x652   : > { %8170 = vrsqrt.f32 %v4801_v15  ;;  %v4770_v55 = vmul.f32 0.0078125, %v4731_v20 }
 0x653   : > { %v8165_v34 = vpop.eup %8164 }
 0x654   : > { %v4862_v57 = vmul.f32 %v8165_v34, %v12683_v19  ;;  %v4802_v18 = vadd.f32 1e-05, %v4770_v55 }
 0x655   : > { %v4733_v52 = vpop.xlane.xlu1 %4732 }
 0x656   : > { %8172 = vrsqrt.f32 %v4802_v18  ;;  %v4771_v48 = vmul.f32 0.0078125, %v4733_v52  ;;  %v4898_v61 = vmul.f32 %v12655_v62, %v4862_v57 }
 0x657   : > { %v8167_v21 = vpop.eup %8166 }
 0x658   : > { %v4863_v23 = vmul.f32 %v8167_v21, %v12688_v37  ;;  %v4803_v12 = vadd.f32 1e-05, %v4771_v48  ;;  %v4934_v27 = vadd.f32 %v12659_v29, %v4898_v61  ;;  %v14253_v61 = vrot.slane %v12864_v38, 7 }
 0x659   : > { %v4735_v26 = vpop.xlane.xlu0 %4734 }
 0x65a   : > { %8174 = vrsqrt.f32 %v4803_v12  ;;  %v4772_v46 = vmul.f32 0.0078125, %v4735_v26  ;;  %v4899_v32 = vmul.f32 %v12655_v62, %v4863_v23  ;;  %v5017_v20 = vrot.slane %v4934_v27, 7 }
 0x65b   : > { %v8169_v15 = vpop.eup %8168 }
 0x65c   : > { %v4864_v55 = vmul.f32 %v8169_v15, %v12693_v47  ;;  %v4804_v19 = vadd.f32 1e-05, %v4772_v46  ;;  %v4935_v34 = vadd.f32 %v12659_v29, %v4899_v32  ;;  %v5018_v12 = vsel %vm14254_vm2, %v14253_v61, %v5017_v20  ;;  %v7774_v61 = vld [vmem:[#allocation11 + $0x158] ss:$12 sps:$4 sm:$0xff]   ;;  %vm14262_vm2 = vmmov %vm14227_vm0 }
 0x65d   : > { %v5492_v18 = vpop.f32.mrf.mxu0  ;;  %v4737_v57 = vpop.xlane.xlu1 %4736 }
 0x65e   : > { %8176 = vrsqrt.f32 %v4804_v19  ;;  %v4773_v52 = vmul.f32 0.0078125, %v4737_v57  ;;  %v5019_v37 = vrot.slane %v4935_v34, 7  ;;  %v4900_v23 = vmul.f32 %v12655_v62, %v4864_v55  ;;  %v7773_v57 = vld [vmem:[#allocation11 + $0xb0] ss:$12 sps:$4 sm:$0xff]  }
 0x65f   : > { %v5494_v48 = vpop.f32.mrf.mxu0  ;;  %v8171_v21 = vpop.eup %8170  ;;  %v5812_v46 = vmax.f32 %v5492_v18, 0.0  ;;  %v12910_v35 = vpack.c.bf16 %v4935_v34, %v4934_v27 }
 0x660   : > { %v4865_v26 = vmul.f32 %v8171_v21, %v12698_v2  ;;  %v4805_v11 = vadd.f32 1e-05, %v4773_v52  ;;  %v5020_v47 = vsel %vm14227_vm0, %v5017_v20, %v5019_v37  ;;  %v4936_v19 = vadd.f32 %v12659_v29, %v4900_v23  ;;  %v14256_v20 = vld [vmem:[#allocation40_spill] sm:$0xff] }
 0x661   : > { %v5496_v32 = vpop.f32.mrf.mxu0  ;;  %v12907_v15 = vpack.c.bf16 %v5020_v47, %v5018_v12  ;;  %v5813_v39 = vmax.f32 %v5494_v48, 0.0  ;;  %14255 = vst [vmem:[#allocation39_spill] sm:$0xff] %v12910_v35  ;;  %vm14257_vm8 = vnez %v14256_v20  ;;  %v5876_v47 = vmul.f32 %v5812_v46, %v5812_v46 }
 0x662   : > { %v5814_v10 = vmax.f32 %v5496_v32, 0.0  ;;  %8178 = vrsqrt.f32 %v4805_v11  ;;  %v4739_v38 = vpop.xlane.xlu0 %4738  ;;  %v4901_v55 = vmul.f32 %v12655_v62, %v4865_v26  ;;  %v5021_v18 = vrot.slane %v4936_v19, 7  ;;  %v7775_v26 = vld [vmem:[#allocation11 + $0x98] ss:$12 sps:$4 sm:$0xff]  }
 0x663   : > { %v5498_v2 = vpop.f32.mrf.mxu0  ;;  %v8173_v52 = vpop.eup %8172  ;;  %v4774_v21 = vmul.f32 0.0078125, %v4739_v38  ;;  %6978 = vmatprep.mubr.msk.bf16.mxu1 %vm14257_vm8, %v12907_v15  ;;  %v5877_v32 = vmul.f32 %v5813_v39, %v5813_v39 }
 0x664   : > { %v5878_v12 = vmul.f32 %v5814_v10, %v5814_v10  ;;  %v5815_v23 = vmax.f32 %v5498_v2, 0.0  ;;  %v4866_v48 = vmul.f32 %v8173_v52, %v12703_v63  ;;  %5591 = vmatmul.mubr.bf16.vlgmr.msra.gmra.mxu1 %v12910_v35  ;;  %v4937_v11 = vadd.f32 %v12659_v29, %v4901_v55  ;;  %v7776_v10 = vld [vmem:[#allocation11 + $0x140] ss:$12 sps:$4 sm:$0xff]  }
 0x665   : > { %v4806_v27 = vadd.f32 1e-05, %v4774_v21  ;;  %v4741_v34 = vpop.xlane.xlu1 %4740  ;;  %7234 = vmatpush3.bf16.msra.mxu1 %v7773_v57  ;;  %v5022_v63 = vsel %vm14258_vm1, %v5019_v37, %v5021_v18 }
 0x666   : > { %v5879_v38 = vmul.f32 %v5815_v23, %v5815_v23  ;;  %v4775_v59 = vmul.f32 0.0078125, %v4741_v34  ;;  %v5023_v51 = vrot.slane %v4937_v11, 7  ;;  %v4902_v20 = vmul.f32 %v12655_v62, %v4866_v48  ;;  %7235 = vmatprep.subr.bf16.mxu1 %v7774_v61  ;;  %v7777_v23 = vld [vmem:[#allocation11 + $0x80] ss:$12 sps:$4 sm:$0xff]   ;;  %v7781_v34 = vld [vmem:[#allocation11 + $0x68] ss:$12 sps:$4 sm:$0xff]  }
 0x667   : > { %v8175_v2 = vpop.eup %8174  ;;  %8180 = vrsqrt.f32 %v4806_v27  ;;  %v5940_v52 = vpack.c.bf16 %v5878_v12, %v5876_v47  ;;  %v12926_v48 = vpack.c.bf16 %v4937_v11, %v4936_v19  ;;  %v7780_v12 = vld [vmem:[#allocation11 + $0x128] ss:$12 sps:$4 sm:$0xff]  }
 0x668   : > { %v5941_v35 = vpack.c.bf16 %v5879_v38, %v5877_v32  ;;  %v4867_v55 = vmul.f32 %v8175_v2, %v12709_v1  ;;  %v4807_v21 = vadd.f32 1e-05, %v4775_v59  ;;  %v5024_v57 = vsel %vm14259_vm4, %v5021_v18, %v5023_v51  ;;  %v14260_v18 = vld [vmem:[#allocation43_spill] sm:$0xff]  ;;  %vm14265_vm4 = vmmov %vm14227_vm0 }
 0x669   : > { %v4938_v39 = vadd.f32 %v12659_v29, %v4902_v20  ;;  %v12924_v46 = vpack.c.bf16 %v5024_v57, %v5022_v63  ;;  %7236 = vmatpush3.bf16.msra.mxu1 %v7775_v26  ;;  %vm14261_vm7 = vnez %v14260_v18  ;;  %v7784_v38 = vld [vmem:[#allocation11 + $0x110] ss:$12 sps:$4 sm:$0xff]  }
 0x66a   : > { %6132 = vmatprep.mubr.bf16.mxu0 %v5941_v35  ;;  %8182 = vrsqrt.f32 %v4807_v21  ;;  %v4743_v61 = vpop.xlane.xlu0 %4742  ;;  %v4903_v37 = vmul.f32 %v12655_v62, %v4867_v55  ;;  %7237 = vmatprep.subr.bf16.mxu1 %v7776_v10  ;;  %v7785_v57 = vld [vmem:[#allocation11 + $0x50] ss:$12 sps:$4 sm:$0xff]  }
 0x66b   : > { %6133 = vmatmul.mubr.bf16.vlgmr.msra.gmra.mxu0 %v5940_v52  ;;  %v8177_v1 = vpop.eup %8176  ;;  %v4776_v59 = vmul.f32 0.0078125, %v4743_v61  ;;  %6981 = vmatprep.mubr.msk.bf16.mxu1 %vm14261_vm7, %v12924_v46  ;;  %v5025_v20 = vrot.slane %v4938_v39, 7 }
 0x66c   : > { %v4868_v27 = vmul.f32 %v8177_v1, %v12716_v22  ;;  %5601 = vmatmul.mubr.bf16.gmra.mxu1 %v12926_v48  ;;  %v4939_v35 = vadd.f32 %v12659_v29, %v4903_v37  ;;  %v7788_v37 = vld [vmem:[#allocation11 + $0xf8] ss:$12 sps:$4 sm:$0xff]  }
 0x66d   : > { %v4808_v19 = vadd.f32 1e-05, %v4776_v59  ;;  %v4745_v11 = vpop.xlane.xlu1 %4744  ;;  %7238 = vmatpush3.bf16.msra.mxu1 %v7777_v23  ;;  %v5026_v2 = vsel %vm14262_vm2, %v5023_v51, %v5025_v20  ;;  %v14263_v51 = vld [vmem:[#allocation47_spill] sm:$0xff]  ;;  %vm14266_vm2 = vmmov %vm14227_vm0 }
 0x66e   : > { %v4777_v26 = vmul.f32 0.0078125, %v4745_v11  ;;  %v5027_v47 = vrot.slane %v4939_v35, 7  ;;  %v4904_v32 = vmul.f32 %v12655_v62, %v4868_v27  ;;  %7239 = vmatprep.subr.bf16.mxu1 %v7780_v12  ;;  %v12942_v23 = vpack.c.bf16 %v4939_v35, %v4938_v39  ;;  %v7792_v27 = vld [vmem:[#allocation11 + $0xe0] ss:$12 sps:$4 sm:$0xff]  }
 0x66f   : > { %v8179_v10 = vpop.eup %8178  ;;  %8184 = vrsqrt.f32 %v4808_v19  ;;  %vm14264_vm1 = vnez %v14263_v51 }
 0x670   : > { %v4869_v22 = vmul.f32 %v8179_v10, %v12724_v31  ;;  %v4809_v63 = vadd.f32 1e-05, %v4777_v26  ;;  %v5028_v52 = vsel %vm14227_vm0, %v5025_v20, %v5027_v47  ;;  %v4940_v55 = vadd.f32 %v12659_v29, %v4904_v32  ;;  %v7789_v20 = vld [vmem:[#allocation11 + $0x38] ss:$12 sps:$4 sm:$0xff]  }
 0x671   : > { %v12940_v21 = vpack.c.bf16 %v5028_v52, %v5026_v2  ;;  %7240 = vmatpush3.bf16.msra.mxu1 %v7781_v34 }
 0x672   : > { %8186 = vrsqrt.f32 %v4809_v63  ;;  %v4905_v61 = vmul.f32 %v12655_v62, %v4869_v22  ;;  %7241 = vmatprep.subr.bf16.mxu1 %v7784_v38  ;;  %v5029_v1 = vrot.slane %v4940_v55, 7  ;;  %v7796_v22 = vld [vmem:[#allocation11 + $0xc8] ss:$12 sps:$4 sm:$0xff]  }
 0x673   : > { %6984 = vmatprep.mubr.msk.bf16.mxu1 %vm14264_vm1, %v12940_v21  ;;  %v14267_v63 = vld [vmem:[#allocation49_spill] sm:$0xff] }
 0x674   : > { %v8181_v31 = vpop.eup %8180  ;;  %5611 = vmatmul.mubr.bf16.gmra.mxu1 %v12942_v23  ;;  %v4941_v12 = vadd.f32 %v12659_v29, %v4905_v61  ;;  %v5030_v34 = vsel %vm14265_vm4, %v5027_v47, %v5029_v1  ;;  %vm14268_vm0 = vnez %v14267_v63  ;;  %v7797_v61 = vld [vmem:[#allocation11 + $0x8] ss:$12 sps:$4 sm:$0xff]   ;;  %vm14269_vm4 = vmmov %vm14266_vm2 }
 0x675   : > { %v4870_v59 = vmul.f32 %v8181_v31, %v12732_v17  ;;  %7242 = vmatpush3.bf16.msra.mxu1 %v7785_v57  ;;  %v7793_v17 = vld [vmem:[#allocation11 + $0x20] ss:$12 sps:$4 sm:$0xff]  }
 0x676   : > { %v5031_v39 = vrot.slane %v4941_v12, 7  ;;  %7243 = vmatprep.subr.bf16.mxu1 %v7788_v37  ;;  %v12958_v10 = vpack.c.bf16 %v4941_v12, %v4940_v55 }
 0x677   : > { %v8183_v35 = vpop.eup %8182  ;;  %v4906_v19 = vmul.f32 %v12655_v62, %v4870_v59 }
 0x678   : > { %v4871_v11 = vmul.f32 %v8183_v35, %v12748_v4  ;;  %v5032_v26 = vsel %vm14266_vm2, %v5029_v1, %v5031_v39 }
 0x679   : > { %v12955_v32 = vpack.c.bf16 %v5032_v26, %v5030_v34  ;;  %v4942_v38 = vadd.f32 %v12659_v29, %v4906_v19  ;;  %7244 = vmatpush3.bf16.msra.mxu1 %v7789_v20  ;;  %v14270_v19 = vld [vmem:[#allocation52_spill] sm:$0xff] }
 0x67a   : > { %v4907_v2 = vmul.f32 %v12655_v62, %v4871_v11  ;;  %7245 = vmatprep.subr.bf16.mxu1 %v7792_v27 }
 0x67b   : > { %6987 = vmatprep.mubr.msk.bf16.mxu1 %vm14268_vm0, %v12955_v32  ;;  %v5033_v52 = vrot.slane %v4942_v38, 7  ;;  %vm14271_vm0 = vnez %v14270_v19 }
 0x67c   : > { %v8185_v4 = vpop.eup %8184  ;;  %5621 = vmatmul.mubr.bf16.gmra.mxu1 %v12958_v10  ;;  %v4943_v47 = vadd.f32 %v12659_v29, %v4907_v2 }
 0x67d   : > { %v4872_v57 = vmul.f32 %v8185_v4, %v12760_v45  ;;  %7246 = vmatpush3.bf16.msra.mxu1 %v7793_v17  ;;  %v5034_v1 = vsel %vm14269_vm4, %v5031_v39, %v5033_v52  ;;  %vm14272_vm4 = vmmov %vm14266_vm2 }
 0x67e   : > { %v5035_v55 = vrot.slane %v4943_v47, 7  ;;  %7247 = vmatprep.subr.bf16.mxu1 %v7796_v22  ;;  %v12975_v35 = vpack.c.bf16 %v4943_v47, %v4942_v38 }
 0x67f   : > { %v8187_v37 = vpop.eup %8186  ;;  %v4908_v31 = vmul.f32 %v12655_v62, %v4872_v57 }
 0x680   : > { %v4873_v12 = vmul.f32 %v8187_v37, %v12774_v0  ;;  %v5036_v59 = vsel %vm14266_vm2, %v5033_v52, %v5035_v55 }
 0x681   : > { %v12971_v20 = vpack.c.bf16 %v5036_v59, %v5034_v1  ;;  %v4944_v27 = vadd.f32 %v12659_v29, %v4908_v31  ;;  %7248 = vmatpush3.bf16.msra.mxu1 %v7797_v61 }
 0x682   : > { %v4909_v45 = vmul.f32 %v12655_v62, %v4873_v12  ;;  %v14273_v62 = vld [vmem:[#allocation55_spill] sm:$0xff] }
 0x683   : > { %6990 = vmatprep.mubr.msk.bf16.mxu1 %vm14271_vm0, %v12971_v20  ;;  %v5037_v39 = vrot.slane %v4944_v27, 7  ;;  %vm14274_vm1 = vnez %v14273_v62 }
 0x684   : > { %5631 = vmatmul.mubr.bf16.gmra.mxu1 %v12975_v35  ;;  %v4945_v0 = vadd.f32 %v12659_v29, %v4909_v45 }
 0x685   : > { %v5038_v34 = vsel %vm14272_vm4, %v5035_v55, %v5037_v39 }
 0x686   : > { %v5039_v11 = vrot.slane %v4945_v0, 7  ;;  %v12986_v2 = vpack.c.bf16 %v4945_v0, %v4944_v27 }
 0x688   : > { %v5040_v26 = vsel %vm14266_vm2, %v5037_v39, %v5039_v11 }
 0x689   : > { %v12984_v17 = vpack.c.bf16 %v5040_v26, %v5038_v34 }
 0x68b   : > { %6993 = vmatprep.mubr.msk.bf16.mxu1 %vm14274_vm1, %v12984_v17 }
 0x68c   : > { %5641 = vmatmul.mubr.bf16.gmra.mxu1 %v12986_v2 }
 0x68d   : > { %6996 = vmatprep.mubr.msk.bf16.mxu1 %vm9171_vm3, %v12673_v42  ;;  %vm14280_vm3 = vnez %v14263_v51 }
 0x694   : > { %5684 = vmatmul.mubr.bf16.vlgmr.msra.gmra.mxu1 %v12676_v25 }
 0x695   : > { %6999 = vmatprep.mubr.msk.bf16.mxu1 %vm9213_vm6, %v12739_v53 }
 0x699   : > { %v5502_v29 = vpop.f32.mrf.mxu0 }
 0x69a   : > { %v5816_v52 = vmax.f32 %v5502_v29, 0.0 }
 0x69b   : > { %v5504_v38 = vpop.f32.mrf.mxu0 }
 0x69c   : > { %5692 = vmatmul.mubr.bf16.gmra.mxu1 %v12741_v5  ;;  %v5817_v4 = vmax.f32 %v5504_v38, 0.0  ;;  %v5880_v8 = vmul.f32 %v5816_v52, %v5816_v52 }
 0x69d   : > { %v5506_v22 = vpop.f32.mrf.mxu0  ;;  %7002 = vmatprep.mubr.msk.bf16.mxu1 %vm9255_vm9, %v12765_v36 }
 0x69e   : > { %v5818_v47 = vmax.f32 %v5506_v22, 0.0  ;;  %v5881_v61 = vmul.f32 %v5817_v4, %v5817_v4 }
 0x69f   : > { %v5508_v30 = vpop.f32.mrf.mxu0 }
 0x6a0   : > { %v5819_v42 = vmax.f32 %v5508_v30, 0.0  ;;  %v5882_v57 = vmul.f32 %v5818_v47, %v5818_v47 }
 0x6a1   : > { %v5512_v25 = vpop.f32.mrf.mxu0 }
 0x6a2   : > { %v5883_v55 = vmul.f32 %v5819_v42, %v5819_v42  ;;  %v5942_v5 = vpack.c.bf16 %v5882_v57, %v5880_v8  ;;  %v5820_v12 = vmax.f32 %v5512_v25, 0.0 }
 0x6a3   : > { %v5514_v53 = vpop.f32.mrf.mxu0 }
 0x6a4   : > { %v5943_v37 = vpack.c.bf16 %v5883_v55, %v5881_v61  ;;  %5700 = vmatmul.mubr.bf16.gmra.mxu1 %v12767_v3  ;;  %v5821_v36 = vmax.f32 %v5514_v53, 0.0  ;;  %v5884_v11 = vmul.f32 %v5820_v12, %v5820_v12 }
 0x6a5   : > { %v5516_v31 = vpop.f32.mrf.mxu0  ;;  %7005 = vmatprep.mubr.msk.bf16.mxu1 %vm9293_vm12, %v12788_v13 }
 0x6a6   : > { %v5822_v44 = vmax.f32 %v5516_v31, 0.0  ;;  %6140 = vmatprep.mubr.bf16.mxu0 %v5943_v37  ;;  %v5885_v0 = vmul.f32 %v5821_v36, %v5821_v36 }
 0x6a7   : > { %v5518_v1 = vpop.f32.mrf.mxu0  ;;  %6141 = vmatmul.mubr.bf16.gmra.mxu0 %v5942_v5 }
 0x6a8   : > { %v5823_v59 = vmax.f32 %v5518_v1, 0.0  ;;  %v5886_v27 = vmul.f32 %v5822_v44, %v5822_v44 }
 0x6a9   : > { %v5522_v45 = vpop.f32.mrf.mxu0 }
 0x6aa   : > { %v5887_v39 = vmul.f32 %v5823_v59, %v5823_v59  ;;  %v5944_v26 = vpack.c.bf16 %v5886_v27, %v5884_v11  ;;  %v5824_v38 = vmax.f32 %v5522_v45, 0.0 }
 0x6ab   : > { %v5524_v34 = vpop.f32.mrf.mxu0 }
 0x6ac   : > { %v5945_v3 = vpack.c.bf16 %v5887_v39, %v5885_v0  ;;  %5708 = vmatmul.mubr.bf16.gmra.mxu1 %v12790_v60  ;;  %v5825_v13 = vmax.f32 %v5524_v34, 0.0  ;;  %v5888_v57 = vmul.f32 %v5824_v38, %v5824_v38 }
 0x6ad   : > { %v5526_v29 = vpop.f32.mrf.mxu0  ;;  %7008 = vmatprep.mubr.msk.bf16.mxu1 %vm9318_vm15, %v12804_v43 }
 0x6ae   : > { %v5826_v16 = vmax.f32 %v5526_v29, 0.0  ;;  %6148 = vmatprep.mubr.bf16.mxu0 %v5945_v3  ;;  %v5889_v30 = vmul.f32 %v5825_v13, %v5825_v13 }
 0x6af   : > { %v5528_v22 = vpop.f32.mrf.mxu0  ;;  %6149 = vmatmul.mubr.bf16.gmra.mxu0 %v5944_v26 }
 0x6b0   : > { %v5827_v4 = vmax.f32 %v5528_v22, 0.0  ;;  %v5890_v47 = vmul.f32 %v5826_v16, %v5826_v16 }
 0x6b1   : > { %v5532_v52 = vpop.f32.mrf.mxu0 }
 0x6b2   : > { %v5891_v42 = vmul.f32 %v5827_v4, %v5827_v4  ;;  %v5946_v61 = vpack.c.bf16 %v5890_v47, %v5888_v57  ;;  %v5828_v8 = vmax.f32 %v5532_v52, 0.0 }
 0x6b3   : > { %v5534_v25 = vpop.f32.mrf.mxu0 }
 0x6b4   : > { %v5947_v60 = vpack.c.bf16 %v5891_v42, %v5889_v30  ;;  %5716 = vmatmul.mubr.bf16.gmra.mxu1 %v12807_v14  ;;  %v5829_v43 = vmax.f32 %v5534_v25, 0.0  ;;  %v5892_v12 = vmul.f32 %v5828_v8, %v5828_v8 }
 0x6b5   : > { %v5536_v55 = vpop.f32.mrf.mxu0  ;;  %7011 = vmatprep.mubr.msk.bf16.mxu1 %vm9349_vm11, %v12821_v56 }
 0x6b6   : > { %v5830_v24 = vmax.f32 %v5536_v55, 0.0  ;;  %6156 = vmatprep.mubr.bf16.mxu0 %v5947_v60  ;;  %v5893_v36 = vmul.f32 %v5829_v43, %v5829_v43 }
 0x6b7   : > { %v5538_v53 = vpop.f32.mrf.mxu0  ;;  %6157 = vmatmul.mubr.bf16.gmra.mxu0 %v5946_v61 }
 0x6b8   : > { %v5831_v37 = vmax.f32 %v5538_v53, 0.0  ;;  %v5894_v5 = vmul.f32 %v5830_v24, %v5830_v24 }
 0x6b9   : > { %v5542_v31 = vpop.f32.mrf.mxu0 }
 0x6ba   : > { %v5895_v44 = vmul.f32 %v5831_v37, %v5831_v37  ;;  %v5948_v59 = vpack.c.bf16 %v5894_v5, %v5892_v12  ;;  %v5832_v45 = vmax.f32 %v5542_v31, 0.0 }
 0x6bb   : > { %v5544_v1 = vpop.f32.mrf.mxu0 }
 0x6bc   : > { %v5949_v14 = vpack.c.bf16 %v5895_v44, %v5893_v36  ;;  %5724 = vmatmul.mubr.bf16.gmra.mxu1 %v12827_v40  ;;  %v5833_v56 = vmax.f32 %v5544_v1, 0.0  ;;  %v5896_v29 = vmul.f32 %v5832_v45, %v5832_v45 }
 0x6bd   : > { %v5546_v27 = vpop.f32.mrf.mxu0  ;;  %7014 = vmatprep.mubr.msk.bf16.mxu1 %vm9384_vm10, %v12843_v50 }
 0x6be   : > { %v5834_v41 = vmax.f32 %v5546_v27, 0.0  ;;  %6164 = vmatprep.mubr.bf16.mxu0 %v5949_v14  ;;  %v5897_v3 = vmul.f32 %v5833_v56, %v5833_v56 }
 0x6bf   : > { %v5548_v0 = vpop.f32.mrf.mxu0  ;;  %6165 = vmatmul.mubr.bf16.gmra.mxu0 %v5948_v59 }
 0x6c0   : > { %v5835_v39 = vmax.f32 %v5548_v0, 0.0  ;;  %v5898_v11 = vmul.f32 %v5834_v41, %v5834_v41 }
 0x6c1   : > { %v5552_v34 = vpop.f32.mrf.mxu0 }
 0x6c2   : > { %v5899_v26 = vmul.f32 %v5835_v39, %v5835_v39  ;;  %v5950_v16 = vpack.c.bf16 %v5898_v11, %v5896_v29  ;;  %v5836_v22 = vmax.f32 %v5552_v34, 0.0 }
 0x6c3   : > { %v5554_v13 = vpop.f32.mrf.mxu0 }
 0x6c4   : > { %v5951_v40 = vpack.c.bf16 %v5899_v26, %v5897_v3  ;;  %5732 = vmatmul.mubr.bf16.gmra.mxu1 %v12845_v28  ;;  %v5837_v50 = vmax.f32 %v5554_v13, 0.0  ;;  %v5900_v25 = vmul.f32 %v5836_v22, %v5836_v22  ;;  %v14277_v26 = vld [vmem:[#allocation57_spill] sm:$0xff] }
 0x6c5   : > { %v5556_v38 = vpop.f32.mrf.mxu0  ;;  %7017 = vmatprep.mubr.msk.bf16.mxu1 %vm9409_vm14, %v12855_v58 }
 0x6c6   : > { %v5838_v9 = vmax.f32 %v5556_v38, 0.0  ;;  %6172 = vmatprep.mubr.bf16.mxu0 %v5951_v40  ;;  %v5901_v42 = vmul.f32 %v5837_v50, %v5837_v50 }
 0x6c7   : > { %v5558_v4 = vpop.f32.mrf.mxu0  ;;  %6173 = vmatmul.mubr.bf16.gmra.mxu0 %v5950_v16 }
 0x6c8   : > { %v5839_v47 = vmax.f32 %v5558_v4, 0.0  ;;  %v5902_v52 = vmul.f32 %v5838_v9, %v5838_v9 }
 0x6c9   : > { %v5562_v30 = vpop.f32.mrf.mxu0 }
 0x6ca   : > { %v5903_v57 = vmul.f32 %v5839_v47, %v5839_v47  ;;  %v5952_v61 = vpack.c.bf16 %v5902_v52, %v5900_v25  ;;  %v5840_v43 = vmax.f32 %v5562_v30, 0.0 }
 0x6cb   : > { %v5564_v60 = vpop.f32.mrf.mxu0 }
 0x6cc   : > { %v5953_v28 = vpack.c.bf16 %v5903_v57, %v5901_v42  ;;  %5740 = vmatmul.mubr.bf16.gmra.mxu1 %v12871_v6  ;;  %v5841_v58 = vmax.f32 %v5564_v60, 0.0  ;;  %v5904_v36 = vmul.f32 %v5840_v43, %v5840_v43  ;;  %v14279_v57 = vld [vmem:[#allocation39_spill] sm:$0xff] }
 0x6cd   : > { %v5566_v55 = vpop.f32.mrf.mxu0  ;;  %7020 = vmatprep.mubr.msk.bf16.mxu1 %vm9433_vm13, %v12869_v54 }
 0x6ce   : > { %v5842_v7 = vmax.f32 %v5566_v55, 0.0  ;;  %6180 = vmatprep.mubr.bf16.mxu0 %v5953_v28  ;;  %v5905_v5 = vmul.f32 %v5841_v58, %v5841_v58 }
 0x6cf   : > { %v5568_v24 = vpop.f32.mrf.mxu0  ;;  %6181 = vmatmul.mubr.bf16.gmra.mxu0 %v5952_v61 }
 0x6d0   : > { %v5843_v8 = vmax.f32 %v5568_v24, 0.0  ;;  %v5906_v53 = vmul.f32 %v5842_v7, %v5842_v7 }
 0x6d1   : > { %v5572_v37 = vpop.f32.mrf.mxu0 }
 0x6d2   : > { %v5907_v31 = vmul.f32 %v5843_v8, %v5843_v8  ;;  %v5954_v12 = vpack.c.bf16 %v5906_v53, %v5904_v36  ;;  %v5844_v27 = vmax.f32 %v5572_v37, 0.0 }
 0x6d3   : > { %v5574_v44 = vpop.f32.mrf.mxu0 }
 0x6d4   : > { %v5955_v6 = vpack.c.bf16 %v5907_v31, %v5905_v5  ;;  %5748 = vmatmul.mubr.bf16.gmra.mxu1 %v12884_v33  ;;  %v5845_v14 = vmax.f32 %v5574_v44, 0.0  ;;  %v5908_v34 = vmul.f32 %v5844_v27, %v5844_v27 }
 0x6d5   : > { %v5576_v1 = vpop.f32.mrf.mxu0  ;;  %7023 = vmatprep.mubr.msk.bf16.mxu1 %vm9457_vm5, %v14275_v49  ;;  %vm14281_vm5 = vnez %v14267_v63 }
 0x6d6   : > { %v5846_v59 = vmax.f32 %v5576_v1, 0.0  ;;  %6188 = vmatprep.mubr.bf16.mxu0 %v5955_v6  ;;  %v5909_v39 = vmul.f32 %v5845_v14, %v5845_v14 }
 0x6d7   : > { %v5578_v56 = vpop.f32.mrf.mxu0  ;;  %6189 = vmatmul.mubr.bf16.gmra.mxu0 %v5954_v12 }
 0x6d8   : > { %v5847_v41 = vmax.f32 %v5578_v56, 0.0  ;;  %v5910_v45 = vmul.f32 %v5846_v59, %v5846_v59 }
 0x6d9   : > { %v5582_v0 = vpop.f32.mrf.mxu0 }
 0x6da   : > { %v5911_v11 = vmul.f32 %v5847_v41, %v5847_v41  ;;  %v5956_v29 = vpack.c.bf16 %v5910_v45, %v5908_v34  ;;  %v5848_v50 = vmax.f32 %v5582_v0, 0.0 }
 0x6db   : > { %v5584_v3 = vpop.f32.mrf.mxu0 }
 0x6dc   : > { %v5957_v33 = vpack.c.bf16 %v5911_v11, %v5909_v39  ;;  %5756 = vmatmul.mubr.bf16.gmra.mxu1 %v14277_v26  ;;  %v5849_v16 = vmax.f32 %v5584_v3, 0.0  ;;  %v5912_v30 = vmul.f32 %v5848_v50, %v5848_v50 }
 0x6dd   : > { %v5586_v13 = vpop.f32.mrf.mxu0  ;;  %7026 = vmatprep.mubr.msk.bf16.mxu1 %vm14257_vm8, %v12907_v15 }
 0x6de   : > { %v5850_v38 = vmax.f32 %v5586_v13, 0.0  ;;  %6196 = vmatprep.mubr.bf16.mxu0 %v5957_v33  ;;  %v5913_v47 = vmul.f32 %v5849_v16, %v5849_v16 }
 0x6df   : > { %v5588_v9 = vpop.f32.mrf.mxu0  ;;  %6197 = vmatmul.mubr.bf16.gmra.mxu0 %v5956_v29 }
 0x6e0   : > { %v5851_v22 = vmax.f32 %v5588_v9, 0.0  ;;  %v5914_v4 = vmul.f32 %v5850_v38, %v5850_v38 }
 0x6e2   : > { %v5915_v52 = vmul.f32 %v5851_v22, %v5851_v22  ;;  %v5958_v25 = vpack.c.bf16 %v5914_v4, %v5912_v30 }
 0x6e4   : > { %v5959_v42 = vpack.c.bf16 %v5915_v52, %v5913_v47  ;;  %5764 = vmatmul.mubr.bf16.gmra.mxu1 %v14279_v57 }
 0x6e5   : > { %7029 = vmatprep.mubr.msk.bf16.mxu1 %vm14261_vm7, %v12924_v46 }
 0x6e6   : > { %6204 = vmatprep.mubr.bf16.mxu0 %v5959_v42 }
 0x6e7   : > { %6205 = vmatmul.mubr.bf16.gmra.mxu0 %v5958_v25 }
 0x6ec   : > { %5772 = vmatmul.mubr.bf16.gmra.mxu1 %v12926_v48 }
 0x6ed   : > { %7032 = vmatprep.mubr.msk.bf16.mxu1 %vm14280_vm3, %v12940_v21 }
 0x6f4   : > { %5780 = vmatmul.mubr.bf16.gmra.mxu1 %v12942_v23 }
 0x6f5   : > { %7035 = vmatprep.mubr.msk.bf16.mxu1 %vm14281_vm5, %v12955_v32 }
 0x6fc   : > { %5788 = vmatmul.mubr.bf16.gmra.mxu1 %v12958_v10 }
 0x6fd   : > { %7038 = vmatprep.mubr.msk.bf16.mxu1 %vm14271_vm0, %v12971_v20 }
 0x704   : > { %5796 = vmatmul.mubr.bf16.gmra.mxu1 %v12975_v35 }
 0x705   : > { %7041 = vmatprep.mubr.msk.bf16.mxu1 %vm14274_vm1, %v12984_v17 }
 0x70c   : > { %5804 = vmatmul.mubr.bf16.gmra.mxu1 %v12986_v2 }
 0x724   : > { %v5592_v15 = vpop.f32.mrf.mxu1 }
 0x725   : > { %v5852_v23 = vmax.f32 %v5592_v15, 0.0 }
 0x726   : > { %v5594_v46 = vpop.f32.mrf.mxu1 }
 0x727   : > { %v5853_v18 = vmax.f32 %v5594_v46, 0.0  ;;  %v5916_v60 = vmul.f32 %v5852_v23, %v5852_v23 }
 0x728   : > { %v5596_v48 = vpop.f32.mrf.mxu1 }
 0x729   : > { %v5854_v21 = vmax.f32 %v5596_v48, 0.0  ;;  %v5917_v19 = vmul.f32 %v5853_v18, %v5853_v18 }
 0x72a   : > { %v5598_v51 = vpop.f32.mrf.mxu1 }
 0x72b   : > { %v5855_v32 = vmax.f32 %v5598_v51, 0.0  ;;  %v5918_v10 = vmul.f32 %v5854_v21, %v5854_v21 }
 0x72c   : > { %v5602_v63 = vpop.f32.mrf.mxu1 }
 0x72d   : > { %v5919_v20 = vmul.f32 %v5855_v32, %v5855_v32  ;;  %v5960_v61 = vpack.c.bf16 %v5918_v10, %v5916_v60  ;;  %v5856_v2 = vmax.f32 %v5602_v63, 0.0 }
 0x72e   : > { %v5604_v35 = vpop.f32.mrf.mxu1 }
 0x72f   : > { %v5961_v28 = vpack.c.bf16 %v5919_v20, %v5917_v19  ;;  %v5857_v17 = vmax.f32 %v5604_v35, 0.0  ;;  %v5920_v37 = vmul.f32 %v5856_v2, %v5856_v2 }
 0x730   : > { %v5606_v62 = vpop.f32.mrf.mxu1 }
 0x731   : > { %v5858_v55 = vmax.f32 %v5606_v62, 0.0  ;;  %6212 = vmatprep.mubr.bf16.mxu0 %v5961_v28  ;;  %v5921_v8 = vmul.f32 %v5857_v17, %v5857_v17 }
 0x732   : > { %v5608_v58 = vpop.f32.mrf.mxu1  ;;  %6213 = vmatmul.mubr.bf16.gmra.mxu0 %v5960_v61 }
 0x733   : > { %v5859_v7 = vmax.f32 %v5608_v58, 0.0  ;;  %v5922_v43 = vmul.f32 %v5858_v55, %v5858_v55 }
 0x734   : > { %v5612_v24 = vpop.f32.mrf.mxu1 }
 0x735   : > { %v5923_v53 = vmul.f32 %v5859_v7, %v5859_v7  ;;  %v5962_v36 = vpack.c.bf16 %v5922_v43, %v5920_v37  ;;  %v5860_v1 = vmax.f32 %v5612_v24, 0.0  ;;  %v13056_v43 = vpop.f32.mrf.mxu0 }
 0x736   : > { %v5614_v5 = vpop.f32.mrf.mxu1 }
 0x737   : > { %v5963_v31 = vpack.c.bf16 %v5923_v53, %v5921_v8  ;;  %v5861_v6 = vmax.f32 %v5614_v5, 0.0  ;;  %v5924_v41 = vmul.f32 %v5860_v1, %v5860_v1 }
 0x738   : > { %v5616_v44 = vpop.f32.mrf.mxu1 }
 0x739   : > { %v5862_v12 = vmax.f32 %v5616_v44, 0.0  ;;  %6220 = vmatprep.mubr.bf16.mxu0 %v5963_v31  ;;  %v5925_v27 = vmul.f32 %v5861_v6, %v5861_v6  ;;  %v7362_v31 = vpop.f32.mrf.mxu0 }
 0x73a   : > { %v5618_v49 = vpop.f32.mrf.mxu1  ;;  %6221 = vmatmul.mubr.bf16.gmra.mxu0 %v5962_v36 }
 0x73b   : > { %v5863_v54 = vmax.f32 %v5618_v49, 0.0  ;;  %v5926_v14 = vmul.f32 %v5862_v12, %v5862_v12  ;;  %v13058_v1 = vpop.f32.mrf.mxu0 }
 0x73c   : > { %v5622_v59 = vpop.f32.mrf.mxu1 }
 0x73d   : > { %v5927_v56 = vmul.f32 %v5863_v54, %v5863_v54  ;;  %v5964_v39 = vpack.c.bf16 %v5926_v14, %v5924_v41  ;;  %v5864_v33 = vmax.f32 %v5622_v59, 0.0 }
 0x73e   : > { %v5624_v45 = vpop.f32.mrf.mxu1 }
 0x73f   : > { %v5965_v0 = vpack.c.bf16 %v5927_v56, %v5925_v27  ;;  %v5865_v34 = vmax.f32 %v5624_v45, 0.0  ;;  %v5928_v50 = vmul.f32 %v5864_v33, %v5864_v33  ;;  %v7365_v27 = vpop.f32.mrf.mxu0 }
 0x740   : > { %v5626_v11 = vpop.f32.mrf.mxu1 }
 0x741   : > { %v5866_v3 = vmax.f32 %v5626_v11, 0.0  ;;  %6228 = vmatprep.mubr.bf16.mxu0 %v5965_v0  ;;  %v5929_v16 = vmul.f32 %v5865_v34, %v5865_v34 }
 0x742   : > { %v5628_v26 = vpop.f32.mrf.mxu1  ;;  %6229 = vmatmul.mubr.bf16.gmra.mxu0 %v5964_v39 }
 0x743   : > { %v5867_v29 = vmax.f32 %v5628_v26, 0.0  ;;  %v5930_v13 = vmul.f32 %v5866_v3, %v5866_v3 }
 0x744   : > { %v5632_v40 = vpop.f32.mrf.mxu1 }
 0x745   : > { %v5931_v38 = vmul.f32 %v5867_v29, %v5867_v29  ;;  %v5966_v4 = vpack.c.bf16 %v5930_v13, %v5928_v50  ;;  %v5868_v42 = vmax.f32 %v5632_v40, 0.0 }
 0x746   : > { %v5634_v9 = vpop.f32.mrf.mxu1 }
 0x747   : > { %v5967_v22 = vpack.c.bf16 %v5931_v38, %v5929_v16  ;;  %v5869_v52 = vmax.f32 %v5634_v9, 0.0  ;;  %v5932_v21 = vmul.f32 %v5868_v42, %v5868_v42 }
 0x748   : > { %v5636_v47 = vpop.f32.mrf.mxu1 }
 0x749   : > { %v5870_v30 = vmax.f32 %v5636_v47, 0.0  ;;  %6236 = vmatprep.mubr.bf16.mxu0 %v5967_v22  ;;  %v5933_v48 = vmul.f32 %v5869_v52, %v5869_v52 }
 0x74a   : > { %v5638_v57 = vpop.f32.mrf.mxu1  ;;  %6237 = vmatmul.mubr.bf16.gmra.mxu0 %v5966_v4 }
 0x74b   : > { %v5871_v25 = vmax.f32 %v5638_v57, 0.0  ;;  %v5934_v15 = vmul.f32 %v5870_v30, %v5870_v30 }
 0x74c   : > { %v5642_v46 = vpop.f32.mrf.mxu1 }
 0x74d   : > { %v5935_v18 = vmul.f32 %v5871_v25, %v5871_v25  ;;  %v5968_v32 = vpack.c.bf16 %v5934_v15, %v5932_v21  ;;  %v5872_v20 = vmax.f32 %v5642_v46, 0.0 }
 0x74e   : > { %v5644_v23 = vpop.f32.mrf.mxu1 }
 0x74f   : > { %v5969_v51 = vpack.c.bf16 %v5935_v18, %v5933_v48  ;;  %v5873_v63 = vmax.f32 %v5644_v23, 0.0  ;;  %v5936_v55 = vmul.f32 %v5872_v20, %v5872_v20 }
 0x750   : > { %v5646_v10 = vpop.f32.mrf.mxu1 }
 0x751   : > { %v5874_v19 = vmax.f32 %v5646_v10, 0.0  ;;  %6244 = vmatprep.mubr.bf16.mxu0 %v5969_v51  ;;  %v5937_v62 = vmul.f32 %v5873_v63, %v5873_v63 }
 0x752   : > { %v5648_v60 = vpop.f32.mrf.mxu1  ;;  %6245 = vmatmul.mubr.bf16.gmra.mxu0 %v5968_v32 }
 0x753   : > { %v5875_v35 = vmax.f32 %v5648_v60, 0.0  ;;  %v5938_v28 = vmul.f32 %v5874_v19, %v5874_v19  ;;  %v7363_v19 = vadd.f32 %v7362_v31, %v13056_v43 }
 0x754   : > { %v7249_v61 = vpop.f32.mrf.mxu1 }
 0x755   : > { %v5939_v17 = vmul.f32 %v5875_v35, %v5875_v35  ;;  %v5970_v24 = vpack.c.bf16 %v5938_v28, %v5936_v55 }
 0x756   : > { %v7250_v2 = vpop.f32.mrf.mxu1 }
 0x757   : > { %v5971_v58 = vpack.c.bf16 %v5939_v17, %v5937_v62  ;;  %v7251_v7 = vadd.f32 %v7250_v2, %v7249_v61 }
 0x758   : > { %v7252_v8 = vpop.f32.mrf.mxu1 }
 0x759   : > { %v7058_v53 = vmul.f32 -1.442695, %v7251_v7  ;;  %6252 = vmatprep.mubr.bf16.mxu0 %v5971_v58  ;;  %v14282_v7 = vld [vmem:[#allocation82_spill] sm:$0xff] }
 0x75a   : > { %v7253_v37 = vpop.f32.mrf.mxu1  ;;  %6253 = vmatmul.mubr.bf16.gmra.mxu0 %v5970_v24 }
 0x75b   : > { %8188 = vpow2.f32 %v7058_v53  ;;  %v7254_v5 = vadd.f32 %v7253_v37, %v7252_v8  ;;  %v7366_v8 = vadd.f32 %v7365_v27, %v13058_v1 }
 0x75c   : > { %v7255_v36 = vpop.f32.mrf.mxu1 }
 0x75d   : > { %v7059_v44 = vmul.f32 -1.442695, %v7254_v5 }
 0x75e   : > { %v7256_v6 = vpop.f32.mrf.mxu1 }
 0x75f   : > { %8190 = vpow2.f32 %v7059_v44  ;;  %v7257_v12 = vadd.f32 %v7256_v6, %v7255_v36 }
 0x760   : > { %v7258_v49 = vpop.f32.mrf.mxu1 }
 0x761   : > { %v7060_v54 = vmul.f32 -1.442695, %v7257_v12 }
 0x762   : > { %v7259_v14 = vpop.f32.mrf.mxu1 }
 0x763   : > { %8192 = vpow2.f32 %v7060_v54  ;;  %v7260_v59 = vadd.f32 %v7259_v14, %v7258_v49  ;;  %v14283_v49 = vld [vmem:[#allocation81_spill] sm:$0xff] }
 0x764   : > { %v7261_v56 = vpop.f32.mrf.mxu1 }
 0x765   : > { %v7061_v41 = vmul.f32 -1.442695, %v7260_v59 }
 0x766   : > { %v7262_v45 = vpop.f32.mrf.mxu1 }
 0x767   : > { %8194 = vpow2.f32 %v7061_v41  ;;  %v7263_v0 = vadd.f32 %v7262_v45, %v7261_v56  ;;  %v13060_v39 = vpop.f32.mrf.mxu0 }
 0x768   : > { %v8189_v11 = vpop.eup %8188  ;;  %v7264_v34 = vpop.f32.mrf.mxu1 }
 0x769   : > { %v6357_v3 = vadd.f32 1.0, %v8189_v11  ;;  %v7062_v33 = vmul.f32 -1.442695, %v7263_v0  ;;  %v7368_v26 = vpop.f32.mrf.mxu0 }
 0x76a   : > { %v7265_v29 = vpop.f32.mrf.mxu1  ;;  %v7369_v14 = vadd.f32 %v7368_v26, %v13060_v39 }
 0x76b   : > { %8196 = vrcp.f32 %v6357_v3  ;;  %v7266_v13 = vadd.f32 %v7265_v29, %v7264_v34  ;;  %v13062_v40 = vpop.f32.mrf.mxu0  ;;  %v14284_v29 = vld [vmem:[#allocation86_spill] sm:$0xff] }
 0x76c   : > { %v8191_v16 = vpop.eup %8190  ;;  %8198 = vpow2.f32 %v7062_v33  ;;  %v7267_v38 = vpop.f32.mrf.mxu1 }
 0x76d   : > { %v6358_v50 = vadd.f32 1.0, %v8191_v16  ;;  %v7063_v9 = vmul.f32 -1.442695, %v7266_v13  ;;  %v13064_v22 = vpop.f32.mrf.mxu0 }
 0x76e   : > { %v7268_v4 = vpop.f32.mrf.mxu1  ;;  %v7372_v39 = vadd.f32 %v13064_v22, %v13062_v40 }
 0x76f   : > { %8200 = vrcp.f32 %v6358_v50  ;;  %v7269_v47 = vadd.f32 %v7268_v4, %v7267_v38  ;;  %v13066_v52 = vpop.f32.mrf.mxu0 }
 0x770   : > { %v8193_v30 = vpop.eup %8192  ;;  %8202 = vpow2.f32 %v7063_v9  ;;  %v7270_v42 = vpop.f32.mrf.mxu1 }
 0x771   : > { %v6359_v57 = vadd.f32 1.0, %v8193_v30  ;;  %v7064_v25 = vmul.f32 -1.442695, %v7269_v47  ;;  %v13068_v15 = vpop.f32.mrf.mxu0 }
 0x772   : > { %v7271_v46 = vpop.f32.mrf.mxu1 }
 0x773   : > { %8204 = vrcp.f32 %v6359_v57  ;;  %v7272_v48 = vadd.f32 %v7271_v46, %v7270_v42  ;;  %v13070_v18 = vpop.f32.mrf.mxu0 }
 0x774   : > { %v8195_v21 = vpop.eup %8194  ;;  %8206 = vpow2.f32 %v7064_v25  ;;  %v7273_v23 = vpop.f32.mrf.mxu1  ;;  %v14285_v25 = vld [vmem:[#allocation87_spill] sm:$0xff] }
 0x775   : > { %v6360_v51 = vadd.f32 1.0, %v8195_v21  ;;  %v7065_v32 = vmul.f32 -1.442695, %v7272_v48  ;;  %v13072_v10 = vpop.f32.mrf.mxu0  ;;  %v7375_v21 = vadd.f32 %v13068_v15, %v13066_v52 }
 0x776   : > { %v7274_v63 = vpop.f32.mrf.mxu1  ;;  %v7378_v52 = vadd.f32 %v13072_v10, %v13070_v18 }
 0x777   : > { %8208 = vrcp.f32 %v6360_v51  ;;  %v7275_v20 = vadd.f32 %v7274_v63, %v7273_v23  ;;  %v13075_v60 = vpop.f32.mrf.mxu0 }
 0x778   : > { %v8197_v35 = vpop.eup %8196  ;;  %8210 = vpow2.f32 %v7065_v32  ;;  %v7276_v28 = vpop.f32.mrf.mxu1 }
 0x779   : > { %v8199_v61 = vpop.eup %8198  ;;  %v6453_v62 = vmul.f32 %v8197_v35, %v7363_v19  ;;  %v7066_v17 = vmul.f32 -1.442695, %v7275_v20  ;;  %v13077_v55 = vpop.f32.mrf.mxu0 }
 0x77a   : > { %v6361_v2 = vadd.f32 1.0, %v8199_v61  ;;  %v7277_v58 = vpop.f32.mrf.mxu1  ;;  %v7381_v18 = vadd.f32 %v13077_v55, %v13075_v60 }
 0x77b   : > { %v6485_v24 = vadd.f32 %v6453_v62, %v14282_v7  ;;  %8212 = vpow2.f32 %v7066_v17  ;;  %v7278_v43 = vadd.f32 %v7277_v58, %v7276_v28  ;;  %v13081_v53 = vpop.f32.mrf.mxu0  ;;  %v14286_v17 = vld [vmem:[#allocation84_spill] sm:$0xff] }
 0x77c   : > { %v8201_v37 = vpop.eup %8200  ;;  %8214 = vrcp.f32 %v6361_v2  ;;  %v7279_v5 = vpop.f32.mrf.mxu1 }
 0x77d   : > { %v8203_v31 = vpop.eup %8202  ;;  %6517 = vst [vmem:[%s13085_s8] sm:$0xff] %v6485_v24  ;;  %v6454_v36 = vmul.f32 %v8201_v37, %v7366_v8  ;;  %v7067_v44 = vmul.f32 -1.442695, %v7278_v43  ;;  %v13088_v6 = vpop.f32.mrf.mxu0 }
 0x77e   : > { %v6362_v12 = vadd.f32 1.0, %v8203_v31  ;;  %v7280_v1 = vpop.f32.mrf.mxu1  ;;  %v7384_v60 = vadd.f32 %v13088_v6, %v13081_v53  ;;  %v14289_v53 = vld [vmem:[#allocation93_spill] sm:$0xff] }
 0x77f   : > { %v6486_v54 = vadd.f32 %v6454_v36, %v14283_v49  ;;  %8216 = vpow2.f32 %v7067_v44  ;;  %v7281_v59 = vadd.f32 %v7280_v1, %v7279_v5  ;;  %v13092_v27 = vpop.f32.mrf.mxu0  ;;  %v14287_v44 = vld [vmem:[#allocation92_spill] sm:$0xff] }
 0x780   : > { %v8205_v56 = vpop.eup %8204  ;;  %8218 = vrcp.f32 %v6362_v12  ;;  %v7282_v41 = vpop.f32.mrf.mxu1 }
 0x781   : > { %v8207_v45 = vpop.eup %8206  ;;  %6518 = vst [vmem:[%s13085_s8 + $0x8] sm:$0xff] %v6486_v54  ;;  %v6455_v0 = vmul.f32 %v8205_v56, %v7369_v14  ;;  %v7068_v11 = vmul.f32 -1.442695, %v7281_v59  ;;  %v13095_v34 = vpop.f32.mrf.mxu0 }
 0x782   : > { %v6363_v3 = vadd.f32 1.0, %v8207_v45  ;;  %v7283_v33 = vpop.f32.mrf.mxu1 }
 0x783   : > { %v6487_v13 = vadd.f32 %v6455_v0, %v14284_v29  ;;  %8220 = vpow2.f32 %v7068_v11  ;;  %v7284_v26 = vadd.f32 %v7283_v33, %v7282_v41  ;;  %v13100_v16 = vpop.f32.mrf.mxu0  ;;  %v14288_v11 = vld [vmem:[#allocation95_spill] sm:$0xff] }
 0x784   : > { %v8209_v38 = vpop.eup %8208  ;;  %8222 = vrcp.f32 %v6363_v3  ;;  %v7285_v50 = vpop.f32.mrf.mxu1 }
 0x785   : > { %v8211_v9 = vpop.eup %8210  ;;  %6519 = vst [vmem:[%s13085_s8 + $0x10] sm:$0xff] %v6487_v13  ;;  %v6456_v4 = vmul.f32 %v8209_v38, %v7372_v39  ;;  %v7069_v47 = vmul.f32 -1.442695, %v7284_v26  ;;  %v13103_v30 = vpop.f32.mrf.mxu0 }
 0x786   : > { %v6364_v42 = vadd.f32 1.0, %v8211_v9  ;;  %v7286_v57 = vpop.f32.mrf.mxu1 }
 0x787   : > { %v6488_v46 = vadd.f32 %v6456_v4, %v14285_v25  ;;  %8224 = vpow2.f32 %v7069_v47  ;;  %v7287_v40 = vadd.f32 %v7286_v57, %v7285_v50  ;;  %v13106_v22 = vpop.f32.mrf.mxu0  ;;  %v7387_v50 = vadd.f32 %v13095_v34, %v13092_v27 }
 0x788   : > { %v8213_v48 = vpop.eup %8212  ;;  %8226 = vrcp.f32 %v6364_v42  ;;  %v7288_v23 = vpop.f32.mrf.mxu1  ;;  %v7390_v34 = vadd.f32 %v13103_v30, %v13100_v16 }
 0x789   : > { %v8215_v51 = vpop.eup %8214  ;;  %6520 = vst [vmem:[%s13085_s8 + $0x18] sm:$0xff] %v6488_v46  ;;  %v6365_v32 = vadd.f32 1.0, %v8213_v48  ;;  %v7070_v63 = vmul.f32 -1.442695, %v7287_v40  ;;  %v13111_v19 = vpop.f32.mrf.mxu0 }
 0x78a   : > { %v6457_v20 = vmul.f32 %v8215_v51, %v7375_v21  ;;  %v7289_v35 = vpop.f32.mrf.mxu1 }
 0x78b   : > { %8228 = vrcp.f32 %v6365_v32  ;;  %v7290_v28 = vadd.f32 %v7289_v35, %v7288_v23  ;;  %v13113_v61 = vpop.f32.mrf.mxu0  ;;  %v14290_v23 = vld [vmem:[#allocation97_spill] sm:$0xff] }
 0x78c   : > { %v8217_v62 = vpop.eup %8216  ;;  %v6489_v2 = vadd.f32 %v6457_v20, %v14286_v17  ;;  %8230 = vpow2.f32 %v7070_v63  ;;  %v7291_v15 = vpop.f32.mrf.mxu1 }
 0x78d   : > { %v8219_v58 = vpop.eup %8218  ;;  %v6366_v7 = vadd.f32 1.0, %v8217_v62  ;;  %v7071_v24 = vmul.f32 -1.442695, %v7290_v28  ;;  %v13118_v8 = vpop.f32.mrf.mxu0 }
 0x78e   : > { %6521 = vst [vmem:[%s13085_s8 + $0x20] sm:$0xff] %v6489_v2  ;;  %v6458_v43 = vmul.f32 %v8219_v58, %v7378_v52  ;;  %v7292_v37 = vpop.f32.mrf.mxu1  ;;  %v14291_v52 = vld [vmem:[#allocation25_spill] sm:$0xff]  ;;  %v7393_v58 = vadd.f32 %v13111_v19, %v13106_v22 }
 0x78f   : > { %8232 = vrcp.f32 %v6366_v7  ;;  %v7293_v5 = vadd.f32 %v7292_v37, %v7291_v15  ;;  %v13121_v31 = vpop.f32.mrf.mxu0 }
 0x790   : > { %v8221_v36 = vpop.eup %8220  ;;  %v6490_v12 = vadd.f32 %v6458_v43, %v14287_v44  ;;  %8234 = vpow2.f32 %v7071_v24  ;;  %v7294_v10 = vpop.f32.mrf.mxu1 }
 0x791   : > { %v8223_v1 = vpop.eup %8222  ;;  %v6367_v49 = vadd.f32 1.0, %v8221_v36  ;;  %v7072_v54 = vmul.f32 -1.442695, %v7293_v5  ;;  %v13126_v14 = vpop.f32.mrf.mxu0 }
 0x792   : > { %6522 = vst [vmem:[%s13085_s8 + $0x28] sm:$0xff] %v6490_v12  ;;  %v6459_v59 = vmul.f32 %v8223_v1, %v7381_v18  ;;  %v7295_v56 = vpop.f32.mrf.mxu1  ;;  %v14292_v12 = vld [vmem:[#allocation28_spill] sm:$0xff] }
 0x793   : > { %8236 = vrcp.f32 %v6367_v49  ;;  %v7296_v41 = vadd.f32 %v7295_v56, %v7294_v10  ;;  %v13129_v45 = vpop.f32.mrf.mxu0  ;;  %v7396_v10 = vadd.f32 %v13118_v8, %v13113_v61  ;;  %v7399_v61 = vadd.f32 %v13126_v14, %v13121_v31 }
 0x794   : > { %v8225_v0 = vpop.eup %8224  ;;  %v6491_v3 = vadd.f32 %v6459_v59, %v14288_v11  ;;  %8238 = vpow2.f32 %v7072_v54  ;;  %v7297_v55 = vpop.f32.mrf.mxu1  ;;  %v14293_v11 = vld [vmem:[#allocation26_spill] sm:$0xff] }
 0x795   : > { %v8227_v33 = vpop.eup %8226  ;;  %v6368_v29 = vadd.f32 1.0, %v8225_v0  ;;  %v7073_v13 = vmul.f32 -1.442695, %v7296_v41  ;;  %v13134_v39 = vpop.f32.mrf.mxu0 }
 0x796   : > { %6523 = vst [vmem:[%s13085_s8 + $0x30] sm:$0xff] %v6491_v3  ;;  %v6460_v26 = vmul.f32 %v8227_v33, %v7384_v60  ;;  %v7298_v38 = vpop.f32.mrf.mxu1 }
 0x797   : > { %8240 = vrcp.f32 %v6368_v29  ;;  %v7299_v9 = vadd.f32 %v7298_v38, %v7297_v55  ;;  %v13139_v4 = vpop.f32.mrf.mxu0 }
 0x798   : > { %v8229_v47 = vpop.eup %8228  ;;  %v6492_v6 = vadd.f32 %v6460_v26, %v14289_v53  ;;  %8242 = vpow2.f32 %v7073_v13  ;;  %v7300_v42 = vpop.f32.mrf.mxu1 }
 0x799   : > { %v8231_v57 = vpop.eup %8230  ;;  %v6461_v25 = vmul.f32 %v8229_v47, %v7387_v50  ;;  %v7074_v46 = vmul.f32 -1.442695, %v7299_v9  ;;  %v13142_v40 = vpop.f32.mrf.mxu0  ;;  %v14294_v50 = vld [vmem:[#allocation107_spill] sm:$0xff]  ;;  %v7402_v47 = vadd.f32 %v13134_v39, %v13129_v45 }
 0x79a   : > { %6524 = vst [vmem:[%s13085_s8 + $0x38] sm:$0xff] %v6492_v6  ;;  %v6369_v48 = vadd.f32 1.0, %v8231_v57  ;;  %v7301_v21 = vpop.f32.mrf.mxu1 }
 0x79b   : > { %v6493_v27 = vadd.f32 %v6461_v25, %v14290_v23  ;;  %8244 = vpow2.f32 %v7074_v46  ;;  %v7302_v51 = vadd.f32 %v7301_v21, %v7300_v42  ;;  %v13148_v63 = vpop.f32.mrf.mxu0  ;;  %v14295_v46 = vld [vmem:[#allocation102_spill] sm:$0xff]  ;;  %v7405_v21 = vadd.f32 %v13142_v40, %v13139_v4 }
 0x79c   : > { %v8233_v32 = vpop.eup %8232  ;;  %8246 = vrcp.f32 %v6369_v48  ;;  %v7303_v20 = vpop.f32.mrf.mxu1 }
 0x79d   : > { %v8235_v35 = vpop.eup %8234  ;;  %6525 = vst [vmem:[%s13085_s8 + $0x40] sm:$0xff] %v6493_v27  ;;  %v6462_v28 = vmul.f32 %v8233_v32, %v7390_v34  ;;  %v7075_v62 = vmul.f32 -1.442695, %v7302_v51  ;;  %v7407_v7 = vpop.f32.mrf.mxu0  ;;  %v14296_v32 = vld [vmem:[#allocation101_spill] sm:$0xff] }
 0x79e   : > { %v6370_v17 = vadd.f32 1.0, %v8235_v35  ;;  %v7304_v2 = vpop.f32.mrf.mxu1  ;;  %v7408_v35 = vadd.f32 %v7407_v7, %v13148_v63 }
 0x79f   : > { %v6494_v15 = vadd.f32 %v6462_v28, %v14291_v52  ;;  %8248 = vpow2.f32 %v7075_v62  ;;  %v7305_v16 = vadd.f32 %v7304_v2, %v7303_v20  ;;  %v7409_v1 = vpop.f32.mrf.mxu0 }
 0x7a0   : > { %v8237_v30 = vpop.eup %8236  ;;  %8250 = vrcp.f32 %v6370_v17  ;;  %v7306_v24 = vpop.f32.mrf.mxu1 }
 0x7a1   : > { %v8239_v43 = vpop.eup %8238  ;;  %6526 = vst [vmem:[%s13085_s8 + $0x48] sm:$0xff] %v6494_v15  ;;  %v6463_v37 = vmul.f32 %v8237_v30, %v7393_v58  ;;  %v7076_v5 = vmul.f32 -1.442695, %v7305_v16  ;;  %v7410_v8 = vpop.f32.mrf.mxu0  ;;  %v14297_v15 = vld [vmem:[#allocation103_spill] sm:$0xff] }
 0x7a2   : > { %v6371_v36 = vadd.f32 1.0, %v8239_v43  ;;  %v7307_v44 = vpop.f32.mrf.mxu1  ;;  %v7411_v40 = vadd.f32 %v7410_v8, %v7409_v1  ;;  %v14298_v43 = vld [vmem:[#allocation66_spill] sm:$0xff] }
 0x7a3   : > { %v6495_v18 = vadd.f32 %v6463_v37, %v14292_v12  ;;  %8252 = vpow2.f32 %v7076_v5  ;;  %v7308_v22 = vadd.f32 %v7307_v44, %v7306_v24  ;;  %v7412_v31 = vpop.f32.mrf.mxu0  ;;  %v14299_v12 = vld [vmem:[#allocation61_spill] sm:$0xff] }
 0x7a4   : > { %v8241_v19 = vpop.eup %8240  ;;  %8254 = vrcp.f32 %v6371_v36  ;;  %v13158_v49 = vpop.f32.mrf.mxu1 }
 0x7a5   : > { %v8243_v54 = vpop.eup %8242  ;;  %6527 = vst [vmem:[%s13085_s8 + $0x50] sm:$0xff] %v6495_v18  ;;  %v6464_v59 = vmul.f32 %v8241_v19, %v7396_v10  ;;  %v7077_v56 = vmul.f32 -1.442695, %v7308_v22  ;;  %v7413_v23 = vpop.f32.mrf.mxu0 }
 0x7a6   : > { %v6372_v41 = vadd.f32 1.0, %v8243_v54  ;;  %v13161_v0 = vpop.f32.mrf.mxu1  ;;  %v7414_v63 = vadd.f32 %v7413_v23, %v7412_v31 }
 0x7a7   : > { %v6496_v3 = vadd.f32 %v6464_v59, %v14293_v11  ;;  %8256 = vpow2.f32 %v7077_v56  ;;  %v7415_v28 = vpop.f32.mrf.mxu0  ;;  %v14300_v59 = vld [vmem:[#allocation68_spill] sm:$0xff] }
 0x7a8   : > { %v8245_v60 = vpop.eup %8244  ;;  %8258 = vrcp.f32 %v6372_v41  ;;  %v13166_v55 = vpop.f32.mrf.mxu1 }
 0x7a9   : > { %v8247_v33 = vpop.eup %8246  ;;  %6528 = vst [vmem:[%s13085_s8 + $0x58] sm:$0xff] %v6496_v3  ;;  %v6373_v29 = vadd.f32 1.0, %v8245_v60  ;;  %v7416_v16 = vpop.f32.mrf.mxu0 }
 0x7aa   : > { %v6465_v13 = vmul.f32 %v8247_v33, %v7399_v61  ;;  %v13169_v26 = vpop.f32.mrf.mxu1  ;;  %v7417_v10 = vadd.f32 %v7416_v16, %v7415_v28  ;;  %v14301_v61 = vld [vmem:[#allocation104_spill] sm:$0xff] }
 0x7ab   : > { %8260 = vrcp.f32 %v6373_v29  ;;  %v7418_v5 = vpop.f32.mrf.mxu0  ;;  %v7311_v29 = vadd.f32 %v13161_v0, %v13158_v49 }
 0x7ac   : > { %v8249_v38 = vpop.eup %8248  ;;  %v6497_v9 = vadd.f32 %v6465_v13, %v14294_v50  ;;  %v7315_v14 = vpop.f32.mrf.mxu1  ;;  %v7314_v50 = vadd.f32 %v13169_v26, %v13166_v55 }
 0x7ad   : > { %v8251_v53 = vpop.eup %8250  ;;  %v6374_v6 = vadd.f32 1.0, %v8249_v38  ;;  %v7419_v19 = vpop.f32.mrf.mxu0  ;;  %v7078_v38 = vmul.f32 -1.442695, %v7311_v29  ;;  %v14303_v29 = vld [vmem:[#allocation58_spill] sm:$0xff] }
 0x7ae   : > { %6529 = vst [vmem:[%s13085_s8 + $0x60] sm:$0xff] %v6497_v9  ;;  %v6466_v42 = vmul.f32 %v8251_v53, %v7402_v47  ;;  %v7316_v57 = vpop.f32.mrf.mxu1  ;;  %v7420_v41 = vadd.f32 %v7419_v19, %v7418_v5  ;;  %v7079_v31 = vmul.f32 -1.442695, %v7314_v50 }
 0x7af   : > { %8262 = vrcp.f32 %v6374_v6  ;;  %v7317_v47 = vadd.f32 %v7316_v57, %v7315_v14 }
 0x7b0   : > { %v8253_v25 = vpop.eup %8252  ;;  %v6498_v48 = vadd.f32 %v6466_v42, %v14295_v46  ;;  %v7318_v39 = vpop.f32.mrf.mxu1 }
 0x7b1   : > { %v8255_v27 = vpop.eup %8254  ;;  %v6375_v34 = vadd.f32 1.0, %v8253_v25  ;;  %v7080_v6 = vmul.f32 -1.442695, %v7317_v47 }
 0x7b2   : > { %6530 = vst [vmem:[%s13085_s8 + $0x68] sm:$0xff] %v6498_v48  ;;  %v6467_v45 = vmul.f32 %v8255_v27, %v7405_v21  ;;  %v7319_v4 = vpop.f32.mrf.mxu1 }
 0x7b3   : > { %8264 = vrcp.f32 %v6375_v34  ;;  %v7320_v42 = vadd.f32 %v7319_v4, %v7318_v39 }
 0x7b4   : > { %v8257_v51 = vpop.eup %8256  ;;  %v6499_v20 = vadd.f32 %v6467_v45, %v14296_v32  ;;  %v7321_v24 = vpop.f32.mrf.mxu1 }
 0x7b5   : > { %v8259_v62 = vpop.eup %8258  ;;  %v6376_v17 = vadd.f32 1.0, %v8257_v51  ;;  %v7081_v48 = vmul.f32 -1.442695, %v7320_v42  ;;  %v14304_v42 = vld [vmem:[#allocation65_spill] sm:$0xff] }
 0x7b6   : > { %6531 = vst [vmem:[%s13085_s8 + $0x70] sm:$0xff] %v6499_v20  ;;  %v6468_v2 = vmul.f32 %v8259_v62, %v7408_v35  ;;  %v7322_v44 = vpop.f32.mrf.mxu1 }
 0x7b7   : > { %8266 = vrcp.f32 %v6376_v17  ;;  %v7323_v46 = vadd.f32 %v7322_v44, %v7321_v24 }
 0x7b8   : > { %v8261_v52 = vpop.eup %8260  ;;  %v6500_v58 = vadd.f32 %v6468_v2, %v14297_v15  ;;  %v7324_v54 = vpop.f32.mrf.mxu1  ;;  %8268 = vpow2.f32 %v7078_v38 }
 0x7b9   : > { %v6469_v30 = vmul.f32 %v8261_v52, %v7411_v40  ;;  %8270 = vpow2.f32 %v7079_v31  ;;  %v7082_v23 = vmul.f32 -1.442695, %v7323_v46 }
 0x7ba   : > { %6532 = vst [vmem:[%s13085_s8 + $0x78] sm:$0xff] %v6500_v58  ;;  %v7325_v60 = vpop.f32.mrf.mxu1  ;;  %8272 = vpow2.f32 %v7080_v6 }
 0x7bb   : > { %v6501_v37 = vadd.f32 %v6469_v30, %v14298_v43  ;;  %8274 = vpow2.f32 %v7081_v48  ;;  %v7326_v49 = vadd.f32 %v7325_v60, %v7324_v54  ;;  %v14302_v54 = vld [vmem:[#allocation32_spill] sm:$0xff] }
 0x7bc   : > { %v8263_v7 = vpop.eup %8262  ;;  %v7327_v33 = vpop.f32.mrf.mxu1  ;;  %8276 = vpow2.f32 %v7082_v23 }
 0x7bd   : > { %6533 = vst [vmem:[%s13085_s8 + $0x80] sm:$0xff] %v6501_v37  ;;  %v6470_v36 = vmul.f32 %v8263_v7, %v7414_v63  ;;  %v7083_v55 = vmul.f32 -1.442695, %v7326_v49 }
 0x7be   : > { %v7328_v13 = vpop.f32.mrf.mxu1 }
 0x7bf   : > { %v6502_v18 = vadd.f32 %v6470_v36, %v14299_v12  ;;  %v7329_v26 = vadd.f32 %v7328_v13, %v7327_v33  ;;  %8278 = vpow2.f32 %v7083_v55 }
 0x7c0   : > { %v8265_v22 = vpop.eup %8264  ;;  %v7330_v9 = vpop.f32.mrf.mxu1 }
 0x7c1   : > { %6534 = vst [vmem:[%s13085_s8 + $0x88] sm:$0xff] %v6502_v18  ;;  %v6471_v1 = vmul.f32 %v8265_v22, %v7417_v10  ;;  %v7084_v45 = vmul.f32 -1.442695, %v7329_v26  ;;  %v14305_v26 = vld [vmem:[#allocation105_spill] sm:$0xff] }
 0x7c2   : > { %v7331_v53 = vpop.f32.mrf.mxu1 }
 0x7c3   : > { %v6503_v56 = vadd.f32 %v6471_v1, %v14300_v59  ;;  %v7332_v32 = vadd.f32 %v7331_v53, %v7330_v9 }
 0x7c4   : > { %v8267_v11 = vpop.eup %8266  ;;  %v7333_v25 = vpop.f32.mrf.mxu1 }
 0x7c5   : > { %6535 = vst [vmem:[%s13085_s8 + $0x90] sm:$0xff] %v6503_v56  ;;  %v6472_v3 = vmul.f32 %v8267_v11, %v7420_v41  ;;  %v8269_v0 = vpop.eup %8268  ;;  %v7085_v62 = vmul.f32 -1.442695, %v7332_v32 }
 0x7c6   : > { %v7334_v21 = vpop.f32.mrf.mxu1  ;;  %v6377_v14 = vadd.f32 1.0, %v8269_v0  ;;  %v8271_v57 = vpop.eup %8270 }
 0x7c7   : > { %v6504_v8 = vadd.f32 %v6472_v3, %v14301_v61  ;;  %v8273_v39 = vpop.eup %8272  ;;  %v6378_v51 = vadd.f32 1.0, %v8271_v57  ;;  %v7335_v17 = vadd.f32 %v7334_v21, %v7333_v25 }
 0x7c8   : > { %v7336_v27 = vpop.f32.mrf.mxu1  ;;  %8280 = vrcp.f32 %v6377_v14  ;;  %v6379_v35 = vadd.f32 1.0, %v8273_v39  ;;  %v8275_v28 = vpop.eup %8274 }
 0x7c9   : > { %6536 = vst [vmem:[%s13085_s8 + $0x98] sm:$0xff] %v6504_v8  ;;  %8282 = vpow2.f32 %v7084_v45  ;;  %v8277_v4 = vpop.eup %8276  ;;  %v6380_v40 = vadd.f32 1.0, %v8275_v28  ;;  %v7086_v15 = vmul.f32 -1.442695, %v7335_v17 }
 0x7ca   : > { %v7337_v34 = vpop.f32.mrf.mxu1  ;;  %8284 = vrcp.f32 %v6378_v51  ;;  %v6381_v30 = vadd.f32 1.0, %v8277_v4 }
 0x7cb   : > { %8286 = vrcp.f32 %v6379_v35  ;;  %v7338_v52 = vadd.f32 %v7337_v34, %v7336_v27 }
 0x7cc   : > { %v7339_v20 = vpop.f32.mrf.mxu1  ;;  %8288 = vpow2.f32 %v7085_v62  ;;  %v8279_v37 = vpop.eup %8278 }
 0x7cd   : > { %8290 = vrcp.f32 %v6380_v40  ;;  %v7087_v24 = vmul.f32 -1.442695, %v7338_v52  ;;  %v6382_v18 = vadd.f32 1.0, %v8279_v37 }
 0x7ce   : > { %v7340_v2 = vpop.f32.mrf.mxu1  ;;  %8292 = vpow2.f32 %v7086_v15  ;;  %v14307_v15 = vld [vmem:[#allocation60_spill] sm:$0xff] }
 0x7cf   : > { %v7341_v63 = vadd.f32 %v7340_v2, %v7339_v20  ;;  %8294 = vrcp.f32 %v6381_v30  ;;  %v14306_v20 = vld [vmem:[#allocation67_spill] sm:$0xff] }
 0x7d0   : > { %v7342_v58 = vpop.f32.mrf.mxu1  ;;  %8296 = vpow2.f32 %v7087_v24 }
 0x7d1   : > { %v7088_v19 = vmul.f32 -1.442695, %v7341_v63  ;;  %8298 = vrcp.f32 %v6382_v18 }
 0x7d2   : > { %v7343_v36 = vpop.f32.mrf.mxu1 }
 0x7d3   : > { %v7344_v1 = vadd.f32 %v7343_v36, %v7342_v58  ;;  %8300 = vpow2.f32 %v7088_v19 }
 0x7d5   : > { %v8281_v5 = vpop.eup %8280  ;;  %v7089_v33 = vmul.f32 -1.442695, %v7344_v1 }
 0x7d6   : > { %v8283_v22 = vpop.eup %8282 }
 0x7d7   : > { %v8285_v41 = vpop.eup %8284  ;;  %v6383_v60 = vadd.f32 1.0, %v8283_v22  ;;  %v14309_v22 = vld [vmem:[#allocation29_spill] sm:$0xff] }
 0x7d8   : > { %v8287_v8 = vpop.eup %8286 }
 0x7d9   : > { %v8289_v50 = vpop.eup %8288  ;;  %8302 = vrcp.f32 %v6383_v60 }
 0x7da   : > { %v8291_v53 = vpop.eup %8290  ;;  %v6384_v6 = vadd.f32 1.0, %v8289_v50  ;;  %8304 = vpow2.f32 %v7089_v33 }
 0x7db   : > { %v8293_v48 = vpop.eup %8292 }
 0x7dc   : > { %v8295_v49 = vpop.eup %8294  ;;  %8306 = vrcp.f32 %v6384_v6  ;;  %v6385_v55 = vadd.f32 1.0, %v8293_v48  ;;  %v14312_v6 = vld [vmem:[#allocation38_spill] sm:$0xff] }
 0x7dd   : > { %v8297_v27 = vpop.eup %8296 }
 0x7de   : > { %v8299_v51 = vpop.eup %8298  ;;  %8308 = vrcp.f32 %v6385_v55  ;;  %v6386_v32 = vadd.f32 1.0, %v8297_v27 }
 0x7e0   : > { %v8301_v62 = vpop.eup %8300  ;;  %8310 = vrcp.f32 %v6386_v32 }
 0x7e1   : > { %v6387_v52 = vadd.f32 1.0, %v8301_v62 }
 0x7e3   : > { %8312 = vrcp.f32 %v6387_v52 }
 0x7e6   : > { %v8303_v40 = vpop.eup %8302 }
 0x7e7   : > { %v8305_v30 = vpop.eup %8304 }
 0x7e8   : > { %v6388_v63 = vadd.f32 1.0, %v8305_v30 }
 0x7ea   : > { %8314 = vrcp.f32 %v6388_v63 }
 0x7f2   : > { %v7421_v16 = vpop.f32.mrf.mxu0 }
 0x7f4   : > { %v7422_v43 = vpop.f32.mrf.mxu0 }
 0x7f5   : > { %v7423_v7 = vadd.f32 %v7422_v43, %v7421_v16 }
 0x7f6   : > { %v7424_v44 = vpop.f32.mrf.mxu0 }
 0x7f7   : > { %v6473_v12 = vmul.f32 %v8281_v5, %v7423_v7  ;;  %v14308_v7 = vld [vmem:[#allocation31_spill] sm:$0xff] }
 0x7f8   : > { %v7425_v10 = vpop.f32.mrf.mxu0 }
 0x7f9   : > { %v6505_v59 = vadd.f32 %v6473_v12, %v14302_v54  ;;  %v7426_v56 = vadd.f32 %v7425_v10, %v7424_v44  ;;  %v8307_v44 = vpop.eup %8306 }
 0x7fa   : > { %v7427_v11 = vpop.f32.mrf.mxu0  ;;  %v8309_v54 = vpop.eup %8308 }
 0x7fb   : > { %6537 = vst [vmem:[%s13085_s8 + $0xa0] sm:$0xff] %v6505_v59  ;;  %v6474_v3 = vmul.f32 %v8285_v41, %v7426_v56 }
 0x7fc   : > { %v7428_v61 = vpop.f32.mrf.mxu0 }
 0x7fd   : > { %v6506_v13 = vadd.f32 %v6474_v3, %v14303_v29  ;;  %v7429_v38 = vadd.f32 %v7428_v61, %v7427_v11  ;;  %v14310_v11 = vld [vmem:[#allocation106_spill] sm:$0xff]  ;;  %v8311_v61 = vpop.eup %8310 }
 0x7fe   : > { %v7430_v9 = vpop.f32.mrf.mxu0 }
 0x7ff   : > { %6538 = vst [vmem:[%s13085_s8 + $0xa8] sm:$0xff] %v6506_v13  ;;  %v6475_v47 = vmul.f32 %v8287_v8, %v7429_v38  ;;  %v14311_v13 = vld [vmem:[#allocation35_spill] sm:$0xff] }
 0x800   : > { %v7431_v31 = vpop.f32.mrf.mxu0 }
 0x801   : > { %v6507_v25 = vadd.f32 %v6475_v47, %v14304_v42  ;;  %v7432_v46 = vadd.f32 %v7431_v31, %v7430_v9  ;;  %v8313_v9 = vpop.eup %8312 }
 0x802   : > { %v7433_v21 = vpop.f32.mrf.mxu0 }
 0x803   : > { %6539 = vst [vmem:[%s13085_s8 + $0xb0] sm:$0xff] %v6507_v25  ;;  %v6476_v23 = vmul.f32 %v8291_v53, %v7432_v46  ;;  %v8315_v46 = vpop.eup %8314 }
 0x804   : > { %v7434_v0 = vpop.f32.mrf.mxu0 }
 0x805   : > { %v6508_v14 = vadd.f32 %v6476_v23, %v14305_v26  ;;  %v7435_v57 = vadd.f32 %v7434_v0, %v7433_v21  ;;  %v14313_v21 = vld [vmem:[#allocation69_spill] sm:$0xff] }
 0x806   : > { %v7436_v34 = vpop.f32.mrf.mxu0 }
 0x807   : > { %6540 = vst [vmem:[%s13085_s8 + $0xb8] sm:$0xff] %v6508_v14  ;;  %v6477_v45 = vmul.f32 %v8295_v49, %v7435_v57 }
 0x808   : > { %v7437_v39 = vpop.f32.mrf.mxu0 }
 0x809   : > { %v6509_v35 = vadd.f32 %v6477_v45, %v14306_v20  ;;  %v7438_v28 = vadd.f32 %v7437_v39, %v7436_v34 }
 0x80a   : > { %v7439_v17 = vpop.f32.mrf.mxu0 }
 0x80b   : > { %6541 = vst [vmem:[%s13085_s8 + $0xc0] sm:$0xff] %v6509_v35  ;;  %v6478_v2 = vmul.f32 %v8299_v51, %v7438_v28 }
 0x80c   : > { %v7440_v4 = vpop.f32.mrf.mxu0 }
 0x80d   : > { %v6510_v58 = vadd.f32 %v6478_v2, %v14307_v15  ;;  %v7441_v16 = vadd.f32 %v7440_v4, %v7439_v17 }
 0x80e   : > { %v7442_v24 = vpop.f32.mrf.mxu0 }
 0x80f   : > { %6542 = vst [vmem:[%s13085_s8 + $0xc8] sm:$0xff] %v6510_v58  ;;  %v6479_v43 = vmul.f32 %v8303_v40, %v7441_v16 }
 0x810   : > { %v7443_v37 = vpop.f32.mrf.mxu0 }
 0x811   : > { %v6511_v5 = vadd.f32 %v6479_v43, %v14308_v7  ;;  %v7444_v36 = vadd.f32 %v7443_v37, %v7442_v24 }
 0x812   : > { %v7445_v12 = vpop.f32.mrf.mxu0 }
 0x813   : > { %6543 = vst [vmem:[%s13085_s8 + $0xd0] sm:$0xff] %v6511_v5  ;;  %v6480_v18 = vmul.f32 %v8307_v44, %v7444_v36 }
 0x814   : > { %v7446_v10 = vpop.f32.mrf.mxu0 }
 0x815   : > { %v6512_v19 = vadd.f32 %v6480_v18, %v14309_v22  ;;  %v7447_v1 = vadd.f32 %v7446_v10, %v7445_v12 }
 0x816   : > { %v7448_v59 = vpop.f32.mrf.mxu0 }
 0x817   : > { %6544 = vst [vmem:[%s13085_s8 + $0xd8] sm:$0xff] %v6512_v19  ;;  %v6481_v56 = vmul.f32 %v8309_v54, %v7447_v1 }
 0x818   : > { %v7449_v41 = vpop.f32.mrf.mxu0 }
 0x819   : > { %v6513_v3 = vadd.f32 %v6481_v56, %v14310_v11  ;;  %v7450_v60 = vadd.f32 %v7449_v41, %v7448_v59 }
 0x81a   : > { %v7451_v8 = vpop.f32.mrf.mxu0 }
 0x81b   : > { %6545 = vst [vmem:[%s13085_s8 + $0xe0] sm:$0xff] %v6513_v3  ;;  %v6482_v33 = vmul.f32 %v8311_v61, %v7450_v60 }
 0x81c   : > { %v7452_v29 = vpop.f32.mrf.mxu0 }
 0x81d   : > { %v6514_v38 = vadd.f32 %v6482_v33, %v14311_v13  ;;  %v7453_v50 = vadd.f32 %v7452_v29, %v7451_v8 }
 0x81e   : > { %v7454_v47 = vpop.f32.mrf.mxu0 }
 0x81f   : > { %6546 = vst [vmem:[%s13085_s8 + $0xe8] sm:$0xff] %v6514_v38  ;;  %v6483_v31 = vmul.f32 %v8313_v9, %v7453_v50 }
 0x820   : > { %v7455_v53 = vpop.f32.mrf.mxu0 }
 0x821   : > { %v6515_v42 = vadd.f32 %v6483_v31, %v14312_v6  ;;  %v7456_v25 = vadd.f32 %v7455_v53, %v7454_v47 }
 0x823   : > { %6547 = vst [vmem:[%s13085_s8 + $0xf0] sm:$0xff] %v6515_v42  ;;  %v6484_v48 = vmul.f32 %v8315_v46, %v7456_v25 }
 0x825   : > { %v6516_v23 = vadd.f32 %v6484_v48, %v14313_v21 }
 0x827   : > { %6548 = vst [vmem:[%s13085_s8 + $0xf8] sm:$0xff] %v6516_v23 }
 0x828   : > { %8546 = shalt.err (!%p8543_p6)
}
 0x829   : > { %s8547_s23 = scalar_lea.hbm %s13223_s12, 4096  ;;  %s8551_s9 = scalar_lea.hbm %s13277_s7, 8192 }
 0x82a   : > { %p8548_p5 = scmp.ne.s32.totalorder %s13223_s12, %s8547_s23  ;;  %p8552_p9 = scmp.lt.s32.totalorder %s13223_s12, %s13277_s7 }
 0x82b   : > { %p8553_p11 = scmp.lt.s32.totalorder %s8551_s9, %s8547_s23 }
 0x82c   : > { %p8549_p1 = pnand %p8548_p5, %p14314_p13 }
 0x82d   : > { %p8554_p10 = por %p8553_p11, %p8552_p9 }
 0x82e   : > { %p8550_p3 = pneg %p8549_p1 }
 0x830   : > { %p8555_p12 = pnand %p8554_p10, %p8550_p3 }
 0x832   : > { %8558 = shalt.err (!%p8555_p12)
}
 0x833   : > { %s8625_s10 = smov 128   ;;  %s8626_s14 = smov 8  }
 0x834   : > { %7563 = dma.vmem_to_hbm [thread:$0]  (%p14314_p13), %s13225_s29, 4096, %s13223_s12, %s6550_s17, %s8625_s10, %s8625_s10, %s8626_s14  }
 0x835 PF: > { %s6578_s13 = sand.u32 1, %s8597_s24   ;;  %p14315_p0 = scmp.ne.s32.totalorder %s13537_s20, 0 }
 0x836   : > { %p14316_p2 = scmp.ge.s32.totalorder %s8609_s27, 2  ;;  %s6579_s30 = scalar_lea.sflag [#allocation4], %s6578_s13 }
 0x838   : > { %p7589_p4 = pnand %p14316_p2, %p14315_p0 }
 0x83a   : > { %p7590_p8 = pneg %p7589_p4 }
 0x83c   : > { %8592 = dma.done.wait (%p7590_p8), %s6579_s30, 4096  }
 0x83d   : > { %8594 = vsyncadd (%p7590_p8), %s6579_s30, 4294963200  ;;  %p23_p7 = scmp.ge.s32.totalorder %s8770_s11, 4   ;;  %s14317_s24 = smov %s8601_s25 }
 0x83e   : > { %s14318_s25 = smov %s8605_s26  ;;  %s14319_s26 = smov %s8781_s16 }
 0x83f   : > { %s14320_s27 = smov %s8770_s11  ;;  %25 = sbr.rel (!%p23_p7) target bundleno = 10 (0xa), region = 117 }
 0x844   :  { %6584 = vsyncpa [#allocation3], 1 }
 0x845   :  { %6586 = vsyncpa [#allocation3 + $0x1], 1 }
 0x846   :  { %6587 = vsyncpa [#allocation6], 1 }
 0x847   :  { %6588 = vsyncpa [#allocation9], 1 }
 0x848   :  { %6589 = vsyncpa [#allocation12], 1 }
 0x849   :  { %6590 = vsyncpa [#allocation4], 1 }
 0x84a   :  { %6592 = vsyncpa [#allocation4 + $0x1], 1 }

</bundles_post_ra>
